<compile_context>
chip_gen: v7x
topology: tpu7x:2x2x1
jax: 0.10.0
libtpu: 0.0.40
codegen_flags: <defaults>
</compile_context>

<pallas_src>
import functools
import math

import jax
import jax.numpy as jnp
from jax.experimental import pallas as pl
from jax.experimental.pallas import tpu as pltpu

EPS = 1e-5
_NEG_INF = -1e30

# (in_channels, squeeze_channels, expand_channels) for Fire2..Fire9
_FIRE_CHANNELS = [
    (96, 16, 64), (128, 16, 64), (128, 32, 128), (256, 32, 128),
    (256, 48, 192), (384, 48, 192), (384, 64, 256), (512, 64, 256),
]
_FIRE_NAMES = ["Fire2", "Fire3", "Fire4", "Fire5",
               "Fire6", "Fire7", "Fire8", "Fire9"]
# 2x2 maxpool after conv1, Fire4 and Fire8 (Fire9 feeds the head directly).
_POOL_AFTER_FIRE = (False, False, True, False, False, False, True, False)


def _round_up(x, m):
    return ((x + m - 1) // m) * m


# -----------------------------------------------------------------------------
# In-kernel helpers (pure value ops -- everything stays in vregs / spilled VMEM)
# -----------------------------------------------------------------------------
def _maxpool2x2(a, H, W):
    """2x2 / stride-2 max pool of a row-major (H*W, C) value.

    Uses only contiguous static slices + elementwise maxima (robust lowering).
    """
    Hh, Wh = H // 2, W // 2
    pieces = []
    for yy in range(Hh):
        r0 = a[(2 * yy) * W:(2 * yy + 1) * W, :]        # (W, C) row y = 2*yy
        r1 = a[(2 * yy + 1) * W:(2 * yy + 2) * W, :]    # (W, C) row y = 2*yy+1
        vm = jnp.maximum(r0, r1)                        # vertical max
        for xx in range(Wh):                            # horizontal max
            pieces.append(jnp.maximum(vm[2 * xx:2 * xx + 1, :],
                                      vm[2 * xx + 1:2 * xx + 2, :]))
    return jnp.concatenate(pieces, axis=0)              # (Hh*Wh, C)


def _conv3x3_taps(sq_bf16, w9_ref, H, W):
    """3x3 same-padding conv of a (H*W, Sq) bf16 value as 9 shifted matmuls."""
    HW = H * W
    Sq = sq_bf16.shape[-1]
    Ex = w9_ref.shape[-1]
    P = W + 1                                           # zero rows above/below
    zeros = jnp.zeros((P, Sq), jnp.bfloat16)
    padded = jnp.concatenate([zeros, sq_bf16, zeros], axis=0)   # (HW + 2P, Sq)
    # width-wrap masks (computed once, reused by the 6 edge taps)
    col = jax.lax.broadcasted_iota(jnp.int32, (HW, Sq), 0) % W
    mask_l = col >= 1                                   # left neighbour exists
    mask_r = col <= W - 2                               # right neighbour exists
    zero_tap = jnp.zeros((HW, Sq), jnp.bfloat16)
    acc = jnp.zeros((HW, Ex), jnp.float32)
    for dy in range(3):
        for dx in range(3):
            off = (dy - 1) * W + (dx - 1)
            tap = padded[P + off:P + off + HW, :]       # bf16, no per-tap cast
            if dx == 0:
                tap = jnp.where(mask_l, tap, zero_tap)
            elif dx == 2:
                tap = jnp.where(mask_r, tap, zero_tap)
            acc = acc + jnp.dot(tap, w9_ref[dy * 3 + dx],
                                preferred_element_type=jnp.float32)
    return acc                                          # (HW, Ex) f32


def _fire(x_bf16, wsq_ref, bsq_ref, we1_ref, we3_ref, bex_ref, H, W):
    """Fused Fire module: squeeze -> (expand1x1 | expand3x3) -> concat -> ReLU."""
    # squeeze 1x1 (BN scale folded into weight) + shift + ReLU, cast to bf16 once
    sq = jnp.dot(x_bf16, wsq_ref[...], preferred_element_type=jnp.float32)
    sq = jnp.maximum(sq + bsq_ref[...], 0.0).astype(jnp.bfloat16)   # (HW, Sq)
    # split expand weights: two accumulators, no structural-zero matmul columns
    acc1 = jnp.dot(sq, we1_ref[...], preferred_element_type=jnp.float32)
    acc3 = _conv3x3_taps(sq, we3_ref, H, W)
    y = jnp.concatenate([acc1, acc3], axis=1) + bex_ref[...]
    return jnp.maximum(y, 0.0)                          # (HW, 2*Ex) f32


# -----------------------------------------------------------------------------
# The single fused kernel (one grid step == whole network for one image)
# -----------------------------------------------------------------------------
def _squeezenet_kernel(*refs, H0, W0, n_fire, pool_after):
    x_ref = refs[0]
    w1_ref, b1_ref = refs[1], refs[2]
    pos = 3
    fire_refs = []
    for _ in range(n_fire):
        fire_refs.append(refs[pos:pos + 5])
        pos += 5
    w2_ref, b2_ref = refs[pos], refs[pos + 1]
    o_ref = refs[pos + 2]

    # conv1: pre-im2col'd input -> one matmul + folded-BN shift + ReLU
    a = jnp.dot(x_ref[0], w1_ref[...], preferred_element_type=jnp.float32)
    a = jnp.maximum(a + b1_ref[...], 0.0)               # (H0*W0, 128) f32
    H, W = H0, W0
    a = _maxpool2x2(a, H, W)
    H, W = H // 2, W // 2
    a = a.astype(jnp.bfloat16)

    y = a
    for i in range(n_fire):
        wsq, bsq, we1, we3, bex = fire_refs[i]
        y = _fire(a, wsq, bsq, we1, we3, bex, H, W)
        if pool_after[i]:
            y = _maxpool2x2(y, H, W)
            H, W = H // 2, W // 2
        a = y.astype(jnp.bfloat16)

    # TODO(synk): F.dropout(x, 0.5) (training=True default) skipped -> identity.

    # head: global average pool -> 1x1 conv (conv2) -> log-softmax
    gap = jnp.sum(y, axis=0, keepdims=True) * (1.0 / (H * W))       # (1, 512)
    logits = jnp.dot(gap.astype(jnp.bfloat16), w2_ref[...],
                     preferred_element_type=jnp.float32) + b2_ref[...]
    m = jnp.max(logits, axis=1, keepdims=True)
    lse = jnp.log(jnp.sum(jnp.exp(logits - m), axis=1, keepdims=True)) + m
    o_ref[0] = logits - lse                             # padded lanes ~ -1e30


def _const_index_map(ndim):
    return lambda n: (0,) * ndim


# -----------------------------------------------------------------------------
# Wrapper: conv1 im2col (tiny, once) + one fused pallas_call
# -----------------------------------------------------------------------------
@functools.partial(jax.jit, static_argnums=(2,))
def squeezenet_forward(weights, x_nchw, n_classes):
    n, cin, h, w = x_nchw.shape
    assert h % 8 == 0 and w % 8 == 0, "spatial size must survive three 2x2 pools"

    # im2col for conv1 (3x3, pad 1) in NHWC-flat layout, K padded lane-dense
    x = jnp.transpose(x_nchw, (0, 2, 3, 1))                         # (N,H,W,Cin)
    xp = jnp.pad(x, ((0, 0), (1, 1), (1, 1), (0, 0)))
    taps = [xp[:, dy:dy + h, dx:dx + w, :] for dy in range(3) for dx in range(3)]
    xi = jnp.concatenate(taps, axis=-1).reshape(n, h * w, 9 * cin)
    k1 = weights[0].shape[0]
    xi = jnp.pad(xi, ((0, 0), (0, 0), (0, k1 - 9 * cin))).astype(jnp.bfloat16)

    nc_pad = weights[-2].shape[-1]
    hw0 = h * w

    in_specs = [pl.BlockSpec((1, hw0, k1), lambda i: (i, 0, 0))]
    for wgt in weights:
        in_specs.append(pl.BlockSpec(wgt.shape, _const_index_map(wgt.ndim)))

    out = pl.pallas_call(
        functools.partial(_squeezenet_kernel, H0=h, W0=w,
                          n_fire=len(_FIRE_CHANNELS),
                          pool_after=_POOL_AFTER_FIRE),
        out_shape=jax.ShapeDtypeStruct((n, 1, nc_pad), jnp.float32),
        grid_spec=pltpu.PrefetchScalarGridSpec(
            num_scalar_prefetch=0,
            grid=(n,),
            in_specs=in_specs,
            out_specs=pl.BlockSpec((1, 1, nc_pad), lambda i: (i, 0, 0)),
        ),
        compiler_params=pltpu.CompilerParams(
            dimension_semantics=("parallel",)),
    )(xi, *weights)
    return out[:, 0, :n_classes]


# -----------------------------------------------------------------------------
# Parameter initialization (deterministic, mirrors the module's __init__)
# -----------------------------------------------------------------------------
def _conv_params(key, cout, cin, k):
    n = k * k * cin
    std = math.sqrt(2.0 / n)
    kw, kb = jax.random.split(key)
    wgt = std * jax.random.normal(kw, (cout, cin, k, k), jnp.float32)
    bound = 1.0 / math.sqrt(n)
    b = jax.random.uniform(kb, (cout,), jnp.float32, -bound, bound)
    return wgt, b


def _bn_params(c):
    return (jnp.ones((c,), jnp.float32),    # gamma
            jnp.zeros((c,), jnp.float32),   # beta
            jnp.zeros((c,), jnp.float32),   # running mean
            jnp.ones((c,), jnp.float32))    # running var


def init_squeezenet(key, input_channel, n_classes):
    keys = iter(jax.random.split(key, 64))
    p = {"conv1": (*_conv_params(next(keys), 96, input_channel, 3), _bn_params(96))}

    def fire(in_c, sq, ex):
        return {
            "squeeze":   (*_conv_params(next(keys), sq, in_c, 1), _bn_params(sq)),
            "expand1x1": (*_conv_params(next(keys), ex, sq, 1), _bn_params(ex)),
            "expand3x3": (*_conv_params(next(keys), ex, sq, 3), _bn_params(ex)),
        }

    for name, (in_c, sq, ex) in zip(_FIRE_NAMES, _FIRE_CHANNELS):
        p[name] = fire(in_c, sq, ex)
    p["conv2"] = _conv_params(next(keys), n_classes, 512, 1)
    return p


# -----------------------------------------------------------------------------
# One-time packing: fold eval-mode BN into weights/shifts, transpose, cast bf16.
# -----------------------------------------------------------------------------
def _fold_scale_shift(bias, bn):
    gamma, beta, mean, var = bn
    s = gamma / jnp.sqrt(var + EPS)
    shift = (bias - mean) * s + beta
    return s, shift


def pack_squeezenet(raw, input_channel, n_classes):
    weights = []

    # conv1: im2col weight (K1, 128), scale folded, padded out channels 96->128
    w, b, bn = raw["conv1"]
    cout, cin = w.shape[0], w.shape[1]
    k_raw = 9 * cin
    k1 = _round_up(max(k_raw, 128), 128)
    cout_pad = 128
    wk = jnp.transpose(w, (2, 3, 1, 0)).reshape(k_raw, cout)   # K = (ky*3+kx)*cin+c
    s, shift = _fold_scale_shift(b, bn)
    wk = wk * s[None, :]
    wk = jnp.pad(wk, ((0, k1 - k_raw), (0, cout_pad - cout)))
    shift = jnp.pad(shift, (0, cout_pad - cout))
    weights += [wk.astype(jnp.bfloat16),
                shift.reshape(1, cout_pad).astype(jnp.float32)]

    # Fire modules (Fire2 input padded 96->128; later fires are already dense)
    in_pads = [cout_pad] + [2 * ex for (_, _, ex) in _FIRE_CHANNELS[:-1]]
    for name, (in_c, sq_c, ex_c), cin_pad in zip(_FIRE_NAMES, _FIRE_CHANNELS, in_pads):
        fp = raw[name]
        ws, bs, bns = fp["squeeze"]
        s, shift = _fold_scale_shift(bs, bns)
        wsq = ws.reshape(sq_c, in_c).T * s[None, :]
        wsq = jnp.pad(wsq, ((0, cin_pad - in_c), (0, 0)))
        weights += [wsq.astype(jnp.bfloat16),
                    shift.reshape(1, sq_c).astype(jnp.float32)]

        w1, b1, bn1 = fp["expand1x1"]
        s1, sh1 = _fold_scale_shift(b1, bn1)
        we1 = w1.reshape(ex_c, sq_c).T * s1[None, :]

        w3, b3, bn3 = fp["expand3x3"]
        s3, sh3 = _fold_scale_shift(b3, bn3)
        we3 = jnp.transpose(w3, (2, 3, 1, 0)).reshape(9, sq_c, ex_c) * s3[None, None, :]

        bex = jnp.concatenate([sh1, sh3]).reshape(1, 2 * ex_c)     # [1x1 | 3x3]
        weights += [we1.astype(jnp.bfloat16), we3.astype(jnp.bfloat16),
                    bex.astype(jnp.float32)]

    # conv2 classifier, padded to 128 lanes; padded biases -> -1e30 so the
    # padded classes never contribute to the log-softmax.
    w2, b2 = raw["conv2"]
    nc_pad = _round_up(max(n_classes, 128), 128)
    w2m = jnp.pad(w2.reshape(n_classes, 512).T, ((0, 0), (0, nc_pad - n_classes)))
    b2m = jnp.pad(b2, (0, nc_pad - n_classes), constant_values=_NEG_INF)
    weights += [w2m.astype(jnp.bfloat16),
                b2m.reshape(1, nc_pad).astype(jnp.float32)]
    return weights


# -----------------------------------------------------------------------------
if __name__ == "__main__":
    key = jax.random.PRNGKey(0)
    k_param, k_x = jax.random.split(key)

    input_channel, n_classes = 3, 10
    raw_params = init_squeezenet(k_param, input_channel, n_classes)
    weights = pack_squeezenet(raw_params, input_channel, n_classes)

    # PyTorch-convention NCHW input: batch=2, channels=3, spatial=16x16
    x = jax.random.normal(k_x, (2, input_channel, 16, 16), jnp.float32)

    out = squeezenet_forward(weights, x, n_classes)
    out = jax.block_until_ready(out)

    assert out.shape == (2, n_classes)
    assert bool(jnp.all(jnp.isfinite(out)))
    # log-softmax rows should sum to ~1 in probability space
    assert bool(jnp.allclose(jnp.sum(jnp.exp(out), axis=1), 1.0, atol=1e-4))
    print("KERNEL_OK")
</pallas_src>

<mosaic_0001>
module attributes {stable_mosaic.version = 11 : i64} {
  func.func @_squeezenet_kernel(%arg0: i32, %arg1: memref<1x256x128xbf16, #tpu.memory_space<vmem>>, %arg2: memref<128x128xbf16, #tpu.memory_space<vmem>>, %arg3: memref<1x128xf32, #tpu.memory_space<vmem>>, %arg4: memref<128x16xbf16, #tpu.memory_space<vmem>>, %arg5: memref<1x16xf32, #tpu.memory_space<vmem>>, %arg6: memref<16x64xbf16, #tpu.memory_space<vmem>>, %arg7: memref<9x16x64xbf16, #tpu.memory_space<vmem>>, %arg8: memref<1x128xf32, #tpu.memory_space<vmem>>, %arg9: memref<128x16xbf16, #tpu.memory_space<vmem>>, %arg10: memref<1x16xf32, #tpu.memory_space<vmem>>, %arg11: memref<16x64xbf16, #tpu.memory_space<vmem>>, %arg12: memref<9x16x64xbf16, #tpu.memory_space<vmem>>, %arg13: memref<1x128xf32, #tpu.memory_space<vmem>>, %arg14: memref<128x32xbf16, #tpu.memory_space<vmem>>, %arg15: memref<1x32xf32, #tpu.memory_space<vmem>>, %arg16: memref<32x128xbf16, #tpu.memory_space<vmem>>, %arg17: memref<9x32x128xbf16, #tpu.memory_space<vmem>>, %arg18: memref<1x256xf32, #tpu.memory_space<vmem>>, %arg19: memref<256x32xbf16, #tpu.memory_space<vmem>>, %arg20: memref<1x32xf32, #tpu.memory_space<vmem>>, %arg21: memref<32x128xbf16, #tpu.memory_space<vmem>>, %arg22: memref<9x32x128xbf16, #tpu.memory_space<vmem>>, %arg23: memref<1x256xf32, #tpu.memory_space<vmem>>, %arg24: memref<256x48xbf16, #tpu.memory_space<vmem>>, %arg25: memref<1x48xf32, #tpu.memory_space<vmem>>, %arg26: memref<48x192xbf16, #tpu.memory_space<vmem>>, %arg27: memref<9x48x192xbf16, #tpu.memory_space<vmem>>, %arg28: memref<1x384xf32, #tpu.memory_space<vmem>>, %arg29: memref<384x48xbf16, #tpu.memory_space<vmem>>, %arg30: memref<1x48xf32, #tpu.memory_space<vmem>>, %arg31: memref<48x192xbf16, #tpu.memory_space<vmem>>, %arg32: memref<9x48x192xbf16, #tpu.memory_space<vmem>>, %arg33: memref<1x384xf32, #tpu.memory_space<vmem>>, %arg34: memref<384x64xbf16, #tpu.memory_space<vmem>>, %arg35: memref<1x64xf32, #tpu.memory_space<vmem>>, %arg36: memref<64x256xbf16, #tpu.memory_space<vmem>>, %arg37: memref<9x64x256xbf16, #tpu.memory_space<vmem>>, %arg38: memref<1x512xf32, #tpu.memory_space<vmem>>, %arg39: memref<512x64xbf16, #tpu.memory_space<vmem>>, %arg40: memref<1x64xf32, #tpu.memory_space<vmem>>, %arg41: memref<64x256xbf16, #tpu.memory_space<vmem>>, %arg42: memref<9x64x256xbf16, #tpu.memory_space<vmem>>, %arg43: memref<1x512xf32, #tpu.memory_space<vmem>>, %arg44: memref<512x128xbf16, #tpu.memory_space<vmem>>, %arg45: memref<1x128xf32, #tpu.memory_space<vmem>>, %arg46: memref<1x1x128xf32, #tpu.memory_space<vmem>>) attributes {dimension_semantics = [#tpu.dimension_semantics<parallel>], iteration_bounds = array<i64: 2>, scalar_prefetch = 0 : i64, scratch_operands = 0 : i64, tpu.core_type = #tpu.core_type<tc>, window_params = [{transform_indices = @transform_0, window_bounds = array<i64: 1, 256, 128>}, {pipeline_mode = #tpu.pipeline_mode<synchronous>, transform_indices = @transform_1, window_bounds = array<i64: 128, 128>}, {pipeline_mode = #tpu.pipeline_mode<synchronous>, transform_indices = @transform_2, window_bounds = array<i64: 1, 128>}, {pipeline_mode = #tpu.pipeline_mode<synchronous>, transform_indices = @transform_3, window_bounds = array<i64: 128, 16>}, {pipeline_mode = #tpu.pipeline_mode<synchronous>, transform_indices = @transform_4, window_bounds = array<i64: 1, 16>}, {pipeline_mode = #tpu.pipeline_mode<synchronous>, transform_indices = @transform_5, window_bounds = array<i64: 16, 64>}, {pipeline_mode = #tpu.pipeline_mode<synchronous>, transform_indices = @transform_6, window_bounds = array<i64: 9, 16, 64>}, {pipeline_mode = #tpu.pipeline_mode<synchronous>, transform_indices = @transform_7, window_bounds = array<i64: 1, 128>}, {pipeline_mode = #tpu.pipeline_mode<synchronous>, transform_indices = @transform_8, window_bounds = array<i64: 128, 16>}, {pipeline_mode = #tpu.pipeline_mode<synchronous>, transform_indices = @transform_9, window_bounds = array<i64: 1, 16>}, {pipeline_mode = #tpu.pipeline_mode<synchronous>, transform_indices = @transform_10, window_bounds = array<i64: 16, 64>}, {pipeline_mode = #tpu.pipeline_mode<synchronous>, transform_indices = @transform_11, window_bounds = array<i64: 9, 16, 64>}, {pipeline_mode = #tpu.pipeline_mode<synchronous>, transform_indices = @transform_12, window_bounds = array<i64: 1, 128>}, {pipeline_mode = #tpu.pipeline_mode<synchronous>, transform_indices = @transform_13, window_bounds = array<i64: 128, 32>}, {pipeline_mode = #tpu.pipeline_mode<synchronous>, transform_indices = @transform_14, window_bounds = array<i64: 1, 32>}, {pipeline_mode = #tpu.pipeline_mode<synchronous>, transform_indices = @transform_15, window_bounds = array<i64: 32, 128>}, {pipeline_mode = #tpu.pipeline_mode<synchronous>, transform_indices = @transform_16, window_bounds = array<i64: 9, 32, 128>}, {pipeline_mode = #tpu.pipeline_mode<synchronous>, transform_indices = @transform_17, window_bounds = array<i64: 1, 256>}, {pipeline_mode = #tpu.pipeline_mode<synchronous>, transform_indices = @transform_18, window_bounds = array<i64: 256, 32>}, {pipeline_mode = #tpu.pipeline_mode<synchronous>, transform_indices = @transform_19, window_bounds = array<i64: 1, 32>}, {pipeline_mode = #tpu.pipeline_mode<synchronous>, transform_indices = @transform_20, window_bounds = array<i64: 32, 128>}, {pipeline_mode = #tpu.pipeline_mode<synchronous>, transform_indices = @transform_21, window_bounds = array<i64: 9, 32, 128>}, {pipeline_mode = #tpu.pipeline_mode<synchronous>, transform_indices = @transform_22, window_bounds = array<i64: 1, 256>}, {pipeline_mode = #tpu.pipeline_mode<synchronous>, transform_indices = @transform_23, window_bounds = array<i64: 256, 48>}, {pipeline_mode = #tpu.pipeline_mode<synchronous>, transform_indices = @transform_24, window_bounds = array<i64: 1, 48>}, {pipeline_mode = #tpu.pipeline_mode<synchronous>, transform_indices = @transform_25, window_bounds = array<i64: 48, 192>}, {pipeline_mode = #tpu.pipeline_mode<synchronous>, transform_indices = @transform_26, window_bounds = array<i64: 9, 48, 192>}, {pipeline_mode = #tpu.pipeline_mode<synchronous>, transform_indices = @transform_27, window_bounds = array<i64: 1, 384>}, {pipeline_mode = #tpu.pipeline_mode<synchronous>, transform_indices = @transform_28, window_bounds = array<i64: 384, 48>}, {pipeline_mode = #tpu.pipeline_mode<synchronous>, transform_indices = @transform_29, window_bounds = array<i64: 1, 48>}, {pipeline_mode = #tpu.pipeline_mode<synchronous>, transform_indices = @transform_30, window_bounds = array<i64: 48, 192>}, {pipeline_mode = #tpu.pipeline_mode<synchronous>, transform_indices = @transform_31, window_bounds = array<i64: 9, 48, 192>}, {pipeline_mode = #tpu.pipeline_mode<synchronous>, transform_indices = @transform_32, window_bounds = array<i64: 1, 384>}, {pipeline_mode = #tpu.pipeline_mode<synchronous>, transform_indices = @transform_33, window_bounds = array<i64: 384, 64>}, {pipeline_mode = #tpu.pipeline_mode<synchronous>, transform_indices = @transform_34, window_bounds = array<i64: 1, 64>}, {pipeline_mode = #tpu.pipeline_mode<synchronous>, transform_indices = @transform_35, window_bounds = array<i64: 64, 256>}, {pipeline_mode = #tpu.pipeline_mode<synchronous>, transform_indices = @transform_36, window_bounds = array<i64: 9, 64, 256>}, {pipeline_mode = #tpu.pipeline_mode<synchronous>, transform_indices = @transform_37, window_bounds = array<i64: 1, 512>}, {pipeline_mode = #tpu.pipeline_mode<synchronous>, transform_indices = @transform_38, window_bounds = array<i64: 512, 64>}, {pipeline_mode = #tpu.pipeline_mode<synchronous>, transform_indices = @transform_39, window_bounds = array<i64: 1, 64>}, {pipeline_mode = #tpu.pipeline_mode<synchronous>, transform_indices = @transform_40, window_bounds = array<i64: 64, 256>}, {pipeline_mode = #tpu.pipeline_mode<synchronous>, transform_indices = @transform_41, window_bounds = array<i64: 9, 64, 256>}, {pipeline_mode = #tpu.pipeline_mode<synchronous>, transform_indices = @transform_42, window_bounds = array<i64: 1, 512>}, {pipeline_mode = #tpu.pipeline_mode<synchronous>, transform_indices = @transform_43, window_bounds = array<i64: 512, 128>}, {pipeline_mode = #tpu.pipeline_mode<synchronous>, transform_indices = @transform_44, window_bounds = array<i64: 1, 128>}, {transform_indices = @transform_45, window_bounds = array<i64: 1, 1, 128>}]} {
    %c0 = arith.constant 0 : index
    %c0_0 = arith.constant 0 : index
    %c0_1 = arith.constant 0 : index
    %0 = vector.load %arg1[%c0, %c0_0, %c0_1] : memref<1x256x128xbf16, #tpu.memory_space<vmem>>, vector<1x256x128xbf16>
    %1 = vector.shape_cast %0 : vector<1x256x128xbf16> to vector<256x128xbf16>
    %c0_2 = arith.constant 0 : index
    %c0_3 = arith.constant 0 : index
    %2 = vector.load %arg2[%c0_2, %c0_3] : memref<128x128xbf16, #tpu.memory_space<vmem>>, vector<128x128xbf16>
    %cst = arith.constant dense<0.000000e+00> : vector<256x128xf32>
    %3 = tpu.matmul %1, %2, %cst {dimension_numbers = #tpu.dot_dimension_numbers<[1], [0], [0], [1], [0, 0, 1, 1], [], []>} : vector<256x128xbf16>, vector<128x128xbf16>, vector<256x128xf32> -> vector<256x128xf32>
    %c0_4 = arith.constant 0 : index
    %c0_5 = arith.constant 0 : index
    %4 = vector.load %arg3[%c0_4, %c0_5] : memref<1x128xf32, #tpu.memory_space<vmem>>, vector<1x128xf32>
    %5 = vector.broadcast %4 : vector<1x128xf32> to vector<256x128xf32>
    %6 = arith.addf %3, %5 : vector<256x128xf32>
    %cst_6 = arith.constant 0.000000e+00 : f32
    %7 = vector.broadcast %cst_6 : f32 to vector<256x128xf32>
    %8 = arith.maximumf %6, %7 : vector<256x128xf32>
    %9 = vector.extract_strided_slice %8 {offsets = [0, 0], sizes = [16, 128], strides = [1, 1]} : vector<256x128xf32> to vector<16x128xf32>
    %10 = vector.extract_strided_slice %8 {offsets = [16, 0], sizes = [16, 128], strides = [1, 1]} : vector<256x128xf32> to vector<16x128xf32>
    %11 = arith.maximumf %9, %10 : vector<16x128xf32>
    %12 = vector.extract_strided_slice %11 {offsets = [0, 0], sizes = [1, 128], strides = [1, 1]} : vector<16x128xf32> to vector<1x128xf32>
    %13 = vector.extract_strided_slice %11 {offsets = [1, 0], sizes = [1, 128], strides = [1, 1]} : vector<16x128xf32> to vector<1x128xf32>
    %14 = arith.maximumf %12, %13 : vector<1x128xf32>
    %15 = vector.extract_strided_slice %11 {offsets = [2, 0], sizes = [1, 128], strides = [1, 1]} : vector<16x128xf32> to vector<1x128xf32>
    %16 = vector.extract_strided_slice %11 {offsets = [3, 0], sizes = [1, 128], strides = [1, 1]} : vector<16x128xf32> to vector<1x128xf32>
    %17 = arith.maximumf %15, %16 : vector<1x128xf32>
    %18 = vector.extract_strided_slice %11 {offsets = [4, 0], sizes = [1, 128], strides = [1, 1]} : vector<16x128xf32> to vector<1x128xf32>
    %19 = vector.extract_strided_slice %11 {offsets = [5, 0], sizes = [1, 128], strides = [1, 1]} : vector<16x128xf32> to vector<1x128xf32>
    %20 = arith.maximumf %18, %19 : vector<1x128xf32>
    %21 = vector.extract_strided_slice %11 {offsets = [6, 0], sizes = [1, 128], strides = [1, 1]} : vector<16x128xf32> to vector<1x128xf32>
    %22 = vector.extract_strided_slice %11 {offsets = [7, 0], sizes = [1, 128], strides = [1, 1]} : vector<16x128xf32> to vector<1x128xf32>
    %23 = arith.maximumf %21, %22 : vector<1x128xf32>
    %24 = vector.extract_strided_slice %11 {offsets = [8, 0], sizes = [1, 128], strides = [1, 1]} : vector<16x128xf32> to vector<1x128xf32>
    %25 = vector.extract_strided_slice %11 {offsets = [9, 0], sizes = [1, 128], strides = [1, 1]} : vector<16x128xf32> to vector<1x128xf32>
    %26 = arith.maximumf %24, %25 : vector<1x128xf32>
    %27 = vector.extract_strided_slice %11 {offsets = [10, 0], sizes = [1, 128], strides = [1, 1]} : vector<16x128xf32> to vector<1x128xf32>
    %28 = vector.extract_strided_slice %11 {offsets = [11, 0], sizes = [1, 128], strides = [1, 1]} : vector<16x128xf32> to vector<1x128xf32>
    %29 = arith.maximumf %27, %28 : vector<1x128xf32>
    %30 = vector.extract_strided_slice %11 {offsets = [12, 0], sizes = [1, 128], strides = [1, 1]} : vector<16x128xf32> to vector<1x128xf32>
    %31 = vector.extract_strided_slice %11 {offsets = [13, 0], sizes = [1, 128], strides = [1, 1]} : vector<16x128xf32> to vector<1x128xf32>
    %32 = arith.maximumf %30, %31 : vector<1x128xf32>
    %33 = vector.extract_strided_slice %11 {offsets = [14, 0], sizes = [1, 128], strides = [1, 1]} : vector<16x128xf32> to vector<1x128xf32>
    %34 = vector.extract_strided_slice %11 {offsets = [15, 0], sizes = [1, 128], strides = [1, 1]} : vector<16x128xf32> to vector<1x128xf32>
    %35 = arith.maximumf %33, %34 : vector<1x128xf32>
    %36 = vector.extract_strided_slice %8 {offsets = [32, 0], sizes = [16, 128], strides = [1, 1]} : vector<256x128xf32> to vector<16x128xf32>
    %37 = vector.extract_strided_slice %8 {offsets = [48, 0], sizes = [16, 128], strides = [1, 1]} : vector<256x128xf32> to vector<16x128xf32>
    %38 = arith.maximumf %36, %37 : vector<16x128xf32>
    %39 = vector.extract_strided_slice %38 {offsets = [0, 0], sizes = [1, 128], strides = [1, 1]} : vector<16x128xf32> to vector<1x128xf32>
    %40 = vector.extract_strided_slice %38 {offsets = [1, 0], sizes = [1, 128], strides = [1, 1]} : vector<16x128xf32> to vector<1x128xf32>
    %41 = arith.maximumf %39, %40 : vector<1x128xf32>
    %42 = vector.extract_strided_slice %38 {offsets = [2, 0], sizes = [1, 128], strides = [1, 1]} : vector<16x128xf32> to vector<1x128xf32>
    %43 = vector.extract_strided_slice %38 {offsets = [3, 0], sizes = [1, 128], strides = [1, 1]} : vector<16x128xf32> to vector<1x128xf32>
    %44 = arith.maximumf %42, %43 : vector<1x128xf32>
    %45 = vector.extract_strided_slice %38 {offsets = [4, 0], sizes = [1, 128], strides = [1, 1]} : vector<16x128xf32> to vector<1x128xf32>
    %46 = vector.extract_strided_slice %38 {offsets = [5, 0], sizes = [1, 128], strides = [1, 1]} : vector<16x128xf32> to vector<1x128xf32>
    %47 = arith.maximumf %45, %46 : vector<1x128xf32>
    %48 = vector.extract_strided_slice %38 {offsets = [6, 0], sizes = [1, 128], strides = [1, 1]} : vector<16x128xf32> to vector<1x128xf32>
    %49 = vector.extract_strided_slice %38 {offsets = [7, 0], sizes = [1, 128], strides = [1, 1]} : vector<16x128xf32> to vector<1x128xf32>
    %50 = arith.maximumf %48, %49 : vector<1x128xf32>
    %51 = vector.extract_strided_slice %38 {offsets = [8, 0], sizes = [1, 128], strides = [1, 1]} : vector<16x128xf32> to vector<1x128xf32>
    %52 = vector.extract_strided_slice %38 {offsets = [9, 0], sizes = [1, 128], strides = [1, 1]} : vector<16x128xf32> to vector<1x128xf32>
    %53 = arith.maximumf %51, %52 : vector<1x128xf32>
    %54 = vector.extract_strided_slice %38 {offsets = [10, 0], sizes = [1, 128], strides = [1, 1]} : vector<16x128xf32> to vector<1x128xf32>
    %55 = vector.extract_strided_slice %38 {offsets = [11, 0], sizes = [1, 128], strides = [1, 1]} : vector<16x128xf32> to vector<1x128xf32>
    %56 = arith.maximumf %54, %55 : vector<1x128xf32>
    %57 = vector.extract_strided_slice %38 {offsets = [12, 0], sizes = [1, 128], strides = [1, 1]} : vector<16x128xf32> to vector<1x128xf32>
    %58 = vector.extract_strided_slice %38 {offsets = [13, 0], sizes = [1, 128], strides = [1, 1]} : vector<16x128xf32> to vector<1x128xf32>
    %59 = arith.maximumf %57, %58 : vector<1x128xf32>
    %60 = vector.extract_strided_slice %38 {offsets = [14, 0], sizes = [1, 128], strides = [1, 1]} : vector<16x128xf32> to vector<1x128xf32>
    %61 = vector.extract_strided_slice %38 {offsets = [15, 0], sizes = [1, 128], strides = [1, 1]} : vector<16x128xf32> to vector<1x128xf32>
    %62 = arith.maximumf %60, %61 : vector<1x128xf32>
    %63 = vector.extract_strided_slice %8 {offsets = [64, 0], sizes = [16, 128], strides = [1, 1]} : vector<256x128xf32> to vector<16x128xf32>
    %64 = vector.extract_strided_slice %8 {offsets = [80, 0], sizes = [16, 128], strides = [1, 1]} : vector<256x128xf32> to vector<16x128xf32>
    %65 = arith.maximumf %63, %64 : vector<16x128xf32>
    %66 = vector.extract_strided_slice %65 {offsets = [0, 0], sizes = [1, 128], strides = [1, 1]} : vector<16x128xf32> to vector<1x128xf32>
    %67 = vector.extract_strided_slice %65 {offsets = [1, 0], sizes = [1, 128], strides = [1, 1]} : vector<16x128xf32> to vector<1x128xf32>
    %68 = arith.maximumf %66, %67 : vector<1x128xf32>
    %69 = vector.extract_strided_slice %65 {offsets = [2, 0], sizes = [1, 128], strides = [1, 1]} : vector<16x128xf32> to vector<1x128xf32>
    %70 = vector.extract_strided_slice %65 {offsets = [3, 0], sizes = [1, 128], strides = [1, 1]} : vector<16x128xf32> to vector<1x128xf32>
    %71 = arith.maximumf %69, %70 : vector<1x128xf32>
    %72 = vector.extract_strided_slice %65 {offsets = [4, 0], sizes = [1, 128], strides = [1, 1]} : vector<16x128xf32> to vector<1x128xf32>
    %73 = vector.extract_strided_slice %65 {offsets = [5, 0], sizes = [1, 128], strides = [1, 1]} : vector<16x128xf32> to vector<1x128xf32>
    %74 = arith.maximumf %72, %73 : vector<1x128xf32>
    %75 = vector.extract_strided_slice %65 {offsets = [6, 0], sizes = [1, 128], strides = [1, 1]} : vector<16x128xf32> to vector<1x128xf32>
    %76 = vector.extract_strided_slice %65 {offsets = [7, 0], sizes = [1, 128], strides = [1, 1]} : vector<16x128xf32> to vector<1x128xf32>
    %77 = arith.maximumf %75, %76 : vector<1x128xf32>
    %78 = vector.extract_strided_slice %65 {offsets = [8, 0], sizes = [1, 128], strides = [1, 1]} : vector<16x128xf32> to vector<1x128xf32>
    %79 = vector.extract_strided_slice %65 {offsets = [9, 0], sizes = [1, 128], strides = [1, 1]} : vector<16x128xf32> to vector<1x128xf32>
    %80 = arith.maximumf %78, %79 : vector<1x128xf32>
    %81 = vector.extract_strided_slice %65 {offsets = [10, 0], sizes = [1, 128], strides = [1, 1]} : vector<16x128xf32> to vector<1x128xf32>
    %82 = vector.extract_strided_slice %65 {offsets = [11, 0], sizes = [1, 128], strides = [1, 1]} : vector<16x128xf32> to vector<1x128xf32>
    %83 = arith.maximumf %81, %82 : vector<1x128xf32>
    %84 = vector.extract_strided_slice %65 {offsets = [12, 0], sizes = [1, 128], strides = [1, 1]} : vector<16x128xf32> to vector<1x128xf32>
    %85 = vector.extract_strided_slice %65 {offsets = [13, 0], sizes = [1, 128], strides = [1, 1]} : vector<16x128xf32> to vector<1x128xf32>
    %86 = arith.maximumf %84, %85 : vector<1x128xf32>
    %87 = vector.extract_strided_slice %65 {offsets = [14, 0], sizes = [1, 128], strides = [1, 1]} : vector<16x128xf32> to vector<1x128xf32>
    %88 = vector.extract_strided_slice %65 {offsets = [15, 0], sizes = [1, 128], strides = [1, 1]} : vector<16x128xf32> to vector<1x128xf32>
    %89 = arith.maximumf %87, %88 : vector<1x128xf32>
    %90 = vector.extract_strided_slice %8 {offsets = [96, 0], sizes = [16, 128], strides = [1, 1]} : vector<256x128xf32> to vector<16x128xf32>
    %91 = vector.extract_strided_slice %8 {offsets = [112, 0], sizes = [16, 128], strides = [1, 1]} : vector<256x128xf32> to vector<16x128xf32>
    %92 = arith.maximumf %90, %91 : vector<16x128xf32>
    %93 = vector.extract_strided_slice %92 {offsets = [0, 0], sizes = [1, 128], strides = [1, 1]} : vector<16x128xf32> to vector<1x128xf32>
    %94 = vector.extract_strided_slice %92 {offsets = [1, 0], sizes = [1, 128], strides = [1, 1]} : vector<16x128xf32> to vector<1x128xf32>
    %95 = arith.maximumf %93, %94 : vector<1x128xf32>
    %96 = vector.extract_strided_slice %92 {offsets = [2, 0], sizes = [1, 128], strides = [1, 1]} : vector<16x128xf32> to vector<1x128xf32>
    %97 = vector.extract_strided_slice %92 {offsets = [3, 0], sizes = [1, 128], strides = [1, 1]} : vector<16x128xf32> to vector<1x128xf32>
    %98 = arith.maximumf %96, %97 : vector<1x128xf32>
    %99 = vector.extract_strided_slice %92 {offsets = [4, 0], sizes = [1, 128], strides = [1, 1]} : vector<16x128xf32> to vector<1x128xf32>
    %100 = vector.extract_strided_slice %92 {offsets = [5, 0], sizes = [1, 128], strides = [1, 1]} : vector<16x128xf32> to vector<1x128xf32>
    %101 = arith.maximumf %99, %100 : vector<1x128xf32>
    %102 = vector.extract_strided_slice %92 {offsets = [6, 0], sizes = [1, 128], strides = [1, 1]} : vector<16x128xf32> to vector<1x128xf32>
    %103 = vector.extract_strided_slice %92 {offsets = [7, 0], sizes = [1, 128], strides = [1, 1]} : vector<16x128xf32> to vector<1x128xf32>
    %104 = arith.maximumf %102, %103 : vector<1x128xf32>
    %105 = vector.extract_strided_slice %92 {offsets = [8, 0], sizes = [1, 128], strides = [1, 1]} : vector<16x128xf32> to vector<1x128xf32>
    %106 = vector.extract_strided_slice %92 {offsets = [9, 0], sizes = [1, 128], strides = [1, 1]} : vector<16x128xf32> to vector<1x128xf32>
    %107 = arith.maximumf %105, %106 : vector<1x128xf32>
    %108 = vector.extract_strided_slice %92 {offsets = [10, 0], sizes = [1, 128], strides = [1, 1]} : vector<16x128xf32> to vector<1x128xf32>
    %109 = vector.extract_strided_slice %92 {offsets = [11, 0], sizes = [1, 128], strides = [1, 1]} : vector<16x128xf32> to vector<1x128xf32>
    %110 = arith.maximumf %108, %109 : vector<1x128xf32>
    %111 = vector.extract_strided_slice %92 {offsets = [12, 0], sizes = [1, 128], strides = [1, 1]} : vector<16x128xf32> to vector<1x128xf32>
    %112 = vector.extract_strided_slice %92 {offsets = [13, 0], sizes = [1, 128], strides = [1, 1]} : vector<16x128xf32> to vector<1x128xf32>
    %113 = arith.maximumf %111, %112 : vector<1x128xf32>
    %114 = vector.extract_strided_slice %92 {offsets = [14, 0], sizes = [1, 128], strides = [1, 1]} : vector<16x128xf32> to vector<1x128xf32>
    %115 = vector.extract_strided_slice %92 {offsets = [15, 0], sizes = [1, 128], strides = [1, 1]} : vector<16x128xf32> to vector<1x128xf32>
    %116 = arith.maximumf %114, %115 : vector<1x128xf32>
    %117 = vector.extract_strided_slice %8 {offsets = [128, 0], sizes = [16, 128], strides = [1, 1]} : vector<256x128xf32> to vector<16x128xf32>
    %118 = vector.extract_strided_slice %8 {offsets = [144, 0], sizes = [16, 128], strides = [1, 1]} : vector<256x128xf32> to vector<16x128xf32>
    %119 = arith.maximumf %117, %118 : vector<16x128xf32>
    %120 = vector.extract_strided_slice %119 {offsets = [0, 0], sizes = [1, 128], strides = [1, 1]} : vector<16x128xf32> to vector<1x128xf32>
    %121 = vector.extract_strided_slice %119 {offsets = [1, 0], sizes = [1, 128], strides = [1, 1]} : vector<16x128xf32> to vector<1x128xf32>
    %122 = arith.maximumf %120, %121 : vector<1x128xf32>
    %123 = vector.extract_strided_slice %119 {offsets = [2, 0], sizes = [1, 128], strides = [1, 1]} : vector<16x128xf32> to vector<1x128xf32>
    %124 = vector.extract_strided_slice %119 {offsets = [3, 0], sizes = [1, 128], strides = [1, 1]} : vector<16x128xf32> to vector<1x128xf32>
    %125 = arith.maximumf %123, %124 : vector<1x128xf32>
    %126 = vector.extract_strided_slice %119 {offsets = [4, 0], sizes = [1, 128], strides = [1, 1]} : vector<16x128xf32> to vector<1x128xf32>
    %127 = vector.extract_strided_slice %119 {offsets = [5, 0], sizes = [1, 128], strides = [1, 1]} : vector<16x128xf32> to vector<1x128xf32>
    %128 = arith.maximumf %126, %127 : vector<1x128xf32>
    %129 = vector.extract_strided_slice %119 {offsets = [6, 0], sizes = [1, 128], strides = [1, 1]} : vector<16x128xf32> to vector<1x128xf32>
    %130 = vector.extract_strided_slice %119 {offsets = [7, 0], sizes = [1, 128], strides = [1, 1]} : vector<16x128xf32> to vector<1x128xf32>
    %131 = arith.maximumf %129, %130 : vector<1x128xf32>
    %132 = vector.extract_strided_slice %119 {offsets = [8, 0], sizes = [1, 128], strides = [1, 1]} : vector<16x128xf32> to vector<1x128xf32>
    %133 = vector.extract_strided_slice %119 {offsets = [9, 0], sizes = [1, 128], strides = [1, 1]} : vector<16x128xf32> to vector<1x128xf32>
    %134 = arith.maximumf %132, %133 : vector<1x128xf32>
    %135 = vector.extract_strided_slice %119 {offsets = [10, 0], sizes = [1, 128], strides = [1, 1]} : vector<16x128xf32> to vector<1x128xf32>
    %136 = vector.extract_strided_slice %119 {offsets = [11, 0], sizes = [1, 128], strides = [1, 1]} : vector<16x128xf32> to vector<1x128xf32>
    %137 = arith.maximumf %135, %136 : vector<1x128xf32>
    %138 = vector.extract_strided_slice %119 {offsets = [12, 0], sizes = [1, 128], strides = [1, 1]} : vector<16x128xf32> to vector<1x128xf32>
    %139 = vector.extract_strided_slice %119 {offsets = [13, 0], sizes = [1, 128], strides = [1, 1]} : vector<16x128xf32> to vector<1x128xf32>
    %140 = arith.maximumf %138, %139 : vector<1x128xf32>
    %141 = vector.extract_strided_slice %119 {offsets = [14, 0], sizes = [1, 128], strides = [1, 1]} : vector<16x128xf32> to vector<1x128xf32>
    %142 = vector.extract_strided_slice %119 {offsets = [15, 0], sizes = [1, 128], strides = [1, 1]} : vector<16x128xf32> to vector<1x128xf32>
    %143 = arith.maximumf %141, %142 : vector<1x128xf32>
    %144 = vector.extract_strided_slice %8 {offsets = [160, 0], sizes = [16, 128], strides = [1, 1]} : vector<256x128xf32> to vector<16x128xf32>
    %145 = vector.extract_strided_slice %8 {offsets = [176, 0], sizes = [16, 128], strides = [1, 1]} : vector<256x128xf32> to vector<16x128xf32>
    %146 = arith.maximumf %144, %145 : vector<16x128xf32>
    %147 = vector.extract_strided_slice %146 {offsets = [0, 0], sizes = [1, 128], strides = [1, 1]} : vector<16x128xf32> to vector<1x128xf32>
    %148 = vector.extract_strided_slice %146 {offsets = [1, 0], sizes = [1, 128], strides = [1, 1]} : vector<16x128xf32> to vector<1x128xf32>
    %149 = arith.maximumf %147, %148 : vector<1x128xf32>
    %150 = vector.extract_strided_slice %146 {offsets = [2, 0], sizes = [1, 128], strides = [1, 1]} : vector<16x128xf32> to vector<1x128xf32>
    %151 = vector.extract_strided_slice %146 {offsets = [3, 0], sizes = [1, 128], strides = [1, 1]} : vector<16x128xf32> to vector<1x128xf32>
    %152 = arith.maximumf %150, %151 : vector<1x128xf32>
    %153 = vector.extract_strided_slice %146 {offsets = [4, 0], sizes = [1, 128], strides = [1, 1]} : vector<16x128xf32> to vector<1x128xf32>
    %154 = vector.extract_strided_slice %146 {offsets = [5, 0], sizes = [1, 128], strides = [1, 1]} : vector<16x128xf32> to vector<1x128xf32>
    %155 = arith.maximumf %153, %154 : vector<1x128xf32>
    %156 = vector.extract_strided_slice %146 {offsets = [6, 0], sizes = [1, 128], strides = [1, 1]} : vector<16x128xf32> to vector<1x128xf32>
    %157 = vector.extract_strided_slice %146 {offsets = [7, 0], sizes = [1, 128], strides = [1, 1]} : vector<16x128xf32> to vector<1x128xf32>
    %158 = arith.maximumf %156, %157 : vector<1x128xf32>
    %159 = vector.extract_strided_slice %146 {offsets = [8, 0], sizes = [1, 128], strides = [1, 1]} : vector<16x128xf32> to vector<1x128xf32>
    %160 = vector.extract_strided_slice %146 {offsets = [9, 0], sizes = [1, 128], strides = [1, 1]} : vector<16x128xf32> to vector<1x128xf32>
    %161 = arith.maximumf %159, %160 : vector<1x128xf32>
    %162 = vector.extract_strided_slice %146 {offsets = [10, 0], sizes = [1, 128], strides = [1, 1]} : vector<16x128xf32> to vector<1x128xf32>
    %163 = vector.extract_strided_slice %146 {offsets = [11, 0], sizes = [1, 128], strides = [1, 1]} : vector<16x128xf32> to vector<1x128xf32>
    %164 = arith.maximumf %162, %163 : vector<1x128xf32>
    %165 = vector.extract_strided_slice %146 {offsets = [12, 0], sizes = [1, 128], strides = [1, 1]} : vector<16x128xf32> to vector<1x128xf32>
    %166 = vector.extract_strided_slice %146 {offsets = [13, 0], sizes = [1, 128], strides = [1, 1]} : vector<16x128xf32> to vector<1x128xf32>
    %167 = arith.maximumf %165, %166 : vector<1x128xf32>
    %168 = vector.extract_strided_slice %146 {offsets = [14, 0], sizes = [1, 128], strides = [1, 1]} : vector<16x128xf32> to vector<1x128xf32>
    %169 = vector.extract_strided_slice %146 {offsets = [15, 0], sizes = [1, 128], strides = [1, 1]} : vector<16x128xf32> to vector<1x128xf32>
    %170 = arith.maximumf %168, %169 : vector<1x128xf32>
    %171 = vector.extract_strided_slice %8 {offsets = [192, 0], sizes = [16, 128], strides = [1, 1]} : vector<256x128xf32> to vector<16x128xf32>
    %172 = vector.extract_strided_slice %8 {offsets = [208, 0], sizes = [16, 128], strides = [1, 1]} : vector<256x128xf32> to vector<16x128xf32>
    %173 = arith.maximumf %171, %172 : vector<16x128xf32>
    %174 = vector.extract_strided_slice %173 {offsets = [0, 0], sizes = [1, 128], strides = [1, 1]} : vector<16x128xf32> to vector<1x128xf32>
    %175 = vector.extract_strided_slice %173 {offsets = [1, 0], sizes = [1, 128], strides = [1, 1]} : vector<16x128xf32> to vector<1x128xf32>
    %176 = arith.maximumf %174, %175 : vector<1x128xf32>
    %177 = vector.extract_strided_slice %173 {offsets = [2, 0], sizes = [1, 128], strides = [1, 1]} : vector<16x128xf32> to vector<1x128xf32>
    %178 = vector.extract_strided_slice %173 {offsets = [3, 0], sizes = [1, 128], strides = [1, 1]} : vector<16x128xf32> to vector<1x128xf32>
    %179 = arith.maximumf %177, %178 : vector<1x128xf32>
    %180 = vector.extract_strided_slice %173 {offsets = [4, 0], sizes = [1, 128], strides = [1, 1]} : vector<16x128xf32> to vector<1x128xf32>
    %181 = vector.extract_strided_slice %173 {offsets = [5, 0], sizes = [1, 128], strides = [1, 1]} : vector<16x128xf32> to vector<1x128xf32>
    %182 = arith.maximumf %180, %181 : vector<1x128xf32>
    %183 = vector.extract_strided_slice %173 {offsets = [6, 0], sizes = [1, 128], strides = [1, 1]} : vector<16x128xf32> to vector<1x128xf32>
    %184 = vector.extract_strided_slice %173 {offsets = [7, 0], sizes = [1, 128], strides = [1, 1]} : vector<16x128xf32> to vector<1x128xf32>
    %185 = arith.maximumf %183, %184 : vector<1x128xf32>
    %186 = vector.extract_strided_slice %173 {offsets = [8, 0], sizes = [1, 128], strides = [1, 1]} : vector<16x128xf32> to vector<1x128xf32>
    %187 = vector.extract_strided_slice %173 {offsets = [9, 0], sizes = [1, 128], strides = [1, 1]} : vector<16x128xf32> to vector<1x128xf32>
    %188 = arith.maximumf %186, %187 : vector<1x128xf32>
    %189 = vector.extract_strided_slice %173 {offsets = [10, 0], sizes = [1, 128], strides = [1, 1]} : vector<16x128xf32> to vector<1x128xf32>
    %190 = vector.extract_strided_slice %173 {offsets = [11, 0], sizes = [1, 128], strides = [1, 1]} : vector<16x128xf32> to vector<1x128xf32>
    %191 = arith.maximumf %189, %190 : vector<1x128xf32>
    %192 = vector.extract_strided_slice %173 {offsets = [12, 0], sizes = [1, 128], strides = [1, 1]} : vector<16x128xf32> to vector<1x128xf32>
    %193 = vector.extract_strided_slice %173 {offsets = [13, 0], sizes = [1, 128], strides = [1, 1]} : vector<16x128xf32> to vector<1x128xf32>
    %194 = arith.maximumf %192, %193 : vector<1x128xf32>
    %195 = vector.extract_strided_slice %173 {offsets = [14, 0], sizes = [1, 128], strides = [1, 1]} : vector<16x128xf32> to vector<1x128xf32>
    %196 = vector.extract_strided_slice %173 {offsets = [15, 0], sizes = [1, 128], strides = [1, 1]} : vector<16x128xf32> to vector<1x128xf32>
    %197 = arith.maximumf %195, %196 : vector<1x128xf32>
    %198 = vector.extract_strided_slice %8 {offsets = [224, 0], sizes = [16, 128], strides = [1, 1]} : vector<256x128xf32> to vector<16x128xf32>
    %199 = vector.extract_strided_slice %8 {offsets = [240, 0], sizes = [16, 128], strides = [1, 1]} : vector<256x128xf32> to vector<16x128xf32>
    %200 = arith.maximumf %198, %199 : vector<16x128xf32>
    %201 = vector.extract_strided_slice %200 {offsets = [0, 0], sizes = [1, 128], strides = [1, 1]} : vector<16x128xf32> to vector<1x128xf32>
    %202 = vector.extract_strided_slice %200 {offsets = [1, 0], sizes = [1, 128], strides = [1, 1]} : vector<16x128xf32> to vector<1x128xf32>
    %203 = arith.maximumf %201, %202 : vector<1x128xf32>
    %204 = vector.extract_strided_slice %200 {offsets = [2, 0], sizes = [1, 128], strides = [1, 1]} : vector<16x128xf32> to vector<1x128xf32>
    %205 = vector.extract_strided_slice %200 {offsets = [3, 0], sizes = [1, 128], strides = [1, 1]} : vector<16x128xf32> to vector<1x128xf32>
    %206 = arith.maximumf %204, %205 : vector<1x128xf32>
    %207 = vector.extract_strided_slice %200 {offsets = [4, 0], sizes = [1, 128], strides = [1, 1]} : vector<16x128xf32> to vector<1x128xf32>
    %208 = vector.extract_strided_slice %200 {offsets = [5, 0], sizes = [1, 128], strides = [1, 1]} : vector<16x128xf32> to vector<1x128xf32>
    %209 = arith.maximumf %207, %208 : vector<1x128xf32>
    %210 = vector.extract_strided_slice %200 {offsets = [6, 0], sizes = [1, 128], strides = [1, 1]} : vector<16x128xf32> to vector<1x128xf32>
    %211 = vector.extract_strided_slice %200 {offsets = [7, 0], sizes = [1, 128], strides = [1, 1]} : vector<16x128xf32> to vector<1x128xf32>
    %212 = arith.maximumf %210, %211 : vector<1x128xf32>
    %213 = vector.extract_strided_slice %200 {offsets = [8, 0], sizes = [1, 128], strides = [1, 1]} : vector<16x128xf32> to vector<1x128xf32>
    %214 = vector.extract_strided_slice %200 {offsets = [9, 0], sizes = [1, 128], strides = [1, 1]} : vector<16x128xf32> to vector<1x128xf32>
    %215 = arith.maximumf %213, %214 : vector<1x128xf32>
    %216 = vector.extract_strided_slice %200 {offsets = [10, 0], sizes = [1, 128], strides = [1, 1]} : vector<16x128xf32> to vector<1x128xf32>
    %217 = vector.extract_strided_slice %200 {offsets = [11, 0], sizes = [1, 128], strides = [1, 1]} : vector<16x128xf32> to vector<1x128xf32>
    %218 = arith.maximumf %216, %217 : vector<1x128xf32>
    %219 = vector.extract_strided_slice %200 {offsets = [12, 0], sizes = [1, 128], strides = [1, 1]} : vector<16x128xf32> to vector<1x128xf32>
    %220 = vector.extract_strided_slice %200 {offsets = [13, 0], sizes = [1, 128], strides = [1, 1]} : vector<16x128xf32> to vector<1x128xf32>
    %221 = arith.maximumf %219, %220 : vector<1x128xf32>
    %222 = vector.extract_strided_slice %200 {offsets = [14, 0], sizes = [1, 128], strides = [1, 1]} : vector<16x128xf32> to vector<1x128xf32>
    %223 = vector.extract_strided_slice %200 {offsets = [15, 0], sizes = [1, 128], strides = [1, 1]} : vector<16x128xf32> to vector<1x128xf32>
    %224 = arith.maximumf %222, %223 : vector<1x128xf32>
    %225 = tpu.concatenate %14, %17, %20, %23, %26, %29, %32, %35, %41, %44, %47, %50, %53, %56, %59, %62 in 0 : vector<1x128xf32>, vector<1x128xf32>, vector<1x128xf32>, vector<1x128xf32>, vector<1x128xf32>, vector<1x128xf32>, vector<1x128xf32>, vector<1x128xf32>, vector<1x128xf32>, vector<1x128xf32>, vector<1x128xf32>, vector<1x128xf32>, vector<1x128xf32>, vector<1x128xf32>, vector<1x128xf32>, vector<1x128xf32> -> vector<16x128xf32>
    %226 = tpu.concatenate %68, %71, %74, %77, %80, %83, %86, %89, %95, %98, %101, %104, %107, %110, %113, %116 in 0 : vector<1x128xf32>, vector<1x128xf32>, vector<1x128xf32>, vector<1x128xf32>, vector<1x128xf32>, vector<1x128xf32>, vector<1x128xf32>, vector<1x128xf32>, vector<1x128xf32>, vector<1x128xf32>, vector<1x128xf32>, vector<1x128xf32>, vector<1x128xf32>, vector<1x128xf32>, vector<1x128xf32>, vector<1x128xf32> -> vector<16x128xf32>
    %227 = tpu.concatenate %122, %125, %128, %131, %134, %137, %140, %143, %149, %152, %155, %158, %161, %164, %167, %170 in 0 : vector<1x128xf32>, vector<1x128xf32>, vector<1x128xf32>, vector<1x128xf32>, vector<1x128xf32>, vector<1x128xf32>, vector<1x128xf32>, vector<1x128xf32>, vector<1x128xf32>, vector<1x128xf32>, vector<1x128xf32>, vector<1x128xf32>, vector<1x128xf32>, vector<1x128xf32>, vector<1x128xf32>, vector<1x128xf32> -> vector<16x128xf32>
    %228 = tpu.concatenate %176, %179, %182, %185, %188, %191, %194, %197, %203, %206, %209, %212, %215, %218, %221, %224 in 0 : vector<1x128xf32>, vector<1x128xf32>, vector<1x128xf32>, vector<1x128xf32>, vector<1x128xf32>, vector<1x128xf32>, vector<1x128xf32>, vector<1x128xf32>, vector<1x128xf32>, vector<1x128xf32>, vector<1x128xf32>, vector<1x128xf32>, vector<1x128xf32>, vector<1x128xf32>, vector<1x128xf32>, vector<1x128xf32> -> vector<16x128xf32>
    %229 = tpu.concatenate %225, %226, %227, %228 in 0 : vector<16x128xf32>, vector<16x128xf32>, vector<16x128xf32>, vector<16x128xf32> -> vector<64x128xf32>
    %230 = arith.truncf %229 : vector<64x128xf32> to vector<64x128xbf16>
    %c0_7 = arith.constant 0 : index
    %c0_8 = arith.constant 0 : index
    %231 = vector.load %arg4[%c0_7, %c0_8] : memref<128x16xbf16, #tpu.memory_space<vmem>>, vector<128x16xbf16>
    %cst_9 = arith.constant dense<0.000000e+00> : vector<64x16xf32>
    %232 = tpu.matmul %230, %231, %cst_9 {dimension_numbers = #tpu.dot_dimension_numbers<[1], [0], [0], [1], [0, 0, 1, 1], [], []>} : vector<64x128xbf16>, vector<128x16xbf16>, vector<64x16xf32> -> vector<64x16xf32>
    %c0_10 = arith.constant 0 : index
    %c0_11 = arith.constant 0 : index
    %233 = vector.load %arg5[%c0_10, %c0_11] : memref<1x16xf32, #tpu.memory_space<vmem>>, vector<1x16xf32>
    %234 = vector.broadcast %233 : vector<1x16xf32> to vector<64x16xf32>
    %235 = arith.addf %232, %234 : vector<64x16xf32>
    %cst_12 = arith.constant 0.000000e+00 : f32
    %236 = vector.broadcast %cst_12 : f32 to vector<64x16xf32>
    %237 = arith.maximumf %235, %236 : vector<64x16xf32>
    %238 = arith.truncf %237 : vector<64x16xf32> to vector<64x16xbf16>
    %c0_13 = arith.constant 0 : index
    %c0_14 = arith.constant 0 : index
    %239 = vector.load %arg6[%c0_13, %c0_14] : memref<16x64xbf16, #tpu.memory_space<vmem>>, vector<16x64xbf16>
    %cst_15 = arith.constant dense<0.000000e+00> : vector<64x64xf32>
    %240 = tpu.matmul %238, %239, %cst_15 {dimension_numbers = #tpu.dot_dimension_numbers<[1], [0], [0], [1], [0, 0, 1, 1], [], []>} : vector<64x16xbf16>, vector<16x64xbf16>, vector<64x64xf32> -> vector<64x64xf32>
    %cst_16 = arith.constant 0.000000e+00 : bf16
    %241 = vector.broadcast %cst_16 : bf16 to vector<9x16xbf16>
    %242 = tpu.concatenate %241, %238, %241 in 0 : vector<9x16xbf16>, vector<64x16xbf16>, vector<9x16xbf16> -> vector<82x16xbf16>
    %243 = tpu.iota {dimensions = array<i32: 0>} : vector<64x16xi32>
    %c8_i32 = arith.constant 8 : i32
    %c0_i32 = arith.constant 0 : i32
    %244 = arith.cmpi eq, %c8_i32, %c0_i32 : i32
    %c1_i32 = arith.constant 1 : i32
    %245 = arith.select %244, %c1_i32, %c8_i32 : i32
    %246 = vector.broadcast %245 : i32 to vector<64x16xi32>
    %247 = arith.remsi %243, %246 : vector<64x16xi32>
    %c0_i32_17 = arith.constant 0 : i32
    %248 = vector.broadcast %c0_i32_17 : i32 to vector<64x16xi32>
    %249 = arith.cmpi ne, %247, %248 : vector<64x16xi32>
    %c0_i32_18 = arith.constant 0 : i32
    %250 = vector.broadcast %c0_i32_18 : i32 to vector<64x16xi32>
    %251 = arith.cmpi slt, %247, %250 : vector<64x16xi32>
    %c0_i32_19 = arith.constant 0 : i32
    %252 = arith.cmpi slt, %245, %c0_i32_19 : i32
    %253 = vector.broadcast %252 : i1 to vector<64x16xi1>
    %254 = vector.broadcast %253 : vector<64x16xi1> to vector<64x16xi1>
    %255 = arith.xori %251, %254 : vector<64x16xi1>
    %256 = arith.andi %255, %249 : vector<64x16xi1>
    %257 = vector.broadcast %245 : i32 to vector<64x16xi32>
    %258 = arith.addi %247, %257 : vector<64x16xi32>
    %259 = arith.select %256, %258, %247 : vector<64x16xi1>, vector<64x16xi32>
    %c1_i32_20 = arith.constant 1 : i32
    %260 = vector.broadcast %c1_i32_20 : i32 to vector<64x16xi32>
    %261 = arith.cmpi sge, %259, %260 : vector<64x16xi32>
    %c6_i32 = arith.constant 6 : i32
    %262 = vector.broadcast %c6_i32 : i32 to vector<64x16xi32>
    %263 = arith.cmpi sle, %259, %262 : vector<64x16xi32>
    %cst_21 = arith.constant 0.000000e+00 : bf16
    %264 = vector.broadcast %cst_21 : bf16 to vector<64x16xbf16>
    %cst_22 = arith.constant 0.000000e+00 : f32
    %265 = vector.broadcast %cst_22 : f32 to vector<64x64xf32>
    %266 = vector.extract_strided_slice %242 {offsets = [0, 0], sizes = [64, 16], strides = [1, 1]} : vector<82x16xbf16> to vector<64x16xbf16>
    %267 = arith.select %261, %266, %264 : vector<64x16xi1>, vector<64x16xbf16>
    %c0_23 = arith.constant 0 : index
    %c0_24 = arith.constant 0 : index
    %c0_25 = arith.constant 0 : index
    %268 = vector.load %arg7[%c0_23, %c0_24, %c0_25] : memref<9x16x64xbf16, #tpu.memory_space<vmem>>, vector<1x16x64xbf16>
    %269 = vector.shape_cast %268 : vector<1x16x64xbf16> to vector<16x64xbf16>
    %cst_26 = arith.constant dense<0.000000e+00> : vector<64x64xf32>
    %270 = tpu.matmul %267, %269, %cst_26 {dimension_numbers = #tpu.dot_dimension_numbers<[1], [0], [0], [1], [0, 0, 1, 1], [], []>} : vector<64x16xbf16>, vector<16x64xbf16>, vector<64x64xf32> -> vector<64x64xf32>
    %271 = arith.addf %265, %270 : vector<64x64xf32>
    %272 = vector.extract_strided_slice %242 {offsets = [1, 0], sizes = [64, 16], strides = [1, 1]} : vector<82x16xbf16> to vector<64x16xbf16>
    %c1 = arith.constant 1 : index
    %c0_27 = arith.constant 0 : index
    %c0_28 = arith.constant 0 : index
    %273 = vector.load %arg7[%c1, %c0_27, %c0_28] : memref<9x16x64xbf16, #tpu.memory_space<vmem>>, vector<1x16x64xbf16>
    %274 = vector.shape_cast %273 : vector<1x16x64xbf16> to vector<16x64xbf16>
    %cst_29 = arith.constant dense<0.000000e+00> : vector<64x64xf32>
    %275 = tpu.matmul %272, %274, %cst_29 {dimension_numbers = #tpu.dot_dimension_numbers<[1], [0], [0], [1], [0, 0, 1, 1], [], []>} : vector<64x16xbf16>, vector<16x64xbf16>, vector<64x64xf32> -> vector<64x64xf32>
    %276 = arith.addf %271, %275 : vector<64x64xf32>
    %277 = vector.extract_strided_slice %242 {offsets = [2, 0], sizes = [64, 16], strides = [1, 1]} : vector<82x16xbf16> to vector<64x16xbf16>
    %278 = arith.select %263, %277, %264 : vector<64x16xi1>, vector<64x16xbf16>
    %c2 = arith.constant 2 : index
    %c0_30 = arith.constant 0 : index
    %c0_31 = arith.constant 0 : index
    %279 = vector.load %arg7[%c2, %c0_30, %c0_31] : memref<9x16x64xbf16, #tpu.memory_space<vmem>>, vector<1x16x64xbf16>
    %280 = vector.shape_cast %279 : vector<1x16x64xbf16> to vector<16x64xbf16>
    %cst_32 = arith.constant dense<0.000000e+00> : vector<64x64xf32>
    %281 = tpu.matmul %278, %280, %cst_32 {dimension_numbers = #tpu.dot_dimension_numbers<[1], [0], [0], [1], [0, 0, 1, 1], [], []>} : vector<64x16xbf16>, vector<16x64xbf16>, vector<64x64xf32> -> vector<64x64xf32>
    %282 = arith.addf %276, %281 : vector<64x64xf32>
    %283 = vector.extract_strided_slice %242 {offsets = [8, 0], sizes = [64, 16], strides = [1, 1]} : vector<82x16xbf16> to vector<64x16xbf16>
    %284 = arith.select %261, %283, %264 : vector<64x16xi1>, vector<64x16xbf16>
    %c3 = arith.constant 3 : index
    %c0_33 = arith.constant 0 : index
    %c0_34 = arith.constant 0 : index
    %285 = vector.load %arg7[%c3, %c0_33, %c0_34] : memref<9x16x64xbf16, #tpu.memory_space<vmem>>, vector<1x16x64xbf16>
    %286 = vector.shape_cast %285 : vector<1x16x64xbf16> to vector<16x64xbf16>
    %cst_35 = arith.constant dense<0.000000e+00> : vector<64x64xf32>
    %287 = tpu.matmul %284, %286, %cst_35 {dimension_numbers = #tpu.dot_dimension_numbers<[1], [0], [0], [1], [0, 0, 1, 1], [], []>} : vector<64x16xbf16>, vector<16x64xbf16>, vector<64x64xf32> -> vector<64x64xf32>
    %288 = arith.addf %282, %287 : vector<64x64xf32>
    %289 = vector.extract_strided_slice %242 {offsets = [9, 0], sizes = [64, 16], strides = [1, 1]} : vector<82x16xbf16> to vector<64x16xbf16>
    %c4 = arith.constant 4 : index
    %c0_36 = arith.constant 0 : index
    %c0_37 = arith.constant 0 : index
    %290 = vector.load %arg7[%c4, %c0_36, %c0_37] : memref<9x16x64xbf16, #tpu.memory_space<vmem>>, vector<1x16x64xbf16>
    %291 = vector.shape_cast %290 : vector<1x16x64xbf16> to vector<16x64xbf16>
    %cst_38 = arith.constant dense<0.000000e+00> : vector<64x64xf32>
    %292 = tpu.matmul %289, %291, %cst_38 {dimension_numbers = #tpu.dot_dimension_numbers<[1], [0], [0], [1], [0, 0, 1, 1], [], []>} : vector<64x16xbf16>, vector<16x64xbf16>, vector<64x64xf32> -> vector<64x64xf32>
    %293 = arith.addf %288, %292 : vector<64x64xf32>
    %294 = vector.extract_strided_slice %242 {offsets = [10, 0], sizes = [64, 16], strides = [1, 1]} : vector<82x16xbf16> to vector<64x16xbf16>
    %295 = arith.select %263, %294, %264 : vector<64x16xi1>, vector<64x16xbf16>
    %c5 = arith.constant 5 : index
    %c0_39 = arith.constant 0 : index
    %c0_40 = arith.constant 0 : index
    %296 = vector.load %arg7[%c5, %c0_39, %c0_40] : memref<9x16x64xbf16, #tpu.memory_space<vmem>>, vector<1x16x64xbf16>
    %297 = vector.shape_cast %296 : vector<1x16x64xbf16> to vector<16x64xbf16>
    %cst_41 = arith.constant dense<0.000000e+00> : vector<64x64xf32>
    %298 = tpu.matmul %295, %297, %cst_41 {dimension_numbers = #tpu.dot_dimension_numbers<[1], [0], [0], [1], [0, 0, 1, 1], [], []>} : vector<64x16xbf16>, vector<16x64xbf16>, vector<64x64xf32> -> vector<64x64xf32>
    %299 = arith.addf %293, %298 : vector<64x64xf32>
    %300 = vector.extract_strided_slice %242 {offsets = [16, 0], sizes = [64, 16], strides = [1, 1]} : vector<82x16xbf16> to vector<64x16xbf16>
    %301 = arith.select %261, %300, %264 : vector<64x16xi1>, vector<64x16xbf16>
    %c6 = arith.constant 6 : index
    %c0_42 = arith.constant 0 : index
    %c0_43 = arith.constant 0 : index
    %302 = vector.load %arg7[%c6, %c0_42, %c0_43] : memref<9x16x64xbf16, #tpu.memory_space<vmem>>, vector<1x16x64xbf16>
    %303 = vector.shape_cast %302 : vector<1x16x64xbf16> to vector<16x64xbf16>
    %cst_44 = arith.constant dense<0.000000e+00> : vector<64x64xf32>
    %304 = tpu.matmul %301, %303, %cst_44 {dimension_numbers = #tpu.dot_dimension_numbers<[1], [0], [0], [1], [0, 0, 1, 1], [], []>} : vector<64x16xbf16>, vector<16x64xbf16>, vector<64x64xf32> -> vector<64x64xf32>
    %305 = arith.addf %299, %304 : vector<64x64xf32>
    %306 = vector.extract_strided_slice %242 {offsets = [17, 0], sizes = [64, 16], strides = [1, 1]} : vector<82x16xbf16> to vector<64x16xbf16>
    %c7 = arith.constant 7 : index
    %c0_45 = arith.constant 0 : index
    %c0_46 = arith.constant 0 : index
    %307 = vector.load %arg7[%c7, %c0_45, %c0_46] : memref<9x16x64xbf16, #tpu.memory_space<vmem>>, vector<1x16x64xbf16>
    %308 = vector.shape_cast %307 : vector<1x16x64xbf16> to vector<16x64xbf16>
    %cst_47 = arith.constant dense<0.000000e+00> : vector<64x64xf32>
    %309 = tpu.matmul %306, %308, %cst_47 {dimension_numbers = #tpu.dot_dimension_numbers<[1], [0], [0], [1], [0, 0, 1, 1], [], []>} : vector<64x16xbf16>, vector<16x64xbf16>, vector<64x64xf32> -> vector<64x64xf32>
    %310 = arith.addf %305, %309 : vector<64x64xf32>
    %311 = vector.extract_strided_slice %242 {offsets = [18, 0], sizes = [64, 16], strides = [1, 1]} : vector<82x16xbf16> to vector<64x16xbf16>
    %312 = arith.select %263, %311, %264 : vector<64x16xi1>, vector<64x16xbf16>
    %c8 = arith.constant 8 : index
    %c0_48 = arith.constant 0 : index
    %c0_49 = arith.constant 0 : index
    %313 = vector.load %arg7[%c8, %c0_48, %c0_49] : memref<9x16x64xbf16, #tpu.memory_space<vmem>>, vector<1x16x64xbf16>
    %314 = vector.shape_cast %313 : vector<1x16x64xbf16> to vector<16x64xbf16>
    %cst_50 = arith.constant dense<0.000000e+00> : vector<64x64xf32>
    %315 = tpu.matmul %312, %314, %cst_50 {dimension_numbers = #tpu.dot_dimension_numbers<[1], [0], [0], [1], [0, 0, 1, 1], [], []>} : vector<64x16xbf16>, vector<16x64xbf16>, vector<64x64xf32> -> vector<64x64xf32>
    %316 = arith.addf %310, %315 : vector<64x64xf32>
    %317 = tpu.concatenate %240, %316 in 1 : vector<64x64xf32>, vector<64x64xf32> -> vector<64x128xf32>
    %c0_51 = arith.constant 0 : index
    %c0_52 = arith.constant 0 : index
    %318 = vector.load %arg8[%c0_51, %c0_52] : memref<1x128xf32, #tpu.memory_space<vmem>>, vector<1x128xf32>
    %319 = vector.broadcast %318 : vector<1x128xf32> to vector<64x128xf32>
    %320 = arith.addf %317, %319 : vector<64x128xf32>
    %cst_53 = arith.constant 0.000000e+00 : f32
    %321 = vector.broadcast %cst_53 : f32 to vector<64x128xf32>
    %322 = arith.maximumf %320, %321 : vector<64x128xf32>
    %323 = arith.truncf %322 : vector<64x128xf32> to vector<64x128xbf16>
    %c0_54 = arith.constant 0 : index
    %c0_55 = arith.constant 0 : index
    %324 = vector.load %arg9[%c0_54, %c0_55] : memref<128x16xbf16, #tpu.memory_space<vmem>>, vector<128x16xbf16>
    %cst_56 = arith.constant dense<0.000000e+00> : vector<64x16xf32>
    %325 = tpu.matmul %323, %324, %cst_56 {dimension_numbers = #tpu.dot_dimension_numbers<[1], [0], [0], [1], [0, 0, 1, 1], [], []>} : vector<64x128xbf16>, vector<128x16xbf16>, vector<64x16xf32> -> vector<64x16xf32>
    %c0_57 = arith.constant 0 : index
    %c0_58 = arith.constant 0 : index
    %326 = vector.load %arg10[%c0_57, %c0_58] : memref<1x16xf32, #tpu.memory_space<vmem>>, vector<1x16xf32>
    %327 = vector.broadcast %326 : vector<1x16xf32> to vector<64x16xf32>
    %328 = arith.addf %325, %327 : vector<64x16xf32>
    %cst_59 = arith.constant 0.000000e+00 : f32
    %329 = vector.broadcast %cst_59 : f32 to vector<64x16xf32>
    %330 = arith.maximumf %328, %329 : vector<64x16xf32>
    %331 = arith.truncf %330 : vector<64x16xf32> to vector<64x16xbf16>
    %c0_60 = arith.constant 0 : index
    %c0_61 = arith.constant 0 : index
    %332 = vector.load %arg11[%c0_60, %c0_61] : memref<16x64xbf16, #tpu.memory_space<vmem>>, vector<16x64xbf16>
    %cst_62 = arith.constant dense<0.000000e+00> : vector<64x64xf32>
    %333 = tpu.matmul %331, %332, %cst_62 {dimension_numbers = #tpu.dot_dimension_numbers<[1], [0], [0], [1], [0, 0, 1, 1], [], []>} : vector<64x16xbf16>, vector<16x64xbf16>, vector<64x64xf32> -> vector<64x64xf32>
    %cst_63 = arith.constant 0.000000e+00 : bf16
    %334 = vector.broadcast %cst_63 : bf16 to vector<9x16xbf16>
    %335 = tpu.concatenate %334, %331, %334 in 0 : vector<9x16xbf16>, vector<64x16xbf16>, vector<9x16xbf16> -> vector<82x16xbf16>
    %336 = tpu.iota {dimensions = array<i32: 0>} : vector<64x16xi32>
    %c8_i32_64 = arith.constant 8 : i32
    %c0_i32_65 = arith.constant 0 : i32
    %337 = arith.cmpi eq, %c8_i32_64, %c0_i32_65 : i32
    %c1_i32_66 = arith.constant 1 : i32
    %338 = arith.select %337, %c1_i32_66, %c8_i32_64 : i32
    %339 = vector.broadcast %338 : i32 to vector<64x16xi32>
    %340 = arith.remsi %336, %339 : vector<64x16xi32>
    %c0_i32_67 = arith.constant 0 : i32
    %341 = vector.broadcast %c0_i32_67 : i32 to vector<64x16xi32>
    %342 = arith.cmpi ne, %340, %341 : vector<64x16xi32>
    %c0_i32_68 = arith.constant 0 : i32
    %343 = vector.broadcast %c0_i32_68 : i32 to vector<64x16xi32>
    %344 = arith.cmpi slt, %340, %343 : vector<64x16xi32>
    %c0_i32_69 = arith.constant 0 : i32
    %345 = arith.cmpi slt, %338, %c0_i32_69 : i32
    %346 = vector.broadcast %345 : i1 to vector<64x16xi1>
    %347 = vector.broadcast %346 : vector<64x16xi1> to vector<64x16xi1>
    %348 = arith.xori %344, %347 : vector<64x16xi1>
    %349 = arith.andi %348, %342 : vector<64x16xi1>
    %350 = vector.broadcast %338 : i32 to vector<64x16xi32>
    %351 = arith.addi %340, %350 : vector<64x16xi32>
    %352 = arith.select %349, %351, %340 : vector<64x16xi1>, vector<64x16xi32>
    %c1_i32_70 = arith.constant 1 : i32
    %353 = vector.broadcast %c1_i32_70 : i32 to vector<64x16xi32>
    %354 = arith.cmpi sge, %352, %353 : vector<64x16xi32>
    %c6_i32_71 = arith.constant 6 : i32
    %355 = vector.broadcast %c6_i32_71 : i32 to vector<64x16xi32>
    %356 = arith.cmpi sle, %352, %355 : vector<64x16xi32>
    %cst_72 = arith.constant 0.000000e+00 : bf16
    %357 = vector.broadcast %cst_72 : bf16 to vector<64x16xbf16>
    %cst_73 = arith.constant 0.000000e+00 : f32
    %358 = vector.broadcast %cst_73 : f32 to vector<64x64xf32>
    %359 = vector.extract_strided_slice %335 {offsets = [0, 0], sizes = [64, 16], strides = [1, 1]} : vector<82x16xbf16> to vector<64x16xbf16>
    %360 = arith.select %354, %359, %357 : vector<64x16xi1>, vector<64x16xbf16>
    %c0_74 = arith.constant 0 : index
    %c0_75 = arith.constant 0 : index
    %c0_76 = arith.constant 0 : index
    %361 = vector.load %arg12[%c0_74, %c0_75, %c0_76] : memref<9x16x64xbf16, #tpu.memory_space<vmem>>, vector<1x16x64xbf16>
    %362 = vector.shape_cast %361 : vector<1x16x64xbf16> to vector<16x64xbf16>
    %cst_77 = arith.constant dense<0.000000e+00> : vector<64x64xf32>
    %363 = tpu.matmul %360, %362, %cst_77 {dimension_numbers = #tpu.dot_dimension_numbers<[1], [0], [0], [1], [0, 0, 1, 1], [], []>} : vector<64x16xbf16>, vector<16x64xbf16>, vector<64x64xf32> -> vector<64x64xf32>
    %364 = arith.addf %358, %363 : vector<64x64xf32>
    %365 = vector.extract_strided_slice %335 {offsets = [1, 0], sizes = [64, 16], strides = [1, 1]} : vector<82x16xbf16> to vector<64x16xbf16>
    %c1_78 = arith.constant 1 : index
    %c0_79 = arith.constant 0 : index
    %c0_80 = arith.constant 0 : index
    %366 = vector.load %arg12[%c1_78, %c0_79, %c0_80] : memref<9x16x64xbf16, #tpu.memory_space<vmem>>, vector<1x16x64xbf16>
    %367 = vector.shape_cast %366 : vector<1x16x64xbf16> to vector<16x64xbf16>
    %cst_81 = arith.constant dense<0.000000e+00> : vector<64x64xf32>
    %368 = tpu.matmul %365, %367, %cst_81 {dimension_numbers = #tpu.dot_dimension_numbers<[1], [0], [0], [1], [0, 0, 1, 1], [], []>} : vector<64x16xbf16>, vector<16x64xbf16>, vector<64x64xf32> -> vector<64x64xf32>
    %369 = arith.addf %364, %368 : vector<64x64xf32>
    %370 = vector.extract_strided_slice %335 {offsets = [2, 0], sizes = [64, 16], strides = [1, 1]} : vector<82x16xbf16> to vector<64x16xbf16>
    %371 = arith.select %356, %370, %357 : vector<64x16xi1>, vector<64x16xbf16>
    %c2_82 = arith.constant 2 : index
    %c0_83 = arith.constant 0 : index
    %c0_84 = arith.constant 0 : index
    %372 = vector.load %arg12[%c2_82, %c0_83, %c0_84] : memref<9x16x64xbf16, #tpu.memory_space<vmem>>, vector<1x16x64xbf16>
    %373 = vector.shape_cast %372 : vector<1x16x64xbf16> to vector<16x64xbf16>
    %cst_85 = arith.constant dense<0.000000e+00> : vector<64x64xf32>
    %374 = tpu.matmul %371, %373, %cst_85 {dimension_numbers = #tpu.dot_dimension_numbers<[1], [0], [0], [1], [0, 0, 1, 1], [], []>} : vector<64x16xbf16>, vector<16x64xbf16>, vector<64x64xf32> -> vector<64x64xf32>
    %375 = arith.addf %369, %374 : vector<64x64xf32>
    %376 = vector.extract_strided_slice %335 {offsets = [8, 0], sizes = [64, 16], strides = [1, 1]} : vector<82x16xbf16> to vector<64x16xbf16>
    %377 = arith.select %354, %376, %357 : vector<64x16xi1>, vector<64x16xbf16>
    %c3_86 = arith.constant 3 : index
    %c0_87 = arith.constant 0 : index
    %c0_88 = arith.constant 0 : index
    %378 = vector.load %arg12[%c3_86, %c0_87, %c0_88] : memref<9x16x64xbf16, #tpu.memory_space<vmem>>, vector<1x16x64xbf16>
    %379 = vector.shape_cast %378 : vector<1x16x64xbf16> to vector<16x64xbf16>
    %cst_89 = arith.constant dense<0.000000e+00> : vector<64x64xf32>
    %380 = tpu.matmul %377, %379, %cst_89 {dimension_numbers = #tpu.dot_dimension_numbers<[1], [0], [0], [1], [0, 0, 1, 1], [], []>} : vector<64x16xbf16>, vector<16x64xbf16>, vector<64x64xf32> -> vector<64x64xf32>
    %381 = arith.addf %375, %380 : vector<64x64xf32>
    %382 = vector.extract_strided_slice %335 {offsets = [9, 0], sizes = [64, 16], strides = [1, 1]} : vector<82x16xbf16> to vector<64x16xbf16>
    %c4_90 = arith.constant 4 : index
    %c0_91 = arith.constant 0 : index
    %c0_92 = arith.constant 0 : index
    %383 = vector.load %arg12[%c4_90, %c0_91, %c0_92] : memref<9x16x64xbf16, #tpu.memory_space<vmem>>, vector<1x16x64xbf16>
    %384 = vector.shape_cast %383 : vector<1x16x64xbf16> to vector<16x64xbf16>
    %cst_93 = arith.constant dense<0.000000e+00> : vector<64x64xf32>
    %385 = tpu.matmul %382, %384, %cst_93 {dimension_numbers = #tpu.dot_dimension_numbers<[1], [0], [0], [1], [0, 0, 1, 1], [], []>} : vector<64x16xbf16>, vector<16x64xbf16>, vector<64x64xf32> -> vector<64x64xf32>
    %386 = arith.addf %381, %385 : vector<64x64xf32>
    %387 = vector.extract_strided_slice %335 {offsets = [10, 0], sizes = [64, 16], strides = [1, 1]} : vector<82x16xbf16> to vector<64x16xbf16>
    %388 = arith.select %356, %387, %357 : vector<64x16xi1>, vector<64x16xbf16>
    %c5_94 = arith.constant 5 : index
    %c0_95 = arith.constant 0 : index
    %c0_96 = arith.constant 0 : index
    %389 = vector.load %arg12[%c5_94, %c0_95, %c0_96] : memref<9x16x64xbf16, #tpu.memory_space<vmem>>, vector<1x16x64xbf16>
    %390 = vector.shape_cast %389 : vector<1x16x64xbf16> to vector<16x64xbf16>
    %cst_97 = arith.constant dense<0.000000e+00> : vector<64x64xf32>
    %391 = tpu.matmul %388, %390, %cst_97 {dimension_numbers = #tpu.dot_dimension_numbers<[1], [0], [0], [1], [0, 0, 1, 1], [], []>} : vector<64x16xbf16>, vector<16x64xbf16>, vector<64x64xf32> -> vector<64x64xf32>
    %392 = arith.addf %386, %391 : vector<64x64xf32>
    %393 = vector.extract_strided_slice %335 {offsets = [16, 0], sizes = [64, 16], strides = [1, 1]} : vector<82x16xbf16> to vector<64x16xbf16>
    %394 = arith.select %354, %393, %357 : vector<64x16xi1>, vector<64x16xbf16>
    %c6_98 = arith.constant 6 : index
    %c0_99 = arith.constant 0 : index
    %c0_100 = arith.constant 0 : index
    %395 = vector.load %arg12[%c6_98, %c0_99, %c0_100] : memref<9x16x64xbf16, #tpu.memory_space<vmem>>, vector<1x16x64xbf16>
    %396 = vector.shape_cast %395 : vector<1x16x64xbf16> to vector<16x64xbf16>
    %cst_101 = arith.constant dense<0.000000e+00> : vector<64x64xf32>
    %397 = tpu.matmul %394, %396, %cst_101 {dimension_numbers = #tpu.dot_dimension_numbers<[1], [0], [0], [1], [0, 0, 1, 1], [], []>} : vector<64x16xbf16>, vector<16x64xbf16>, vector<64x64xf32> -> vector<64x64xf32>
    %398 = arith.addf %392, %397 : vector<64x64xf32>
    %399 = vector.extract_strided_slice %335 {offsets = [17, 0], sizes = [64, 16], strides = [1, 1]} : vector<82x16xbf16> to vector<64x16xbf16>
    %c7_102 = arith.constant 7 : index
    %c0_103 = arith.constant 0 : index
    %c0_104 = arith.constant 0 : index
    %400 = vector.load %arg12[%c7_102, %c0_103, %c0_104] : memref<9x16x64xbf16, #tpu.memory_space<vmem>>, vector<1x16x64xbf16>
    %401 = vector.shape_cast %400 : vector<1x16x64xbf16> to vector<16x64xbf16>
    %cst_105 = arith.constant dense<0.000000e+00> : vector<64x64xf32>
    %402 = tpu.matmul %399, %401, %cst_105 {dimension_numbers = #tpu.dot_dimension_numbers<[1], [0], [0], [1], [0, 0, 1, 1], [], []>} : vector<64x16xbf16>, vector<16x64xbf16>, vector<64x64xf32> -> vector<64x64xf32>
    %403 = arith.addf %398, %402 : vector<64x64xf32>
    %404 = vector.extract_strided_slice %335 {offsets = [18, 0], sizes = [64, 16], strides = [1, 1]} : vector<82x16xbf16> to vector<64x16xbf16>
    %405 = arith.select %356, %404, %357 : vector<64x16xi1>, vector<64x16xbf16>
    %c8_106 = arith.constant 8 : index
    %c0_107 = arith.constant 0 : index
    %c0_108 = arith.constant 0 : index
    %406 = vector.load %arg12[%c8_106, %c0_107, %c0_108] : memref<9x16x64xbf16, #tpu.memory_space<vmem>>, vector<1x16x64xbf16>
    %407 = vector.shape_cast %406 : vector<1x16x64xbf16> to vector<16x64xbf16>
    %cst_109 = arith.constant dense<0.000000e+00> : vector<64x64xf32>
    %408 = tpu.matmul %405, %407, %cst_109 {dimension_numbers = #tpu.dot_dimension_numbers<[1], [0], [0], [1], [0, 0, 1, 1], [], []>} : vector<64x16xbf16>, vector<16x64xbf16>, vector<64x64xf32> -> vector<64x64xf32>
    %409 = arith.addf %403, %408 : vector<64x64xf32>
    %410 = tpu.concatenate %333, %409 in 1 : vector<64x64xf32>, vector<64x64xf32> -> vector<64x128xf32>
    %c0_110 = arith.constant 0 : index
    %c0_111 = arith.constant 0 : index
    %411 = vector.load %arg13[%c0_110, %c0_111] : memref<1x128xf32, #tpu.memory_space<vmem>>, vector<1x128xf32>
    %412 = vector.broadcast %411 : vector<1x128xf32> to vector<64x128xf32>
    %413 = arith.addf %410, %412 : vector<64x128xf32>
    %cst_112 = arith.constant 0.000000e+00 : f32
    %414 = vector.broadcast %cst_112 : f32 to vector<64x128xf32>
    %415 = arith.maximumf %413, %414 : vector<64x128xf32>
    %416 = arith.truncf %415 : vector<64x128xf32> to vector<64x128xbf16>
    %c0_113 = arith.constant 0 : index
    %c0_114 = arith.constant 0 : index
    %417 = vector.load %arg14[%c0_113, %c0_114] : memref<128x32xbf16, #tpu.memory_space<vmem>>, vector<128x32xbf16>
    %cst_115 = arith.constant dense<0.000000e+00> : vector<64x32xf32>
    %418 = tpu.matmul %416, %417, %cst_115 {dimension_numbers = #tpu.dot_dimension_numbers<[1], [0], [0], [1], [0, 0, 1, 1], [], []>} : vector<64x128xbf16>, vector<128x32xbf16>, vector<64x32xf32> -> vector<64x32xf32>
    %c0_116 = arith.constant 0 : index
    %c0_117 = arith.constant 0 : index
    %419 = vector.load %arg15[%c0_116, %c0_117] : memref<1x32xf32, #tpu.memory_space<vmem>>, vector<1x32xf32>
    %420 = vector.broadcast %419 : vector<1x32xf32> to vector<64x32xf32>
    %421 = arith.addf %418, %420 : vector<64x32xf32>
    %cst_118 = arith.constant 0.000000e+00 : f32
    %422 = vector.broadcast %cst_118 : f32 to vector<64x32xf32>
    %423 = arith.maximumf %421, %422 : vector<64x32xf32>
    %424 = arith.truncf %423 : vector<64x32xf32> to vector<64x32xbf16>
    %c0_119 = arith.constant 0 : index
    %c0_120 = arith.constant 0 : index
    %425 = vector.load %arg16[%c0_119, %c0_120] : memref<32x128xbf16, #tpu.memory_space<vmem>>, vector<32x128xbf16>
    %cst_121 = arith.constant dense<0.000000e+00> : vector<64x128xf32>
    %426 = tpu.matmul %424, %425, %cst_121 {dimension_numbers = #tpu.dot_dimension_numbers<[1], [0], [0], [1], [0, 0, 1, 1], [], []>} : vector<64x32xbf16>, vector<32x128xbf16>, vector<64x128xf32> -> vector<64x128xf32>
    %cst_122 = arith.constant 0.000000e+00 : bf16
    %427 = vector.broadcast %cst_122 : bf16 to vector<9x32xbf16>
    %428 = tpu.concatenate %427, %424, %427 in 0 : vector<9x32xbf16>, vector<64x32xbf16>, vector<9x32xbf16> -> vector<82x32xbf16>
    %429 = tpu.iota {dimensions = array<i32: 0>} : vector<64x32xi32>
    %c8_i32_123 = arith.constant 8 : i32
    %c0_i32_124 = arith.constant 0 : i32
    %430 = arith.cmpi eq, %c8_i32_123, %c0_i32_124 : i32
    %c1_i32_125 = arith.constant 1 : i32
    %431 = arith.select %430, %c1_i32_125, %c8_i32_123 : i32
    %432 = vector.broadcast %431 : i32 to vector<64x32xi32>
    %433 = arith.remsi %429, %432 : vector<64x32xi32>
    %c0_i32_126 = arith.constant 0 : i32
    %434 = vector.broadcast %c0_i32_126 : i32 to vector<64x32xi32>
    %435 = arith.cmpi ne, %433, %434 : vector<64x32xi32>
    %c0_i32_127 = arith.constant 0 : i32
    %436 = vector.broadcast %c0_i32_127 : i32 to vector<64x32xi32>
    %437 = arith.cmpi slt, %433, %436 : vector<64x32xi32>
    %c0_i32_128 = arith.constant 0 : i32
    %438 = arith.cmpi slt, %431, %c0_i32_128 : i32
    %439 = vector.broadcast %438 : i1 to vector<64x32xi1>
    %440 = vector.broadcast %439 : vector<64x32xi1> to vector<64x32xi1>
    %441 = arith.xori %437, %440 : vector<64x32xi1>
    %442 = arith.andi %441, %435 : vector<64x32xi1>
    %443 = vector.broadcast %431 : i32 to vector<64x32xi32>
    %444 = arith.addi %433, %443 : vector<64x32xi32>
    %445 = arith.select %442, %444, %433 : vector<64x32xi1>, vector<64x32xi32>
    %c1_i32_129 = arith.constant 1 : i32
    %446 = vector.broadcast %c1_i32_129 : i32 to vector<64x32xi32>
    %447 = arith.cmpi sge, %445, %446 : vector<64x32xi32>
    %c6_i32_130 = arith.constant 6 : i32
    %448 = vector.broadcast %c6_i32_130 : i32 to vector<64x32xi32>
    %449 = arith.cmpi sle, %445, %448 : vector<64x32xi32>
    %cst_131 = arith.constant 0.000000e+00 : bf16
    %450 = vector.broadcast %cst_131 : bf16 to vector<64x32xbf16>
    %cst_132 = arith.constant 0.000000e+00 : f32
    %451 = vector.broadcast %cst_132 : f32 to vector<64x128xf32>
    %452 = vector.extract_strided_slice %428 {offsets = [0, 0], sizes = [64, 32], strides = [1, 1]} : vector<82x32xbf16> to vector<64x32xbf16>
    %453 = arith.select %447, %452, %450 : vector<64x32xi1>, vector<64x32xbf16>
    %c0_133 = arith.constant 0 : index
    %c0_134 = arith.constant 0 : index
    %c0_135 = arith.constant 0 : index
    %454 = vector.load %arg17[%c0_133, %c0_134, %c0_135] : memref<9x32x128xbf16, #tpu.memory_space<vmem>>, vector<1x32x128xbf16>
    %455 = vector.shape_cast %454 : vector<1x32x128xbf16> to vector<32x128xbf16>
    %cst_136 = arith.constant dense<0.000000e+00> : vector<64x128xf32>
    %456 = tpu.matmul %453, %455, %cst_136 {dimension_numbers = #tpu.dot_dimension_numbers<[1], [0], [0], [1], [0, 0, 1, 1], [], []>} : vector<64x32xbf16>, vector<32x128xbf16>, vector<64x128xf32> -> vector<64x128xf32>
    %457 = arith.addf %451, %456 : vector<64x128xf32>
    %458 = vector.extract_strided_slice %428 {offsets = [1, 0], sizes = [64, 32], strides = [1, 1]} : vector<82x32xbf16> to vector<64x32xbf16>
    %c1_137 = arith.constant 1 : index
    %c0_138 = arith.constant 0 : index
    %c0_139 = arith.constant 0 : index
    %459 = vector.load %arg17[%c1_137, %c0_138, %c0_139] : memref<9x32x128xbf16, #tpu.memory_space<vmem>>, vector<1x32x128xbf16>
    %460 = vector.shape_cast %459 : vector<1x32x128xbf16> to vector<32x128xbf16>
    %cst_140 = arith.constant dense<0.000000e+00> : vector<64x128xf32>
    %461 = tpu.matmul %458, %460, %cst_140 {dimension_numbers = #tpu.dot_dimension_numbers<[1], [0], [0], [1], [0, 0, 1, 1], [], []>} : vector<64x32xbf16>, vector<32x128xbf16>, vector<64x128xf32> -> vector<64x128xf32>
    %462 = arith.addf %457, %461 : vector<64x128xf32>
    %463 = vector.extract_strided_slice %428 {offsets = [2, 0], sizes = [64, 32], strides = [1, 1]} : vector<82x32xbf16> to vector<64x32xbf16>
    %464 = arith.select %449, %463, %450 : vector<64x32xi1>, vector<64x32xbf16>
    %c2_141 = arith.constant 2 : index
    %c0_142 = arith.constant 0 : index
    %c0_143 = arith.constant 0 : index
    %465 = vector.load %arg17[%c2_141, %c0_142, %c0_143] : memref<9x32x128xbf16, #tpu.memory_space<vmem>>, vector<1x32x128xbf16>
    %466 = vector.shape_cast %465 : vector<1x32x128xbf16> to vector<32x128xbf16>
    %cst_144 = arith.constant dense<0.000000e+00> : vector<64x128xf32>
    %467 = tpu.matmul %464, %466, %cst_144 {dimension_numbers = #tpu.dot_dimension_numbers<[1], [0], [0], [1], [0, 0, 1, 1], [], []>} : vector<64x32xbf16>, vector<32x128xbf16>, vector<64x128xf32> -> vector<64x128xf32>
    %468 = arith.addf %462, %467 : vector<64x128xf32>
    %469 = vector.extract_strided_slice %428 {offsets = [8, 0], sizes = [64, 32], strides = [1, 1]} : vector<82x32xbf16> to vector<64x32xbf16>
    %470 = arith.select %447, %469, %450 : vector<64x32xi1>, vector<64x32xbf16>
    %c3_145 = arith.constant 3 : index
    %c0_146 = arith.constant 0 : index
    %c0_147 = arith.constant 0 : index
    %471 = vector.load %arg17[%c3_145, %c0_146, %c0_147] : memref<9x32x128xbf16, #tpu.memory_space<vmem>>, vector<1x32x128xbf16>
    %472 = vector.shape_cast %471 : vector<1x32x128xbf16> to vector<32x128xbf16>
    %cst_148 = arith.constant dense<0.000000e+00> : vector<64x128xf32>
    %473 = tpu.matmul %470, %472, %cst_148 {dimension_numbers = #tpu.dot_dimension_numbers<[1], [0], [0], [1], [0, 0, 1, 1], [], []>} : vector<64x32xbf16>, vector<32x128xbf16>, vector<64x128xf32> -> vector<64x128xf32>
    %474 = arith.addf %468, %473 : vector<64x128xf32>
    %475 = vector.extract_strided_slice %428 {offsets = [9, 0], sizes = [64, 32], strides = [1, 1]} : vector<82x32xbf16> to vector<64x32xbf16>
    %c4_149 = arith.constant 4 : index
    %c0_150 = arith.constant 0 : index
    %c0_151 = arith.constant 0 : index
    %476 = vector.load %arg17[%c4_149, %c0_150, %c0_151] : memref<9x32x128xbf16, #tpu.memory_space<vmem>>, vector<1x32x128xbf16>
    %477 = vector.shape_cast %476 : vector<1x32x128xbf16> to vector<32x128xbf16>
    %cst_152 = arith.constant dense<0.000000e+00> : vector<64x128xf32>
    %478 = tpu.matmul %475, %477, %cst_152 {dimension_numbers = #tpu.dot_dimension_numbers<[1], [0], [0], [1], [0, 0, 1, 1], [], []>} : vector<64x32xbf16>, vector<32x128xbf16>, vector<64x128xf32> -> vector<64x128xf32>
    %479 = arith.addf %474, %478 : vector<64x128xf32>
    %480 = vector.extract_strided_slice %428 {offsets = [10, 0], sizes = [64, 32], strides = [1, 1]} : vector<82x32xbf16> to vector<64x32xbf16>
    %481 = arith.select %449, %480, %450 : vector<64x32xi1>, vector<64x32xbf16>
    %c5_153 = arith.constant 5 : index
    %c0_154 = arith.constant 0 : index
    %c0_155 = arith.constant 0 : index
    %482 = vector.load %arg17[%c5_153, %c0_154, %c0_155] : memref<9x32x128xbf16, #tpu.memory_space<vmem>>, vector<1x32x128xbf16>
    %483 = vector.shape_cast %482 : vector<1x32x128xbf16> to vector<32x128xbf16>
    %cst_156 = arith.constant dense<0.000000e+00> : vector<64x128xf32>
    %484 = tpu.matmul %481, %483, %cst_156 {dimension_numbers = #tpu.dot_dimension_numbers<[1], [0], [0], [1], [0, 0, 1, 1], [], []>} : vector<64x32xbf16>, vector<32x128xbf16>, vector<64x128xf32> -> vector<64x128xf32>
    %485 = arith.addf %479, %484 : vector<64x128xf32>
    %486 = vector.extract_strided_slice %428 {offsets = [16, 0], sizes = [64, 32], strides = [1, 1]} : vector<82x32xbf16> to vector<64x32xbf16>
    %487 = arith.select %447, %486, %450 : vector<64x32xi1>, vector<64x32xbf16>
    %c6_157 = arith.constant 6 : index
    %c0_158 = arith.constant 0 : index
    %c0_159 = arith.constant 0 : index
    %488 = vector.load %arg17[%c6_157, %c0_158, %c0_159] : memref<9x32x128xbf16, #tpu.memory_space<vmem>>, vector<1x32x128xbf16>
    %489 = vector.shape_cast %488 : vector<1x32x128xbf16> to vector<32x128xbf16>
    %cst_160 = arith.constant dense<0.000000e+00> : vector<64x128xf32>
    %490 = tpu.matmul %487, %489, %cst_160 {dimension_numbers = #tpu.dot_dimension_numbers<[1], [0], [0], [1], [0, 0, 1, 1], [], []>} : vector<64x32xbf16>, vector<32x128xbf16>, vector<64x128xf32> -> vector<64x128xf32>
    %491 = arith.addf %485, %490 : vector<64x128xf32>
    %492 = vector.extract_strided_slice %428 {offsets = [17, 0], sizes = [64, 32], strides = [1, 1]} : vector<82x32xbf16> to vector<64x32xbf16>
    %c7_161 = arith.constant 7 : index
    %c0_162 = arith.constant 0 : index
    %c0_163 = arith.constant 0 : index
    %493 = vector.load %arg17[%c7_161, %c0_162, %c0_163] : memref<9x32x128xbf16, #tpu.memory_space<vmem>>, vector<1x32x128xbf16>
    %494 = vector.shape_cast %493 : vector<1x32x128xbf16> to vector<32x128xbf16>
    %cst_164 = arith.constant dense<0.000000e+00> : vector<64x128xf32>
    %495 = tpu.matmul %492, %494, %cst_164 {dimension_numbers = #tpu.dot_dimension_numbers<[1], [0], [0], [1], [0, 0, 1, 1], [], []>} : vector<64x32xbf16>, vector<32x128xbf16>, vector<64x128xf32> -> vector<64x128xf32>
    %496 = arith.addf %491, %495 : vector<64x128xf32>
    %497 = vector.extract_strided_slice %428 {offsets = [18, 0], sizes = [64, 32], strides = [1, 1]} : vector<82x32xbf16> to vector<64x32xbf16>
    %498 = arith.select %449, %497, %450 : vector<64x32xi1>, vector<64x32xbf16>
    %c8_165 = arith.constant 8 : index
    %c0_166 = arith.constant 0 : index
    %c0_167 = arith.constant 0 : index
    %499 = vector.load %arg17[%c8_165, %c0_166, %c0_167] : memref<9x32x128xbf16, #tpu.memory_space<vmem>>, vector<1x32x128xbf16>
    %500 = vector.shape_cast %499 : vector<1x32x128xbf16> to vector<32x128xbf16>
    %cst_168 = arith.constant dense<0.000000e+00> : vector<64x128xf32>
    %501 = tpu.matmul %498, %500, %cst_168 {dimension_numbers = #tpu.dot_dimension_numbers<[1], [0], [0], [1], [0, 0, 1, 1], [], []>} : vector<64x32xbf16>, vector<32x128xbf16>, vector<64x128xf32> -> vector<64x128xf32>
    %502 = arith.addf %496, %501 : vector<64x128xf32>
    %503 = tpu.concatenate %426, %502 in 1 : vector<64x128xf32>, vector<64x128xf32> -> vector<64x256xf32>
    %c0_169 = arith.constant 0 : index
    %c0_170 = arith.constant 0 : index
    %504 = vector.load %arg18[%c0_169, %c0_170] : memref<1x256xf32, #tpu.memory_space<vmem>>, vector<1x256xf32>
    %505 = vector.broadcast %504 : vector<1x256xf32> to vector<64x256xf32>
    %506 = arith.addf %503, %505 : vector<64x256xf32>
    %cst_171 = arith.constant 0.000000e+00 : f32
    %507 = vector.broadcast %cst_171 : f32 to vector<64x256xf32>
    %508 = arith.maximumf %506, %507 : vector<64x256xf32>
    %509 = vector.extract_strided_slice %508 {offsets = [0, 0], sizes = [8, 256], strides = [1, 1]} : vector<64x256xf32> to vector<8x256xf32>
    %510 = vector.extract_strided_slice %508 {offsets = [8, 0], sizes = [8, 256], strides = [1, 1]} : vector<64x256xf32> to vector<8x256xf32>
    %511 = arith.maximumf %509, %510 : vector<8x256xf32>
    %512 = vector.extract_strided_slice %511 {offsets = [0, 0], sizes = [1, 256], strides = [1, 1]} : vector<8x256xf32> to vector<1x256xf32>
    %513 = vector.extract_strided_slice %511 {offsets = [1, 0], sizes = [1, 256], strides = [1, 1]} : vector<8x256xf32> to vector<1x256xf32>
    %514 = arith.maximumf %512, %513 : vector<1x256xf32>
    %515 = vector.extract_strided_slice %511 {offsets = [2, 0], sizes = [1, 256], strides = [1, 1]} : vector<8x256xf32> to vector<1x256xf32>
    %516 = vector.extract_strided_slice %511 {offsets = [3, 0], sizes = [1, 256], strides = [1, 1]} : vector<8x256xf32> to vector<1x256xf32>
    %517 = arith.maximumf %515, %516 : vector<1x256xf32>
    %518 = vector.extract_strided_slice %511 {offsets = [4, 0], sizes = [1, 256], strides = [1, 1]} : vector<8x256xf32> to vector<1x256xf32>
    %519 = vector.extract_strided_slice %511 {offsets = [5, 0], sizes = [1, 256], strides = [1, 1]} : vector<8x256xf32> to vector<1x256xf32>
    %520 = arith.maximumf %518, %519 : vector<1x256xf32>
    %521 = vector.extract_strided_slice %511 {offsets = [6, 0], sizes = [1, 256], strides = [1, 1]} : vector<8x256xf32> to vector<1x256xf32>
    %522 = vector.extract_strided_slice %511 {offsets = [7, 0], sizes = [1, 256], strides = [1, 1]} : vector<8x256xf32> to vector<1x256xf32>
    %523 = arith.maximumf %521, %522 : vector<1x256xf32>
    %524 = vector.extract_strided_slice %508 {offsets = [16, 0], sizes = [8, 256], strides = [1, 1]} : vector<64x256xf32> to vector<8x256xf32>
    %525 = vector.extract_strided_slice %508 {offsets = [24, 0], sizes = [8, 256], strides = [1, 1]} : vector<64x256xf32> to vector<8x256xf32>
    %526 = arith.maximumf %524, %525 : vector<8x256xf32>
    %527 = vector.extract_strided_slice %526 {offsets = [0, 0], sizes = [1, 256], strides = [1, 1]} : vector<8x256xf32> to vector<1x256xf32>
    %528 = vector.extract_strided_slice %526 {offsets = [1, 0], sizes = [1, 256], strides = [1, 1]} : vector<8x256xf32> to vector<1x256xf32>
    %529 = arith.maximumf %527, %528 : vector<1x256xf32>
    %530 = vector.extract_strided_slice %526 {offsets = [2, 0], sizes = [1, 256], strides = [1, 1]} : vector<8x256xf32> to vector<1x256xf32>
    %531 = vector.extract_strided_slice %526 {offsets = [3, 0], sizes = [1, 256], strides = [1, 1]} : vector<8x256xf32> to vector<1x256xf32>
    %532 = arith.maximumf %530, %531 : vector<1x256xf32>
    %533 = vector.extract_strided_slice %526 {offsets = [4, 0], sizes = [1, 256], strides = [1, 1]} : vector<8x256xf32> to vector<1x256xf32>
    %534 = vector.extract_strided_slice %526 {offsets = [5, 0], sizes = [1, 256], strides = [1, 1]} : vector<8x256xf32> to vector<1x256xf32>
    %535 = arith.maximumf %533, %534 : vector<1x256xf32>
    %536 = vector.extract_strided_slice %526 {offsets = [6, 0], sizes = [1, 256], strides = [1, 1]} : vector<8x256xf32> to vector<1x256xf32>
    %537 = vector.extract_strided_slice %526 {offsets = [7, 0], sizes = [1, 256], strides = [1, 1]} : vector<8x256xf32> to vector<1x256xf32>
    %538 = arith.maximumf %536, %537 : vector<1x256xf32>
    %539 = vector.extract_strided_slice %508 {offsets = [32, 0], sizes = [8, 256], strides = [1, 1]} : vector<64x256xf32> to vector<8x256xf32>
    %540 = vector.extract_strided_slice %508 {offsets = [40, 0], sizes = [8, 256], strides = [1, 1]} : vector<64x256xf32> to vector<8x256xf32>
    %541 = arith.maximumf %539, %540 : vector<8x256xf32>
    %542 = vector.extract_strided_slice %541 {offsets = [0, 0], sizes = [1, 256], strides = [1, 1]} : vector<8x256xf32> to vector<1x256xf32>
    %543 = vector.extract_strided_slice %541 {offsets = [1, 0], sizes = [1, 256], strides = [1, 1]} : vector<8x256xf32> to vector<1x256xf32>
    %544 = arith.maximumf %542, %543 : vector<1x256xf32>
    %545 = vector.extract_strided_slice %541 {offsets = [2, 0], sizes = [1, 256], strides = [1, 1]} : vector<8x256xf32> to vector<1x256xf32>
    %546 = vector.extract_strided_slice %541 {offsets = [3, 0], sizes = [1, 256], strides = [1, 1]} : vector<8x256xf32> to vector<1x256xf32>
    %547 = arith.maximumf %545, %546 : vector<1x256xf32>
    %548 = vector.extract_strided_slice %541 {offsets = [4, 0], sizes = [1, 256], strides = [1, 1]} : vector<8x256xf32> to vector<1x256xf32>
    %549 = vector.extract_strided_slice %541 {offsets = [5, 0], sizes = [1, 256], strides = [1, 1]} : vector<8x256xf32> to vector<1x256xf32>
    %550 = arith.maximumf %548, %549 : vector<1x256xf32>
    %551 = vector.extract_strided_slice %541 {offsets = [6, 0], sizes = [1, 256], strides = [1, 1]} : vector<8x256xf32> to vector<1x256xf32>
    %552 = vector.extract_strided_slice %541 {offsets = [7, 0], sizes = [1, 256], strides = [1, 1]} : vector<8x256xf32> to vector<1x256xf32>
    %553 = arith.maximumf %551, %552 : vector<1x256xf32>
    %554 = vector.extract_strided_slice %508 {offsets = [48, 0], sizes = [8, 256], strides = [1, 1]} : vector<64x256xf32> to vector<8x256xf32>
    %555 = vector.extract_strided_slice %508 {offsets = [56, 0], sizes = [8, 256], strides = [1, 1]} : vector<64x256xf32> to vector<8x256xf32>
    %556 = arith.maximumf %554, %555 : vector<8x256xf32>
    %557 = vector.extract_strided_slice %556 {offsets = [0, 0], sizes = [1, 256], strides = [1, 1]} : vector<8x256xf32> to vector<1x256xf32>
    %558 = vector.extract_strided_slice %556 {offsets = [1, 0], sizes = [1, 256], strides = [1, 1]} : vector<8x256xf32> to vector<1x256xf32>
    %559 = arith.maximumf %557, %558 : vector<1x256xf32>
    %560 = vector.extract_strided_slice %556 {offsets = [2, 0], sizes = [1, 256], strides = [1, 1]} : vector<8x256xf32> to vector<1x256xf32>
    %561 = vector.extract_strided_slice %556 {offsets = [3, 0], sizes = [1, 256], strides = [1, 1]} : vector<8x256xf32> to vector<1x256xf32>
    %562 = arith.maximumf %560, %561 : vector<1x256xf32>
    %563 = vector.extract_strided_slice %556 {offsets = [4, 0], sizes = [1, 256], strides = [1, 1]} : vector<8x256xf32> to vector<1x256xf32>
    %564 = vector.extract_strided_slice %556 {offsets = [5, 0], sizes = [1, 256], strides = [1, 1]} : vector<8x256xf32> to vector<1x256xf32>
    %565 = arith.maximumf %563, %564 : vector<1x256xf32>
    %566 = vector.extract_strided_slice %556 {offsets = [6, 0], sizes = [1, 256], strides = [1, 1]} : vector<8x256xf32> to vector<1x256xf32>
    %567 = vector.extract_strided_slice %556 {offsets = [7, 0], sizes = [1, 256], strides = [1, 1]} : vector<8x256xf32> to vector<1x256xf32>
    %568 = arith.maximumf %566, %567 : vector<1x256xf32>
    %569 = tpu.concatenate %514, %517, %520, %523, %529, %532, %535, %538, %544, %547, %550, %553, %559, %562, %565, %568 in 0 : vector<1x256xf32>, vector<1x256xf32>, vector<1x256xf32>, vector<1x256xf32>, vector<1x256xf32>, vector<1x256xf32>, vector<1x256xf32>, vector<1x256xf32>, vector<1x256xf32>, vector<1x256xf32>, vector<1x256xf32>, vector<1x256xf32>, vector<1x256xf32>, vector<1x256xf32>, vector<1x256xf32>, vector<1x256xf32> -> vector<16x256xf32>
    %570 = arith.truncf %569 : vector<16x256xf32> to vector<16x256xbf16>
    %c0_172 = arith.constant 0 : index
    %c0_173 = arith.constant 0 : index
    %571 = vector.load %arg19[%c0_172, %c0_173] : memref<256x32xbf16, #tpu.memory_space<vmem>>, vector<256x32xbf16>
    %cst_174 = arith.constant dense<0.000000e+00> : vector<16x32xf32>
    %572 = tpu.matmul %570, %571, %cst_174 {dimension_numbers = #tpu.dot_dimension_numbers<[1], [0], [0], [1], [0, 0, 1, 1], [], []>} : vector<16x256xbf16>, vector<256x32xbf16>, vector<16x32xf32> -> vector<16x32xf32>
    %c0_175 = arith.constant 0 : index
    %c0_176 = arith.constant 0 : index
    %573 = vector.load %arg20[%c0_175, %c0_176] : memref<1x32xf32, #tpu.memory_space<vmem>>, vector<1x32xf32>
    %574 = vector.broadcast %573 : vector<1x32xf32> to vector<16x32xf32>
    %575 = arith.addf %572, %574 : vector<16x32xf32>
    %cst_177 = arith.constant 0.000000e+00 : f32
    %576 = vector.broadcast %cst_177 : f32 to vector<16x32xf32>
    %577 = arith.maximumf %575, %576 : vector<16x32xf32>
    %578 = arith.truncf %577 : vector<16x32xf32> to vector<16x32xbf16>
    %c0_178 = arith.constant 0 : index
    %c0_179 = arith.constant 0 : index
    %579 = vector.load %arg21[%c0_178, %c0_179] : memref<32x128xbf16, #tpu.memory_space<vmem>>, vector<32x128xbf16>
    %cst_180 = arith.constant dense<0.000000e+00> : vector<16x128xf32>
    %580 = tpu.matmul %578, %579, %cst_180 {dimension_numbers = #tpu.dot_dimension_numbers<[1], [0], [0], [1], [0, 0, 1, 1], [], []>} : vector<16x32xbf16>, vector<32x128xbf16>, vector<16x128xf32> -> vector<16x128xf32>
    %cst_181 = arith.constant 0.000000e+00 : bf16
    %581 = vector.broadcast %cst_181 : bf16 to vector<5x32xbf16>
    %582 = tpu.concatenate %581, %578, %581 in 0 : vector<5x32xbf16>, vector<16x32xbf16>, vector<5x32xbf16> -> vector<26x32xbf16>
    %583 = tpu.iota {dimensions = array<i32: 0>} : vector<16x32xi32>
    %c4_i32 = arith.constant 4 : i32
    %c0_i32_182 = arith.constant 0 : i32
    %584 = arith.cmpi eq, %c4_i32, %c0_i32_182 : i32
    %c1_i32_183 = arith.constant 1 : i32
    %585 = arith.select %584, %c1_i32_183, %c4_i32 : i32
    %586 = vector.broadcast %585 : i32 to vector<16x32xi32>
    %587 = arith.remsi %583, %586 : vector<16x32xi32>
    %c0_i32_184 = arith.constant 0 : i32
    %588 = vector.broadcast %c0_i32_184 : i32 to vector<16x32xi32>
    %589 = arith.cmpi ne, %587, %588 : vector<16x32xi32>
    %c0_i32_185 = arith.constant 0 : i32
    %590 = vector.broadcast %c0_i32_185 : i32 to vector<16x32xi32>
    %591 = arith.cmpi slt, %587, %590 : vector<16x32xi32>
    %c0_i32_186 = arith.constant 0 : i32
    %592 = arith.cmpi slt, %585, %c0_i32_186 : i32
    %593 = vector.broadcast %592 : i1 to vector<16x32xi1>
    %594 = vector.broadcast %593 : vector<16x32xi1> to vector<16x32xi1>
    %595 = arith.xori %591, %594 : vector<16x32xi1>
    %596 = arith.andi %595, %589 : vector<16x32xi1>
    %597 = vector.broadcast %585 : i32 to vector<16x32xi32>
    %598 = arith.addi %587, %597 : vector<16x32xi32>
    %599 = arith.select %596, %598, %587 : vector<16x32xi1>, vector<16x32xi32>
    %c1_i32_187 = arith.constant 1 : i32
    %600 = vector.broadcast %c1_i32_187 : i32 to vector<16x32xi32>
    %601 = arith.cmpi sge, %599, %600 : vector<16x32xi32>
    %c2_i32 = arith.constant 2 : i32
    %602 = vector.broadcast %c2_i32 : i32 to vector<16x32xi32>
    %603 = arith.cmpi sle, %599, %602 : vector<16x32xi32>
    %cst_188 = arith.constant 0.000000e+00 : bf16
    %604 = vector.broadcast %cst_188 : bf16 to vector<16x32xbf16>
    %cst_189 = arith.constant 0.000000e+00 : f32
    %605 = vector.broadcast %cst_189 : f32 to vector<16x128xf32>
    %606 = vector.extract_strided_slice %582 {offsets = [0, 0], sizes = [16, 32], strides = [1, 1]} : vector<26x32xbf16> to vector<16x32xbf16>
    %607 = arith.select %601, %606, %604 : vector<16x32xi1>, vector<16x32xbf16>
    %c0_190 = arith.constant 0 : index
    %c0_191 = arith.constant 0 : index
    %c0_192 = arith.constant 0 : index
    %608 = vector.load %arg22[%c0_190, %c0_191, %c0_192] : memref<9x32x128xbf16, #tpu.memory_space<vmem>>, vector<1x32x128xbf16>
    %609 = vector.shape_cast %608 : vector<1x32x128xbf16> to vector<32x128xbf16>
    %cst_193 = arith.constant dense<0.000000e+00> : vector<16x128xf32>
    %610 = tpu.matmul %607, %609, %cst_193 {dimension_numbers = #tpu.dot_dimension_numbers<[1], [0], [0], [1], [0, 0, 1, 1], [], []>} : vector<16x32xbf16>, vector<32x128xbf16>, vector<16x128xf32> -> vector<16x128xf32>
    %611 = arith.addf %605, %610 : vector<16x128xf32>
    %612 = vector.extract_strided_slice %582 {offsets = [1, 0], sizes = [16, 32], strides = [1, 1]} : vector<26x32xbf16> to vector<16x32xbf16>
    %c1_194 = arith.constant 1 : index
    %c0_195 = arith.constant 0 : index
    %c0_196 = arith.constant 0 : index
    %613 = vector.load %arg22[%c1_194, %c0_195, %c0_196] : memref<9x32x128xbf16, #tpu.memory_space<vmem>>, vector<1x32x128xbf16>
    %614 = vector.shape_cast %613 : vector<1x32x128xbf16> to vector<32x128xbf16>
    %cst_197 = arith.constant dense<0.000000e+00> : vector<16x128xf32>
    %615 = tpu.matmul %612, %614, %cst_197 {dimension_numbers = #tpu.dot_dimension_numbers<[1], [0], [0], [1], [0, 0, 1, 1], [], []>} : vector<16x32xbf16>, vector<32x128xbf16>, vector<16x128xf32> -> vector<16x128xf32>
    %616 = arith.addf %611, %615 : vector<16x128xf32>
    %617 = vector.extract_strided_slice %582 {offsets = [2, 0], sizes = [16, 32], strides = [1, 1]} : vector<26x32xbf16> to vector<16x32xbf16>
    %618 = arith.select %603, %617, %604 : vector<16x32xi1>, vector<16x32xbf16>
    %c2_198 = arith.constant 2 : index
    %c0_199 = arith.constant 0 : index
    %c0_200 = arith.constant 0 : index
    %619 = vector.load %arg22[%c2_198, %c0_199, %c0_200] : memref<9x32x128xbf16, #tpu.memory_space<vmem>>, vector<1x32x128xbf16>
    %620 = vector.shape_cast %619 : vector<1x32x128xbf16> to vector<32x128xbf16>
    %cst_201 = arith.constant dense<0.000000e+00> : vector<16x128xf32>
    %621 = tpu.matmul %618, %620, %cst_201 {dimension_numbers = #tpu.dot_dimension_numbers<[1], [0], [0], [1], [0, 0, 1, 1], [], []>} : vector<16x32xbf16>, vector<32x128xbf16>, vector<16x128xf32> -> vector<16x128xf32>
    %622 = arith.addf %616, %621 : vector<16x128xf32>
    %623 = vector.extract_strided_slice %582 {offsets = [4, 0], sizes = [16, 32], strides = [1, 1]} : vector<26x32xbf16> to vector<16x32xbf16>
    %624 = arith.select %601, %623, %604 : vector<16x32xi1>, vector<16x32xbf16>
    %c3_202 = arith.constant 3 : index
    %c0_203 = arith.constant 0 : index
    %c0_204 = arith.constant 0 : index
    %625 = vector.load %arg22[%c3_202, %c0_203, %c0_204] : memref<9x32x128xbf16, #tpu.memory_space<vmem>>, vector<1x32x128xbf16>
    %626 = vector.shape_cast %625 : vector<1x32x128xbf16> to vector<32x128xbf16>
    %cst_205 = arith.constant dense<0.000000e+00> : vector<16x128xf32>
    %627 = tpu.matmul %624, %626, %cst_205 {dimension_numbers = #tpu.dot_dimension_numbers<[1], [0], [0], [1], [0, 0, 1, 1], [], []>} : vector<16x32xbf16>, vector<32x128xbf16>, vector<16x128xf32> -> vector<16x128xf32>
    %628 = arith.addf %622, %627 : vector<16x128xf32>
    %629 = vector.extract_strided_slice %582 {offsets = [5, 0], sizes = [16, 32], strides = [1, 1]} : vector<26x32xbf16> to vector<16x32xbf16>
    %c4_206 = arith.constant 4 : index
    %c0_207 = arith.constant 0 : index
    %c0_208 = arith.constant 0 : index
    %630 = vector.load %arg22[%c4_206, %c0_207, %c0_208] : memref<9x32x128xbf16, #tpu.memory_space<vmem>>, vector<1x32x128xbf16>
    %631 = vector.shape_cast %630 : vector<1x32x128xbf16> to vector<32x128xbf16>
    %cst_209 = arith.constant dense<0.000000e+00> : vector<16x128xf32>
    %632 = tpu.matmul %629, %631, %cst_209 {dimension_numbers = #tpu.dot_dimension_numbers<[1], [0], [0], [1], [0, 0, 1, 1], [], []>} : vector<16x32xbf16>, vector<32x128xbf16>, vector<16x128xf32> -> vector<16x128xf32>
    %633 = arith.addf %628, %632 : vector<16x128xf32>
    %634 = vector.extract_strided_slice %582 {offsets = [6, 0], sizes = [16, 32], strides = [1, 1]} : vector<26x32xbf16> to vector<16x32xbf16>
    %635 = arith.select %603, %634, %604 : vector<16x32xi1>, vector<16x32xbf16>
    %c5_210 = arith.constant 5 : index
    %c0_211 = arith.constant 0 : index
    %c0_212 = arith.constant 0 : index
    %636 = vector.load %arg22[%c5_210, %c0_211, %c0_212] : memref<9x32x128xbf16, #tpu.memory_space<vmem>>, vector<1x32x128xbf16>
    %637 = vector.shape_cast %636 : vector<1x32x128xbf16> to vector<32x128xbf16>
    %cst_213 = arith.constant dense<0.000000e+00> : vector<16x128xf32>
    %638 = tpu.matmul %635, %637, %cst_213 {dimension_numbers = #tpu.dot_dimension_numbers<[1], [0], [0], [1], [0, 0, 1, 1], [], []>} : vector<16x32xbf16>, vector<32x128xbf16>, vector<16x128xf32> -> vector<16x128xf32>
    %639 = arith.addf %633, %638 : vector<16x128xf32>
    %640 = vector.extract_strided_slice %582 {offsets = [8, 0], sizes = [16, 32], strides = [1, 1]} : vector<26x32xbf16> to vector<16x32xbf16>
    %641 = arith.select %601, %640, %604 : vector<16x32xi1>, vector<16x32xbf16>
    %c6_214 = arith.constant 6 : index
    %c0_215 = arith.constant 0 : index
    %c0_216 = arith.constant 0 : index
    %642 = vector.load %arg22[%c6_214, %c0_215, %c0_216] : memref<9x32x128xbf16, #tpu.memory_space<vmem>>, vector<1x32x128xbf16>
    %643 = vector.shape_cast %642 : vector<1x32x128xbf16> to vector<32x128xbf16>
    %cst_217 = arith.constant dense<0.000000e+00> : vector<16x128xf32>
    %644 = tpu.matmul %641, %643, %cst_217 {dimension_numbers = #tpu.dot_dimension_numbers<[1], [0], [0], [1], [0, 0, 1, 1], [], []>} : vector<16x32xbf16>, vector<32x128xbf16>, vector<16x128xf32> -> vector<16x128xf32>
    %645 = arith.addf %639, %644 : vector<16x128xf32>
    %646 = vector.extract_strided_slice %582 {offsets = [9, 0], sizes = [16, 32], strides = [1, 1]} : vector<26x32xbf16> to vector<16x32xbf16>
    %c7_218 = arith.constant 7 : index
    %c0_219 = arith.constant 0 : index
    %c0_220 = arith.constant 0 : index
    %647 = vector.load %arg22[%c7_218, %c0_219, %c0_220] : memref<9x32x128xbf16, #tpu.memory_space<vmem>>, vector<1x32x128xbf16>
    %648 = vector.shape_cast %647 : vector<1x32x128xbf16> to vector<32x128xbf16>
    %cst_221 = arith.constant dense<0.000000e+00> : vector<16x128xf32>
    %649 = tpu.matmul %646, %648, %cst_221 {dimension_numbers = #tpu.dot_dimension_numbers<[1], [0], [0], [1], [0, 0, 1, 1], [], []>} : vector<16x32xbf16>, vector<32x128xbf16>, vector<16x128xf32> -> vector<16x128xf32>
    %650 = arith.addf %645, %649 : vector<16x128xf32>
    %651 = vector.extract_strided_slice %582 {offsets = [10, 0], sizes = [16, 32], strides = [1, 1]} : vector<26x32xbf16> to vector<16x32xbf16>
    %652 = arith.select %603, %651, %604 : vector<16x32xi1>, vector<16x32xbf16>
    %c8_222 = arith.constant 8 : index
    %c0_223 = arith.constant 0 : index
    %c0_224 = arith.constant 0 : index
    %653 = vector.load %arg22[%c8_222, %c0_223, %c0_224] : memref<9x32x128xbf16, #tpu.memory_space<vmem>>, vector<1x32x128xbf16>
    %654 = vector.shape_cast %653 : vector<1x32x128xbf16> to vector<32x128xbf16>
    %cst_225 = arith.constant dense<0.000000e+00> : vector<16x128xf32>
    %655 = tpu.matmul %652, %654, %cst_225 {dimension_numbers = #tpu.dot_dimension_numbers<[1], [0], [0], [1], [0, 0, 1, 1], [], []>} : vector<16x32xbf16>, vector<32x128xbf16>, vector<16x128xf32> -> vector<16x128xf32>
    %656 = arith.addf %650, %655 : vector<16x128xf32>
    %657 = tpu.concatenate %580, %656 in 1 : vector<16x128xf32>, vector<16x128xf32> -> vector<16x256xf32>
    %c0_226 = arith.constant 0 : index
    %c0_227 = arith.constant 0 : index
    %658 = vector.load %arg23[%c0_226, %c0_227] : memref<1x256xf32, #tpu.memory_space<vmem>>, vector<1x256xf32>
    %659 = vector.broadcast %658 : vector<1x256xf32> to vector<16x256xf32>
    %660 = arith.addf %657, %659 : vector<16x256xf32>
    %cst_228 = arith.constant 0.000000e+00 : f32
    %661 = vector.broadcast %cst_228 : f32 to vector<16x256xf32>
    %662 = arith.maximumf %660, %661 : vector<16x256xf32>
    %663 = arith.truncf %662 : vector<16x256xf32> to vector<16x256xbf16>
    %c0_229 = arith.constant 0 : index
    %c0_230 = arith.constant 0 : index
    %664 = vector.load %arg24[%c0_229, %c0_230] : memref<256x48xbf16, #tpu.memory_space<vmem>>, vector<256x48xbf16>
    %cst_231 = arith.constant dense<0.000000e+00> : vector<16x48xf32>
    %665 = tpu.matmul %663, %664, %cst_231 {dimension_numbers = #tpu.dot_dimension_numbers<[1], [0], [0], [1], [0, 0, 1, 1], [], []>} : vector<16x256xbf16>, vector<256x48xbf16>, vector<16x48xf32> -> vector<16x48xf32>
    %c0_232 = arith.constant 0 : index
    %c0_233 = arith.constant 0 : index
    %666 = vector.load %arg25[%c0_232, %c0_233] : memref<1x48xf32, #tpu.memory_space<vmem>>, vector<1x48xf32>
    %667 = vector.broadcast %666 : vector<1x48xf32> to vector<16x48xf32>
    %668 = arith.addf %665, %667 : vector<16x48xf32>
    %cst_234 = arith.constant 0.000000e+00 : f32
    %669 = vector.broadcast %cst_234 : f32 to vector<16x48xf32>
    %670 = arith.maximumf %668, %669 : vector<16x48xf32>
    %671 = arith.truncf %670 : vector<16x48xf32> to vector<16x48xbf16>
    %c0_235 = arith.constant 0 : index
    %c0_236 = arith.constant 0 : index
    %672 = vector.load %arg26[%c0_235, %c0_236] : memref<48x192xbf16, #tpu.memory_space<vmem>>, vector<48x192xbf16>
    %cst_237 = arith.constant dense<0.000000e+00> : vector<16x192xf32>
    %673 = tpu.matmul %671, %672, %cst_237 {dimension_numbers = #tpu.dot_dimension_numbers<[1], [0], [0], [1], [0, 0, 1, 1], [], []>} : vector<16x48xbf16>, vector<48x192xbf16>, vector<16x192xf32> -> vector<16x192xf32>
    %cst_238 = arith.constant 0.000000e+00 : bf16
    %674 = vector.broadcast %cst_238 : bf16 to vector<5x48xbf16>
    %675 = tpu.concatenate %674, %671, %674 in 0 : vector<5x48xbf16>, vector<16x48xbf16>, vector<5x48xbf16> -> vector<26x48xbf16>
    %676 = tpu.iota {dimensions = array<i32: 0>} : vector<16x48xi32>
    %c4_i32_239 = arith.constant 4 : i32
    %c0_i32_240 = arith.constant 0 : i32
    %677 = arith.cmpi eq, %c4_i32_239, %c0_i32_240 : i32
    %c1_i32_241 = arith.constant 1 : i32
    %678 = arith.select %677, %c1_i32_241, %c4_i32_239 : i32
    %679 = vector.broadcast %678 : i32 to vector<16x48xi32>
    %680 = arith.remsi %676, %679 : vector<16x48xi32>
    %c0_i32_242 = arith.constant 0 : i32
    %681 = vector.broadcast %c0_i32_242 : i32 to vector<16x48xi32>
    %682 = arith.cmpi ne, %680, %681 : vector<16x48xi32>
    %c0_i32_243 = arith.constant 0 : i32
    %683 = vector.broadcast %c0_i32_243 : i32 to vector<16x48xi32>
    %684 = arith.cmpi slt, %680, %683 : vector<16x48xi32>
    %c0_i32_244 = arith.constant 0 : i32
    %685 = arith.cmpi slt, %678, %c0_i32_244 : i32
    %686 = vector.broadcast %685 : i1 to vector<16x48xi1>
    %687 = vector.broadcast %686 : vector<16x48xi1> to vector<16x48xi1>
    %688 = arith.xori %684, %687 : vector<16x48xi1>
    %689 = arith.andi %688, %682 : vector<16x48xi1>
    %690 = vector.broadcast %678 : i32 to vector<16x48xi32>
    %691 = arith.addi %680, %690 : vector<16x48xi32>
    %692 = arith.select %689, %691, %680 : vector<16x48xi1>, vector<16x48xi32>
    %c1_i32_245 = arith.constant 1 : i32
    %693 = vector.broadcast %c1_i32_245 : i32 to vector<16x48xi32>
    %694 = arith.cmpi sge, %692, %693 : vector<16x48xi32>
    %c2_i32_246 = arith.constant 2 : i32
    %695 = vector.broadcast %c2_i32_246 : i32 to vector<16x48xi32>
    %696 = arith.cmpi sle, %692, %695 : vector<16x48xi32>
    %cst_247 = arith.constant 0.000000e+00 : bf16
    %697 = vector.broadcast %cst_247 : bf16 to vector<16x48xbf16>
    %cst_248 = arith.constant 0.000000e+00 : f32
    %698 = vector.broadcast %cst_248 : f32 to vector<16x192xf32>
    %699 = vector.extract_strided_slice %675 {offsets = [0, 0], sizes = [16, 48], strides = [1, 1]} : vector<26x48xbf16> to vector<16x48xbf16>
    %700 = arith.select %694, %699, %697 : vector<16x48xi1>, vector<16x48xbf16>
    %c0_249 = arith.constant 0 : index
    %c0_250 = arith.constant 0 : index
    %c0_251 = arith.constant 0 : index
    %701 = vector.load %arg27[%c0_249, %c0_250, %c0_251] : memref<9x48x192xbf16, #tpu.memory_space<vmem>>, vector<1x48x192xbf16>
    %702 = vector.shape_cast %701 : vector<1x48x192xbf16> to vector<48x192xbf16>
    %cst_252 = arith.constant dense<0.000000e+00> : vector<16x192xf32>
    %703 = tpu.matmul %700, %702, %cst_252 {dimension_numbers = #tpu.dot_dimension_numbers<[1], [0], [0], [1], [0, 0, 1, 1], [], []>} : vector<16x48xbf16>, vector<48x192xbf16>, vector<16x192xf32> -> vector<16x192xf32>
    %704 = arith.addf %698, %703 : vector<16x192xf32>
    %705 = vector.extract_strided_slice %675 {offsets = [1, 0], sizes = [16, 48], strides = [1, 1]} : vector<26x48xbf16> to vector<16x48xbf16>
    %c1_253 = arith.constant 1 : index
    %c0_254 = arith.constant 0 : index
    %c0_255 = arith.constant 0 : index
    %706 = vector.load %arg27[%c1_253, %c0_254, %c0_255] : memref<9x48x192xbf16, #tpu.memory_space<vmem>>, vector<1x48x192xbf16>
    %707 = vector.shape_cast %706 : vector<1x48x192xbf16> to vector<48x192xbf16>
    %cst_256 = arith.constant dense<0.000000e+00> : vector<16x192xf32>
    %708 = tpu.matmul %705, %707, %cst_256 {dimension_numbers = #tpu.dot_dimension_numbers<[1], [0], [0], [1], [0, 0, 1, 1], [], []>} : vector<16x48xbf16>, vector<48x192xbf16>, vector<16x192xf32> -> vector<16x192xf32>
    %709 = arith.addf %704, %708 : vector<16x192xf32>
    %710 = vector.extract_strided_slice %675 {offsets = [2, 0], sizes = [16, 48], strides = [1, 1]} : vector<26x48xbf16> to vector<16x48xbf16>
    %711 = arith.select %696, %710, %697 : vector<16x48xi1>, vector<16x48xbf16>
    %c2_257 = arith.constant 2 : index
    %c0_258 = arith.constant 0 : index
    %c0_259 = arith.constant 0 : index
    %712 = vector.load %arg27[%c2_257, %c0_258, %c0_259] : memref<9x48x192xbf16, #tpu.memory_space<vmem>>, vector<1x48x192xbf16>
    %713 = vector.shape_cast %712 : vector<1x48x192xbf16> to vector<48x192xbf16>
    %cst_260 = arith.constant dense<0.000000e+00> : vector<16x192xf32>
    %714 = tpu.matmul %711, %713, %cst_260 {dimension_numbers = #tpu.dot_dimension_numbers<[1], [0], [0], [1], [0, 0, 1, 1], [], []>} : vector<16x48xbf16>, vector<48x192xbf16>, vector<16x192xf32> -> vector<16x192xf32>
    %715 = arith.addf %709, %714 : vector<16x192xf32>
    %716 = vector.extract_strided_slice %675 {offsets = [4, 0], sizes = [16, 48], strides = [1, 1]} : vector<26x48xbf16> to vector<16x48xbf16>
    %717 = arith.select %694, %716, %697 : vector<16x48xi1>, vector<16x48xbf16>
    %c3_261 = arith.constant 3 : index
    %c0_262 = arith.constant 0 : index
    %c0_263 = arith.constant 0 : index
    %718 = vector.load %arg27[%c3_261, %c0_262, %c0_263] : memref<9x48x192xbf16, #tpu.memory_space<vmem>>, vector<1x48x192xbf16>
    %719 = vector.shape_cast %718 : vector<1x48x192xbf16> to vector<48x192xbf16>
    %cst_264 = arith.constant dense<0.000000e+00> : vector<16x192xf32>
    %720 = tpu.matmul %717, %719, %cst_264 {dimension_numbers = #tpu.dot_dimension_numbers<[1], [0], [0], [1], [0, 0, 1, 1], [], []>} : vector<16x48xbf16>, vector<48x192xbf16>, vector<16x192xf32> -> vector<16x192xf32>
    %721 = arith.addf %715, %720 : vector<16x192xf32>
    %722 = vector.extract_strided_slice %675 {offsets = [5, 0], sizes = [16, 48], strides = [1, 1]} : vector<26x48xbf16> to vector<16x48xbf16>
    %c4_265 = arith.constant 4 : index
    %c0_266 = arith.constant 0 : index
    %c0_267 = arith.constant 0 : index
    %723 = vector.load %arg27[%c4_265, %c0_266, %c0_267] : memref<9x48x192xbf16, #tpu.memory_space<vmem>>, vector<1x48x192xbf16>
    %724 = vector.shape_cast %723 : vector<1x48x192xbf16> to vector<48x192xbf16>
    %cst_268 = arith.constant dense<0.000000e+00> : vector<16x192xf32>
    %725 = tpu.matmul %722, %724, %cst_268 {dimension_numbers = #tpu.dot_dimension_numbers<[1], [0], [0], [1], [0, 0, 1, 1], [], []>} : vector<16x48xbf16>, vector<48x192xbf16>, vector<16x192xf32> -> vector<16x192xf32>
    %726 = arith.addf %721, %725 : vector<16x192xf32>
    %727 = vector.extract_strided_slice %675 {offsets = [6, 0], sizes = [16, 48], strides = [1, 1]} : vector<26x48xbf16> to vector<16x48xbf16>
    %728 = arith.select %696, %727, %697 : vector<16x48xi1>, vector<16x48xbf16>
    %c5_269 = arith.constant 5 : index
    %c0_270 = arith.constant 0 : index
    %c0_271 = arith.constant 0 : index
    %729 = vector.load %arg27[%c5_269, %c0_270, %c0_271] : memref<9x48x192xbf16, #tpu.memory_space<vmem>>, vector<1x48x192xbf16>
    %730 = vector.shape_cast %729 : vector<1x48x192xbf16> to vector<48x192xbf16>
    %cst_272 = arith.constant dense<0.000000e+00> : vector<16x192xf32>
    %731 = tpu.matmul %728, %730, %cst_272 {dimension_numbers = #tpu.dot_dimension_numbers<[1], [0], [0], [1], [0, 0, 1, 1], [], []>} : vector<16x48xbf16>, vector<48x192xbf16>, vector<16x192xf32> -> vector<16x192xf32>
    %732 = arith.addf %726, %731 : vector<16x192xf32>
    %733 = vector.extract_strided_slice %675 {offsets = [8, 0], sizes = [16, 48], strides = [1, 1]} : vector<26x48xbf16> to vector<16x48xbf16>
    %734 = arith.select %694, %733, %697 : vector<16x48xi1>, vector<16x48xbf16>
    %c6_273 = arith.constant 6 : index
    %c0_274 = arith.constant 0 : index
    %c0_275 = arith.constant 0 : index
    %735 = vector.load %arg27[%c6_273, %c0_274, %c0_275] : memref<9x48x192xbf16, #tpu.memory_space<vmem>>, vector<1x48x192xbf16>
    %736 = vector.shape_cast %735 : vector<1x48x192xbf16> to vector<48x192xbf16>
    %cst_276 = arith.constant dense<0.000000e+00> : vector<16x192xf32>
    %737 = tpu.matmul %734, %736, %cst_276 {dimension_numbers = #tpu.dot_dimension_numbers<[1], [0], [0], [1], [0, 0, 1, 1], [], []>} : vector<16x48xbf16>, vector<48x192xbf16>, vector<16x192xf32> -> vector<16x192xf32>
    %738 = arith.addf %732, %737 : vector<16x192xf32>
    %739 = vector.extract_strided_slice %675 {offsets = [9, 0], sizes = [16, 48], strides = [1, 1]} : vector<26x48xbf16> to vector<16x48xbf16>
    %c7_277 = arith.constant 7 : index
    %c0_278 = arith.constant 0 : index
    %c0_279 = arith.constant 0 : index
    %740 = vector.load %arg27[%c7_277, %c0_278, %c0_279] : memref<9x48x192xbf16, #tpu.memory_space<vmem>>, vector<1x48x192xbf16>
    %741 = vector.shape_cast %740 : vector<1x48x192xbf16> to vector<48x192xbf16>
    %cst_280 = arith.constant dense<0.000000e+00> : vector<16x192xf32>
    %742 = tpu.matmul %739, %741, %cst_280 {dimension_numbers = #tpu.dot_dimension_numbers<[1], [0], [0], [1], [0, 0, 1, 1], [], []>} : vector<16x48xbf16>, vector<48x192xbf16>, vector<16x192xf32> -> vector<16x192xf32>
    %743 = arith.addf %738, %742 : vector<16x192xf32>
    %744 = vector.extract_strided_slice %675 {offsets = [10, 0], sizes = [16, 48], strides = [1, 1]} : vector<26x48xbf16> to vector<16x48xbf16>
    %745 = arith.select %696, %744, %697 : vector<16x48xi1>, vector<16x48xbf16>
    %c8_281 = arith.constant 8 : index
    %c0_282 = arith.constant 0 : index
    %c0_283 = arith.constant 0 : index
    %746 = vector.load %arg27[%c8_281, %c0_282, %c0_283] : memref<9x48x192xbf16, #tpu.memory_space<vmem>>, vector<1x48x192xbf16>
    %747 = vector.shape_cast %746 : vector<1x48x192xbf16> to vector<48x192xbf16>
    %cst_284 = arith.constant dense<0.000000e+00> : vector<16x192xf32>
    %748 = tpu.matmul %745, %747, %cst_284 {dimension_numbers = #tpu.dot_dimension_numbers<[1], [0], [0], [1], [0, 0, 1, 1], [], []>} : vector<16x48xbf16>, vector<48x192xbf16>, vector<16x192xf32> -> vector<16x192xf32>
    %749 = arith.addf %743, %748 : vector<16x192xf32>
    %750 = tpu.concatenate %673, %749 in 1 : vector<16x192xf32>, vector<16x192xf32> -> vector<16x384xf32>
    %c0_285 = arith.constant 0 : index
    %c0_286 = arith.constant 0 : index
    %751 = vector.load %arg28[%c0_285, %c0_286] : memref<1x384xf32, #tpu.memory_space<vmem>>, vector<1x384xf32>
    %752 = vector.broadcast %751 : vector<1x384xf32> to vector<16x384xf32>
    %753 = arith.addf %750, %752 : vector<16x384xf32>
    %cst_287 = arith.constant 0.000000e+00 : f32
    %754 = vector.broadcast %cst_287 : f32 to vector<16x384xf32>
    %755 = arith.maximumf %753, %754 : vector<16x384xf32>
    %756 = arith.truncf %755 : vector<16x384xf32> to vector<16x384xbf16>
    %c0_288 = arith.constant 0 : index
    %c0_289 = arith.constant 0 : index
    %757 = vector.load %arg29[%c0_288, %c0_289] : memref<384x48xbf16, #tpu.memory_space<vmem>>, vector<384x48xbf16>
    %cst_290 = arith.constant dense<0.000000e+00> : vector<16x48xf32>
    %758 = tpu.matmul %756, %757, %cst_290 {dimension_numbers = #tpu.dot_dimension_numbers<[1], [0], [0], [1], [0, 0, 1, 1], [], []>} : vector<16x384xbf16>, vector<384x48xbf16>, vector<16x48xf32> -> vector<16x48xf32>
    %c0_291 = arith.constant 0 : index
    %c0_292 = arith.constant 0 : index
    %759 = vector.load %arg30[%c0_291, %c0_292] : memref<1x48xf32, #tpu.memory_space<vmem>>, vector<1x48xf32>
    %760 = vector.broadcast %759 : vector<1x48xf32> to vector<16x48xf32>
    %761 = arith.addf %758, %760 : vector<16x48xf32>
    %cst_293 = arith.constant 0.000000e+00 : f32
    %762 = vector.broadcast %cst_293 : f32 to vector<16x48xf32>
    %763 = arith.maximumf %761, %762 : vector<16x48xf32>
    %764 = arith.truncf %763 : vector<16x48xf32> to vector<16x48xbf16>
    %c0_294 = arith.constant 0 : index
    %c0_295 = arith.constant 0 : index
    %765 = vector.load %arg31[%c0_294, %c0_295] : memref<48x192xbf16, #tpu.memory_space<vmem>>, vector<48x192xbf16>
    %cst_296 = arith.constant dense<0.000000e+00> : vector<16x192xf32>
    %766 = tpu.matmul %764, %765, %cst_296 {dimension_numbers = #tpu.dot_dimension_numbers<[1], [0], [0], [1], [0, 0, 1, 1], [], []>} : vector<16x48xbf16>, vector<48x192xbf16>, vector<16x192xf32> -> vector<16x192xf32>
    %cst_297 = arith.constant 0.000000e+00 : bf16
    %767 = vector.broadcast %cst_297 : bf16 to vector<5x48xbf16>
    %768 = tpu.concatenate %767, %764, %767 in 0 : vector<5x48xbf16>, vector<16x48xbf16>, vector<5x48xbf16> -> vector<26x48xbf16>
    %769 = tpu.iota {dimensions = array<i32: 0>} : vector<16x48xi32>
    %c4_i32_298 = arith.constant 4 : i32
    %c0_i32_299 = arith.constant 0 : i32
    %770 = arith.cmpi eq, %c4_i32_298, %c0_i32_299 : i32
    %c1_i32_300 = arith.constant 1 : i32
    %771 = arith.select %770, %c1_i32_300, %c4_i32_298 : i32
    %772 = vector.broadcast %771 : i32 to vector<16x48xi32>
    %773 = arith.remsi %769, %772 : vector<16x48xi32>
    %c0_i32_301 = arith.constant 0 : i32
    %774 = vector.broadcast %c0_i32_301 : i32 to vector<16x48xi32>
    %775 = arith.cmpi ne, %773, %774 : vector<16x48xi32>
    %c0_i32_302 = arith.constant 0 : i32
    %776 = vector.broadcast %c0_i32_302 : i32 to vector<16x48xi32>
    %777 = arith.cmpi slt, %773, %776 : vector<16x48xi32>
    %c0_i32_303 = arith.constant 0 : i32
    %778 = arith.cmpi slt, %771, %c0_i32_303 : i32
    %779 = vector.broadcast %778 : i1 to vector<16x48xi1>
    %780 = vector.broadcast %779 : vector<16x48xi1> to vector<16x48xi1>
    %781 = arith.xori %777, %780 : vector<16x48xi1>
    %782 = arith.andi %781, %775 : vector<16x48xi1>
    %783 = vector.broadcast %771 : i32 to vector<16x48xi32>
    %784 = arith.addi %773, %783 : vector<16x48xi32>
    %785 = arith.select %782, %784, %773 : vector<16x48xi1>, vector<16x48xi32>
    %c1_i32_304 = arith.constant 1 : i32
    %786 = vector.broadcast %c1_i32_304 : i32 to vector<16x48xi32>
    %787 = arith.cmpi sge, %785, %786 : vector<16x48xi32>
    %c2_i32_305 = arith.constant 2 : i32
    %788 = vector.broadcast %c2_i32_305 : i32 to vector<16x48xi32>
    %789 = arith.cmpi sle, %785, %788 : vector<16x48xi32>
    %cst_306 = arith.constant 0.000000e+00 : bf16
    %790 = vector.broadcast %cst_306 : bf16 to vector<16x48xbf16>
    %cst_307 = arith.constant 0.000000e+00 : f32
    %791 = vector.broadcast %cst_307 : f32 to vector<16x192xf32>
    %792 = vector.extract_strided_slice %768 {offsets = [0, 0], sizes = [16, 48], strides = [1, 1]} : vector<26x48xbf16> to vector<16x48xbf16>
    %793 = arith.select %787, %792, %790 : vector<16x48xi1>, vector<16x48xbf16>
    %c0_308 = arith.constant 0 : index
    %c0_309 = arith.constant 0 : index
    %c0_310 = arith.constant 0 : index
    %794 = vector.load %arg32[%c0_308, %c0_309, %c0_310] : memref<9x48x192xbf16, #tpu.memory_space<vmem>>, vector<1x48x192xbf16>
    %795 = vector.shape_cast %794 : vector<1x48x192xbf16> to vector<48x192xbf16>
    %cst_311 = arith.constant dense<0.000000e+00> : vector<16x192xf32>
    %796 = tpu.matmul %793, %795, %cst_311 {dimension_numbers = #tpu.dot_dimension_numbers<[1], [0], [0], [1], [0, 0, 1, 1], [], []>} : vector<16x48xbf16>, vector<48x192xbf16>, vector<16x192xf32> -> vector<16x192xf32>
    %797 = arith.addf %791, %796 : vector<16x192xf32>
    %798 = vector.extract_strided_slice %768 {offsets = [1, 0], sizes = [16, 48], strides = [1, 1]} : vector<26x48xbf16> to vector<16x48xbf16>
    %c1_312 = arith.constant 1 : index
    %c0_313 = arith.constant 0 : index
    %c0_314 = arith.constant 0 : index
    %799 = vector.load %arg32[%c1_312, %c0_313, %c0_314] : memref<9x48x192xbf16, #tpu.memory_space<vmem>>, vector<1x48x192xbf16>
    %800 = vector.shape_cast %799 : vector<1x48x192xbf16> to vector<48x192xbf16>
    %cst_315 = arith.constant dense<0.000000e+00> : vector<16x192xf32>
    %801 = tpu.matmul %798, %800, %cst_315 {dimension_numbers = #tpu.dot_dimension_numbers<[1], [0], [0], [1], [0, 0, 1, 1], [], []>} : vector<16x48xbf16>, vector<48x192xbf16>, vector<16x192xf32> -> vector<16x192xf32>
    %802 = arith.addf %797, %801 : vector<16x192xf32>
    %803 = vector.extract_strided_slice %768 {offsets = [2, 0], sizes = [16, 48], strides = [1, 1]} : vector<26x48xbf16> to vector<16x48xbf16>
    %804 = arith.select %789, %803, %790 : vector<16x48xi1>, vector<16x48xbf16>
    %c2_316 = arith.constant 2 : index
    %c0_317 = arith.constant 0 : index
    %c0_318 = arith.constant 0 : index
    %805 = vector.load %arg32[%c2_316, %c0_317, %c0_318] : memref<9x48x192xbf16, #tpu.memory_space<vmem>>, vector<1x48x192xbf16>
    %806 = vector.shape_cast %805 : vector<1x48x192xbf16> to vector<48x192xbf16>
    %cst_319 = arith.constant dense<0.000000e+00> : vector<16x192xf32>
    %807 = tpu.matmul %804, %806, %cst_319 {dimension_numbers = #tpu.dot_dimension_numbers<[1], [0], [0], [1], [0, 0, 1, 1], [], []>} : vector<16x48xbf16>, vector<48x192xbf16>, vector<16x192xf32> -> vector<16x192xf32>
    %808 = arith.addf %802, %807 : vector<16x192xf32>
    %809 = vector.extract_strided_slice %768 {offsets = [4, 0], sizes = [16, 48], strides = [1, 1]} : vector<26x48xbf16> to vector<16x48xbf16>
    %810 = arith.select %787, %809, %790 : vector<16x48xi1>, vector<16x48xbf16>
    %c3_320 = arith.constant 3 : index
    %c0_321 = arith.constant 0 : index
    %c0_322 = arith.constant 0 : index
    %811 = vector.load %arg32[%c3_320, %c0_321, %c0_322] : memref<9x48x192xbf16, #tpu.memory_space<vmem>>, vector<1x48x192xbf16>
    %812 = vector.shape_cast %811 : vector<1x48x192xbf16> to vector<48x192xbf16>
    %cst_323 = arith.constant dense<0.000000e+00> : vector<16x192xf32>
    %813 = tpu.matmul %810, %812, %cst_323 {dimension_numbers = #tpu.dot_dimension_numbers<[1], [0], [0], [1], [0, 0, 1, 1], [], []>} : vector<16x48xbf16>, vector<48x192xbf16>, vector<16x192xf32> -> vector<16x192xf32>
    %814 = arith.addf %808, %813 : vector<16x192xf32>
    %815 = vector.extract_strided_slice %768 {offsets = [5, 0], sizes = [16, 48], strides = [1, 1]} : vector<26x48xbf16> to vector<16x48xbf16>
    %c4_324 = arith.constant 4 : index
    %c0_325 = arith.constant 0 : index
    %c0_326 = arith.constant 0 : index
    %816 = vector.load %arg32[%c4_324, %c0_325, %c0_326] : memref<9x48x192xbf16, #tpu.memory_space<vmem>>, vector<1x48x192xbf16>
    %817 = vector.shape_cast %816 : vector<1x48x192xbf16> to vector<48x192xbf16>
    %cst_327 = arith.constant dense<0.000000e+00> : vector<16x192xf32>
    %818 = tpu.matmul %815, %817, %cst_327 {dimension_numbers = #tpu.dot_dimension_numbers<[1], [0], [0], [1], [0, 0, 1, 1], [], []>} : vector<16x48xbf16>, vector<48x192xbf16>, vector<16x192xf32> -> vector<16x192xf32>
    %819 = arith.addf %814, %818 : vector<16x192xf32>
    %820 = vector.extract_strided_slice %768 {offsets = [6, 0], sizes = [16, 48], strides = [1, 1]} : vector<26x48xbf16> to vector<16x48xbf16>
    %821 = arith.select %789, %820, %790 : vector<16x48xi1>, vector<16x48xbf16>
    %c5_328 = arith.constant 5 : index
    %c0_329 = arith.constant 0 : index
    %c0_330 = arith.constant 0 : index
    %822 = vector.load %arg32[%c5_328, %c0_329, %c0_330] : memref<9x48x192xbf16, #tpu.memory_space<vmem>>, vector<1x48x192xbf16>
    %823 = vector.shape_cast %822 : vector<1x48x192xbf16> to vector<48x192xbf16>
    %cst_331 = arith.constant dense<0.000000e+00> : vector<16x192xf32>
    %824 = tpu.matmul %821, %823, %cst_331 {dimension_numbers = #tpu.dot_dimension_numbers<[1], [0], [0], [1], [0, 0, 1, 1], [], []>} : vector<16x48xbf16>, vector<48x192xbf16>, vector<16x192xf32> -> vector<16x192xf32>
    %825 = arith.addf %819, %824 : vector<16x192xf32>
    %826 = vector.extract_strided_slice %768 {offsets = [8, 0], sizes = [16, 48], strides = [1, 1]} : vector<26x48xbf16> to vector<16x48xbf16>
    %827 = arith.select %787, %826, %790 : vector<16x48xi1>, vector<16x48xbf16>
    %c6_332 = arith.constant 6 : index
    %c0_333 = arith.constant 0 : index
    %c0_334 = arith.constant 0 : index
    %828 = vector.load %arg32[%c6_332, %c0_333, %c0_334] : memref<9x48x192xbf16, #tpu.memory_space<vmem>>, vector<1x48x192xbf16>
    %829 = vector.shape_cast %828 : vector<1x48x192xbf16> to vector<48x192xbf16>
    %cst_335 = arith.constant dense<0.000000e+00> : vector<16x192xf32>
    %830 = tpu.matmul %827, %829, %cst_335 {dimension_numbers = #tpu.dot_dimension_numbers<[1], [0], [0], [1], [0, 0, 1, 1], [], []>} : vector<16x48xbf16>, vector<48x192xbf16>, vector<16x192xf32> -> vector<16x192xf32>
    %831 = arith.addf %825, %830 : vector<16x192xf32>
    %832 = vector.extract_strided_slice %768 {offsets = [9, 0], sizes = [16, 48], strides = [1, 1]} : vector<26x48xbf16> to vector<16x48xbf16>
    %c7_336 = arith.constant 7 : index
    %c0_337 = arith.constant 0 : index
    %c0_338 = arith.constant 0 : index
    %833 = vector.load %arg32[%c7_336, %c0_337, %c0_338] : memref<9x48x192xbf16, #tpu.memory_space<vmem>>, vector<1x48x192xbf16>
    %834 = vector.shape_cast %833 : vector<1x48x192xbf16> to vector<48x192xbf16>
    %cst_339 = arith.constant dense<0.000000e+00> : vector<16x192xf32>
    %835 = tpu.matmul %832, %834, %cst_339 {dimension_numbers = #tpu.dot_dimension_numbers<[1], [0], [0], [1], [0, 0, 1, 1], [], []>} : vector<16x48xbf16>, vector<48x192xbf16>, vector<16x192xf32> -> vector<16x192xf32>
    %836 = arith.addf %831, %835 : vector<16x192xf32>
    %837 = vector.extract_strided_slice %768 {offsets = [10, 0], sizes = [16, 48], strides = [1, 1]} : vector<26x48xbf16> to vector<16x48xbf16>
    %838 = arith.select %789, %837, %790 : vector<16x48xi1>, vector<16x48xbf16>
    %c8_340 = arith.constant 8 : index
    %c0_341 = arith.constant 0 : index
    %c0_342 = arith.constant 0 : index
    %839 = vector.load %arg32[%c8_340, %c0_341, %c0_342] : memref<9x48x192xbf16, #tpu.memory_space<vmem>>, vector<1x48x192xbf16>
    %840 = vector.shape_cast %839 : vector<1x48x192xbf16> to vector<48x192xbf16>
    %cst_343 = arith.constant dense<0.000000e+00> : vector<16x192xf32>
    %841 = tpu.matmul %838, %840, %cst_343 {dimension_numbers = #tpu.dot_dimension_numbers<[1], [0], [0], [1], [0, 0, 1, 1], [], []>} : vector<16x48xbf16>, vector<48x192xbf16>, vector<16x192xf32> -> vector<16x192xf32>
    %842 = arith.addf %836, %841 : vector<16x192xf32>
    %843 = tpu.concatenate %766, %842 in 1 : vector<16x192xf32>, vector<16x192xf32> -> vector<16x384xf32>
    %c0_344 = arith.constant 0 : index
    %c0_345 = arith.constant 0 : index
    %844 = vector.load %arg33[%c0_344, %c0_345] : memref<1x384xf32, #tpu.memory_space<vmem>>, vector<1x384xf32>
    %845 = vector.broadcast %844 : vector<1x384xf32> to vector<16x384xf32>
    %846 = arith.addf %843, %845 : vector<16x384xf32>
    %cst_346 = arith.constant 0.000000e+00 : f32
    %847 = vector.broadcast %cst_346 : f32 to vector<16x384xf32>
    %848 = arith.maximumf %846, %847 : vector<16x384xf32>
    %849 = arith.truncf %848 : vector<16x384xf32> to vector<16x384xbf16>
    %c0_347 = arith.constant 0 : index
    %c0_348 = arith.constant 0 : index
    %850 = vector.load %arg34[%c0_347, %c0_348] : memref<384x64xbf16, #tpu.memory_space<vmem>>, vector<384x64xbf16>
    %cst_349 = arith.constant dense<0.000000e+00> : vector<16x64xf32>
    %851 = tpu.matmul %849, %850, %cst_349 {dimension_numbers = #tpu.dot_dimension_numbers<[1], [0], [0], [1], [0, 0, 1, 1], [], []>} : vector<16x384xbf16>, vector<384x64xbf16>, vector<16x64xf32> -> vector<16x64xf32>
    %c0_350 = arith.constant 0 : index
    %c0_351 = arith.constant 0 : index
    %852 = vector.load %arg35[%c0_350, %c0_351] : memref<1x64xf32, #tpu.memory_space<vmem>>, vector<1x64xf32>
    %853 = vector.broadcast %852 : vector<1x64xf32> to vector<16x64xf32>
    %854 = arith.addf %851, %853 : vector<16x64xf32>
    %cst_352 = arith.constant 0.000000e+00 : f32
    %855 = vector.broadcast %cst_352 : f32 to vector<16x64xf32>
    %856 = arith.maximumf %854, %855 : vector<16x64xf32>
    %857 = arith.truncf %856 : vector<16x64xf32> to vector<16x64xbf16>
    %c0_353 = arith.constant 0 : index
    %c0_354 = arith.constant 0 : index
    %858 = vector.load %arg36[%c0_353, %c0_354] : memref<64x256xbf16, #tpu.memory_space<vmem>>, vector<64x256xbf16>
    %cst_355 = arith.constant dense<0.000000e+00> : vector<16x256xf32>
    %859 = tpu.matmul %857, %858, %cst_355 {dimension_numbers = #tpu.dot_dimension_numbers<[1], [0], [0], [1], [0, 0, 1, 1], [], []>} : vector<16x64xbf16>, vector<64x256xbf16>, vector<16x256xf32> -> vector<16x256xf32>
    %cst_356 = arith.constant 0.000000e+00 : bf16
    %860 = vector.broadcast %cst_356 : bf16 to vector<5x64xbf16>
    %861 = tpu.concatenate %860, %857, %860 in 0 : vector<5x64xbf16>, vector<16x64xbf16>, vector<5x64xbf16> -> vector<26x64xbf16>
    %862 = tpu.iota {dimensions = array<i32: 0>} : vector<16x64xi32>
    %c4_i32_357 = arith.constant 4 : i32
    %c0_i32_358 = arith.constant 0 : i32
    %863 = arith.cmpi eq, %c4_i32_357, %c0_i32_358 : i32
    %c1_i32_359 = arith.constant 1 : i32
    %864 = arith.select %863, %c1_i32_359, %c4_i32_357 : i32
    %865 = vector.broadcast %864 : i32 to vector<16x64xi32>
    %866 = arith.remsi %862, %865 : vector<16x64xi32>
    %c0_i32_360 = arith.constant 0 : i32
    %867 = vector.broadcast %c0_i32_360 : i32 to vector<16x64xi32>
    %868 = arith.cmpi ne, %866, %867 : vector<16x64xi32>
    %c0_i32_361 = arith.constant 0 : i32
    %869 = vector.broadcast %c0_i32_361 : i32 to vector<16x64xi32>
    %870 = arith.cmpi slt, %866, %869 : vector<16x64xi32>
    %c0_i32_362 = arith.constant 0 : i32
    %871 = arith.cmpi slt, %864, %c0_i32_362 : i32
    %872 = vector.broadcast %871 : i1 to vector<16x64xi1>
    %873 = vector.broadcast %872 : vector<16x64xi1> to vector<16x64xi1>
    %874 = arith.xori %870, %873 : vector<16x64xi1>
    %875 = arith.andi %874, %868 : vector<16x64xi1>
    %876 = vector.broadcast %864 : i32 to vector<16x64xi32>
    %877 = arith.addi %866, %876 : vector<16x64xi32>
    %878 = arith.select %875, %877, %866 : vector<16x64xi1>, vector<16x64xi32>
    %c1_i32_363 = arith.constant 1 : i32
    %879 = vector.broadcast %c1_i32_363 : i32 to vector<16x64xi32>
    %880 = arith.cmpi sge, %878, %879 : vector<16x64xi32>
    %c2_i32_364 = arith.constant 2 : i32
    %881 = vector.broadcast %c2_i32_364 : i32 to vector<16x64xi32>
    %882 = arith.cmpi sle, %878, %881 : vector<16x64xi32>
    %cst_365 = arith.constant 0.000000e+00 : bf16
    %883 = vector.broadcast %cst_365 : bf16 to vector<16x64xbf16>
    %cst_366 = arith.constant 0.000000e+00 : f32
    %884 = vector.broadcast %cst_366 : f32 to vector<16x256xf32>
    %885 = vector.extract_strided_slice %861 {offsets = [0, 0], sizes = [16, 64], strides = [1, 1]} : vector<26x64xbf16> to vector<16x64xbf16>
    %886 = arith.select %880, %885, %883 : vector<16x64xi1>, vector<16x64xbf16>
    %c0_367 = arith.constant 0 : index
    %c0_368 = arith.constant 0 : index
    %c0_369 = arith.constant 0 : index
    %887 = vector.load %arg37[%c0_367, %c0_368, %c0_369] : memref<9x64x256xbf16, #tpu.memory_space<vmem>>, vector<1x64x256xbf16>
    %888 = vector.shape_cast %887 : vector<1x64x256xbf16> to vector<64x256xbf16>
    %cst_370 = arith.constant dense<0.000000e+00> : vector<16x256xf32>
    %889 = tpu.matmul %886, %888, %cst_370 {dimension_numbers = #tpu.dot_dimension_numbers<[1], [0], [0], [1], [0, 0, 1, 1], [], []>} : vector<16x64xbf16>, vector<64x256xbf16>, vector<16x256xf32> -> vector<16x256xf32>
    %890 = arith.addf %884, %889 : vector<16x256xf32>
    %891 = vector.extract_strided_slice %861 {offsets = [1, 0], sizes = [16, 64], strides = [1, 1]} : vector<26x64xbf16> to vector<16x64xbf16>
    %c1_371 = arith.constant 1 : index
    %c0_372 = arith.constant 0 : index
    %c0_373 = arith.constant 0 : index
    %892 = vector.load %arg37[%c1_371, %c0_372, %c0_373] : memref<9x64x256xbf16, #tpu.memory_space<vmem>>, vector<1x64x256xbf16>
    %893 = vector.shape_cast %892 : vector<1x64x256xbf16> to vector<64x256xbf16>
    %cst_374 = arith.constant dense<0.000000e+00> : vector<16x256xf32>
    %894 = tpu.matmul %891, %893, %cst_374 {dimension_numbers = #tpu.dot_dimension_numbers<[1], [0], [0], [1], [0, 0, 1, 1], [], []>} : vector<16x64xbf16>, vector<64x256xbf16>, vector<16x256xf32> -> vector<16x256xf32>
    %895 = arith.addf %890, %894 : vector<16x256xf32>
    %896 = vector.extract_strided_slice %861 {offsets = [2, 0], sizes = [16, 64], strides = [1, 1]} : vector<26x64xbf16> to vector<16x64xbf16>
    %897 = arith.select %882, %896, %883 : vector<16x64xi1>, vector<16x64xbf16>
    %c2_375 = arith.constant 2 : index
    %c0_376 = arith.constant 0 : index
    %c0_377 = arith.constant 0 : index
    %898 = vector.load %arg37[%c2_375, %c0_376, %c0_377] : memref<9x64x256xbf16, #tpu.memory_space<vmem>>, vector<1x64x256xbf16>
    %899 = vector.shape_cast %898 : vector<1x64x256xbf16> to vector<64x256xbf16>
    %cst_378 = arith.constant dense<0.000000e+00> : vector<16x256xf32>
    %900 = tpu.matmul %897, %899, %cst_378 {dimension_numbers = #tpu.dot_dimension_numbers<[1], [0], [0], [1], [0, 0, 1, 1], [], []>} : vector<16x64xbf16>, vector<64x256xbf16>, vector<16x256xf32> -> vector<16x256xf32>
    %901 = arith.addf %895, %900 : vector<16x256xf32>
    %902 = vector.extract_strided_slice %861 {offsets = [4, 0], sizes = [16, 64], strides = [1, 1]} : vector<26x64xbf16> to vector<16x64xbf16>
    %903 = arith.select %880, %902, %883 : vector<16x64xi1>, vector<16x64xbf16>
    %c3_379 = arith.constant 3 : index
    %c0_380 = arith.constant 0 : index
    %c0_381 = arith.constant 0 : index
    %904 = vector.load %arg37[%c3_379, %c0_380, %c0_381] : memref<9x64x256xbf16, #tpu.memory_space<vmem>>, vector<1x64x256xbf16>
    %905 = vector.shape_cast %904 : vector<1x64x256xbf16> to vector<64x256xbf16>
    %cst_382 = arith.constant dense<0.000000e+00> : vector<16x256xf32>
    %906 = tpu.matmul %903, %905, %cst_382 {dimension_numbers = #tpu.dot_dimension_numbers<[1], [0], [0], [1], [0, 0, 1, 1], [], []>} : vector<16x64xbf16>, vector<64x256xbf16>, vector<16x256xf32> -> vector<16x256xf32>
    %907 = arith.addf %901, %906 : vector<16x256xf32>
    %908 = vector.extract_strided_slice %861 {offsets = [5, 0], sizes = [16, 64], strides = [1, 1]} : vector<26x64xbf16> to vector<16x64xbf16>
    %c4_383 = arith.constant 4 : index
    %c0_384 = arith.constant 0 : index
    %c0_385 = arith.constant 0 : index
    %909 = vector.load %arg37[%c4_383, %c0_384, %c0_385] : memref<9x64x256xbf16, #tpu.memory_space<vmem>>, vector<1x64x256xbf16>
    %910 = vector.shape_cast %909 : vector<1x64x256xbf16> to vector<64x256xbf16>
    %cst_386 = arith.constant dense<0.000000e+00> : vector<16x256xf32>
    %911 = tpu.matmul %908, %910, %cst_386 {dimension_numbers = #tpu.dot_dimension_numbers<[1], [0], [0], [1], [0, 0, 1, 1], [], []>} : vector<16x64xbf16>, vector<64x256xbf16>, vector<16x256xf32> -> vector<16x256xf32>
    %912 = arith.addf %907, %911 : vector<16x256xf32>
    %913 = vector.extract_strided_slice %861 {offsets = [6, 0], sizes = [16, 64], strides = [1, 1]} : vector<26x64xbf16> to vector<16x64xbf16>
    %914 = arith.select %882, %913, %883 : vector<16x64xi1>, vector<16x64xbf16>
    %c5_387 = arith.constant 5 : index
    %c0_388 = arith.constant 0 : index
    %c0_389 = arith.constant 0 : index
    %915 = vector.load %arg37[%c5_387, %c0_388, %c0_389] : memref<9x64x256xbf16, #tpu.memory_space<vmem>>, vector<1x64x256xbf16>
    %916 = vector.shape_cast %915 : vector<1x64x256xbf16> to vector<64x256xbf16>
    %cst_390 = arith.constant dense<0.000000e+00> : vector<16x256xf32>
    %917 = tpu.matmul %914, %916, %cst_390 {dimension_numbers = #tpu.dot_dimension_numbers<[1], [0], [0], [1], [0, 0, 1, 1], [], []>} : vector<16x64xbf16>, vector<64x256xbf16>, vector<16x256xf32> -> vector<16x256xf32>
    %918 = arith.addf %912, %917 : vector<16x256xf32>
    %919 = vector.extract_strided_slice %861 {offsets = [8, 0], sizes = [16, 64], strides = [1, 1]} : vector<26x64xbf16> to vector<16x64xbf16>
    %920 = arith.select %880, %919, %883 : vector<16x64xi1>, vector<16x64xbf16>
    %c6_391 = arith.constant 6 : index
    %c0_392 = arith.constant 0 : index
    %c0_393 = arith.constant 0 : index
    %921 = vector.load %arg37[%c6_391, %c0_392, %c0_393] : memref<9x64x256xbf16, #tpu.memory_space<vmem>>, vector<1x64x256xbf16>
    %922 = vector.shape_cast %921 : vector<1x64x256xbf16> to vector<64x256xbf16>
    %cst_394 = arith.constant dense<0.000000e+00> : vector<16x256xf32>
    %923 = tpu.matmul %920, %922, %cst_394 {dimension_numbers = #tpu.dot_dimension_numbers<[1], [0], [0], [1], [0, 0, 1, 1], [], []>} : vector<16x64xbf16>, vector<64x256xbf16>, vector<16x256xf32> -> vector<16x256xf32>
    %924 = arith.addf %918, %923 : vector<16x256xf32>
    %925 = vector.extract_strided_slice %861 {offsets = [9, 0], sizes = [16, 64], strides = [1, 1]} : vector<26x64xbf16> to vector<16x64xbf16>
    %c7_395 = arith.constant 7 : index
    %c0_396 = arith.constant 0 : index
    %c0_397 = arith.constant 0 : index
    %926 = vector.load %arg37[%c7_395, %c0_396, %c0_397] : memref<9x64x256xbf16, #tpu.memory_space<vmem>>, vector<1x64x256xbf16>
    %927 = vector.shape_cast %926 : vector<1x64x256xbf16> to vector<64x256xbf16>
    %cst_398 = arith.constant dense<0.000000e+00> : vector<16x256xf32>
    %928 = tpu.matmul %925, %927, %cst_398 {dimension_numbers = #tpu.dot_dimension_numbers<[1], [0], [0], [1], [0, 0, 1, 1], [], []>} : vector<16x64xbf16>, vector<64x256xbf16>, vector<16x256xf32> -> vector<16x256xf32>
    %929 = arith.addf %924, %928 : vector<16x256xf32>
    %930 = vector.extract_strided_slice %861 {offsets = [10, 0], sizes = [16, 64], strides = [1, 1]} : vector<26x64xbf16> to vector<16x64xbf16>
    %931 = arith.select %882, %930, %883 : vector<16x64xi1>, vector<16x64xbf16>
    %c8_399 = arith.constant 8 : index
    %c0_400 = arith.constant 0 : index
    %c0_401 = arith.constant 0 : index
    %932 = vector.load %arg37[%c8_399, %c0_400, %c0_401] : memref<9x64x256xbf16, #tpu.memory_space<vmem>>, vector<1x64x256xbf16>
    %933 = vector.shape_cast %932 : vector<1x64x256xbf16> to vector<64x256xbf16>
    %cst_402 = arith.constant dense<0.000000e+00> : vector<16x256xf32>
    %934 = tpu.matmul %931, %933, %cst_402 {dimension_numbers = #tpu.dot_dimension_numbers<[1], [0], [0], [1], [0, 0, 1, 1], [], []>} : vector<16x64xbf16>, vector<64x256xbf16>, vector<16x256xf32> -> vector<16x256xf32>
    %935 = arith.addf %929, %934 : vector<16x256xf32>
    %936 = tpu.concatenate %859, %935 in 1 : vector<16x256xf32>, vector<16x256xf32> -> vector<16x512xf32>
    %c0_403 = arith.constant 0 : index
    %c0_404 = arith.constant 0 : index
    %937 = vector.load %arg38[%c0_403, %c0_404] : memref<1x512xf32, #tpu.memory_space<vmem>>, vector<1x512xf32>
    %938 = vector.broadcast %937 : vector<1x512xf32> to vector<16x512xf32>
    %939 = arith.addf %936, %938 : vector<16x512xf32>
    %cst_405 = arith.constant 0.000000e+00 : f32
    %940 = vector.broadcast %cst_405 : f32 to vector<16x512xf32>
    %941 = arith.maximumf %939, %940 : vector<16x512xf32>
    %942 = vector.extract_strided_slice %941 {offsets = [0, 0], sizes = [4, 512], strides = [1, 1]} : vector<16x512xf32> to vector<4x512xf32>
    %943 = vector.extract_strided_slice %941 {offsets = [4, 0], sizes = [4, 512], strides = [1, 1]} : vector<16x512xf32> to vector<4x512xf32>
    %944 = arith.maximumf %942, %943 : vector<4x512xf32>
    %945 = vector.extract_strided_slice %944 {offsets = [0, 0], sizes = [1, 512], strides = [1, 1]} : vector<4x512xf32> to vector<1x512xf32>
    %946 = vector.extract_strided_slice %944 {offsets = [1, 0], sizes = [1, 512], strides = [1, 1]} : vector<4x512xf32> to vector<1x512xf32>
    %947 = arith.maximumf %945, %946 : vector<1x512xf32>
    %948 = vector.extract_strided_slice %944 {offsets = [2, 0], sizes = [1, 512], strides = [1, 1]} : vector<4x512xf32> to vector<1x512xf32>
    %949 = vector.extract_strided_slice %944 {offsets = [3, 0], sizes = [1, 512], strides = [1, 1]} : vector<4x512xf32> to vector<1x512xf32>
    %950 = arith.maximumf %948, %949 : vector<1x512xf32>
    %951 = vector.extract_strided_slice %941 {offsets = [8, 0], sizes = [4, 512], strides = [1, 1]} : vector<16x512xf32> to vector<4x512xf32>
    %952 = vector.extract_strided_slice %941 {offsets = [12, 0], sizes = [4, 512], strides = [1, 1]} : vector<16x512xf32> to vector<4x512xf32>
    %953 = arith.maximumf %951, %952 : vector<4x512xf32>
    %954 = vector.extract_strided_slice %953 {offsets = [0, 0], sizes = [1, 512], strides = [1, 1]} : vector<4x512xf32> to vector<1x512xf32>
    %955 = vector.extract_strided_slice %953 {offsets = [1, 0], sizes = [1, 512], strides = [1, 1]} : vector<4x512xf32> to vector<1x512xf32>
    %956 = arith.maximumf %954, %955 : vector<1x512xf32>
    %957 = vector.extract_strided_slice %953 {offsets = [2, 0], sizes = [1, 512], strides = [1, 1]} : vector<4x512xf32> to vector<1x512xf32>
    %958 = vector.extract_strided_slice %953 {offsets = [3, 0], sizes = [1, 512], strides = [1, 1]} : vector<4x512xf32> to vector<1x512xf32>
    %959 = arith.maximumf %957, %958 : vector<1x512xf32>
    %960 = tpu.concatenate %947, %950, %956, %959 in 0 : vector<1x512xf32>, vector<1x512xf32>, vector<1x512xf32>, vector<1x512xf32> -> vector<4x512xf32>
    %961 = arith.truncf %960 : vector<4x512xf32> to vector<4x512xbf16>
    %c0_406 = arith.constant 0 : index
    %c0_407 = arith.constant 0 : index
    %962 = vector.load %arg39[%c0_406, %c0_407] : memref<512x64xbf16, #tpu.memory_space<vmem>>, vector<512x64xbf16>
    %cst_408 = arith.constant dense<0.000000e+00> : vector<4x64xf32>
    %963 = tpu.matmul %961, %962, %cst_408 {dimension_numbers = #tpu.dot_dimension_numbers<[1], [0], [0], [1], [0, 0, 1, 1], [], []>} : vector<4x512xbf16>, vector<512x64xbf16>, vector<4x64xf32> -> vector<4x64xf32>
    %c0_409 = arith.constant 0 : index
    %c0_410 = arith.constant 0 : index
    %964 = vector.load %arg40[%c0_409, %c0_410] : memref<1x64xf32, #tpu.memory_space<vmem>>, vector<1x64xf32>
    %965 = vector.broadcast %964 : vector<1x64xf32> to vector<4x64xf32>
    %966 = arith.addf %963, %965 : vector<4x64xf32>
    %cst_411 = arith.constant 0.000000e+00 : f32
    %967 = vector.broadcast %cst_411 : f32 to vector<4x64xf32>
    %968 = arith.maximumf %966, %967 : vector<4x64xf32>
    %969 = arith.truncf %968 : vector<4x64xf32> to vector<4x64xbf16>
    %c0_412 = arith.constant 0 : index
    %c0_413 = arith.constant 0 : index
    %970 = vector.load %arg41[%c0_412, %c0_413] : memref<64x256xbf16, #tpu.memory_space<vmem>>, vector<64x256xbf16>
    %cst_414 = arith.constant dense<0.000000e+00> : vector<4x256xf32>
    %971 = tpu.matmul %969, %970, %cst_414 {dimension_numbers = #tpu.dot_dimension_numbers<[1], [0], [0], [1], [0, 0, 1, 1], [], []>} : vector<4x64xbf16>, vector<64x256xbf16>, vector<4x256xf32> -> vector<4x256xf32>
    %cst_415 = arith.constant 0.000000e+00 : bf16
    %972 = vector.broadcast %cst_415 : bf16 to vector<3x64xbf16>
    %973 = tpu.concatenate %972, %969, %972 in 0 : vector<3x64xbf16>, vector<4x64xbf16>, vector<3x64xbf16> -> vector<10x64xbf16>
    %974 = tpu.iota {dimensions = array<i32: 0>} : vector<4x64xi32>
    %c2_i32_416 = arith.constant 2 : i32
    %c0_i32_417 = arith.constant 0 : i32
    %975 = arith.cmpi eq, %c2_i32_416, %c0_i32_417 : i32
    %c1_i32_418 = arith.constant 1 : i32
    %976 = arith.select %975, %c1_i32_418, %c2_i32_416 : i32
    %977 = vector.broadcast %976 : i32 to vector<4x64xi32>
    %978 = arith.remsi %974, %977 : vector<4x64xi32>
    %c0_i32_419 = arith.constant 0 : i32
    %979 = vector.broadcast %c0_i32_419 : i32 to vector<4x64xi32>
    %980 = arith.cmpi ne, %978, %979 : vector<4x64xi32>
    %c0_i32_420 = arith.constant 0 : i32
    %981 = vector.broadcast %c0_i32_420 : i32 to vector<4x64xi32>
    %982 = arith.cmpi slt, %978, %981 : vector<4x64xi32>
    %c0_i32_421 = arith.constant 0 : i32
    %983 = arith.cmpi slt, %976, %c0_i32_421 : i32
    %984 = vector.broadcast %983 : i1 to vector<4x64xi1>
    %985 = vector.broadcast %984 : vector<4x64xi1> to vector<4x64xi1>
    %986 = arith.xori %982, %985 : vector<4x64xi1>
    %987 = arith.andi %986, %980 : vector<4x64xi1>
    %988 = vector.broadcast %976 : i32 to vector<4x64xi32>
    %989 = arith.addi %978, %988 : vector<4x64xi32>
    %990 = arith.select %987, %989, %978 : vector<4x64xi1>, vector<4x64xi32>
    %c1_i32_422 = arith.constant 1 : i32
    %991 = vector.broadcast %c1_i32_422 : i32 to vector<4x64xi32>
    %992 = arith.cmpi sge, %990, %991 : vector<4x64xi32>
    %c0_i32_423 = arith.constant 0 : i32
    %993 = vector.broadcast %c0_i32_423 : i32 to vector<4x64xi32>
    %994 = arith.cmpi sle, %990, %993 : vector<4x64xi32>
    %cst_424 = arith.constant 0.000000e+00 : bf16
    %995 = vector.broadcast %cst_424 : bf16 to vector<4x64xbf16>
    %cst_425 = arith.constant 0.000000e+00 : f32
    %996 = vector.broadcast %cst_425 : f32 to vector<4x256xf32>
    %997 = vector.extract_strided_slice %973 {offsets = [0, 0], sizes = [4, 64], strides = [1, 1]} : vector<10x64xbf16> to vector<4x64xbf16>
    %998 = arith.select %992, %997, %995 : vector<4x64xi1>, vector<4x64xbf16>
    %c0_426 = arith.constant 0 : index
    %c0_427 = arith.constant 0 : index
    %c0_428 = arith.constant 0 : index
    %999 = vector.load %arg42[%c0_426, %c0_427, %c0_428] : memref<9x64x256xbf16, #tpu.memory_space<vmem>>, vector<1x64x256xbf16>
    %1000 = vector.shape_cast %999 : vector<1x64x256xbf16> to vector<64x256xbf16>
    %cst_429 = arith.constant dense<0.000000e+00> : vector<4x256xf32>
    %1001 = tpu.matmul %998, %1000, %cst_429 {dimension_numbers = #tpu.dot_dimension_numbers<[1], [0], [0], [1], [0, 0, 1, 1], [], []>} : vector<4x64xbf16>, vector<64x256xbf16>, vector<4x256xf32> -> vector<4x256xf32>
    %1002 = arith.addf %996, %1001 : vector<4x256xf32>
    %1003 = vector.extract_strided_slice %973 {offsets = [1, 0], sizes = [4, 64], strides = [1, 1]} : vector<10x64xbf16> to vector<4x64xbf16>
    %c1_430 = arith.constant 1 : index
    %c0_431 = arith.constant 0 : index
    %c0_432 = arith.constant 0 : index
    %1004 = vector.load %arg42[%c1_430, %c0_431, %c0_432] : memref<9x64x256xbf16, #tpu.memory_space<vmem>>, vector<1x64x256xbf16>
    %1005 = vector.shape_cast %1004 : vector<1x64x256xbf16> to vector<64x256xbf16>
    %cst_433 = arith.constant dense<0.000000e+00> : vector<4x256xf32>
    %1006 = tpu.matmul %1003, %1005, %cst_433 {dimension_numbers = #tpu.dot_dimension_numbers<[1], [0], [0], [1], [0, 0, 1, 1], [], []>} : vector<4x64xbf16>, vector<64x256xbf16>, vector<4x256xf32> -> vector<4x256xf32>
    %1007 = arith.addf %1002, %1006 : vector<4x256xf32>
    %1008 = vector.extract_strided_slice %973 {offsets = [2, 0], sizes = [4, 64], strides = [1, 1]} : vector<10x64xbf16> to vector<4x64xbf16>
    %1009 = arith.select %994, %1008, %995 : vector<4x64xi1>, vector<4x64xbf16>
    %c2_434 = arith.constant 2 : index
    %c0_435 = arith.constant 0 : index
    %c0_436 = arith.constant 0 : index
    %1010 = vector.load %arg42[%c2_434, %c0_435, %c0_436] : memref<9x64x256xbf16, #tpu.memory_space<vmem>>, vector<1x64x256xbf16>
    %1011 = vector.shape_cast %1010 : vector<1x64x256xbf16> to vector<64x256xbf16>
    %cst_437 = arith.constant dense<0.000000e+00> : vector<4x256xf32>
    %1012 = tpu.matmul %1009, %1011, %cst_437 {dimension_numbers = #tpu.dot_dimension_numbers<[1], [0], [0], [1], [0, 0, 1, 1], [], []>} : vector<4x64xbf16>, vector<64x256xbf16>, vector<4x256xf32> -> vector<4x256xf32>
    %1013 = arith.addf %1007, %1012 : vector<4x256xf32>
    %1014 = vector.extract_strided_slice %973 {offsets = [2, 0], sizes = [4, 64], strides = [1, 1]} : vector<10x64xbf16> to vector<4x64xbf16>
    %1015 = arith.select %992, %1014, %995 : vector<4x64xi1>, vector<4x64xbf16>
    %c3_438 = arith.constant 3 : index
    %c0_439 = arith.constant 0 : index
    %c0_440 = arith.constant 0 : index
    %1016 = vector.load %arg42[%c3_438, %c0_439, %c0_440] : memref<9x64x256xbf16, #tpu.memory_space<vmem>>, vector<1x64x256xbf16>
    %1017 = vector.shape_cast %1016 : vector<1x64x256xbf16> to vector<64x256xbf16>
    %cst_441 = arith.constant dense<0.000000e+00> : vector<4x256xf32>
    %1018 = tpu.matmul %1015, %1017, %cst_441 {dimension_numbers = #tpu.dot_dimension_numbers<[1], [0], [0], [1], [0, 0, 1, 1], [], []>} : vector<4x64xbf16>, vector<64x256xbf16>, vector<4x256xf32> -> vector<4x256xf32>
    %1019 = arith.addf %1013, %1018 : vector<4x256xf32>
    %1020 = vector.extract_strided_slice %973 {offsets = [3, 0], sizes = [4, 64], strides = [1, 1]} : vector<10x64xbf16> to vector<4x64xbf16>
    %c4_442 = arith.constant 4 : index
    %c0_443 = arith.constant 0 : index
    %c0_444 = arith.constant 0 : index
    %1021 = vector.load %arg42[%c4_442, %c0_443, %c0_444] : memref<9x64x256xbf16, #tpu.memory_space<vmem>>, vector<1x64x256xbf16>
    %1022 = vector.shape_cast %1021 : vector<1x64x256xbf16> to vector<64x256xbf16>
    %cst_445 = arith.constant dense<0.000000e+00> : vector<4x256xf32>
    %1023 = tpu.matmul %1020, %1022, %cst_445 {dimension_numbers = #tpu.dot_dimension_numbers<[1], [0], [0], [1], [0, 0, 1, 1], [], []>} : vector<4x64xbf16>, vector<64x256xbf16>, vector<4x256xf32> -> vector<4x256xf32>
    %1024 = arith.addf %1019, %1023 : vector<4x256xf32>
    %1025 = vector.extract_strided_slice %973 {offsets = [4, 0], sizes = [4, 64], strides = [1, 1]} : vector<10x64xbf16> to vector<4x64xbf16>
    %1026 = arith.select %994, %1025, %995 : vector<4x64xi1>, vector<4x64xbf16>
    %c5_446 = arith.constant 5 : index
    %c0_447 = arith.constant 0 : index
    %c0_448 = arith.constant 0 : index
    %1027 = vector.load %arg42[%c5_446, %c0_447, %c0_448] : memref<9x64x256xbf16, #tpu.memory_space<vmem>>, vector<1x64x256xbf16>
    %1028 = vector.shape_cast %1027 : vector<1x64x256xbf16> to vector<64x256xbf16>
    %cst_449 = arith.constant dense<0.000000e+00> : vector<4x256xf32>
    %1029 = tpu.matmul %1026, %1028, %cst_449 {dimension_numbers = #tpu.dot_dimension_numbers<[1], [0], [0], [1], [0, 0, 1, 1], [], []>} : vector<4x64xbf16>, vector<64x256xbf16>, vector<4x256xf32> -> vector<4x256xf32>
    %1030 = arith.addf %1024, %1029 : vector<4x256xf32>
    %1031 = vector.extract_strided_slice %973 {offsets = [4, 0], sizes = [4, 64], strides = [1, 1]} : vector<10x64xbf16> to vector<4x64xbf16>
    %1032 = arith.select %992, %1031, %995 : vector<4x64xi1>, vector<4x64xbf16>
    %c6_450 = arith.constant 6 : index
    %c0_451 = arith.constant 0 : index
    %c0_452 = arith.constant 0 : index
    %1033 = vector.load %arg42[%c6_450, %c0_451, %c0_452] : memref<9x64x256xbf16, #tpu.memory_space<vmem>>, vector<1x64x256xbf16>
    %1034 = vector.shape_cast %1033 : vector<1x64x256xbf16> to vector<64x256xbf16>
    %cst_453 = arith.constant dense<0.000000e+00> : vector<4x256xf32>
    %1035 = tpu.matmul %1032, %1034, %cst_453 {dimension_numbers = #tpu.dot_dimension_numbers<[1], [0], [0], [1], [0, 0, 1, 1], [], []>} : vector<4x64xbf16>, vector<64x256xbf16>, vector<4x256xf32> -> vector<4x256xf32>
    %1036 = arith.addf %1030, %1035 : vector<4x256xf32>
    %1037 = vector.extract_strided_slice %973 {offsets = [5, 0], sizes = [4, 64], strides = [1, 1]} : vector<10x64xbf16> to vector<4x64xbf16>
    %c7_454 = arith.constant 7 : index
    %c0_455 = arith.constant 0 : index
    %c0_456 = arith.constant 0 : index
    %1038 = vector.load %arg42[%c7_454, %c0_455, %c0_456] : memref<9x64x256xbf16, #tpu.memory_space<vmem>>, vector<1x64x256xbf16>
    %1039 = vector.shape_cast %1038 : vector<1x64x256xbf16> to vector<64x256xbf16>
    %cst_457 = arith.constant dense<0.000000e+00> : vector<4x256xf32>
    %1040 = tpu.matmul %1037, %1039, %cst_457 {dimension_numbers = #tpu.dot_dimension_numbers<[1], [0], [0], [1], [0, 0, 1, 1], [], []>} : vector<4x64xbf16>, vector<64x256xbf16>, vector<4x256xf32> -> vector<4x256xf32>
    %1041 = arith.addf %1036, %1040 : vector<4x256xf32>
    %1042 = vector.extract_strided_slice %973 {offsets = [6, 0], sizes = [4, 64], strides = [1, 1]} : vector<10x64xbf16> to vector<4x64xbf16>
    %1043 = arith.select %994, %1042, %995 : vector<4x64xi1>, vector<4x64xbf16>
    %c8_458 = arith.constant 8 : index
    %c0_459 = arith.constant 0 : index
    %c0_460 = arith.constant 0 : index
    %1044 = vector.load %arg42[%c8_458, %c0_459, %c0_460] : memref<9x64x256xbf16, #tpu.memory_space<vmem>>, vector<1x64x256xbf16>
    %1045 = vector.shape_cast %1044 : vector<1x64x256xbf16> to vector<64x256xbf16>
    %cst_461 = arith.constant dense<0.000000e+00> : vector<4x256xf32>
    %1046 = tpu.matmul %1043, %1045, %cst_461 {dimension_numbers = #tpu.dot_dimension_numbers<[1], [0], [0], [1], [0, 0, 1, 1], [], []>} : vector<4x64xbf16>, vector<64x256xbf16>, vector<4x256xf32> -> vector<4x256xf32>
    %1047 = arith.addf %1041, %1046 : vector<4x256xf32>
    %1048 = tpu.concatenate %971, %1047 in 1 : vector<4x256xf32>, vector<4x256xf32> -> vector<4x512xf32>
    %c0_462 = arith.constant 0 : index
    %c0_463 = arith.constant 0 : index
    %1049 = vector.load %arg43[%c0_462, %c0_463] : memref<1x512xf32, #tpu.memory_space<vmem>>, vector<1x512xf32>
    %1050 = vector.broadcast %1049 : vector<1x512xf32> to vector<4x512xf32>
    %1051 = arith.addf %1048, %1050 : vector<4x512xf32>
    %cst_464 = arith.constant 0.000000e+00 : f32
    %1052 = vector.broadcast %cst_464 : f32 to vector<4x512xf32>
    %1053 = arith.maximumf %1051, %1052 : vector<4x512xf32>
    %cst_465 = arith.constant dense<0.000000e+00> : vector<512xf32>
    %1054 = vector.multi_reduction <add>, %1053, %cst_465 [0] : vector<4x512xf32> to vector<512xf32>
    %1055 = vector.shape_cast %1054 : vector<512xf32> to vector<1x512xf32>
    %cst_466 = arith.constant 2.500000e-01 : f32
    %1056 = vector.broadcast %cst_466 : f32 to vector<1x512xf32>
    %1057 = arith.mulf %1055, %1056 : vector<1x512xf32>
    %1058 = arith.truncf %1057 : vector<1x512xf32> to vector<1x512xbf16>
    %c0_467 = arith.constant 0 : index
    %c0_468 = arith.constant 0 : index
    %1059 = vector.load %arg44[%c0_467, %c0_468] : memref<512x128xbf16, #tpu.memory_space<vmem>>, vector<512x128xbf16>
    %cst_469 = arith.constant dense<0.000000e+00> : vector<1x128xf32>
    %1060 = tpu.matmul %1058, %1059, %cst_469 {dimension_numbers = #tpu.dot_dimension_numbers<[1], [0], [0], [1], [0, 0, 1, 1], [], []>} : vector<1x512xbf16>, vector<512x128xbf16>, vector<1x128xf32> -> vector<1x128xf32>
    %c0_470 = arith.constant 0 : index
    %c0_471 = arith.constant 0 : index
    %1061 = vector.load %arg45[%c0_470, %c0_471] : memref<1x128xf32, #tpu.memory_space<vmem>>, vector<1x128xf32>
    %1062 = arith.addf %1060, %1061 : vector<1x128xf32>
    %cst_472 = arith.constant dense<0xFF800000> : vector<1xf32>
    %1063 = vector.multi_reduction <maximumf>, %1062, %cst_472 [1] : vector<1x128xf32> to vector<1xf32>
    %1064 = vector.shape_cast %1063 : vector<1xf32> to vector<1x1xf32>
    %1065 = vector.broadcast %1064 : vector<1x1xf32> to vector<1x128xf32>
    %1066 = arith.subf %1062, %1065 : vector<1x128xf32>
    %1067 = math.exp %1066 : vector<1x128xf32>
    %cst_473 = arith.constant dense<0.000000e+00> : vector<1xf32>
    %1068 = vector.multi_reduction <add>, %1067, %cst_473 [1] : vector<1x128xf32> to vector<1xf32>
    %1069 = vector.shape_cast %1068 : vector<1xf32> to vector<1x1xf32>
    %1070 = math.log %1069 : vector<1x1xf32>
    %1071 = arith.addf %1070, %1064 : vector<1x1xf32>
    %1072 = vector.broadcast %1071 : vector<1x1xf32> to vector<1x128xf32>
    %1073 = arith.subf %1062, %1072 : vector<1x128xf32>
    %c0_474 = arith.constant 0 : index
    %c0_475 = arith.constant 0 : index
    %c0_476 = arith.constant 0 : index
    %1074 = vector.load %arg46[%c0_474, %c0_475, %c0_476] : memref<1x1x128xf32, #tpu.memory_space<vmem>>, vector<1x1x128xf32>
    %1075 = vector.shape_cast %1074 : vector<1x1x128xf32> to vector<1x128xf32>
    %1076 = vector.shape_cast %1073 : vector<1x128xf32> to vector<1x1x128xf32>
    tpu.vector_store %arg46[%c0_474, %c0_475, %c0_476], %1076 {strides = array<i32>} : memref<1x1x128xf32, #tpu.memory_space<vmem>>, vector<1x1x128xf32>,
    return
  }
  func.func @transform_0(%arg0: i32) -> (i32, i32, i32) {
    %c0_i32 = arith.constant 0 : i32
    %c0_i32_0 = arith.constant 0 : i32
    %c0_i32_1 = arith.constant 0 : i32
    return %arg0, %c0_i32, %c0_i32_0 : i32, i32, i32
  }
  func.func @transform_1(%arg0: i32) -> (i32, i32) {
    %c0_i32 = arith.constant 0 : i32
    %c0_i32_0 = arith.constant 0 : i32
    %c0_i32_1 = arith.constant 0 : i32
    return %c0_i32, %c0_i32_0 : i32, i32
  }
  func.func @transform_2(%arg0: i32) -> (i32, i32) {
    %c0_i32 = arith.constant 0 : i32
    %c0_i32_0 = arith.constant 0 : i32
    %c0_i32_1 = arith.constant 0 : i32
    return %c0_i32, %c0_i32_0 : i32, i32
  }
  func.func @transform_3(%arg0: i32) -> (i32, i32) {
    %c0_i32 = arith.constant 0 : i32
    %c0_i32_0 = arith.constant 0 : i32
    %c0_i32_1 = arith.constant 0 : i32
    return %c0_i32, %c0_i32_0 : i32, i32
  }
  func.func @transform_4(%arg0: i32) -> (i32, i32) {
    %c0_i32 = arith.constant 0 : i32
    %c0_i32_0 = arith.constant 0 : i32
    %c0_i32_1 = arith.constant 0 : i32
    return %c0_i32, %c0_i32_0 : i32, i32
  }
  func.func @transform_5(%arg0: i32) -> (i32, i32) {
    %c0_i32 = arith.constant 0 : i32
    %c0_i32_0 = arith.constant 0 : i32
    %c0_i32_1 = arith.constant 0 : i32
    return %c0_i32, %c0_i32_0 : i32, i32
  }
  func.func @transform_6(%arg0: i32) -> (i32, i32, i32) {
    %c0_i32 = arith.constant 0 : i32
    %c0_i32_0 = arith.constant 0 : i32
    %c0_i32_1 = arith.constant 0 : i32
    %c0_i32_2 = arith.constant 0 : i32
    return %c0_i32, %c0_i32_0, %c0_i32_1 : i32, i32, i32
  }
  func.func @transform_7(%arg0: i32) -> (i32, i32) {
    %c0_i32 = arith.constant 0 : i32
    %c0_i32_0 = arith.constant 0 : i32
    %c0_i32_1 = arith.constant 0 : i32
    return %c0_i32, %c0_i32_0 : i32, i32
  }
  func.func @transform_8(%arg0: i32) -> (i32, i32) {
    %c0_i32 = arith.constant 0 : i32
    %c0_i32_0 = arith.constant 0 : i32
    %c0_i32_1 = arith.constant 0 : i32
    return %c0_i32, %c0_i32_0 : i32, i32
  }
  func.func @transform_9(%arg0: i32) -> (i32, i32) {
    %c0_i32 = arith.constant 0 : i32
    %c0_i32_0 = arith.constant 0 : i32
    %c0_i32_1 = arith.constant 0 : i32
    return %c0_i32, %c0_i32_0 : i32, i32
  }
  func.func @transform_10(%arg0: i32) -> (i32, i32) {
    %c0_i32 = arith.constant 0 : i32
    %c0_i32_0 = arith.constant 0 : i32
    %c0_i32_1 = arith.constant 0 : i32
    return %c0_i32, %c0_i32_0 : i32, i32
  }
  func.func @transform_11(%arg0: i32) -> (i32, i32, i32) {
    %c0_i32 = arith.constant 0 : i32
    %c0_i32_0 = arith.constant 0 : i32
    %c0_i32_1 = arith.constant 0 : i32
    %c0_i32_2 = arith.constant 0 : i32
    return %c0_i32, %c0_i32_0, %c0_i32_1 : i32, i32, i32
  }
  func.func @transform_12(%arg0: i32) -> (i32, i32) {
    %c0_i32 = arith.constant 0 : i32
    %c0_i32_0 = arith.constant 0 : i32
    %c0_i32_1 = arith.constant 0 : i32
    return %c0_i32, %c0_i32_0 : i32, i32
  }
  func.func @transform_13(%arg0: i32) -> (i32, i32) {
    %c0_i32 = arith.constant 0 : i32
    %c0_i32_0 = arith.constant 0 : i32
    %c0_i32_1 = arith.constant 0 : i32
    return %c0_i32, %c0_i32_0 : i32, i32
  }
  func.func @transform_14(%arg0: i32) -> (i32, i32) {
    %c0_i32 = arith.constant 0 : i32
    %c0_i32_0 = arith.constant 0 : i32
    %c0_i32_1 = arith.constant 0 : i32
    return %c0_i32, %c0_i32_0 : i32, i32
  }
  func.func @transform_15(%arg0: i32) -> (i32, i32) {
    %c0_i32 = arith.constant 0 : i32
    %c0_i32_0 = arith.constant 0 : i32
    %c0_i32_1 = arith.constant 0 : i32
    return %c0_i32, %c0_i32_0 : i32, i32
  }
  func.func @transform_16(%arg0: i32) -> (i32, i32, i32) {
    %c0_i32 = arith.constant 0 : i32
    %c0_i32_0 = arith.constant 0 : i32
    %c0_i32_1 = arith.constant 0 : i32
    %c0_i32_2 = arith.constant 0 : i32
    return %c0_i32, %c0_i32_0, %c0_i32_1 : i32, i32, i32
  }
  func.func @transform_17(%arg0: i32) -> (i32, i32) {
    %c0_i32 = arith.constant 0 : i32
    %c0_i32_0 = arith.constant 0 : i32
    %c0_i32_1 = arith.constant 0 : i32
    return %c0_i32, %c0_i32_0 : i32, i32
  }
  func.func @transform_18(%arg0: i32) -> (i32, i32) {
    %c0_i32 = arith.constant 0 : i32
    %c0_i32_0 = arith.constant 0 : i32
    %c0_i32_1 = arith.constant 0 : i32
    return %c0_i32, %c0_i32_0 : i32, i32
  }
  func.func @transform_19(%arg0: i32) -> (i32, i32) {
    %c0_i32 = arith.constant 0 : i32
    %c0_i32_0 = arith.constant 0 : i32
    %c0_i32_1 = arith.constant 0 : i32
    return %c0_i32, %c0_i32_0 : i32, i32
  }
  func.func @transform_20(%arg0: i32) -> (i32, i32) {
    %c0_i32 = arith.constant 0 : i32
    %c0_i32_0 = arith.constant 0 : i32
    %c0_i32_1 = arith.constant 0 : i32
    return %c0_i32, %c0_i32_0 : i32, i32
  }
  func.func @transform_21(%arg0: i32) -> (i32, i32, i32) {
    %c0_i32 = arith.constant 0 : i32
    %c0_i32_0 = arith.constant 0 : i32
    %c0_i32_1 = arith.constant 0 : i32
    %c0_i32_2 = arith.constant 0 : i32
    return %c0_i32, %c0_i32_0, %c0_i32_1 : i32, i32, i32
  }
  func.func @transform_22(%arg0: i32) -> (i32, i32) {
    %c0_i32 = arith.constant 0 : i32
    %c0_i32_0 = arith.constant 0 : i32
    %c0_i32_1 = arith.constant 0 : i32
    return %c0_i32, %c0_i32_0 : i32, i32
  }
  func.func @transform_23(%arg0: i32) -> (i32, i32) {
    %c0_i32 = arith.constant 0 : i32
    %c0_i32_0 = arith.constant 0 : i32
    %c0_i32_1 = arith.constant 0 : i32
    return %c0_i32, %c0_i32_0 : i32, i32
  }
  func.func @transform_24(%arg0: i32) -> (i32, i32) {
    %c0_i32 = arith.constant 0 : i32
    %c0_i32_0 = arith.constant 0 : i32
    %c0_i32_1 = arith.constant 0 : i32
    return %c0_i32, %c0_i32_0 : i32, i32
  }
  func.func @transform_25(%arg0: i32) -> (i32, i32) {
    %c0_i32 = arith.constant 0 : i32
    %c0_i32_0 = arith.constant 0 : i32
    %c0_i32_1 = arith.constant 0 : i32
    return %c0_i32, %c0_i32_0 : i32, i32
  }
  func.func @transform_26(%arg0: i32) -> (i32, i32, i32) {
    %c0_i32 = arith.constant 0 : i32
    %c0_i32_0 = arith.constant 0 : i32
    %c0_i32_1 = arith.constant 0 : i32
    %c0_i32_2 = arith.constant 0 : i32
    return %c0_i32, %c0_i32_0, %c0_i32_1 : i32, i32, i32
  }
  func.func @transform_27(%arg0: i32) -> (i32, i32) {
    %c0_i32 = arith.constant 0 : i32
    %c0_i32_0 = arith.constant 0 : i32
    %c0_i32_1 = arith.constant 0 : i32
    return %c0_i32, %c0_i32_0 : i32, i32
  }
  func.func @transform_28(%arg0: i32) -> (i32, i32) {
    %c0_i32 = arith.constant 0 : i32
    %c0_i32_0 = arith.constant 0 : i32
    %c0_i32_1 = arith.constant 0 : i32
    return %c0_i32, %c0_i32_0 : i32, i32
  }
  func.func @transform_29(%arg0: i32) -> (i32, i32) {
    %c0_i32 = arith.constant 0 : i32
    %c0_i32_0 = arith.constant 0 : i32
    %c0_i32_1 = arith.constant 0 : i32
    return %c0_i32, %c0_i32_0 : i32, i32
  }
  func.func @transform_30(%arg0: i32) -> (i32, i32) {
    %c0_i32 = arith.constant 0 : i32
    %c0_i32_0 = arith.constant 0 : i32
    %c0_i32_1 = arith.constant 0 : i32
    return %c0_i32, %c0_i32_0 : i32, i32
  }
  func.func @transform_31(%arg0: i32) -> (i32, i32, i32) {
    %c0_i32 = arith.constant 0 : i32
    %c0_i32_0 = arith.constant 0 : i32
    %c0_i32_1 = arith.constant 0 : i32
    %c0_i32_2 = arith.constant 0 : i32
    return %c0_i32, %c0_i32_0, %c0_i32_1 : i32, i32, i32
  }
  func.func @transform_32(%arg0: i32) -> (i32, i32) {
    %c0_i32 = arith.constant 0 : i32
    %c0_i32_0 = arith.constant 0 : i32
    %c0_i32_1 = arith.constant 0 : i32
    return %c0_i32, %c0_i32_0 : i32, i32
  }
  func.func @transform_33(%arg0: i32) -> (i32, i32) {
    %c0_i32 = arith.constant 0 : i32
    %c0_i32_0 = arith.constant 0 : i32
    %c0_i32_1 = arith.constant 0 : i32
    return %c0_i32, %c0_i32_0 : i32, i32
  }
  func.func @transform_34(%arg0: i32) -> (i32, i32) {
    %c0_i32 = arith.constant 0 : i32
    %c0_i32_0 = arith.constant 0 : i32
    %c0_i32_1 = arith.constant 0 : i32
    return %c0_i32, %c0_i32_0 : i32, i32
  }
  func.func @transform_35(%arg0: i32) -> (i32, i32) {
    %c0_i32 = arith.constant 0 : i32
    %c0_i32_0 = arith.constant 0 : i32
    %c0_i32_1 = arith.constant 0 : i32
    return %c0_i32, %c0_i32_0 : i32, i32
  }
  func.func @transform_36(%arg0: i32) -> (i32, i32, i32) {
    %c0_i32 = arith.constant 0 : i32
    %c0_i32_0 = arith.constant 0 : i32
    %c0_i32_1 = arith.constant 0 : i32
    %c0_i32_2 = arith.constant 0 : i32
    return %c0_i32, %c0_i32_0, %c0_i32_1 : i32, i32, i32
  }
  func.func @transform_37(%arg0: i32) -> (i32, i32) {
    %c0_i32 = arith.constant 0 : i32
    %c0_i32_0 = arith.constant 0 : i32
    %c0_i32_1 = arith.constant 0 : i32
    return %c0_i32, %c0_i32_0 : i32, i32
  }
  func.func @transform_38(%arg0: i32) -> (i32, i32) {
    %c0_i32 = arith.constant 0 : i32
    %c0_i32_0 = arith.constant 0 : i32
    %c0_i32_1 = arith.constant 0 : i32
    return %c0_i32, %c0_i32_0 : i32, i32
  }
  func.func @transform_39(%arg0: i32) -> (i32, i32) {
    %c0_i32 = arith.constant 0 : i32
    %c0_i32_0 = arith.constant 0 : i32
    %c0_i32_1 = arith.constant 0 : i32
    return %c0_i32, %c0_i32_0 : i32, i32
  }
  func.func @transform_40(%arg0: i32) -> (i32, i32) {
    %c0_i32 = arith.constant 0 : i32
    %c0_i32_0 = arith.constant 0 : i32
    %c0_i32_1 = arith.constant 0 : i32
    return %c0_i32, %c0_i32_0 : i32, i32
  }
  func.func @transform_41(%arg0: i32) -> (i32, i32, i32) {
    %c0_i32 = arith.constant 0 : i32
    %c0_i32_0 = arith.constant 0 : i32
    %c0_i32_1 = arith.constant 0 : i32
    %c0_i32_2 = arith.constant 0 : i32
    return %c0_i32, %c0_i32_0, %c0_i32_1 : i32, i32, i32
  }
  func.func @transform_42(%arg0: i32) -> (i32, i32) {
    %c0_i32 = arith.constant 0 : i32
    %c0_i32_0 = arith.constant 0 : i32
    %c0_i32_1 = arith.constant 0 : i32
    return %c0_i32, %c0_i32_0 : i32, i32
  }
  func.func @transform_43(%arg0: i32) -> (i32, i32) {
    %c0_i32 = arith.constant 0 : i32
    %c0_i32_0 = arith.constant 0 : i32
    %c0_i32_1 = arith.constant 0 : i32
    return %c0_i32, %c0_i32_0 : i32, i32
  }
  func.func @transform_44(%arg0: i32) -> (i32, i32) {
    %c0_i32 = arith.constant 0 : i32
    %c0_i32_0 = arith.constant 0 : i32
    %c0_i32_1 = arith.constant 0 : i32
    return %c0_i32, %c0_i32_0 : i32, i32
  }
  func.func @transform_45(%arg0: i32) -> (i32, i32, i32) {
    %c0_i32 = arith.constant 0 : i32
    %c0_i32_0 = arith.constant 0 : i32
    %c0_i32_1 = arith.constant 0 : i32
    return %arg0, %c0_i32, %c0_i32_0 : i32, i32, i32
  }
}

</mosaic_0001>

<bundles_post_ra>
// kernel: squeezenet_forward.1
= control target key start
LH: loop header
LB: loop body
LE: loop exit
PB: predicated region body
PF: predicated region fallthrough
CT: control target
= control target key end

     0   :  { %s16543_s6 = smov 1   ;;  %s16544_s10 = smov 2   ;;  %s19431_s0 = inlined_call_operand.smem [shape: u32[46], index: -1, kind: input, shape index: {}] }
   0x1   :  { %s16605_s5 = sld [smem:[%s19431_s0]]   ;;  %s16545_s14 = smov 3  }
   0x2   :  { %s16610_s9 = sld [smem:[%s19431_s0 + %s16543_s6]]   ;;  %s16546_s18 = smov 4  }
   0x3   :  { %s16615_s13 = sld [smem:[%s19431_s0 + %s16544_s10]]   ;;  %s16547_s22 = smov 5  }
   0x4   :  { %s16620_s17 = sld [smem:[%s19431_s0 + %s16545_s14]]   ;;  %s16548_s26 = smov 6  }
   0x5   :  { %s16625_s21 = sld [smem:[%s19431_s0 + %s16546_s18]]   ;;  %s16549_s30 = smov 7  }
   0x6   :  { %s16630_s25 = sld [smem:[%s19431_s0 + %s16547_s22]]   ;;  %s16550_s4 = smov 8  }
   0x7   :  { %19508 = sst [smem:[#allocation15_spill]] %s16605_s5  ;;  %s16551_s10 = smov 9  }
   0x8   :  { %s16635_s29 = sld [smem:[%s19431_s0 + %s16548_s26]]   ;;  %s16552_s15 = smov 10  }
   0x9   :  { %s16640_s3 = sld [smem:[%s19431_s0 + %s16549_s30]]   ;;  %s16553_s20 = smov 11  }
   0xa   :  { %s16645_s8 = sld [smem:[%s19431_s0 + %s16550_s4]]   ;;  %s16554_s26 = smov 12  }
   0xb   :  { %s16650_s14 = sld [smem:[%s19431_s0 + %s16551_s10]]   ;;  %s16555_s1 = smov 13  }
   0xc   :  { %s16655_s19 = sld [smem:[%s19431_s0 + %s16552_s15]]   ;;  %s16556_s7 = smov 14  }
   0xd   :  { %s16660_s24 = sld [smem:[%s19431_s0 + %s16553_s20]]   ;;  %s16557_s15 = smov 15  }
   0xe   :  { %s16665_s30 = sld [smem:[%s19431_s0 + %s16554_s26]]   ;;  %s16558_s22 = smov 16  }
   0xf   :  { %19509 = sst [smem:[#allocation16_spill]] %s16640_s3  ;;  %s16559_s28 = smov 17  }
  0x10   :  { %19510 = sst [smem:[#allocation17_spill]] %s16645_s8 }
  0x11   :  { %19511 = sst [smem:[#allocation18_spill]] %s16650_s14 }
  0x12   :  { %s16670_s6 = sld [smem:[%s19431_s0 + %s16555_s1]]  }
  0x13   :  { %s16675_s12 = sld [smem:[%s19431_s0 + %s16556_s7]]   ;;  %s16560_s7 = smov 18  }
  0x14   :  { %19512 = sst [smem:[#allocation19_spill]] %s16665_s30 }
  0x15   :  { %s16680_s20 = sld [smem:[%s19431_s0 + %s16557_s15]]   ;;  %s16561_s15 = smov 19  }
  0x16   :  { %s16685_s27 = sld [smem:[%s19431_s0 + %s16558_s22]]   ;;  %s16562_s22 = smov 20  }
  0x17   :  { %s16690_s4 = sld [smem:[%s19431_s0 + %s16559_s28]]   ;;  %s16563_s28 = smov 21  }
  0x18   :  { %19513 = sst [smem:[#allocation20_spill]] %s16670_s6 }
  0x19   :  { %19514 = sst [smem:[#allocation21_spill]] %s16675_s12 }
  0x1a   :  { %s16695_s12 = sld [smem:[%s19431_s0 + %s16560_s7]]   ;;  %s16564_s7 = smov 22  }
  0x1b   :  { %19515 = sst [smem:[#allocation22_spill]] %s16680_s20 }
  0x1c   :  { %19516 = sst [smem:[#allocation23_spill]] %s16685_s27 }
  0x1d   :  { %19517 = sst [smem:[#allocation24_spill]] %s16690_s4 }
  0x1e   :  { %s16700_s30 = sld [smem:[%s19431_s0 + %s16561_s15]]   ;;  %s16565_s15 = smov 23  }
  0x1f   :  { %s16705_s27 = sld [smem:[%s19431_s0 + %s16562_s22]]   ;;  %s16566_s22 = smov 24  }
  0x20   :  { %19518 = sst [smem:[#allocation25_spill]] %s16695_s12 }
  0x21   :  { %s16710_s4 = sld [smem:[%s19431_s0 + %s16563_s28]]   ;;  %s16567_s28 = smov 25  }
  0x22   :  { %s16715_s12 = sld [smem:[%s19431_s0 + %s16564_s7]]   ;;  %s16568_s7 = smov 26  }
  0x24   :  { %19519 = sst [smem:[#allocation26_spill]] %s16700_s30 }
  0x25   :  { %19520 = sst [smem:[#allocation27_spill]] %s16705_s27 }
  0x26   :  { %s16720_s30 = sld [smem:[%s19431_s0 + %s16565_s15]]   ;;  %s16569_s15 = smov 27  }
  0x27   :  { %19521 = sst [smem:[#allocation28_spill]] %s16710_s4 }
  0x28   :  { %19522 = sst [smem:[#allocation29_spill]] %s16715_s12 }
  0x29   :  { %s16725_s27 = sld [smem:[%s19431_s0 + %s16566_s22]]   ;;  %s16570_s22 = smov 28  }
  0x2a   :  { %s16730_s4 = sld [smem:[%s19431_s0 + %s16567_s28]]   ;;  %s16571_s28 = smov 29  }
  0x2b   :  { %s16735_s12 = sld [smem:[%s19431_s0 + %s16568_s7]]   ;;  %s16572_s7 = smov 30  }
  0x2c   :  { %19523 = sst [smem:[#allocation30_spill]] %s16720_s30 }
  0x2d   :  { %s16740_s30 = sld [smem:[%s19431_s0 + %s16569_s15]]   ;;  %s16573_s15 = smov 31  }
  0x2f   :  { %19524 = sst [smem:[#allocation31_spill]] %s16725_s27 }
  0x30   :  { %19525 = sst [smem:[#allocation32_spill]] %s16730_s4 }
  0x31   :  { %19526 = sst [smem:[#allocation33_spill]] %s16735_s12 }
  0x32   :  { %s16745_s27 = sld [smem:[%s19431_s0 + %s16570_s22]]   ;;  %s16574_s22 = smov 32  }
  0x33   :  { %19527 = sst [smem:[#allocation34_spill]] %s16740_s30 }
  0x34   :  { %s16750_s4 = sld [smem:[%s19431_s0 + %s16571_s28]]   ;;  %s16575_s28 = smov 33  }
  0x35   :  { %s16755_s12 = sld [smem:[%s19431_s0 + %s16572_s7]]   ;;  %s16576_s7 = smov 34  }
  0x36   :  { %s16760_s30 = sld [smem:[%s19431_s0 + %s16573_s15]]   ;;  %s16577_s15 = smov 35  }
  0x37   :  { %s16770_s20 = sld [smem:[%s19431_s0 + %s16575_s28]]   ;;  %s16579_s28 = smov 37  }
  0x38   :  { %19528 = sst [smem:[#allocation35_spill]] %s16745_s27 }
  0x39   :  { %s16765_s27 = sld [smem:[%s19431_s0 + %s16574_s22]]   ;;  %s16578_s22 = smov 36  }
  0x3a   :  { %19529 = sst [smem:[#allocation36_spill]] %s16750_s4 }
  0x3b   :  { %19530 = sst [smem:[#allocation37_spill]] %s16755_s12 }
  0x3c   :  { %19531 = sst [smem:[#allocation38_spill]] %s16760_s30 }
  0x3d   :  { %19533 = sst [smem:[#allocation40_spill]] %s16770_s20 }
  0x3e   :  { %s16775_s12 = sld [smem:[%s19431_s0 + %s16576_s7]]   ;;  %s16580_s7 = smov 38  }
  0x3f   :  { %19532 = sst [smem:[#allocation39_spill]] %s16765_s27 }
  0x40   :  { %s16780_s30 = sld [smem:[%s19431_s0 + %s16577_s15]]   ;;  %s16581_s15 = smov 39  }
  0x41   :  { %s16785_s27 = sld [smem:[%s19431_s0 + %s16578_s22]]   ;;  %s16582_s22 = smov 40  }
  0x42   :  { %s16790_s20 = sld [smem:[%s19431_s0 + %s16579_s28]]   ;;  %s16583_s28 = smov 41  }
  0x43   :  { %s16795_s6 = sld [smem:[%s19431_s0 + %s16580_s7]]   ;;  %s16584_s7 = smov 42  }
  0x46   :  { %19534 = sst [smem:[#allocation41_spill]] %s16780_s30 }
  0x47   :  { %19535 = sst [smem:[#allocation42_spill]] %s16785_s27 }
  0x48   :  { %19536 = sst [smem:[#allocation43_spill]] %s16790_s20 }
  0x49   :  { %19537 = sst [smem:[#allocation44_spill]] %s16795_s6 }
  0x4a   :  { %s16800_s30 = sld [smem:[%s19431_s0 + %s16581_s15]]   ;;  %s16585_s15 = smov 43  }
  0x4b   :  { %s16805_s27 = sld [smem:[%s19431_s0 + %s16582_s22]]   ;;  %s16586_s22 = smov 44  }
  0x4c   :  { %s16810_s20 = sld [smem:[%s19431_s0 + %s16583_s28]]   ;;  %s16587_s28 = smov 45  }
  0x4d   :  { %s16815_s6 = sld [smem:[%s19431_s0 + %s16584_s7]]  }
  0x4e   :  { %s16820_s14 = sld [smem:[%s19431_s0 + %s16585_s15]]  }
  0x51   :  { %19538 = sst [smem:[#allocation45_spill]] %s16805_s27 }
  0x52   :  { %19539 = sst [smem:[#allocation46_spill]] %s16810_s20 }
  0x53   :  { %19540 = sst [smem:[#allocation47_spill]] %s16815_s6 }
  0x54   :  { %s16825_s27 = sld [smem:[%s19431_s0 + %s16586_s22]]  }
  0x55   :  { %s16830_s20 = sld [smem:[%s19431_s0 + %s16587_s28]]  }
  0x56   :  { %96 = vsyncpa [#allocation3], 0 }
  0x57   :  { %97 = vsyncpa [#allocation6], 0 }
  0x58   :  { %98 = vsyncpa [#allocation9], 0 }
  0x59   :  { %99 = vsyncpa [#allocation4], 0 }
  0x5a   :  { %101 = vsyncpa [#allocation4 + $0x1], 0  ;;  %s16832_s7 = smov 0   ;;  %s16834_s10 = smov 0  }
  0x5b   :  { %s16836_s11 = smov 0   ;;  %s16838_s15 = smov 0  }
  0x5c LB: > { %s19541_s8 = sld [smem:[#allocation17_spill]]  ;;  %s19542_s4 = sld [smem:[#allocation36_spill]]  ;;  %s16533_s10 = sphi %s16834_s10, %s19980_s10   ;;  %s16529_s7 = sphi %s16832_s7, %s19979_s7   ;;  %s16541_s15 = sphi %s16838_s15, %s19976_s15   ;;  %s16537_s11 = sphi %s16836_s11, %s19978_s11  }
  0x5d   : > { %19543 = sst [smem:[#allocation48_spill]] %s16529_s7  ;;  %s16853_s0 = sadd.s32 4294967295, %s16541_s15  }
  0x5e   : > { %19544 = sst [smem:[#allocation49_spill]] %s16537_s11  ;;  %s13188_s16 = sadd.s32 4294967294, %s16541_s15  }
  0x5f   : > { %s16857_s18 = sadd.s32 1, %s16541_s15   ;;  %s1064_s22 = sadd.s32 1, %s16537_s11 }
  0x60   : > { %19545 = sst [smem:[#allocation50_spill]] %s16857_s18  ;;  %s1061_s23 = ssub.s32 %s16541_s15, %s16857_s18 }
  0x61   : > { %p1074_p0 = scmp.ne.s32.totalorder %s16537_s11, %s16533_s10  ;;  %p1062_p1 = scmp.eq.s32.totalorder %s1061_s23, 0 }
  0x62   : > { %p1075_p2 = scmp.eq.s32.totalorder %s16853_s0, 1  ;;  %p1080_p3 = scmp.ne.s32.totalorder %s16533_s10, %s16529_s7 }
  0x63   : > { %p1081_p4 = scmp.eq.s32.totalorder %s13188_s16, 1  ;;  %p13189_p7 = scmp.ge.s32.totalorder %s16541_s15, 1 }
  0x64   : > { %s16868_s26 = scalar_select %p1062_p1, %s16537_s11, %s1064_s22  }
  0x65   : > { %p16870_p5 = por %p1075_p2, %p1074_p0  ;;  %p16874_p6 = por %p1081_p4, %p1080_p3 }
  0x66   : > { %19546 = sst [smem:[#allocation51_spill]] %s16868_s26  ;;  %p1088_p8 = scmp.lt.s32.totalorder %s16541_s15, 3 }
  0x67   : > { %s19547_s28 = scalar_select %p16870_p5, 1, 0 }
  0x68   : > { %s19548_s1 = scalar_select %p16874_p6, 1, 0 }
  0x69   : > { %p19455_p9 = scmp.eq.s32.totalorder %s16853_s0, 0  ;;  %p16881_p10 = pnand %p13189_p7, %p1088_p8 }
  0x6a   : > { %19549 = sst [smem:[#allocation52_spill]] %s19548_s1  ;;  %s16588_s16 = smov [#allocation5]  }
  0x6b   : > { %s19550_s2 = scalar_select %p16881_p10, 1, 0 }
  0x6c   : > { %s1208_s22 = sshll.u32 %s16588_s16, 4  ;;  %p15568_p11 = pneg %p16881_p10  ;;  %s1209_s22 = int_to_ptr.vmem [resolvable:$true] %s1208_s22 }
  0x6d   : > { %s16589_s23 = smov [#allocation2]   ;;  %s16590_s18 = smov [#allocation7]  }
  0x6e   : > { %s1185_s26 = sshll.u32 %s16589_s23, 4  ;;  %p16889_p12 = pnand %p19455_p9, %p15568_p11  ;;  %s16893_s26 = int_to_ptr.vmem [resolvable:$true] %s1185_s26 }
  0x6f   : > { %s1231_s1 = sshll.u32 %s16590_s18, 4  ;;  %s16355_s7 = scalar_lea.hbm %s16775_s12, 16  ;;  %s16895_s1 = int_to_ptr.vmem [resolvable:$true] %s1231_s1 }
  0x70   : > { %p16356_p13 = scmp.ne.s32.totalorder %s16775_s12, %s16355_s7  ;;  %p16901_p0 = pneg %p16889_p12 }
  0x71   : > { %p16362_p3 = scmp.lt.u32.totalorder %s16355_s7, %s16775_s12 }
  0x72   : > { %p16358_p1 = pnand %p16901_p0, %p16356_p13 }
  0x74   : > { %p16359_p2 = pneg %p16358_p1 }
  0x76   : > { %p16364_p4 = pnand %p16362_p3, %p16359_p2 }
  0x78   : > { %16367 = shalt.err (!%p16364_p4)
}
  0x79   : > { %s16368_s23 = scalar_lea.vmem %s1209_s22, 16  ;;  %s16375_s18 = scalar_lea.vmem %s1209_s22, 32 }
  0x7a   : > { %p16369_p7 = scmp.ne.s32.totalorder %s1209_s22, %s16368_s23  ;;  %p16376_p9 = scmp.lt.s32.totalorder %s1209_s22, %s1209_s22 }
  0x7b   : > { %p16377_p6 = scmp.lt.s32.totalorder %s16375_s18, %s16368_s23 }
  0x7c   : > { %p16371_p8 = pnand %p16369_p7, %p16901_p0 }
  0x7d   : > { %p16378_p5 = por %p16377_p6, %p16376_p9 }
  0x7e   : > { %p16372_p11 = pneg %p16371_p8 }
  0x80   : > { %p16379_p10 = pnand %p16378_p5, %p16372_p11 }
  0x82   : > { %16382 = shalt.err (!%p16379_p10)
}
  0x83   : > { %15574 = dma.hbm_to_vmem [thread:$0]  (!%p16889_p12), %s16775_s12, 16, %s1209_s22, [#allocation6]  }
  0x84   : > { %s16383_s7 = scalar_lea.hbm %s19542_s4, 16 }
  0x85   : > { %p16384_p13 = scmp.ne.s32.totalorder %s19542_s4, %s16383_s7  ;;  %p16390_p3 = scmp.lt.u32.totalorder %s16383_s7, %s19542_s4 }
  0x87   : > { %p16386_p1 = pnand %p16384_p13, %p16901_p0 }
  0x89   : > { %p16387_p2 = pneg %p16386_p1 }
  0x8b   : > { %p16392_p4 = pnand %p16390_p3, %p16387_p2 }
  0x8d   : > { %16395 = shalt.err (!%p16392_p4)
}
  0x8e   : > { %s16396_s23 = scalar_lea.vmem %s16893_s26, 16  ;;  %s16403_s18 = scalar_lea.vmem %s16893_s26, 32 }
  0x8f   : > { %p16397_p5 = scmp.ne.s32.totalorder %s16893_s26, %s16396_s23  ;;  %p16404_p10 = scmp.lt.s32.totalorder %s16893_s26, %s16893_s26 }
  0x90   : > { %p16405_p7 = scmp.lt.s32.totalorder %s16403_s18, %s16396_s23 }
  0x91   : > { %p16399_p6 = pnand %p16397_p5, %p16901_p0 }
  0x92   : > { %p16406_p8 = por %p16405_p7, %p16404_p10 }
  0x93   : > { %p16400_p9 = pneg %p16399_p6 }
  0x95   : > { %p16407_p11 = pnand %p16406_p8, %p16400_p9 }
  0x97   : > { %16410 = shalt.err (!%p16407_p11)
}
  0x98   : > { %15571 = dma.hbm_to_vmem [thread:$0]  (!%p16889_p12), %s19542_s4, 16, %s16893_s26, [#allocation3]  }
  0x99   : > { %s16411_s22 = scalar_lea.hbm %s16800_s30, 16 }
  0x9a   : > { %p16412_p13 = scmp.ne.s32.totalorder %s16800_s30, %s16411_s22  ;;  %p16418_p3 = scmp.lt.u32.totalorder %s16411_s22, %s16800_s30 }
  0x9c   : > { %p16414_p1 = pnand %p16412_p13, %p16901_p0 }
  0x9e   : > { %p16415_p2 = pneg %p16414_p1 }
  0xa0   : > { %p16420_p4 = pnand %p16418_p3, %p16415_p2 }
  0xa2   : > { %16423 = shalt.err (!%p16420_p4)
}
  0xa3   : > { %s16424_s7 = scalar_lea.vmem %s16895_s1, 16  ;;  %s16431_s23 = scalar_lea.vmem %s16895_s1, 32 }
  0xa4   : > { %p16425_p5 = scmp.ne.s32.totalorder %s16895_s1, %s16424_s7  ;;  %p16432_p10 = scmp.lt.s32.totalorder %s16895_s1, %s16895_s1 }
  0xa5   : > { %p16433_p7 = scmp.lt.s32.totalorder %s16431_s23, %s16424_s7 }
  0xa6   : > { %p16427_p6 = pnand %p16425_p5, %p16901_p0 }
  0xa7   : > { %p16434_p8 = por %p16433_p7, %p16432_p10 }
  0xa8   : > { %p16428_p9 = pneg %p16427_p6 }
  0xaa   : > { %p16435_p11 = pnand %p16434_p8, %p16428_p9 }
  0xac   : > { %16438 = shalt.err (!%p16435_p11)
}
  0xad   : > { %15577 = dma.hbm_to_vmem [thread:$0]  (!%p16889_p12), %s16800_s30, 16, %s16895_s1, [#allocation6]  }
  0xae   : > { %s16591_s26 = smov [#allocation8]   ;;  %s16439_s22 = scalar_lea.hbm %s16825_s27, 16 }
  0xaf   : > { %s1254_s18 = sshll.u32 %s16591_s26, 4  ;;  %p16440_p13 = scmp.ne.s32.totalorder %s16825_s27, %s16439_s22  ;;  %s1255_s18 = int_to_ptr.vmem [resolvable:$true] %s1254_s18 }
  0xb0   : > { %p16446_p3 = scmp.lt.u32.totalorder %s16439_s22, %s16825_s27 }
  0xb1   : > { %p16442_p1 = pnand %p16440_p13, %p16901_p0 }
  0xb3   : > { %p16443_p2 = pneg %p16442_p1 }
  0xb5   : > { %p16448_p4 = pnand %p16446_p3, %p16443_p2 }
  0xb7   : > { %16451 = shalt.err (!%p16448_p4)
}
  0xb8   : > { %s16452_s7 = scalar_lea.vmem %s1255_s18, 16  ;;  %s16459_s23 = scalar_lea.vmem %s1255_s18, 32 }
  0xb9   : > { %p16453_p5 = scmp.ne.s32.totalorder %s1255_s18, %s16452_s7  ;;  %p16460_p10 = scmp.lt.s32.totalorder %s1255_s18, %s1255_s18 }
  0xba   : > { %p16461_p7 = scmp.lt.s32.totalorder %s16459_s23, %s16452_s7 }
  0xbb   : > { %p16455_p6 = pnand %p16453_p5, %p16901_p0 }
  0xbc   : > { %p16462_p8 = por %p16461_p7, %p16460_p10 }
  0xbd   : > { %p16456_p9 = pneg %p16455_p6 }
  0xbf   : > { %p16463_p11 = pnand %p16462_p8, %p16456_p9 }
  0xc1   : > { %16466 = shalt.err (!%p16463_p11)
}
  0xc2   : > { %15580 = dma.hbm_to_vmem [thread:$0]  (!%p16889_p12), %s16825_s27, 16, %s1255_s18, [#allocation9]  }
  0xc3   : > { %p19553_p13 = scmp.ne.s32.totalorder %s19550_s2, 0 }
  0xc5   : > { %1275 = sbr.rel (%p19553_p13) target bundleno = 6195 (0x1833), region = 200 }
  0xcc   : > { %p19554_p1 = scmp.eq.s32.totalorder %s16853_s0, 0 }
  0xce   : > { %16512 = dma.done.wait (%p19554_p1), [#allocation3], 16   ;;  %p19555_p2 = pmov %p19554_p1 }
  0xcf   : > { %p19556_p0 = pmov %p19554_p1 }
  0xd0   : > { %16514 = vsyncadd (%p19555_p2), [#allocation3], 4294967280 }
  0xd1   : > { %16516 = dma.done.wait (%p19556_p0), [#allocation6], 32   ;;  %p19557_p3 = pmov %p19556_p0 }
  0xd2   : > { %p19558_p4 = pmov %p19556_p0 }
  0xd3   : > { %16518 = vsyncadd (%p19557_p3), [#allocation6], 4294967264 }
  0xd4   : > { %16520 = dma.done.wait (%p19558_p4), [#allocation9], 16   ;;  %p19559_p12 = pmov %p19556_p0 }
  0xd5   : > { %s19560_s5 = sld [smem:[#allocation15_spill]]  ;;  %p1394_p5 = scmp.lt.s32.totalorder %s16853_s0, 1  ;;  %v15679_v0 = vld [vmem:[%s16610_s9] sm:$0xff]   ;;  %v15680_v1 = vld [vmem:[%s16610_s9 + $0x8] sm:$0xff]   ;;  %v15681_v2 = vld [vmem:[%s16610_s9 + $0x10] sm:$0xff]   ;;  %vm19465_vm0 = vcmask 1040384  }
  0xd6   : > { %16522 = vsyncadd (%p19559_p12), [#allocation9], 4294967280  ;;  %14702 = vmatprep.subr.bf16.mxu0 %v15679_v0  ;;  %v15682_v3 = vld [vmem:[%s16610_s9 + $0x18] sm:$0xff]   ;;  %v15683_v5 = vld [vmem:[%s16610_s9 + $0x20] sm:$0xff]   ;;  %vm19459_vm1 = vcmask 1041408   ;;  %vm19469_vm2 = vcmask 1042432  }
  0xd7   : > { %s1395_s11 = scalar_select %p1394_p5, %s16853_s0, 1  ;;  %14703 = vmatpush3.bf16.msra.mxu0 %v15679_v0  ;;  %v15684_v6 = vld [vmem:[%s16610_s9 + $0x28] sm:$0xff]   ;;  %v15685_v7 = vld [vmem:[%s16610_s9 + $0x30] sm:$0xff]   ;;  %v15686_v8 = vld [vmem:[%s16610_s9 + $0x38] sm:$0xff]   ;;  %vm19467_vm3 = vcmask 1043456   ;;  %vm19460_vm4 = vcmask 1044480  }
  0xd8   : > { %14704 = vmatprep.subr.bf16.mxu0 %v15680_v1  ;;  %v15703_v24 = vld [vmem:[%s16620_s17] sm:$0xff]   ;;  %v15704_v25 = vld [vmem:[%s16620_s17 + $0x8] sm:$0xff]   ;;  %v15705_v26 = vld [vmem:[%s16620_s17 + $0x10] sm:$0xff]   ;;  %vm19458_vm5 = vcmask 1045504   ;;  %vm19463_vm6 = vcmask 1046528   ;;  %s19491_s16 = smov 64  }
  0xd9   : > { %s14257_s1 = sshll.u32 %s1395_s11, 7  ;;  %14750 = vmatprep.subr.bf16.mxu1 %v15703_v24  ;;  %v15706_v27 = vld [vmem:[%s16620_s17 + $0x18] sm:$0xff]   ;;  %v15707_v28 = vld [vmem:[%s16620_s17 + $0x20] sm:$0xff]   ;;  %v15708_v29 = vld [vmem:[%s16620_s17 + $0x28] sm:$0xff]   ;;  %s19680_s3 = sld [smem:[#allocation16_spill]] }
  0xda   : > { %14751 = vmatpush3.bf16.msra.mxu1 %v15703_v24  ;;  %v15709_v30 = vld [vmem:[%s16620_s17 + $0x30] sm:$0xff]   ;;  %v15710_v31 = vld [vmem:[%s16620_s17 + $0x38] sm:$0xff]   ;;  %v17007_v32 = vld [vmem:[%s16615_s13] ss:$0 sm:$0xff]  ;;  %s19681_s26 = sld [smem:[#allocation18_spill]]  ;;  %s19750_s18 = sld [smem:[#allocation20_spill]] }
  0xdb   : > { %s16975_s2 = scalar_lea.vmem %s19560_s5, %s14257_s1  ;;  %14705 = vmatpush3.bf16.msra.mxu0 %v15680_v1  ;;  %14752 = vmatprep.subr.bf16.mxu1 %v15704_v25  ;;  %s19756_s22 = sld [smem:[#allocation22_spill]] }
  0xdc   : > { %14706 = vmatprep.subr.bf16.mxu0 %v15681_v2  ;;  %v15687_v4 = vld [vmem:[%s16975_s2] sm:$0xff]   ;;  %v15688_v9 = vld [vmem:[%s16975_s2 + $0x8] sm:$0xff]   ;;  %v15689_v10 = vld [vmem:[%s16975_s2 + $0x10] sm:$0xff]   ;;  %s19757_s7 = sld [smem:[#allocation19_spill]]  ;;  %s19765_s23 = sld [smem:[#allocation23_spill]] }
  0xdd   : > { %14718 = vmatprep.mubr.bf16.mxu0 %v15687_v4  ;;  %v15690_v11 = vld [vmem:[%s16975_s2 + $0x18] sm:$0xff]   ;;  %v15691_v12 = vld [vmem:[%s16975_s2 + $0x20] sm:$0xff]   ;;  %v15692_v13 = vld [vmem:[%s16975_s2 + $0x28] sm:$0xff]   ;;  %s19766_s11 = sld [smem:[#allocation21_spill]]  ;;  %s19809_s1 = sld [smem:[#allocation24_spill]] }
  0xde   : > { %v15693_v14 = vld [vmem:[%s16975_s2 + $0x30] sm:$0xff]   ;;  %v15694_v15 = vld [vmem:[%s16975_s2 + $0x38] sm:$0xff]   ;;  %v15695_v16 = vld [vmem:[%s16975_s2 + $0x40] sm:$0xff]   ;;  %14753 = vmatpush3.bf16.msra.mxu1 %v15704_v25  ;;  %s19965_s6 = sld [smem:[#allocation47_spill]]  ;;  %p19972_p9 = scmp.ne.s32.totalorder %s19547_s28, 0 }
  0xdf   : > { %14707 = vmatpush3.bf16.msra.mxu0 %v15681_v2  ;;  %v15696_v17 = vld [vmem:[%s16975_s2 + $0x48] sm:$0xff]   ;;  %v15697_v18 = vld [vmem:[%s16975_s2 + $0x50] sm:$0xff]   ;;  %v15698_v19 = vld [vmem:[%s16975_s2 + $0x58] sm:$0xff]   ;;  %14754 = vmatprep.subr.bf16.mxu1 %v15705_v26 }
  0xe0   : > { %14708 = vmatprep.subr.bf16.mxu0 %v15682_v3  ;;  %v15699_v20 = vld [vmem:[%s16975_s2 + $0x60] sm:$0xff]   ;;  %v15700_v21 = vld [vmem:[%s16975_s2 + $0x68] sm:$0xff]   ;;  %v15701_v22 = vld [vmem:[%s16975_s2 + $0x70] sm:$0xff]  }
  0xe1   : > { %v15702_v23 = vld [vmem:[%s16975_s2 + $0x78] sm:$0xff]   ;;  %s19818_s2 = sld [smem:[#allocation25_spill]] }
  0xe2   : > { %14755 = vmatpush3.bf16.msra.mxu1 %v15705_v26 }
  0xe3   : > { %14709 = vmatpush3.bf16.msra.mxu0 %v15682_v3  ;;  %14756 = vmatprep.subr.bf16.mxu1 %v15706_v27 }
  0xe4   : > { %14710 = vmatprep.subr.bf16.mxu0 %v15683_v5 }
  0xe6   : > { %14757 = vmatpush3.bf16.msra.mxu1 %v15706_v27 }
  0xe7   : > { %14711 = vmatpush3.bf16.msra.mxu0 %v15683_v5  ;;  %14758 = vmatprep.subr.bf16.mxu1 %v15707_v28 }
  0xe8   : > { %14712 = vmatprep.subr.bf16.mxu0 %v15684_v6 }
  0xea   : > { %14759 = vmatpush3.bf16.msra.mxu1 %v15707_v28 }
  0xeb   : > { %14713 = vmatpush3.bf16.msra.mxu0 %v15684_v6  ;;  %14760 = vmatprep.subr.bf16.mxu1 %v15708_v29 }
  0xec   : > { %14714 = vmatprep.subr.bf16.mxu0 %v15685_v7 }
  0xee   : > { %14761 = vmatpush3.bf16.msra.mxu1 %v15708_v29 }
  0xef   : > { %14715 = vmatpush3.bf16.msra.mxu0 %v15685_v7  ;;  %14762 = vmatprep.subr.bf16.mxu1 %v15709_v30 }
  0xf0   : > { %14716 = vmatprep.subr.bf16.mxu0 %v15686_v8 }
  0xf2   : > { %14763 = vmatpush3.bf16.msra.mxu1 %v15709_v30 }
  0xf3   : > { %14717 = vmatpush3.bf16.msra.mxu0 %v15686_v8  ;;  %14764 = vmatprep.subr.bf16.mxu1 %v15710_v31 }
  0xf6   : > { %14719 = vmatmul.mubr.bf16.vlgmr.msra.gmra.mrb[0].mxu0 %v15688_v9  ;;  %14765 = vmatpush3.bf16.msra.mxu1 %v15710_v31 }
  0xf7   : > { %14722 = vmatprep.mubr.bf16.mxu0 %v15689_v10 }
  0xfe   : > { %14723 = vmatmul.mubr.bf16.gmra.mrb[4].mxu0 %v15690_v11 }
  0xff   : > { %14726 = vmatprep.mubr.bf16.mxu0 %v15691_v12 }
 0x106   : > { %14727 = vmatmul.mubr.bf16.gmra.mrb[8].mxu0 %v15692_v13 }
 0x107   : > { %14730 = vmatprep.mubr.bf16.mxu0 %v15693_v14 }
 0x10e   : > { %14731 = vmatmul.mubr.bf16.gmra.mrb[12].mxu0 %v15694_v15 }
 0x10f   : > { %14734 = vmatprep.mubr.bf16.mxu0 %v15695_v16 }
 0x116   : > { %14735 = vmatmul.mubr.bf16.gmra.mrb[16].mxu0 %v15696_v17 }
 0x117   : > { %14738 = vmatprep.mubr.bf16.mxu0 %v15697_v18 }
 0x11e   : > { %14739 = vmatmul.mubr.bf16.gmra.mrb[20].mxu0 %v15698_v19 }
 0x11f   : > { %14742 = vmatprep.mubr.bf16.mxu0 %v15699_v20 }
 0x126   : > { %14743 = vmatmul.mubr.bf16.gmra.mrb[24].mxu0 %v15700_v21 }
 0x127   : > { %14746 = vmatprep.mubr.bf16.mxu0 %v15701_v22 }
 0x12e   : > { %14747 = vmatmul.mubr.bf16.gmra.mrb[28].mxu0 %v15702_v23 }
 0x1c9   : > { %v14720_v33 = vpop.f32.mrb[0].mxu0 }
 0x1ca   : > { %v1644_v34 = vadd.f32 %v14720_v33, %v17007_v32  ;;  %v1635_v35 = vpop.f32.mrb[1].mxu0 }
 0x1cb   : > { %v1636_v36 = vadd.f32 %v17007_v32, %v1635_v35  ;;  %v14721_v37 = vpop.f32.mrb[2].mxu0 }
 0x1cc   : > { %v1764_v38 = vmax.f32 %v1644_v34, 0.0  ;;  %v1647_v39 = vadd.f32 %v14721_v37, %v17007_v32  ;;  %v1638_v40 = vpop.f32.mrb[3].mxu0 }
 0x1cd   : > { %v1762_v41 = vmax.f32 %v1636_v36, 0.0  ;;  %v1639_v42 = vadd.f32 %v17007_v32, %v1638_v40 }
 0x1ce   : > { %v1765_v43 = vmax.f32 %v1647_v39, 0.0 }
 0x1cf   : > { %v1794_v44 = vmax.f32 %v1762_v41, %v1764_v38  ;;  %v1763_v45 = vmax.f32 %v1639_v42, 0.0 }
 0x1d1   : > { %v1797_v46 = vrot.slane %v1794_v44, 1  ;;  %v1795_v47 = vmax.f32 %v1763_v45, %v1765_v43  ;;  %v14724_v48 = vpop.f32.mrb[4].mxu0 }
 0x1d2   : > { %v1660_v49 = vadd.f32 %v14724_v48, %v17007_v32  ;;  %v1651_v50 = vpop.f32.mrb[5].mxu0 }
 0x1d3   : > { %v1799_v51 = vmax.f32 %v1794_v44, %v1797_v46  ;;  %v1801_v52 = vrot.slane %v1795_v47, 1  ;;  %v1652_v53 = vadd.f32 %v17007_v32, %v1651_v50  ;;  %v14725_v54 = vpop.f32.mrb[6].mxu0 }
 0x1d4   : > { %v1768_v55 = vmax.f32 %v1660_v49, 0.0  ;;  %v1663_v56 = vadd.f32 %v14725_v54, %v17007_v32  ;;  %v1654_v57 = vpop.f32.mrb[7].mxu0 }
 0x1d5   : > { %v1875_v58 = vrot.slane %v1799_v51, 1  ;;  %v1877_v59 = vrot.slane %v1799_v51, 2  ;;  %v1803_v60 = vmax.f32 %v1795_v47, %v1801_v52  ;;  %v1766_v61 = vmax.f32 %v1652_v53, 0.0 }
 0x1d6   : > { %v1769_v62 = vmax.f32 %v1663_v56, 0.0  ;;  %v1655_v63 = vadd.f32 %v17007_v32, %v1654_v57  ;;  %v1879_v0 = vrot.slane %v1799_v51, 3 }
 0x1d7   : > { %v1907_v1 = vsel %vm19465_vm0, %v1799_v51, %v1875_v58  ;;  %v1882_v2 = vrot.slane %v1803_v60, 4  ;;  %v1804_v3 = vmax.f32 %v1766_v61, %v1768_v55  ;;  %v1884_v7 = vrot.slane %v1803_v60, 5 }
 0x1d8   : > { %v1767_v4 = vmax.f32 %v1655_v63, 0.0  ;;  %v1909_v5 = vsel %vm19459_vm1, %v1907_v1, %v1877_v59  ;;  %v1886_v16 = vrot.slane %v1803_v60, 6  ;;  %v1888_v25 = vrot.slane %v1803_v60, 7 }
 0x1d9   : > { %v14728_v6 = vpop.f32.mrb[8].mxu0  ;;  %v1911_v8 = vsel %vm19469_vm2, %v1909_v5, %v1879_v0  ;;  %v1807_v9 = vrot.slane %v1804_v3, 1 }
 0x1da   : > { %v1805_v10 = vmax.f32 %v1767_v4, %v1769_v62  ;;  %v1676_v11 = vadd.f32 %v14728_v6, %v17007_v32  ;;  %v1667_v12 = vpop.f32.mrb[9].mxu0  ;;  %v1913_v13 = vsel %vm19467_vm3, %v1911_v8, %v1882_v2 }
 0x1db   : > { %v1668_v14 = vadd.f32 %v17007_v32, %v1667_v12  ;;  %v14729_v15 = vpop.f32.mrb[10].mxu0  ;;  %v1915_v17 = vsel %vm19460_vm4, %v1913_v13, %v1884_v7  ;;  %v1809_v18 = vmax.f32 %v1804_v3, %v1807_v9 }
 0x1dc   : > { %v1811_v19 = vrot.slane %v1805_v10, 1  ;;  %v1772_v20 = vmax.f32 %v1676_v11, 0.0  ;;  %v1679_v21 = vadd.f32 %v14729_v15, %v17007_v32  ;;  %v1670_v22 = vpop.f32.mrb[11].mxu0  ;;  %v1917_v26 = vsel %vm19458_vm5, %v1915_v17, %v1886_v16 }
 0x1dd   : > { %v1770_v23 = vmax.f32 %v1668_v14, 0.0  ;;  %v1671_v24 = vadd.f32 %v17007_v32, %v1670_v22  ;;  %v1891_v27 = vrot.slane %v1809_v18, 1  ;;  %v1893_v28 = vrot.slane %v1809_v18, 2 }
 0x1de   : > { %v1813_v29 = vmax.f32 %v1805_v10, %v1811_v19  ;;  %v1773_v31 = vmax.f32 %v1679_v21, 0.0  ;;  %v1919_v34 = vsel %vm19463_vm6, %v1917_v26, %v1888_v25  ;;  %v1895_v35 = vrot.slane %v1809_v18, 3 }
 0x1df   : > { %v1814_v30 = vmax.f32 %v1770_v23, %v1772_v20  ;;  %v1771_v33 = vmax.f32 %v1671_v24, 0.0  ;;  %v1920_v36 = vsel %vm19465_vm0, %v1809_v18, %v1891_v27 }
 0x1e0   : > { %v1898_v37 = vrot.slane %v1813_v29, 4  ;;  %v1900_v41 = vrot.slane %v1813_v29, 5  ;;  %v1921_v42 = vsel %vm19459_vm1, %v1920_v36, %v1893_v28  ;;  %v1902_v45 = vrot.slane %v1813_v29, 6 }
 0x1e1   : > { %v1817_v38 = vrot.slane %v1814_v30, 1  ;;  %v1815_v39 = vmax.f32 %v1771_v33, %v1773_v31  ;;  %v14732_v40 = vpop.f32.mrb[12].mxu0  ;;  %v1922_v46 = vsel %vm19469_vm2, %v1921_v42, %v1895_v35  ;;  %v1904_v59 = vrot.slane %v1813_v29, 7 }
 0x1e2   : > { %v1692_v43 = vadd.f32 %v14732_v40, %v17007_v32  ;;  %v1683_v44 = vpop.f32.mrb[13].mxu0  ;;  %v1923_v51 = vsel %vm19467_vm3, %v1922_v46, %v1898_v37 }
 0x1e3   : > { %v1819_v47 = vmax.f32 %v1814_v30, %v1817_v38  ;;  %v1821_v48 = vrot.slane %v1815_v39, 1  ;;  %v1684_v49 = vadd.f32 %v17007_v32, %v1683_v44  ;;  %v14733_v50 = vpop.f32.mrb[14].mxu0  ;;  %v1924_v55 = vsel %vm19460_vm4, %v1923_v51, %v1900_v41 }
 0x1e4   : > { %v1776_v52 = vmax.f32 %v1692_v43, 0.0  ;;  %v1695_v53 = vadd.f32 %v14733_v50, %v17007_v32  ;;  %v1686_v54 = vpop.f32.mrb[15].mxu0  ;;  %v1925_v63 = vsel %vm19458_vm5, %v1924_v55, %v1902_v45 }
 0x1e5   : > { %v1928_v56 = vrot.slane %v1819_v47, 1  ;;  %v1930_v57 = vrot.slane %v1819_v47, 2  ;;  %v1823_v58 = vmax.f32 %v1815_v39, %v1821_v48  ;;  %v1774_v60 = vmax.f32 %v1684_v49, 0.0 }
 0x1e6   : > { %v1777_v61 = vmax.f32 %v1695_v53, 0.0  ;;  %v1687_v62 = vadd.f32 %v17007_v32, %v1686_v54  ;;  %v1932_v0 = vrot.slane %v1819_v47, 3  ;;  %v1926_v3 = vsel %vm19463_vm6, %v1925_v63, %v1904_v59 }
 0x1e7   : > { %v1959_v1 = vsel %vm19465_vm0, %v1819_v47, %v1928_v56  ;;  %v1935_v2 = vrot.slane %v1823_v58, 4  ;;  %v1824_v5 = vmax.f32 %v1774_v60, %v1776_v52  ;;  %v2065_v7 = vpack.c.bf16 %v1926_v3, %v1919_v34 }
 0x1e8   : > { %v1960_v4 = vsel %vm19459_vm1, %v1959_v1, %v1930_v57  ;;  %v1775_v6 = vmax.f32 %v1687_v62, 0.0  ;;  %v1937_v8 = vrot.slane %v1823_v58, 5  ;;  %v1939_v18 = vrot.slane %v1823_v58, 6 }
 0x1e9   : > { %v14736_v9 = vpop.f32.mrb[16].mxu0  ;;  %v1961_v10 = vsel %vm19469_vm2, %v1960_v4, %v1932_v0  ;;  %v1827_v11 = vrot.slane %v1824_v5, 1  ;;  %14766 = vmatprep.mubr.bf16.mxu1 %v2065_v7  ;;  %v1941_v27 = vrot.slane %v1823_v58, 7 }
 0x1ea   : > { %v1825_v12 = vmax.f32 %v1775_v6, %v1777_v61  ;;  %v1708_v13 = vadd.f32 %v14736_v9, %v17007_v32  ;;  %v1699_v14 = vpop.f32.mrb[17].mxu0  ;;  %v1962_v15 = vsel %vm19467_vm3, %v1961_v10, %v1935_v2 }
 0x1eb   : > { %v1700_v16 = vadd.f32 %v17007_v32, %v1699_v14  ;;  %v14737_v17 = vpop.f32.mrb[18].mxu0  ;;  %v1963_v19 = vsel %vm19460_vm4, %v1962_v15, %v1937_v8  ;;  %v1829_v20 = vmax.f32 %v1824_v5, %v1827_v11 }
 0x1ec   : > { %v1831_v21 = vrot.slane %v1825_v12, 1  ;;  %v1780_v22 = vmax.f32 %v1708_v13, 0.0  ;;  %v1711_v23 = vadd.f32 %v14737_v17, %v17007_v32  ;;  %v1702_v24 = vpop.f32.mrb[19].mxu0  ;;  %v1964_v28 = vsel %vm19458_vm5, %v1963_v19, %v1939_v18 }
 0x1ed   : > { %v1778_v25 = vmax.f32 %v1700_v16, 0.0  ;;  %v1703_v26 = vadd.f32 %v17007_v32, %v1702_v24  ;;  %v1944_v29 = vrot.slane %v1829_v20, 1  ;;  %v1946_v30 = vrot.slane %v1829_v20, 2 }
 0x1ee   : > { %v1833_v31 = vmax.f32 %v1825_v12, %v1831_v21  ;;  %v1781_v34 = vmax.f32 %v1711_v23, 0.0  ;;  %v1965_v36 = vsel %vm19463_vm6, %v1964_v28, %v1941_v27  ;;  %v1948_v37 = vrot.slane %v1829_v20, 3 }
 0x1ef   : > { %v1834_v33 = vmax.f32 %v1778_v25, %v1780_v22  ;;  %v1779_v35 = vmax.f32 %v1703_v26, 0.0  ;;  %v1966_v38 = vsel %vm19465_vm0, %v1829_v20, %v1944_v29 }
 0x1f0   : > { %v1951_v39 = vrot.slane %v1833_v31, 4  ;;  %v1967_v40 = vsel %vm19459_vm1, %v1966_v38, %v1946_v30  ;;  %v1953_v44 = vrot.slane %v1833_v31, 5  ;;  %v1955_v56 = vrot.slane %v1833_v31, 6 }
 0x1f1   : > { %v1837_v41 = vrot.slane %v1834_v33, 1  ;;  %v1835_v42 = vmax.f32 %v1779_v35, %v1781_v34  ;;  %v14740_v43 = vpop.f32.mrb[20].mxu0  ;;  %v1968_v47 = vsel %vm19469_vm2, %v1967_v40, %v1948_v37  ;;  %v1957_v61 = vrot.slane %v1833_v31, 7 }
 0x1f2   : > { %v1724_v45 = vadd.f32 %v14740_v43, %v17007_v32  ;;  %v1715_v46 = vpop.f32.mrb[21].mxu0  ;;  %v1969_v52 = vsel %vm19467_vm3, %v1968_v47, %v1951_v39 }
 0x1f3   : > { %v1839_v48 = vmax.f32 %v1834_v33, %v1837_v41  ;;  %v1841_v49 = vrot.slane %v1835_v42, 1  ;;  %v1716_v50 = vadd.f32 %v17007_v32, %v1715_v46  ;;  %v14741_v51 = vpop.f32.mrb[22].mxu0  ;;  %v1970_v57 = vsel %vm19460_vm4, %v1969_v52, %v1953_v44 }
 0x1f4   : > { %v1784_v53 = vmax.f32 %v1724_v45, 0.0  ;;  %v1727_v54 = vadd.f32 %v14741_v51, %v17007_v32  ;;  %v1718_v55 = vpop.f32.mrb[23].mxu0  ;;  %v1971_v1 = vsel %vm19458_vm5, %v1970_v57, %v1955_v56 }
 0x1f5   : > { %v1974_v58 = vrot.slane %v1839_v48, 1  ;;  %v1976_v59 = vrot.slane %v1839_v48, 2  ;;  %v1843_v60 = vmax.f32 %v1835_v42, %v1841_v49  ;;  %v1782_v62 = vmax.f32 %v1716_v50, 0.0 }
 0x1f6   : > { %v1785_v63 = vmax.f32 %v1727_v54, 0.0  ;;  %v1719_v0 = vadd.f32 %v17007_v32, %v1718_v55  ;;  %v1978_v2 = vrot.slane %v1839_v48, 3  ;;  %v1972_v5 = vsel %vm19463_vm6, %v1971_v1, %v1957_v61 }
 0x1f7   : > { %v2005_v3 = vsel %vm19465_vm0, %v1839_v48, %v1974_v58  ;;  %v1981_v4 = vrot.slane %v1843_v60, 4  ;;  %v1844_v7 = vmax.f32 %v1782_v62, %v1784_v53  ;;  %v2066_v9 = vpack.c.bf16 %v1972_v5, %v1965_v36 }
 0x1f8   : > { %v2006_v6 = vsel %vm19459_vm1, %v2005_v3, %v1976_v59  ;;  %v1783_v8 = vmax.f32 %v1719_v0, 0.0  ;;  %v1983_v10 = vrot.slane %v1843_v60, 5  ;;  %v1985_v20 = vrot.slane %v1843_v60, 6 }
 0x1f9   : > { %v14744_v11 = vpop.f32.mrb[24].mxu0  ;;  %v2007_v12 = vsel %vm19469_vm2, %v2006_v6, %v1978_v2  ;;  %v1847_v13 = vrot.slane %v1844_v7, 1  ;;  %14767 = vmatmul.mubr.bf16.vlgmr.msra.gmra.mrb[0].mxu1 %v2066_v9  ;;  %v1987_v29 = vrot.slane %v1843_v60, 7 }
 0x1fa   : > { %v1845_v14 = vmax.f32 %v1783_v8, %v1785_v63  ;;  %v1740_v15 = vadd.f32 %v14744_v11, %v17007_v32  ;;  %v1731_v16 = vpop.f32.mrb[25].mxu0  ;;  %v2008_v17 = vsel %vm19467_vm3, %v2007_v12, %v1981_v4 }
 0x1fb   : > { %v1732_v18 = vadd.f32 %v17007_v32, %v1731_v16  ;;  %v14745_v19 = vpop.f32.mrb[26].mxu0  ;;  %v2009_v21 = vsel %vm19460_vm4, %v2008_v17, %v1983_v10  ;;  %v1849_v22 = vmax.f32 %v1844_v7, %v1847_v13 }
 0x1fc   : > { %v1851_v23 = vrot.slane %v1845_v14, 1  ;;  %v1788_v24 = vmax.f32 %v1740_v15, 0.0  ;;  %v1743_v25 = vadd.f32 %v14745_v19, %v17007_v32  ;;  %v1734_v26 = vpop.f32.mrb[27].mxu0  ;;  %v2010_v30 = vsel %vm19458_vm5, %v2009_v21, %v1985_v20 }
 0x1fd   : > { %v1786_v27 = vmax.f32 %v1732_v18, 0.0  ;;  %v1735_v28 = vadd.f32 %v17007_v32, %v1734_v26  ;;  %v1990_v31 = vrot.slane %v1849_v22, 1  ;;  %v1992_v33 = vrot.slane %v1849_v22, 2 }
 0x1fe   : > { %v1853_v34 = vmax.f32 %v1845_v14, %v1851_v23  ;;  %v1789_v36 = vmax.f32 %v1743_v25, 0.0  ;;  %v2011_v38 = vsel %vm19463_vm6, %v2010_v30, %v1987_v29  ;;  %v1994_v39 = vrot.slane %v1849_v22, 3 }
 0x1ff   : > { %v1854_v35 = vmax.f32 %v1786_v27, %v1788_v24  ;;  %v1787_v37 = vmax.f32 %v1735_v28, 0.0  ;;  %v2012_v40 = vsel %vm19465_vm0, %v1849_v22, %v1990_v31 }
 0x200   : > { %v1997_v41 = vrot.slane %v1853_v34, 4  ;;  %v2013_v42 = vsel %vm19459_vm1, %v2012_v40, %v1992_v33  ;;  %v1999_v46 = vrot.slane %v1853_v34, 5  ;;  %v2001_v58 = vrot.slane %v1853_v34, 6  ;;  %v15711_v40 = vld [vmem:[%s16630_s25] sm:$0xff]  }
 0x201   : > { %v1857_v43 = vrot.slane %v1854_v35, 1  ;;  %v1855_v44 = vmax.f32 %v1787_v37, %v1789_v36  ;;  %v14748_v45 = vpop.f32.mrb[28].mxu0  ;;  %v2014_v49 = vsel %vm19469_vm2, %v2013_v42, %v1994_v39  ;;  %v2003_v63 = vrot.slane %v1853_v34, 7  ;;  %14774 = vmatprep.subr.bf16.mxu1 %v15711_v40 }
 0x202   : > { %v1756_v47 = vadd.f32 %v14748_v45, %v17007_v32  ;;  %v1747_v48 = vpop.f32.mrb[29].mxu0  ;;  %v2015_v54 = vsel %vm19467_vm3, %v2014_v49, %v1997_v41  ;;  %14775 = vmatpush3.bf16.msra.mxu1 %v15711_v40  ;;  %v17099_v41 = vld [vmem:[%s16635_s29 + $0x8] sm:$0xff]   ;;  %v2344_v42 = vlaneseq }
 0x203   : > { %v1859_v50 = vmax.f32 %v1854_v35, %v1857_v43  ;;  %v1861_v51 = vrot.slane %v1855_v44, 1  ;;  %v1748_v52 = vadd.f32 %v17007_v32, %v1747_v48  ;;  %v14749_v53 = vpop.f32.mrb[30].mxu0  ;;  %v2016_v59 = vsel %vm19460_vm4, %v2015_v54, %v1999_v46  ;;  %14784 = vmatprep.subr.bf16.mxu1 %v17099_v41 }
 0x204   : > { %v1792_v55 = vmax.f32 %v1756_v47, 0.0  ;;  %v1759_v56 = vadd.f32 %v14749_v53, %v17007_v32  ;;  %v1750_v57 = vpop.f32.mrb[31].mxu0  ;;  %v2017_v3 = vsel %vm19458_vm5, %v2016_v59, %v2001_v58  ;;  %v17102_v43 = vshrl.u32 %v2344_v42, 7 }
 0x205   : > { %v2020_v60 = vrot.slane %v1859_v50, 1  ;;  %v2022_v61 = vrot.slane %v1859_v50, 2  ;;  %v1863_v62 = vmax.f32 %v1855_v44, %v1861_v51  ;;  %v1790_v0 = vmax.f32 %v1748_v52, 0.0  ;;  %v17117_v51 = vld [vmem:[%s16625_s21] ss:$0 sm:$0xff] }
 0x206   : > { %v1793_v1 = vmax.f32 %v1759_v56, 0.0  ;;  %v1751_v2 = vadd.f32 %v17007_v32, %v1750_v57  ;;  %v2024_v4 = vrot.slane %v1859_v50, 3  ;;  %v2018_v7 = vsel %vm19463_vm6, %v2017_v3, %v2003_v63  ;;  %19561 = vst [vmem:[#allocation53_spill] sm:$0xff] %v17102_v43 }
 0x207   : > { %v2051_v5 = vsel %vm19465_vm0, %v1859_v50, %v2020_v60  ;;  %v2027_v6 = vrot.slane %v1863_v62, 4  ;;  %v1864_v9 = vmax.f32 %v1790_v0, %v1792_v55  ;;  %v2067_v11 = vpack.c.bf16 %v2018_v7, %v2011_v38 }
 0x208   : > { %v2052_v8 = vsel %vm19459_vm1, %v2051_v5, %v2022_v61  ;;  %v1791_v10 = vmax.f32 %v1751_v2, 0.0  ;;  %v2029_v12 = vrot.slane %v1863_v62, 5  ;;  %v2031_v32 = vrot.slane %v1863_v62, 6 }
 0x209   : > { %v2053_v13 = vsel %vm19469_vm2, %v2052_v8, %v2024_v4  ;;  %v1867_v14 = vrot.slane %v1864_v9, 1  ;;  %14770 = vmatprep.mubr.bf16.mxu1 %v2067_v11  ;;  %v2033_v17 = vrot.slane %v1863_v62, 7  ;;  %v17105_v44 = vadd.s32 8, %v17102_v43 }
 0x20a   : > { %v1865_v15 = vmax.f32 %v1791_v10, %v1793_v1  ;;  %v2054_v16 = vsel %vm19467_vm3, %v2053_v13, %v2027_v6  ;;  %v2347_v45 = vadd.s32 16, %v17102_v43  ;;  %v17109_v46 = vadd.s32 24, %v17102_v43 }
 0x20b   : > { %v2055_v18 = vsel %vm19460_vm4, %v2054_v16, %v2029_v12  ;;  %v1869_v19 = vmax.f32 %v1864_v9, %v1867_v14  ;;  %19562 = vst [vmem:[#allocation54_spill] sm:$0xff] %v17105_v44  ;;  %v2357_v47 = vand.u32 7, %v17102_v43  ;;  %v2364_v48 = vand.u32 7, %v17105_v44 }
 0x20c   : > { %v1871_v20 = vrot.slane %v1865_v15, 1  ;;  %v2056_v21 = vsel %vm19458_vm5, %v2055_v18, %v2031_v32  ;;  %v2371_v49 = vand.u32 7, %v2347_v45  ;;  %v2378_v50 = vand.u32 7, %v17109_v46 }
 0x20d   : > { %v2057_v22 = vsel %vm19463_vm6, %v2056_v21, %v2033_v17  ;;  %v2036_v23 = vrot.slane %v1869_v19, 1  ;;  %v2038_v24 = vrot.slane %v1869_v19, 2  ;;  %v2040_v26 = vrot.slane %v1869_v19, 3 }
 0x20e   : > { %v1873_v25 = vmax.f32 %v1865_v15, %v1871_v20  ;;  %vm2457_vm7 = vcmp.le.s32.totalorder %v2357_v47, 6  ;;  %vm2458_vm8 = vcmp.le.s32.totalorder %v2364_v48, 6  ;;  %vm2459_vm9 = vcmp.le.s32.totalorder %v2371_v49, 6  ;;  %v17162_v20 = vld [vmem:[%s16635_s29] sm:$0xff]  }
 0x20f   : > { %v2058_v27 = vsel %vm19465_vm0, %v1869_v19, %v2036_v23  ;;  %vm2709_vm10 = vmpackc.low %vm2457_vm7, %vm2457_vm7  ;;  %vm2460_vm11 = vcmp.le.s32.totalorder %v2378_v50, 6  ;;  %vm17119_vm15 = vcmp.ge.s32.totalorder %v2357_v47, 1  ;;  %v19472_v55 = vmov 0  }
 0x210   : > { %v2043_v28 = vrot.slane %v1873_v25, 4  ;;  %v2059_v29 = vsel %vm19459_vm1, %v2058_v27, %v2038_v24  ;;  %v2045_v30 = vrot.slane %v1873_v25, 5  ;;  %v2047_v33 = vrot.slane %v1873_v25, 6  ;;  %vm2710_vm12 = vmpackc.low %vm2458_vm8, %vm2458_vm8 }
 0x211   : > { %v2060_v31 = vsel %vm19469_vm2, %v2059_v29, %v2040_v26  ;;  %v2049_v35 = vrot.slane %v1873_v25, 7  ;;  %vm2711_vm13 = vmpackc.low %vm2459_vm9, %vm2459_vm9  ;;  %v2717_v56 = vsel %vm2709_vm10, 65537, %v19472_v55  ;;  %v2718_v57 = vsel %vm2710_vm12, 65537, %v19472_v55 }
 0x212   : > { %v2061_v34 = vsel %vm19467_vm3, %v2060_v31, %v2043_v28  ;;  %vm2712_vm14 = vmpackc.low %vm2460_vm11, %vm2460_vm11  ;;  %v2719_v58 = vsel %vm2711_vm13, 65537, %v19472_v55  ;;  %vm17132_vm7 = vcmp.ge.s32.totalorder %v2371_v49, 1  ;;  %v13257_v3 = vcombine.low %v2717_v56, %v2718_v57 }
 0x213   : > { %v2062_v36 = vsel %vm19460_vm4, %v2061_v34, %v2045_v30  ;;  %v2720_v59 = vsel %vm2712_vm14, 65537, %v19472_v55  ;;  %vm2465_vm8 = vmpackc.low %vm17119_vm15, %vm17119_vm15  ;;  %vm19468_vm11 = vcmask 130048   ;;  %v17168_v24 = vadd.s32 32, %v17102_v43 }
 0x214   : > { %v2063_v37 = vsel %vm19458_vm5, %v2062_v36, %v2047_v33  ;;  %vm17123_vm5 = vcmp.ge.s32.totalorder %v2364_v48, 1  ;;  %v17144_v4 = vcombine.low %v2719_v58, %v2720_v59  ;;  %vm2467_vm10 = vmpackc.low %vm17132_vm7, %vm17132_vm7  ;;  %v17151_v10 = vsel %vm2465_vm8, 65537, %v19472_v55 }
 0x215   : > { %v2064_v38 = vsel %vm19463_vm6, %v2063_v37, %v2049_v35  ;;  %vm2466_vm9 = vmpackc.low %vm17123_vm5, %vm17123_vm5  ;;  %v17157_v13 = vsel %vm2467_vm10, 65537, %v19472_v55  ;;  %v2738_v14 = vrot.slane %v13257_v3, 7  ;;  %v3104_v16 = vrot.slane %v13257_v3, 3 }
 0x216   : > { %v2068_v39 = vpack.c.bf16 %v2064_v38, %v2057_v22  ;;  %v17154_v11 = vsel %vm2466_vm9, 65537, %v19472_v55  ;;  %v2739_v15 = vrot.slane %v17144_v4, 7  ;;  %v3105_v17 = vrot.slane %v17144_v4, 3 }
 0x217   : > { %vm19461_vm5 = vsmask.f32 4352  ;;  %v13268_v21 = vcombine.low %v17151_v10, %v17151_v10  ;;  %v13269_v25 = vcombine.low %v17154_v11, %v17157_v13  ;;  %v17174_v28 = vadd.s32 40, %v17102_v43 }
 0x218   : > { %14771 = vmatmul.mubr.bf16.gmra.mrb[4].mxu1 %v2068_v39  ;;  %v17179_v29 = vsel %vm19465_vm0, %v2738_v14, %v2739_v15  ;;  %v2351_v33 = vadd.s32 48, %v17102_v43  ;;  %v17186_v34 = vsel %vm19460_vm4, %v3104_v16, %v3105_v17  ;;  %vm17192_vm12 = vmand %vm19460_vm4, %vm19461_vm5  ;;  %v2352_v37 = vadd.s32 56, %v17102_v43 }
 0x219   : > { %vm17198_vm13 = vcmp.ne.s16.totalorder %v2738_v14, 0  ;;  %vm17202_vm14 = vcmp.ne.s16.totalorder %v13268_v21, 0  ;;  %vm19464_vm15 = vsmask.f32 7424  ;;  %vm17207_vm7 = vcmp.ne.s16.totalorder %v13269_v25, 0 }
 0x21a   : > { %v2392_v45 = vand.u32 7, %v17174_v28  ;;  %vm19462_vm8 = vcmp.ne.s16.totalorder %v17179_v29, 0  ;;  %vm17213_vm9 = vcmp.ne.s16.totalorder %v3104_v16, 0  ;;  %v19577_v47 = vmov 0 }
 0x21b   : > { %v19578_v47 = vsel %vm17213_vm9, 4294967295, %v19577_v47  ;;  %vm19466_vm10 = vcmp.ne.s16.totalorder %v17186_v34, 0  ;;  %v2399_v52 = vand.u32 7, %v2351_v33  ;;  %vm19470_vm1 = vsmask.f32 3328 }
 0x21c   : > { %v2406_v57 = vand.u32 7, %v2352_v37  ;;  %v19606_v4 = vmov 0 }
 0x2cc   : > { %v14768_v54 = vpop.f32.mrb[0].mxu1 }
 0x2cd   : > { %v2183_v60 = vadd.f32 %v14768_v54, %v17117_v51  ;;  %v2174_v61 = vpop.f32.mrb[1].mxu1 }
 0x2ce   : > { %v2175_v63 = vadd.f32 %v17117_v51, %v2174_v61  ;;  %v14769_v0 = vpop.f32.mrb[2].mxu1 }
 0x2cf   : > { %v2186_v1 = vadd.f32 %v14769_v0, %v17117_v51  ;;  %v2177_v2 = vpop.f32.mrb[3].mxu1  ;;  %v2207_v6 = vmax.f32 %v2183_v60, 0.0 }
 0x2d0   : > { %v2178_v5 = vadd.f32 %v17117_v51, %v2177_v2  ;;  %v2205_v8 = vmax.f32 %v2175_v63, 0.0  ;;  %v13241_v63 = vcombine.low %v17151_v10, %v17154_v11  ;;  %v19602_v11 = vmov 0 }
 0x2d1   : > { %v2208_v7 = vmax.f32 %v2186_v1, 0.0 }
 0x2d2   : > { %v2206_v9 = vmax.f32 %v2178_v5, 0.0 }
 0x2d3   : > { %v2214_v12 = vpack.c.bf16 %v2208_v7, %v2207_v6 }
 0x2d4   : > { %v2213_v32 = vpack.c.bf16 %v2206_v9, %v2205_v8 }
 0x2d5   : > { %v2311_v18 = vshrl.u32 %v2214_v12, 16  ;;  %v2314_v19 = vshll.u32 %v2214_v12, 16 }
 0x2d6   : > { %v2304_v22 = vshrl.u32 %v2213_v32, 16  ;;  %v2307_v23 = vshll.u32 %v2213_v32, 16  ;;  %14776 = vmatprep.mubr.msk.bf16.mxu1 %vm19468_vm11, %v2213_v32 }
 0x2d7   : > { %v2313_v26 = vrot.slane %v2311_v18, 3  ;;  %v2316_v27 = vrot.slane %v2314_v19, 4  ;;  %14777 = vmatmul.mubr.msk.bf16.vlgmr.msra.gmra.mrb[8].mxu1 %vm19468_vm11, %v2214_v12 }
 0x2d8   : > { %v2306_v30 = vrot.slane %v2304_v22, 3  ;;  %v2309_v31 = vrot.slane %v2307_v23, 4  ;;  %14785 = vmatpush3.bf16.msra.mxu1 %v17099_v41  ;;  %v2385_v41 = vand.u32 7, %v17168_v24 }
 0x2d9   : > { %v17188_v35 = vor.u32 %v2316_v27, %v2313_v26  ;;  %14794 = vmatprep.subr.bf16.mxu1 %v17162_v20 }
 0x2da   : > { %v2310_v40 = vor.u32 %v2309_v31, %v2306_v30  ;;  %vm17230_vm4 = vcmp.le.s32.totalorder %v2385_v41, 6  ;;  %vm17309_vm11 = vcmp.ge.s32.totalorder %v2385_v41, 1 }
 0x2dc   : > { %v17220_v48 = vsel %vm19461_vm5, %v2310_v40, %v17188_v35  ;;  %v17224_v49 = vsel %vm17192_vm12, 0, %v2310_v40  ;;  %vm17242_vm5 = vcmp.le.s32.totalorder %v2392_v45, 6 }
 0x2dd   : > { %v2508_v53 = vshrl.u32 %v17224_v49, 16  ;;  %v2510_v54 = vshll.u32 %v17224_v49, 16  ;;  %v2515_v56 = vshll.u32 %v17220_v48, 16  ;;  %v2519_v58 = vshrl.u32 %v17220_v48, 16  ;;  %vm2714_vm0 = vmpackc.low %vm17242_vm5, %vm17242_vm5 }
 0x2de   : > { %v2750_v60 = vsel %vm17198_vm13, %v17224_v49, 0  ;;  %v17240_v61 = vsel %vm19462_vm8, %v17220_v48, 0  ;;  %v2874_v2 = vsel %vm17202_vm14, %v17224_v49, 0  ;;  %v2875_v3 = vsel %vm17207_vm7, %v17220_v48, 0 }
 0x2df   : > { %v2512_v62 = vrot.slane %v2510_v54, 1  ;;  %v2764_v0 = vrot.slane %v2750_v60, 1  ;;  %v2765_v1 = vrot.slane %v17240_v61, 1  ;;  %v2992_v5 = vrot.slane %v2508_v53, 4 }
 0x2e0   : > { %v2993_v6 = vrot.slane %v2510_v54, 5  ;;  %v17253_v8 = vrot.slane %v2515_v56, 1  ;;  %v2888_v12 = vrot.slane %v2874_v2, 4  ;;  %v17260_v14 = vrot.slane %v2875_v3, 4 }
 0x2e1   : > { %v2513_v7 = vor.u32 %v2512_v62, %v2508_v53  ;;  %v17258_v9 = vsel %vm19463_vm6, %v2764_v0, %v2765_v1  ;;  %v2995_v16 = vrot.slane %v2519_v58, 4  ;;  %v2996_v18 = vrot.slane %v2515_v56, 5  ;;  %vm2713_vm6 = vmpackc.low %vm17230_vm4, %vm17230_vm4 }
 0x2e2   : > { %v2994_v32 = vor.u32 %v2993_v6, %v2992_v5  ;;  %vm17268_vm8 = vcmp.le.s32.totalorder %v2399_v52, 6  ;;  %v3116_v22 = vsel %vm17213_vm9, %v17224_v49, 0  ;;  %v17278_v23 = vsel %vm19466_vm10, %v17220_v48, 0 }
 0x2e3   : > { %v17266_v19 = vsel %vm19464_vm15, %v2513_v7, %v17253_v8  ;;  %v17282_v24 = vsel %vm19467_vm3, %v2888_v12, %v17260_v14  ;;  %v17284_v25 = vor.u32 %v2996_v18, %v2995_v16  ;;  %v3130_v26 = vrot.slane %v3116_v22, 5  ;;  %vm2715_vm10 = vmpackc.low %vm17268_vm8, %vm17268_vm8 }
 0x2e4   : > { %v19475_v27 = vrot.slane %v17278_v23, 5  ;;  %vm2464_vm15 = vcmp.le.s32.totalorder %v2406_v57, 6  ;;  %vm17305_vm4 = vcmp.ge.s32.totalorder %v2399_v52, 1  ;;  %v2721_v37 = vsel %vm2713_vm6, 65537, %v19472_v55 }
 0x2e5   : > { %v17295_v28 = vsel %vm19470_vm1, %v2994_v32, %v17284_v25  ;;  %vm2716_vm3 = vmpackc.low %vm2464_vm15, %vm2464_vm15  ;;  %v2722_v40 = vsel %vm2714_vm0, 65537, %v19472_v55  ;;  %vm17315_vm5 = vcmp.ge.s32.totalorder %v2406_v57, 1  ;;  %v2723_v56 = vsel %vm2715_vm10, 65537, %v19472_v55 }
 0x2e6   : > { %v17300_v30 = vsel %vm19469_vm2, %v3130_v26, %v19475_v27  ;;  %v2724_v52 = vsel %vm2716_vm3, 65537, %v19472_v55  ;;  %vm17322_vm15 = vcmp.ge.s32.totalorder %v2392_v45, 1  ;;  %vm2471_vm0 = vmpackc.low %vm17305_vm4, %vm17305_vm4  ;;  %vm17332_vm6 = vcmp.ge.s32.totalorder %v2378_v50, 1 }
 0x2e7   : > { %vm2469_vm3 = vmpackc.low %vm17309_vm11, %vm17309_vm11  ;;  %v13259_v45 = vcombine.low %v2721_v37, %v2722_v40  ;;  %v13260_v3 = vcombine.low %v2723_v56, %v2724_v52  ;;  %v17365_v21 = vsel %vm2471_vm0, 65537, %v19472_v55  ;;  %vm19595_vm4 = vcmask 130048  }
 0x2e8   : > { %vm2472_vm8 = vmpackc.low %vm17315_vm5, %vm17315_vm5  ;;  %v17351_v6 = vsel %vm2469_vm3, 65537, %v19472_v55  ;;  %vm19596_vm5 = vcmask 1040384   ;;  %vm19600_vm3 = vcmask 1044480   ;;  %vm17438_vm1 = vcmp.ne.s16.totalorder %v13241_v63, 0 }
 0x2e9   : > { %vm2470_vm10 = vmpackc.low %vm17322_vm15, %vm17322_vm15  ;;  %v2741_v32 = vrot.slane %v13259_v45, 7  ;;  %v17354_v16 = vsel %vm2472_vm8, 65537, %v19472_v55  ;;  %v2743_v22 = vrot.slane %v13260_v3, 7  ;;  %v3107_v37 = vrot.slane %v13259_v45, 3 }
 0x2ea   : > { %vm2468_vm11 = vmpackc.low %vm17332_vm6, %vm17332_vm6  ;;  %v17357_v18 = vsel %vm2470_vm10, 65537, %v19472_v55  ;;  %v3109_v40 = vrot.slane %v13260_v3, 3  ;;  %v13272_v52 = vcombine.low %v17354_v16, %v17354_v16  ;;  %vm19623_vm9 = vcmask 1043456  }
 0x2eb   : > { %v14772_v53 = vpop.f32.mrb[4].mxu1  ;;  %v17368_v33 = vsel %vm2468_vm11, 65537, %v19472_v55  ;;  %v13271_v41 = vcombine.low %v17357_v18, %v17365_v21  ;;  %vm19597_vm15 = vmmov %vm19595_vm4 }
 0x2ec   : > { %v2199_v59 = vadd.f32 %v14772_v53, %v17117_v51  ;;  %v2190_v60 = vpop.f32.mrb[5].mxu1  ;;  %v13270_v56 = vcombine.low %v17368_v33, %v17351_v6  ;;  %vm19598_vm0 = vmmov %vm19596_vm5  ;;  %vm17401_vm11 = vcmp.ne.s16.totalorder %v13272_v52, 0  ;;  %v3419_v52 = vsel %vm17198_vm13, %v17220_v48, 0 }
 0x2ed   : > { %v2191_v57 = vadd.f32 %v17117_v51, %v2190_v60  ;;  %v14773_v62 = vpop.f32.mrb[6].mxu1  ;;  %v17378_v60 = vsel %vm19596_vm5, %v2739_v15, %v2741_v32  ;;  %v17386_v45 = vsel %vm19598_vm0, %v2741_v32, %v2743_v22  ;;  %vm19599_vm6 = vmmov %vm19595_vm4  ;;  %v17393_v15 = vsel %vm19600_vm3, %v3105_v17, %v3107_v37 }
 0x2ee   : > { %v2202_v0 = vadd.f32 %v14773_v62, %v17117_v51  ;;  %v2193_v2 = vpop.f32.mrb[7].mxu1  ;;  %v2211_v46 = vmax.f32 %v2199_v59, 0.0  ;;  %vm19601_vm8 = vmmov %vm19600_vm3  ;;  %vm19471_vm10 = vcmp.ne.s16.totalorder %v17378_v60, 0  ;;  %v19603_v11 = vsel %vm17401_vm11, 4294967295, %v19602_v11 }
 0x2ef   : > { %v2194_v5 = vadd.f32 %v17117_v51, %v2193_v2  ;;  %v2209_v7 = vmax.f32 %v2191_v57, 0.0  ;;  %v17396_v3 = vsel %vm19601_vm8, %v3107_v37, %v3109_v40  ;;  %vm17409_vm5 = vcmp.ne.s16.totalorder %v13270_v56, 0 }
 0x2f0   : > { %v2212_v50 = vmax.f32 %v2202_v0, 0.0  ;;  %v19607_v4 = vsel %vm17409_vm5, 4294967295, %v19606_v4  ;;  %v19608_v17 = vmov 0  ;;  %vm19474_vm0 = vcmp.ne.s16.totalorder %v17386_v45, 0 }
 0x2f1   : > { %v2210_v12 = vmax.f32 %v2194_v5, 0.0  ;;  %vm19610_vm8 = vsmask.f32 4352  ;;  %v2521_v32 = vor.u32 %v2519_v58, %v17253_v8 }
 0x2f2   : > { %v2216_v51 = vpack.c.bf16 %v2212_v50, %v2211_v46  ;;  %vm19611_vm2 = vmmov %vm19610_vm8 }
 0x2f3   : > { %v2215_v26 = vpack.c.bf16 %v2210_v12, %v2209_v7 }
 0x2f4   : > { %v2327_v53 = vshrl.u32 %v2216_v51, 16  ;;  %v2330_v54 = vshll.u32 %v2216_v51, 16 }
 0x2f5   : > { %v2319_v59 = vshrl.u32 %v2215_v26, 16  ;;  %v2322_v31 = vshll.u32 %v2215_v26, 16  ;;  %14780 = vmatprep.mubr.msk.bf16.mxu1 %vm19595_vm4, %v2215_v26  ;;  %vm17405_vm4 = vcmp.ne.s16.totalorder %v2743_v22, 0 }
 0x2f6   : > { %v2329_v57 = vrot.slane %v2327_v53, 3  ;;  %v2332_v62 = vrot.slane %v2330_v54, 4  ;;  %14781 = vmatmul.mubr.msk.bf16.gmra.mrb[12].mxu1 %vm19597_vm15, %v2216_v51  ;;  %vm17413_vm15 = vcmp.ne.s16.totalorder %v13271_v41, 0  ;;  %v19614_v54 = vmov 0  ;;  %v15765_v53 = vld [vmem:[%s19765_s23 + $0x80] sm:$0xff]  }
 0x2f7   : > { %v2321_v0 = vrot.slane %v2319_v59, 3  ;;  %v2324_v2 = vrot.slane %v2322_v31, 4  ;;  %14786 = vmatprep.mubr.msk.bf16.mxu1 %vm19599_vm6, %v17266_v19  ;;  %v19604_v19 = vmov 0  ;;  %v19609_v17 = vsel %vm17413_vm15, 4294967295, %v19608_v17 }
 0x2f8   : > { %v2333_v5 = vor.u32 %v2332_v62, %v2329_v57  ;;  %v19605_v19 = vsel %vm17405_vm4, 4294967295, %v19604_v19  ;;  %v17457_v62 = vld [vmem:[%s16635_s29 + $0x10] sm:$0xff]  }
 0x2f9   : > { %v2325_v46 = vor.u32 %v2324_v2, %v2321_v0 }
 0x2fa   : > { %v17419_v50 = vsel %vm17192_vm12, %v2333_v5, 0 }
 0x2fb   : > { %v17426_v7 = vsel %vm19610_vm8, %v17188_v35, %v2325_v46  ;;  %v17429_v12 = vsel %vm19611_vm2, %v2325_v46, %v2333_v5  ;;  %v2539_v51 = vshll.u32 %v17419_v50, 16  ;;  %v2754_v35 = vsel %vm17405_vm4, %v17419_v50, 0 }
 0x2fc   : > { %v2523_v22 = vshll.u32 %v17426_v7, 16  ;;  %v2527_v26 = vshrl.u32 %v17426_v7, 16  ;;  %v2531_v37 = vshll.u32 %v17429_v12, 16  ;;  %vm17445_vm2 = vcmp.ne.s16.totalorder %v3109_v40, 0 }
 0x2fd   : > { %v19615_v54 = vsel %vm17445_vm2, 4294967295, %v19614_v54  ;;  %v2535_v58 = vshrl.u32 %v17429_v12, 16  ;;  %v2541_v8 = vrot.slane %v2539_v51, 1  ;;  %v2752_v56 = vsel %vm19471_vm10, %v17426_v7, 0 }
 0x2fe   : > { %v2525_v59 = vrot.slane %v2523_v22, 1  ;;  %v2533_v31 = vrot.slane %v2531_v37, 1  ;;  %v2999_v41 = vrot.slane %v2527_v26, 4  ;;  %v2767_v57 = vrot.slane %v2752_v56, 1 }
 0x2ff   : > { %v2753_v40 = vsel %vm19474_vm0, %v17429_v12, 0  ;;  %v2771_v63 = vrot.slane %v2754_v35, 1  ;;  %v2876_v0 = vsel %vm17409_vm5, %v17426_v7, 0  ;;  %v2877_v2 = vsel %vm17413_vm15, %v17429_v12, 0  ;;  %vm19618_vm0 = vmmov %vm19599_vm6 }
 0x300   : > { %vm19616_vm8 = vsmask.f32 7424  ;;  %v2529_v46 = vor.u32 %v2527_v26, %v2525_v59  ;;  %v2537_v56 = vor.u32 %v2535_v58, %v2533_v31  ;;  %vm19617_vm10 = vcmask 1046528  }
 0x301   : > { %v17469_v5 = vsel %vm19616_vm8, %v2521_v32, %v2525_v59  ;;  %v17474_v55 = vsel %vm19617_vm10, %v2765_v1, %v2767_v57  ;;  %v2769_v35 = vrot.slane %v2753_v40, 1  ;;  %v2891_v10 = vrot.slane %v2876_v0, 4  ;;  %vm19619_vm3 = vmmov %vm19616_vm8 }
 0x302   : > { %14787 = vmatmul.mubr.msk.bf16.vlgmr.msra.gmra.mrb[16].mxu1 %vm19618_vm0, %v17469_v5  ;;  %v2893_v27 = vrot.slane %v2877_v2, 4  ;;  %v2878_v44 = vsel %vm17401_vm11, %v17419_v50, 0  ;;  %v17483_v32 = vsel %vm19616_vm8, %v2529_v46, %v2533_v31  ;;  %v17486_v61 = vsel %vm19619_vm3, %v2537_v56, %v2541_v8  ;;  %vm19620_vm10 = vmmov %vm19618_vm0 }
 0x303   : > { %14795 = vmatpush3.bf16.msra.mxu1 %v17162_v20  ;;  %v2895_v1 = vrot.slane %v2878_v44, 4  ;;  %v3000_v26 = vrot.slane %v2523_v22, 5  ;;  %14790 = vmatprep.mubr.msk.bf16.mxu1 %vm19620_vm10, %v17483_v32  ;;  %vm19621_vm0 = vcmask 1046528   ;;  %v2892_v20 = vsel %vm19623_vm9, %v17260_v14, %v2891_v10  ;;  %vm19624_vm8 = vmmov %vm19623_vm9 }
 0x304   : > { %14804 = vmatprep.subr.bf16.mxu1 %v17457_v62  ;;  %v2770_v59 = vsel %vm19621_vm0, %v2767_v57, %v2769_v35  ;;  %vm19622_vm6 = vmmov %vm19621_vm0  ;;  %v3003_v0 = vrot.slane %v2535_v58, 4  ;;  %v2894_v31 = vsel %vm19624_vm8, %v2891_v10, %v2893_v27  ;;  %v3004_v44 = vrot.slane %v2531_v37, 5 }
 0x305   : > { %v2772_v40 = vsel %vm19622_vm6, %v2769_v35, %v2771_v63  ;;  %vm19625_vm11 = vmmov %vm19624_vm8  ;;  %v3001_v46 = vor.u32 %v3000_v26, %v2999_v41  ;;  %v3007_v22 = vshrl.u32 %v17419_v50, 16  ;;  %v3010_v56 = vrot.slane %v2539_v51, 5 }
 0x306   : > { %v2896_v2 = vsel %vm19625_vm11, %v2893_v27, %v2895_v1  ;;  %vm19626_vm3 = vcmp.ne.s16.totalorder %v17393_v15, 0  ;;  %vm19627_vm6 = vcmp.ne.s16.totalorder %v17396_v3, 0  ;;  %vm19628_vm9 = vsmask.f32 3328 }
 0x307   : > { %v3118_v43 = vsel %vm19626_vm3, %v17426_v7, 0  ;;  %v3119_v57 = vsel %vm19627_vm6, %v17429_v12, 0  ;;  %v3002_v14 = vsel %vm19628_vm9, %v17284_v25, %v3001_v46  ;;  %v3005_v58 = vor.u32 %v3004_v44, %v3003_v0  ;;  %vm19629_vm11 = vmmov %vm19628_vm9 }
 0x308   : > { %v3133_v10 = vrot.slane %v3118_v43, 5  ;;  %v3135_v63 = vrot.slane %v3119_v57, 5  ;;  %v2497_v27 = vsel %vm17438_vm1, %v17224_v49, 0  ;;  %v13243_v51 = vcombine.low %v17351_v6, %v17357_v18 }
 0x309   : > { %v3009_v37 = vrot.slane %v3007_v22, 4  ;;  %v3120_v41 = vsel %vm17445_vm2, %v17419_v50, 0  ;;  %v3006_v35 = vsel %vm19629_vm11, %v3001_v46, %v3005_v58  ;;  %v19630_v1 = vrot.slane %v17278_v23, 5 }
 0x30a   : > { %vm19631_vm10 = vcmask 1042432   ;;  %v3137_v26 = vrot.slane %v3120_v41, 5  ;;  %vm19633_vm8 = vcmask 130048   ;;  %v17521_v0 = vor.u32 %v3007_v22, %v2541_v8  ;;  %v15715_v41 = vld [vmem:[%s16635_s29 + $0x18] sm:$0xff]  }
 0x30b   : > { %v3134_v25 = vsel %vm19631_vm10, %v19630_v1, %v3133_v10  ;;  %vm19632_vm0 = vmmov %vm19631_vm10  ;;  %14791 = vmatmul.mubr.msk.bf16.gmra.mrb[20].mxu1 %vm19633_vm8, %v17486_v61  ;;  %v3011_v49 = vor.u32 %v3010_v56, %v3009_v37  ;;  %vm19634_vm3 = vcmp.ne.s16.totalorder %v17179_v29, 0  ;;  %v3431_v18 = vrot.slane %v3419_v52, 1 }
 0x30c   : > { %v3136_v43 = vsel %vm19632_vm0, %v3133_v10, %v3135_v63  ;;  %v3420_v6 = vsel %vm19634_vm3, %v17426_v7, 0  ;;  %vm19635_vm6 = vmmov %vm19633_vm8  ;;  %vm19637_vm11 = vcmp.ne.s16.totalorder %v17378_v60, 0  ;;  %vm19638_vm10 = vcmp.ne.s16.totalorder %v17386_v45, 0 }
 0x30d   : > { %14796 = vmatprep.mubr.msk.bf16.mxu1 %vm19635_vm6, %v2497_v27  ;;  %vm19636_vm9 = vmmov %vm19632_vm0  ;;  %v3432_v46 = vrot.slane %v3420_v6, 1  ;;  %v3421_v44 = vsel %vm19637_vm11, %v17429_v12, 0  ;;  %v17534_v8 = vsel %vm19638_vm10, %v17419_v50, 0  ;;  %vm19639_vm0 = vsmask.f32 3328  ;;  %v15726_v6 = vld [vmem:[%s19541_s8 + $0x28] sm:$0xff]  }
 0x30e   : > { %v3138_v23 = vsel %vm19636_vm9, %v3135_v63, %v3137_v26  ;;  %v3012_v22 = vsel %vm19639_vm0, %v3005_v58, %v3011_v49  ;;  %v3434_v56 = vrot.slane %v3421_v44, 1  ;;  %v3436_v57 = vrot.slane %v17534_v8, 1  ;;  %v15724_v49 = vld [vmem:[%s19541_s8 + $0x18] sm:$0xff]   ;;  %v15766_v63 = vld [vmem:[%s19765_s23 + $0x88] sm:$0xff]  }
 0x30f   : > { %vm19640_vm8 = vcmask 1046528   ;;  %v19641_v10 = vcombine.low %v17157_v13, %v17368_v33  ;;  %vm17550_vm11 = vcmp.ne.s16.totalorder %v13243_v51, 0  ;;  %vm19648_vm10 = vcmask 130048  }
 0x310   : > { %v3433_v52 = vsel %vm19640_vm8, %v3431_v18, %v3432_v46  ;;  %vm19644_vm6 = vmmov %vm19640_vm8  ;;  %v2499_v33 = vsel %vm17550_vm11, %v17426_v7, 0  ;;  %v13244_v1 = vcombine.low %v17365_v21, %v17354_v16  ;;  %v15716_v16 = vld [vmem:[%s16635_s29 + $0x20] sm:$0xff]   ;;  %v15717_v21 = vld [vmem:[%s16635_s29 + $0x28] sm:$0xff]  }
 0x311   : > { %vm17542_vm3 = vcmp.ne.s16.totalorder %v19641_v10, 0  ;;  %v3435_v27 = vsel %vm19644_vm6, %v3432_v46, %v3434_v56  ;;  %vm19645_vm9 = vmmov %vm19644_vm6  ;;  %v15727_v18 = vld [vmem:[%s19541_s8 + $0x30] sm:$0xff]   ;;  %v15729_v10 = vld [vmem:[%s16655_s19] sm:$0xff]  }
 0x312   : > { %v3437_v37 = vsel %vm19645_vm9, %v3434_v56, %v3436_v57  ;;  %v2498_v13 = vsel %vm17542_vm3, %v17220_v48, 0  ;;  %vm19649_vm0 = vmmov %vm19648_vm10  ;;  %vm17566_vm8 = vcmp.ne.s16.totalorder %v13244_v1, 0 }
 0x313   : > { %14797 = vmatmul.mubr.msk.bf16.vlgmr.msra.gmra.mrb[16].mxu1 %vm19648_vm10, %v2498_v13  ;;  %v2500_v26 = vsel %vm17566_vm8, %v17429_v12, 0  ;;  %vm19652_vm6 = vmmov %vm19649_vm0 }
 0x314   : > { %14805 = vmatpush3.bf16.msra.mxu1 %v17457_v62  ;;  %14800 = vmatprep.mubr.msk.bf16.mxu1 %vm19649_vm0, %v2499_v33  ;;  %vm19653_vm9 = vmmov %vm19649_vm0  ;;  %v3232_v62 = vsel %vm17550_vm11, %v17429_v12, 0 }
 0x315   : > { %14814 = vmatprep.subr.bf16.mxu1 %v15715_v41  ;;  %vm19654_vm10 = vmmov %vm19649_vm0 }
 0x316   : > { %vm19655_vm2 = vmmov %vm19649_vm0 }
 0x317   : > { %vm19656_vm15 = vmmov %vm19649_vm0 }
 0x318   : > { %vm19658_vm5 = vmmov %vm19649_vm0 }
 0x31b   : > { %14801 = vmatmul.mubr.msk.bf16.gmra.mrb[20].mxu1 %vm19652_vm6, %v2500_v26  ;;  %vm19657_vm6 = vmmov %vm19649_vm0 }
 0x31c   : > { %14806 = vmatprep.mubr.msk.bf16.mxu1 %vm19653_vm9, %v17258_v9  ;;  %vm19659_vm9 = vmmov %vm19649_vm0  ;;  %v15719_v9 = vld [vmem:[%s16635_s29 + $0x38] sm:$0xff]  }
 0x323   : > { %14807 = vmatmul.mubr.msk.bf16.vlgmr.msra.gmra.mrb[16].mxu1 %vm19654_vm10, %v17474_v55  ;;  %vm19660_vm10 = vmmov %vm19649_vm0  ;;  %v15718_v55 = vld [vmem:[%s16635_s29 + $0x30] sm:$0xff]  }
 0x324   : > { %14815 = vmatpush3.bf16.msra.mxu1 %v15715_v41  ;;  %14810 = vmatprep.mubr.msk.bf16.mxu1 %vm19649_vm0, %v2770_v59  ;;  %v13315_v41 = vld [vmem:[%s19680_s3] ss:$0 sm:$0xff]  ;;  %s19879_s3 = sld [smem:[#allocation31_spill]] }
 0x325   : > { %14824 = vmatprep.subr.bf16.mxu1 %v15716_v16 }
 0x32b   : > { %14811 = vmatmul.mubr.msk.bf16.gmra.mrb[20].mxu1 %vm19655_vm2, %v2772_v40  ;;  %vm19661_vm2 = vmmov %vm19649_vm0 }
 0x32c   : > { %14816 = vmatprep.mubr.msk.bf16.mxu1 %vm19656_vm15, %v17282_v24  ;;  %vm19662_vm15 = vmmov %vm19649_vm0  ;;  %v3230_v24 = vsel %vm17438_vm1, %v17220_v48, 0  ;;  %v3233_v48 = vsel %vm17566_vm8, %v17419_v50, 0 }
 0x333   : > { %14817 = vmatmul.mubr.msk.bf16.vlgmr.msra.gmra.mrb[16].mxu1 %vm19657_vm6, %v2892_v20  ;;  %vm19663_vm6 = vmmov %vm19649_vm0 }
 0x334   : > { %14825 = vmatpush3.bf16.msra.mxu1 %v15716_v16  ;;  %14820 = vmatprep.mubr.msk.bf16.mxu1 %vm19658_vm5, %v2894_v31  ;;  %vm19664_vm5 = vmmov %vm19649_vm0 }
 0x335   : > { %14834 = vmatprep.subr.bf16.mxu1 %v15717_v21 }
 0x33b   : > { %14821 = vmatmul.mubr.msk.bf16.gmra.mrb[20].mxu1 %vm19659_vm9, %v2896_v2  ;;  %vm19665_vm9 = vmmov %vm19649_vm0 }
 0x33c   : > { %14826 = vmatprep.mubr.msk.bf16.mxu1 %vm19660_vm10, %v17295_v28  ;;  %vm19666_vm10 = vmmov %vm19649_vm0  ;;  %v15720_v28 = vld [vmem:[%s16635_s29 + $0x40] sm:$0xff]  }
 0x343   : > { %14827 = vmatmul.mubr.msk.bf16.vlgmr.msra.gmra.mrb[16].mxu1 %vm19649_vm0, %v3002_v14 }
 0x344   : > { %14835 = vmatpush3.bf16.msra.mxu1 %v15717_v21  ;;  %14830 = vmatprep.mubr.msk.bf16.mxu1 %vm19661_vm2, %v3006_v35  ;;  %vm19667_vm2 = vmmov %vm19649_vm0  ;;  %v15721_v35 = vld [vmem:[%s19541_s8] sm:$0xff]  }
 0x345   : > { %14844 = vmatprep.subr.bf16.mxu1 %v15718_v55  ;;  %14874 = vmatprep.subr.bf16.mxu0 %v15721_v35 }
 0x346   : > { %14875 = vmatpush3.bf16.msra.mxu0 %v15721_v35 }
 0x34b   : > { %14831 = vmatmul.mubr.msk.bf16.gmra.mrb[20].mxu1 %vm19662_vm15, %v3012_v22  ;;  %vm19668_vm15 = vmmov %vm19649_vm0 }
 0x34c   : > { %14836 = vmatprep.mubr.msk.bf16.mxu1 %vm19663_vm6, %v17300_v30  ;;  %v3231_v30 = vsel %vm17542_vm3, %v17426_v7, 0  ;;  %vm19669_vm6 = vmmov %vm19649_vm0  ;;  %v19673_v7 = vmov 0  }
 0x34d   : > { %v17623_v12 = vrot.slane %v19673_v7, 1 }
 0x353   : > { %14837 = vmatmul.mubr.msk.bf16.vlgmr.msra.gmra.mrb[16].mxu1 %vm19664_vm5, %v3134_v25  ;;  %vm19670_vm5 = vmmov %vm19649_vm0  ;;  %v15722_v25 = vld [vmem:[%s19541_s8 + $0x8] sm:$0xff]  }
 0x354   : > { %14845 = vmatpush3.bf16.msra.mxu1 %v15718_v55  ;;  %14840 = vmatprep.mubr.msk.bf16.mxu1 %vm19665_vm9, %v3136_v43  ;;  %vm19671_vm9 = vmmov %vm19649_vm0  ;;  %v15723_v43 = vld [vmem:[%s19541_s8 + $0x10] sm:$0xff]  }
 0x355   : > { %14854 = vmatprep.subr.bf16.mxu1 %v15719_v9  ;;  %14876 = vmatprep.subr.bf16.mxu0 %v15722_v25 }
 0x356   : > { %14877 = vmatpush3.bf16.msra.mxu0 %v15722_v25 }
 0x357   : > { %14878 = vmatprep.subr.bf16.mxu0 %v15723_v43 }
 0x35a   : > { %14879 = vmatpush3.bf16.msra.mxu0 %v15723_v43 }
 0x35b   : > { %14841 = vmatmul.mubr.msk.bf16.gmra.mrb[20].mxu1 %vm19666_vm10, %v3138_v23  ;;  %vm19672_vm10 = vmmov %vm19649_vm0  ;;  %14880 = vmatprep.subr.bf16.mxu0 %v15724_v49  ;;  %v15728_v23 = vld [vmem:[%s19541_s8 + $0x38] sm:$0xff]  }
 0x35c   : > { %14846 = vmatprep.mubr.msk.bf16.mxu1 %vm19649_vm0, %v3230_v24  ;;  %vm19674_vm0 = vsmask.f32 7424 }
 0x35d   : > { %v3336_v50 = vsel %vm19674_vm0, %v17521_v0, %v17623_v12  ;;  %v15725_v0 = vld [vmem:[%s19541_s8 + $0x20] sm:$0xff]   ;;  %vm19489_vm0 = vcmask 523264  }
 0x35e   : > { %14881 = vmatpush3.bf16.msra.mxu0 %v15724_v49 }
 0x35f   : > { %14882 = vmatprep.subr.bf16.mxu0 %v15725_v0 }
 0x362   : > { %14883 = vmatpush3.bf16.msra.mxu0 %v15725_v0 }
 0x363   : > { %14847 = vmatmul.mubr.msk.bf16.vlgmr.msra.gmra.mrb[16].mxu1 %vm19667_vm2, %v3231_v30  ;;  %14884 = vmatprep.subr.bf16.mxu0 %v15726_v6 }
 0x364   : > { %14855 = vmatpush3.bf16.msra.mxu1 %v15719_v9  ;;  %14850 = vmatprep.mubr.msk.bf16.mxu1 %vm19668_vm15, %v3232_v62  ;;  %vm19675_vm15 = vmmov %vm19667_vm2 }
 0x365   : > { %14864 = vmatprep.subr.bf16.mxu1 %v15720_v28 }
 0x366   : > { %14885 = vmatpush3.bf16.msra.mxu0 %v15726_v6 }
 0x367   : > { %14886 = vmatprep.subr.bf16.mxu0 %v15727_v18 }
 0x36a   : > { %14887 = vmatpush3.bf16.msra.mxu0 %v15727_v18 }
 0x36b   : > { %14851 = vmatmul.mubr.msk.bf16.gmra.mrb[20].mxu1 %vm19669_vm6, %v3233_v48  ;;  %vm19676_vm6 = vmmov %vm19667_vm2  ;;  %14888 = vmatprep.subr.bf16.mxu0 %v15728_v23 }
 0x36c   : > { %14856 = vmatprep.mubr.msk.bf16.mxu1 %vm19670_vm5, %v17469_v5  ;;  %vm19677_vm5 = vmmov %vm19667_vm2 }
 0x36e   : > { %14889 = vmatpush3.bf16.msra.mxu0 %v15728_v23 }
 0x36f   : > { %14898 = vmatprep.subr.bf16.mxu0 %v15729_v10 }
 0x373   : > { %14857 = vmatmul.mubr.msk.bf16.vlgmr.msra.gmra.mrb[16].mxu1 %vm19671_vm9, %v17483_v32  ;;  %vm19678_vm9 = vcmask 1046528  }
 0x374   : > { %14865 = vmatpush3.bf16.msra.mxu1 %v15720_v28  ;;  %14860 = vmatprep.mubr.msk.bf16.mxu1 %vm19672_vm10, %v17486_v61  ;;  %v3439_v5 = vsel %vm19678_vm9, %v3436_v57, %v17623_v12  ;;  %vm19679_vm10 = vmmov %vm19667_vm2 }
 0x375   : > { %vm19685_vm9 = vmmov %vm19667_vm2 }
 0x37b   : > { %14861 = vmatmul.mubr.msk.bf16.gmra.mrb[20].mxu1 %vm19667_vm2, %v3336_v50 }
 0x37c   : > { %14866 = vmatprep.mubr.msk.bf16.mxu1 %vm19675_vm15, %v3433_v52  ;;  %vm19682_vm15 = vmmov %vm19667_vm2 }
 0x383   : > { %14867 = vmatmul.mubr.msk.bf16.vlgmr.msra.gmra.mrb[16].mxu1 %vm19676_vm6, %v3435_v27  ;;  %vm19683_vm6 = vsmask.f32 4352 }
 0x384   : > { %14870 = vmatprep.mubr.msk.bf16.mxu1 %vm19677_vm5, %v3437_v37  ;;  %vm19684_vm5 = vmmov %vm19667_vm2 }
 0x38b   : > { %14871 = vmatmul.mubr.msk.bf16.gmra.mrb[20].mxu1 %vm19679_vm10, %v3439_v5  ;;  %vm19686_vm10 = vcmp.ne.s16.totalorder %v17179_v29, 0 }
 0x3aa   : > { %v14778_v32 = vpop.f32.mrb[8].mxu1 }
 0x3ab   : > { %v2272_v61 = vpop.f32.mrb[9].mxu1 }
 0x3ac   : > { %v14779_v59 = vpop.f32.mrb[10].mxu1 }
 0x3ad   : > { %v2275_v40 = vpop.f32.mrb[11].mxu1 }
 0x3c9   : > { %v17637_v20 = vpop.f32.mrb[12].mxu1 }
 0x3ca   : > { %v17639_v31 = vpop.f32.mrb[13].mxu1 }
 0x3cb   : > { %v17641_v2 = vpop.f32.mrb[14].mxu1 }
 0x3cc   : > { %v17643_v14 = vpop.f32.mrb[15].mxu1 }
 0x456   : > { %v14868_v46 = vpop.f32.mrb[16].mxu1 }
 0x457   : > { %3543 = vrot.lane.b32.xlu1 %v14868_v46, %s19491_s16  ;;  %v3492_v44 = vpop.f32.mrb[17].mxu1 }
 0x458   : > { %3539 = vrot.lane.b32.xlu0 %v3492_v44, %s19491_s16  ;;  %v14869_v8 = vpop.f32.mrb[18].mxu1 }
 0x459   : > { %v3495_v22 = vpop.f32.mrb[19].mxu1 }
 0x45b   : > { %3545 = vrot.lane.b32.xlu1 %v14869_v8, %s19491_s16 }
 0x45c   : > { %3541 = vrot.lane.b32.xlu0 %v3495_v22, %s19491_s16 }
 0x45e   : > { %v14872_v56 = vpop.f32.mrb[20].mxu1 }
 0x45f   : > { %v3508_v57 = vpop.f32.mrb[21].mxu1 }
 0x460   : > { %3547 = vrot.lane.b32.xlu0 %v3508_v57, %s19491_s16  ;;  %v14873_v52 = vpop.f32.mrb[22].mxu1 }
 0x461   : > { %v3511_v27 = vpop.f32.mrb[23].mxu1 }
 0x462   : > { %3549 = vrot.lane.b32.xlu1 %v3511_v27, %s19491_s16 }
 0x464   : > { %3551 = vrot.lane.b32.xlu0 %v14872_v56, %s19491_s16 }
 0x466   : > { %3553 = vrot.lane.b32.xlu1 %v14873_v52, %s19491_s16  ;;  %v15730_v52 = vld [vmem:[%s16660_s24 + $0x8] sm:$0xff]  }
 0x4c9   : > { %v3544_v37 = vpop.permute.xlu1 %3543 }
 0x4ca   : > { %v3566_v13 = vsel %vm19489_vm0, %v14778_v32, %v3544_v37  ;;  %v3540_v33 = vpop.permute.xlu0 %3539 }
 0x4cb   : > { %v3564_v1 = vsel %vm19489_vm0, %v2272_v61, %v3540_v33  ;;  %v3581_v26 = vadd.f32 %v13315_v41, %v3566_v13 }
 0x4cc   : > { %v3579_v21 = vadd.f32 %v13315_v41, %v3564_v1 }
 0x4cd   : > { %v3546_v16 = vpop.permute.xlu1 %3545  ;;  %v3589_v62 = vmax.f32 %v3581_v26, 0.0 }
 0x4ce   : > { %v3567_v55 = vsel %vm19489_vm0, %v14779_v59, %v3546_v16  ;;  %v3542_v9 = vpop.permute.xlu0 %3541  ;;  %v3587_v50 = vmax.f32 %v3579_v21, 0.0 }
 0x4cf   : > { %v3582_v24 = vadd.f32 %v13315_v41, %v3567_v55  ;;  %v3565_v28 = vsel %vm19489_vm0, %v2275_v40, %v3542_v9 }
 0x4d0   : > { %v3580_v30 = vadd.f32 %v13315_v41, %v3565_v28 }
 0x4d1   : > { %v3590_v48 = vmax.f32 %v3582_v24, 0.0 }
 0x4d2   : > { %v3588_v5 = vmax.f32 %v3580_v30, 0.0  ;;  %v3548_v35 = vpop.permute.xlu0 %3547 }
 0x4d3   : > { %v3596_v25 = vpack.c.bf16 %v3590_v48, %v3589_v62  ;;  %v3568_v32 = vsel %vm19489_vm0, %v17639_v31, %v3548_v35  ;;  %v17678_v48 = vld [vmem:[%s16660_s24] sm:$0xff]  }
 0x4d4   : > { %v3583_v61 = vadd.f32 %v13315_v41, %v3568_v32  ;;  %v3550_v43 = vpop.permute.xlu1 %3549  ;;  %v3595_v49 = vpack.c.bf16 %v3588_v5, %v3587_v50 }
 0x4d5   : > { %v3569_v59 = vsel %vm19489_vm0, %v17643_v14, %v3550_v43 }
 0x4d6   : > { %v3584_v0 = vadd.f32 %v13315_v41, %v3569_v59  ;;  %14890 = vmatprep.mubr.bf16.mxu0 %v3595_v49  ;;  %v3552_v6 = vpop.permute.xlu0 %3551  ;;  %v3591_v18 = vmax.f32 %v3583_v61, 0.0 }
 0x4d7   : > { %v3570_v40 = vsel %vm19489_vm0, %v17637_v20, %v3552_v6  ;;  %14891 = vmatmul.mubr.bf16.vlgmr.msra.gmra.mrb[32].mxu0 %v3596_v25  ;;  %v13316_v20 = vld [vmem:[%s19681_s26] ss:$0 sm:$0xff]  ;;  %s19834_s26 = sld [smem:[#allocation27_spill]] }
 0x4d8   : > { %v3592_v23 = vmax.f32 %v3584_v0, 0.0  ;;  %v3585_v46 = vadd.f32 %v13315_v41, %v3570_v40  ;;  %v3554_v44 = vpop.permute.xlu1 %3553  ;;  %14899 = vmatpush3.bf16.msra.mxu0 %v15729_v10 }
 0x4d9   : > { %v3571_v31 = vsel %vm19489_vm0, %v17641_v2, %v3554_v44  ;;  %14908 = vmatprep.subr.bf16.mxu0 %v15730_v52  ;;  %vm19700_vm0 = vcmask 1046528  }
 0x4da   : > { %v3586_v8 = vadd.f32 %v13315_v41, %v3571_v31  ;;  %v3597_v22 = vpack.c.bf16 %v3592_v23, %v3591_v18  ;;  %v3593_v14 = vmax.f32 %v3585_v46, 0.0 }
 0x4dc   : > { %v3594_v56 = vmax.f32 %v3586_v8, 0.0  ;;  %14894 = vmatprep.mubr.bf16.mxu0 %v3597_v22 }
 0x4de   : > { %v3598_v57 = vpack.c.bf16 %v3594_v56, %v3593_v14 }
 0x4e0   : > { %14895 = vmatmul.mubr.bf16.gmra.mrb[36].mxu0 %v3598_v57 }
 0x5aa   : > { %v14892_v27 = vpop.f32.mrb[32].mxu0 }
 0x5ab   : > { %v3713_v37 = vadd.f32 %v14892_v27, %v13316_v20  ;;  %v3704_v13 = vpop.f32.mrb[33].mxu0 }
 0x5ac   : > { %v3705_v33 = vadd.f32 %v13316_v20, %v3704_v13  ;;  %v14893_v1 = vpop.f32.mrb[34].mxu0 }
 0x5ad   : > { %v3716_v10 = vadd.f32 %v14893_v1, %v13316_v20  ;;  %v3707_v26 = vpop.f32.mrb[35].mxu0  ;;  %v3737_v2 = vmax.f32 %v3713_v37, 0.0 }
 0x5ae   : > { %v3708_v16 = vadd.f32 %v13316_v20, %v3707_v26  ;;  %v3735_v21 = vmax.f32 %v3705_v33, 0.0 }
 0x5af   : > { %v3738_v41 = vmax.f32 %v3716_v10, 0.0 }
 0x5b0   : > { %v3736_v55 = vmax.f32 %v3708_v16, 0.0 }
 0x5b1   : > { %v3744_v9 = vpack.c.bf16 %v3738_v41, %v3737_v2 }
 0x5b2   : > { %v3743_v24 = vpack.c.bf16 %v3736_v55, %v3735_v21 }
 0x5b3   : > { %v3839_v28 = vshrl.u32 %v3744_v9, 16  ;;  %v3842_v30 = vshll.u32 %v3744_v9, 16  ;;  %v14896_v62 = vpop.f32.mrb[36].mxu0 }
 0x5b4   : > { %v3832_v50 = vshrl.u32 %v3743_v24, 16  ;;  %v3835_v5 = vshll.u32 %v3743_v24, 16  ;;  %v3729_v35 = vadd.f32 %v14896_v62, %v13316_v20  ;;  %v3720_v25 = vpop.f32.mrb[37].mxu0  ;;  %14900 = vmatprep.mubr.msk.bf16.mxu0 %vm19667_vm2, %v3743_v24  ;;  %vm19687_vm2 = vsmask.f32 7424 }
 0x5b5   : > { %v3841_v32 = vrot.slane %v3839_v28, 3  ;;  %v3844_v61 = vrot.slane %v3842_v30, 4  ;;  %v3721_v43 = vadd.f32 %v13316_v20, %v3720_v25  ;;  %v14897_v49 = vpop.f32.mrb[38].mxu0  ;;  %14901 = vmatmul.mubr.msk.bf16.vlgmr.msra.gmra.mrb[40].mxu0 %vm19682_vm15, %v3744_v9  ;;  %vm19688_vm15 = vmmov %vm19684_vm5 }
 0x5b6   : > { %v3834_v59 = vrot.slane %v3832_v50, 3  ;;  %v3837_v0 = vrot.slane %v3835_v5, 4  ;;  %v3732_v6 = vadd.f32 %v14897_v49, %v13316_v20  ;;  %v3723_v40 = vpop.f32.mrb[39].mxu0  ;;  %14909 = vmatpush3.bf16.msra.mxu0 %v15730_v52  ;;  %v3741_v44 = vmax.f32 %v3729_v35, 0.0 }
 0x5b7   : > { %v3845_v18 = vor.u32 %v3844_v61, %v3841_v32  ;;  %v3724_v23 = vadd.f32 %v13316_v20, %v3723_v40  ;;  %14918 = vmatprep.subr.bf16.mxu0 %v17678_v48  ;;  %v3739_v8 = vmax.f32 %v3721_v43, 0.0 }
 0x5b8   : > { %v3838_v46 = vor.u32 %v3837_v0, %v3834_v59  ;;  %v3742_v31 = vmax.f32 %v3732_v6, 0.0 }
 0x5b9   : > { %v3740_v22 = vmax.f32 %v3724_v23, 0.0 }
 0x5ba   : > { %v17684_v14 = vsel %vm19683_vm6, %v3838_v46, %v3845_v18  ;;  %v17688_v56 = vsel %vm17192_vm12, 0, %v3838_v46  ;;  %v3746_v57 = vpack.c.bf16 %v3742_v31, %v3741_v44 }
 0x5bb   : > { %v3745_v27 = vpack.c.bf16 %v3740_v22, %v3739_v8  ;;  %v3882_v52 = vshll.u32 %v17688_v56, 16  ;;  %v3887_v20 = vshll.u32 %v17684_v14, 16  ;;  %v3880_v10 = vshrl.u32 %v17688_v56, 16 }
 0x5bc   : > { %v3855_v37 = vshrl.u32 %v3746_v57, 16  ;;  %v3858_v13 = vshll.u32 %v3746_v57, 16  ;;  %v3891_v41 = vshrl.u32 %v17684_v14, 16  ;;  %v4081_v21 = vsel %vm17198_vm13, %v17688_v56, 0 }
 0x5bd   : > { %v3847_v33 = vshrl.u32 %v3745_v27, 16  ;;  %v3850_v1 = vshll.u32 %v3745_v27, 16  ;;  %14904 = vmatprep.mubr.msk.bf16.mxu0 %vm19684_vm5, %v3745_v27  ;;  %v3884_v26 = vrot.slane %v3882_v52, 1  ;;  %v3889_v28 = vrot.slane %v3887_v20, 1  ;;  %vm19689_vm5 = vmmov %vm19683_vm6 }
 0x5be   : > { %v3857_v16 = vrot.slane %v3855_v37, 3  ;;  %v3860_v2 = vrot.slane %v3858_v13, 4  ;;  %14905 = vmatmul.mubr.msk.bf16.gmra.mrb[44].mxu0 %vm19685_vm9, %v3746_v57  ;;  %v4082_v62 = vsel %vm19686_vm10, %v17684_v14, 0  ;;  %v4094_v50 = vrot.slane %v4081_v21, 1 }
 0x5bf   : > { %v3849_v55 = vrot.slane %v3847_v33, 3  ;;  %v3852_v9 = vrot.slane %v3850_v1, 4  ;;  %v3885_v24 = vor.u32 %v3884_v26, %v3880_v10  ;;  %v4194_v5 = vsel %vm17202_vm14, %v17688_v56, 0 }
 0x5c0   : > { %v3861_v30 = vor.u32 %v3860_v2, %v3857_v16  ;;  %v4095_v32 = vrot.slane %v4082_v62, 1  ;;  %v4195_v61 = vsel %vm17207_vm7, %v17684_v14, 0  ;;  %v3870_v49 = vsel %vm17438_vm1, %v17688_v56, 0  ;;  %v17741_v16 = vld [vmem:[%s16660_s24 + $0x10] sm:$0xff]  }
 0x5c1   : > { %v3853_v35 = vor.u32 %v3852_v9, %v3849_v55  ;;  %v3890_v25 = vsel %vm19687_vm2, %v3885_v24, %v3889_v28  ;;  %v4207_v59 = vrot.slane %v4194_v5, 4  ;;  %v4208_v0 = vrot.slane %v4195_v61, 4 }
 0x5c2   : > { %v17715_v43 = vsel %vm17192_vm12, %v3861_v30, 0  ;;  %14910 = vmatprep.mubr.msk.bf16.mxu0 %vm19688_vm15, %v3890_v25  ;;  %vm19690_vm9 = vcmask 1046528   ;;  %v3893_v44 = vor.u32 %v3891_v41, %v3889_v28  ;;  %vm19691_vm10 = vcmp.ne.s16.totalorder %v17378_v60, 0 }
 0x5c3   : > { %v17722_v6 = vsel %vm19683_vm6, %v3845_v18, %v3853_v35  ;;  %v17725_v40 = vsel %vm19689_vm5, %v3853_v35, %v3861_v30  ;;  %v3911_v23 = vshll.u32 %v17715_v43, 16  ;;  %v17729_v46 = vsel %vm19690_vm9, %v4094_v50, %v4095_v32 }
 0x5c4   : > { %v3895_v31 = vshll.u32 %v17722_v6, 16  ;;  %v3899_v8 = vshrl.u32 %v17722_v6, 16  ;;  %v3903_v22 = vshll.u32 %v17725_v40, 16  ;;  %v3907_v57 = vshrl.u32 %v17725_v40, 16 }
 0x5c5   : > { %v17735_v18 = vrot.slane %v3911_v23, 1  ;;  %v4083_v27 = vsel %vm19691_vm10, %v17722_v6, 0  ;;  %v4310_v37 = vrot.slane %v3880_v10, 4  ;;  %vm19692_vm2 = vcmp.ne.s16.totalorder %v17386_v45, 0 }
 0x5c6   : > { %v3897_v13 = vrot.slane %v3895_v31, 1  ;;  %v3905_v33 = vrot.slane %v3903_v22, 1  ;;  %v4317_v1 = vrot.slane %v3899_v8, 4  ;;  %v4097_v26 = vrot.slane %v4083_v27, 1 }
 0x5c7   : > { %v4084_v2 = vsel %vm19692_vm2, %v17725_v40, 0  ;;  %v4085_v21 = vsel %vm17405_vm4, %v17715_v43, 0  ;;  %vm19693_vm15 = vcmask 1043456   ;;  %vm19694_vm6 = vnez %v19607_v4 }
 0x5c8   : > { %v17750_v55 = vsel %vm19693_vm15, %v4207_v59, %v4208_v0  ;;  %v4196_v10 = vsel %vm19694_vm6, %v17722_v6, 0  ;;  %vm19695_vm5 = vsmask.f32 7424  ;;  %v3901_v24 = vor.u32 %v3899_v8, %v3897_v13 }
 0x5c9   : > { %v17756_v9 = vsel %vm19695_vm5, %v3893_v44, %v3897_v13  ;;  %v3909_v28 = vor.u32 %v3907_v57, %v3905_v33  ;;  %v17759_v30 = vsel %vm19690_vm9, %v4095_v32, %v4097_v26  ;;  %vm19696_vm10 = vcmask 130048   ;;  %vm19698_vm15 = vmmov %vm19695_vm5 }
 0x5ca   : > { %14911 = vmatmul.mubr.msk.bf16.vlgmr.msra.gmra.mrb[48].mxu0 %vm19696_vm10, %v17756_v9  ;;  %v4099_v62 = vrot.slane %v4084_v2, 1  ;;  %v4101_v50 = vrot.slane %v4085_v21, 1  ;;  %v4210_v5 = vrot.slane %v4196_v10, 4  ;;  %vm19697_vm2 = vnez %v19609_v17 }
 0x5cb   : > { %v4197_v35 = vsel %vm19697_vm2, %v17725_v40, 0  ;;  %14919 = vmatpush3.bf16.msra.mxu0 %v17678_v48  ;;  %v17768_v25 = vsel %vm19698_vm15, %v3901_v24, %v3905_v33  ;;  %v17772_v61 = vsel %vm19695_vm5, %v3909_v28, %v17735_v18  ;;  %vm19699_vm9 = vnez %v19603_v11  ;;  %vm19701_vm2 = vmmov %vm19700_vm0 }
 0x5cc   : > { %v4212_v32 = vrot.slane %v4197_v35, 4  ;;  %v4198_v59 = vsel %vm19699_vm9, %v17715_v43, 0  ;;  %14914 = vmatprep.mubr.msk.bf16.mxu0 %vm19696_vm10, %v17768_v25  ;;  %14928 = vmatprep.subr.bf16.mxu0 %v17741_v16  ;;  %v17781_v44 = vsel %vm19700_vm0, %v4097_v26, %v4099_v62  ;;  %v17784_v48 = vsel %vm19701_vm2, %v4099_v62, %v4101_v50 }
 0x5cd   : > { %vm19702_vm15 = vcmask 1043456   ;;  %v4214_v27 = vrot.slane %v4198_v59, 4  ;;  %v4311_v33 = vrot.slane %v3882_v52, 5  ;;  %v4313_v2 = vrot.slane %v3891_v41, 4 }
 0x5ce   : > { %v17787_v8 = vsel %vm19702_vm15, %v4208_v0, %v4210_v5  ;;  %vm19703_vm5 = vmmov %vm19702_vm15  ;;  %v4314_v21 = vrot.slane %v3887_v20, 5  ;;  %v4318_v10 = vrot.slane %v3895_v31, 5  ;;  %v4321_v24 = vrot.slane %v3907_v57, 4 }
 0x5cf   : > { %v17790_v13 = vsel %vm19703_vm5, %v4210_v5, %v4212_v32  ;;  %vm19704_vm10 = vmmov %vm19703_vm5  ;;  %v4322_v28 = vrot.slane %v3903_v22, 5  ;;  %v4312_v62 = vor.u32 %v4311_v33, %v4310_v37  ;;  %v4325_v50 = vshrl.u32 %v17715_v43, 16 }
 0x5d0   : > { %v17797_v26 = vsel %vm19704_vm10, %v4212_v32, %v4214_v27  ;;  %v4315_v0 = vor.u32 %v4314_v21, %v4313_v2  ;;  %v4328_v35 = vrot.slane %v3911_v23, 5  ;;  %v4319_v5 = vor.u32 %v4318_v10, %v4317_v1 }
 0x5d1   : > { %v4323_v59 = vor.u32 %v4322_v28, %v4321_v24  ;;  %vm19705_vm0 = vnez %v19578_v47  ;;  %vm19706_vm2 = vcmp.ne.s16.totalorder %v17186_v34, 0  ;;  %vm19707_vm15 = vsmask.f32 3328 }
 0x5d2   : > { %v4422_v52 = vsel %vm19705_vm0, %v17688_v56, 0  ;;  %v4423_v20 = vsel %vm19706_vm2, %v17684_v14, 0  ;;  %v4316_v41 = vsel %vm19707_vm15, %v4312_v62, %v4315_v0  ;;  %v4327_v31 = vrot.slane %v4325_v50, 4  ;;  %vm19709_vm10 = vmmov %vm19707_vm15 }
 0x5d3   : > { %v4435_v57 = vrot.slane %v4422_v52, 5  ;;  %v4436_v22 = vrot.slane %v4423_v20, 5  ;;  %vm19708_vm5 = vcmask 130048   ;;  %v4320_v23 = vsel %vm19709_vm10, %v4315_v0, %v4319_v5  ;;  %vm19710_vm9 = vmmov %vm19709_vm10 }
 0x5d4   : > { %14915 = vmatmul.mubr.msk.bf16.gmra.mrb[52].mxu0 %vm19708_vm5, %v17772_v61  ;;  %v4324_v37 = vsel %vm19710_vm9, %v4319_v5, %v4323_v59  ;;  %vm19711_vm6 = vcmp.ne.s16.totalorder %v17393_v15, 0  ;;  %vm19712_vm0 = vcmp.ne.s16.totalorder %v17396_v3, 0  ;;  %vm19713_vm2 = vmmov %vm19708_vm5  ;;  %v4329_v27 = vor.u32 %v4328_v35, %v4327_v31  ;;  %v15733_v31 = vld [vmem:[%s16660_s24 + $0x18] sm:$0xff]  }
 0x5d5   : > { %v4424_v1 = vsel %vm19711_vm6, %v17722_v6, 0  ;;  %v4425_v32 = vsel %vm19712_vm0, %v17725_v40, 0  ;;  %14920 = vmatprep.mubr.msk.bf16.mxu0 %vm19713_vm2, %v3870_v49  ;;  %vm19714_vm15 = vcmask 1042432   ;;  %vm19715_vm9 = vnez %v19615_v54  ;;  %vm19716_vm6 = vmmov %vm19709_vm10 }
 0x5d6   : > { %v4437_v33 = vsel %vm19714_vm15, %v4435_v57, %v4436_v22  ;;  %v4438_v2 = vrot.slane %v4424_v1, 5  ;;  %v4440_v21 = vrot.slane %v4425_v32, 5  ;;  %v4426_v10 = vsel %vm19715_vm9, %v17715_v43, 0  ;;  %vm19717_vm5 = vmmov %vm19714_vm15 }
 0x5d7   : > { %v4330_v24 = vsel %vm19716_vm6, %v4323_v59, %v4329_v27  ;;  %vm19718_vm0 = vmmov %vm19717_vm5  ;;  %v4442_v0 = vrot.slane %v4426_v10, 5  ;;  %v17830_v56 = vor.u32 %v4325_v50, %v17735_v18  ;;  %v4720_v49 = vsel %vm17198_vm13, %v17684_v14, 0  ;;  %v15734_v10 = vld [vmem:[%s16660_s24 + $0x20] sm:$0xff]  }
 0x5d8   : > { %v4439_v28 = vsel %vm19717_vm5, %v4436_v22, %v4438_v2  ;;  %v4441_v62 = vsel %vm19718_vm0, %v4438_v2, %v4440_v21  ;;  %vm19719_vm10 = vcmp.ne.s16.totalorder %v17179_v29, 0  ;;  %vm19720_vm2 = vmmov %vm19718_vm0  ;;  %v4731_v52 = vrot.slane %v4720_v49, 1 }
 0x5d9   : > { %v4721_v35 = vsel %vm19719_vm10, %v17722_v6, 0  ;;  %v4443_v5 = vsel %vm19720_vm2, %v4440_v21, %v4442_v0  ;;  %vm19721_vm15 = vcmp.ne.s16.totalorder %v17378_v60, 0  ;;  %vm19722_vm6 = vcmp.ne.s16.totalorder %v17386_v45, 0  ;;  %v15744_v0 = vld [vmem:[%s19750_s18 + $0x28] sm:$0xff]  }
 0x5da   : > { %v4732_v59 = vrot.slane %v4721_v35, 1  ;;  %v4722_v20 = vsel %vm19721_vm15, %v17725_v40, 0  ;;  %v17846_v50 = vsel %vm19722_vm6, %v17715_v43, 0  ;;  %v3871_v57 = vsel %vm17542_vm3, %v17684_v14, 0  ;;  %v15746_v35 = vld [vmem:[%s19750_s18 + $0x38] sm:$0xff]  }
 0x5db   : > { %v4734_v18 = vrot.slane %v4722_v20, 1  ;;  %vm19723_vm5 = vcmask 1046528   ;;  %v4736_v1 = vrot.slane %v17846_v50, 1  ;;  %vm19724_vm0 = vcmask 130048   ;;  %v15747_v50 = vld [vmem:[%s19756_s22] sm:$0xff]  }
 0x5dc   : > { %v4733_v22 = vsel %vm19723_vm5, %v4731_v52, %v4732_v59  ;;  %14921 = vmatmul.mubr.msk.bf16.vlgmr.msra.gmra.mrb[48].mxu0 %vm19724_vm0, %v3871_v57  ;;  %v3872_v32 = vsel %vm17550_vm11, %v17722_v6, 0  ;;  %vm19725_vm10 = vmmov %vm19723_vm5  ;;  %v3873_v21 = vsel %vm17566_vm8, %v17725_v40, 0 }
 0x5dd   : > { %v4735_v27 = vsel %vm19725_vm10, %v4732_v59, %v4734_v18  ;;  %14929 = vmatpush3.bf16.msra.mxu0 %v17741_v16  ;;  %vm19726_vm2 = vmmov %vm19724_vm0  ;;  %v15735_v16 = vld [vmem:[%s16660_s24 + $0x28] sm:$0xff]  }
 0x5de   : > { %14924 = vmatprep.mubr.msk.bf16.mxu0 %vm19726_vm2, %v3872_v32  ;;  %vm19727_vm15 = vmmov %vm19723_vm5  ;;  %14938 = vmatprep.subr.bf16.mxu0 %v15733_v31 }
 0x5df   : > { %v4737_v2 = vsel %vm19727_vm15, %v4734_v18, %v4736_v1  ;;  %vm19728_vm6 = vmmov %vm19724_vm0 }
 0x5e0   : > { %vm19729_vm5 = vmmov %vm19724_vm0 }
 0x5e1   : > { %vm19730_vm10 = vmmov %vm19724_vm0 }
 0x5e2   : > { %vm19731_vm2 = vmmov %vm19724_vm0 }
 0x5e3   : > { %vm19732_vm15 = vmmov %vm19724_vm0 }
 0x5e4   : > { %14925 = vmatmul.mubr.msk.bf16.gmra.mrb[52].mxu0 %vm19728_vm6, %v3873_v21  ;;  %vm19733_vm6 = vmmov %vm19724_vm0 }
 0x5e5   : > { %14930 = vmatprep.mubr.msk.bf16.mxu0 %vm19729_vm5, %v17729_v46  ;;  %vm19734_vm5 = vmmov %vm19724_vm0  ;;  %v15736_v46 = vld [vmem:[%s16660_s24 + $0x30] sm:$0xff]  }
 0x5e6   : > { %vm19738_vm9 = vmmov %vm19724_vm0 }
 0x5e7   : > { %vm19741_vm4 = vmmov %vm19724_vm0 }
 0x5ec   : > { %14931 = vmatmul.mubr.msk.bf16.vlgmr.msra.gmra.mrb[48].mxu0 %vm19724_vm0, %v17759_v30  ;;  %v4535_v30 = vsel %vm17438_vm1, %v17684_v14, 0  ;;  %v4538_v14 = vsel %vm17566_vm8, %v17715_v43, 0 }
 0x5ed   : > { %14939 = vmatpush3.bf16.msra.mxu0 %v15733_v31  ;;  %14934 = vmatprep.mubr.msk.bf16.mxu0 %vm19730_vm10, %v17781_v44  ;;  %vm19735_vm10 = vmmov %vm19724_vm0  ;;  %v15738_v44 = vld [vmem:[%s16660_s24 + $0x40] sm:$0xff]  }
 0x5ee   : > { %14948 = vmatprep.subr.bf16.mxu0 %v15734_v10 }
 0x5f4   : > { %14935 = vmatmul.mubr.msk.bf16.gmra.mrb[52].mxu0 %vm19731_vm2, %v17784_v48  ;;  %vm19736_vm2 = vmmov %vm19724_vm0  ;;  %v4536_v48 = vsel %vm17542_vm3, %v17722_v6, 0 }
 0x5f5   : > { %14940 = vmatprep.mubr.msk.bf16.mxu0 %vm19732_vm15, %v17750_v55  ;;  %vm19737_vm15 = vmmov %vm19724_vm0  ;;  %v15737_v55 = vld [vmem:[%s16660_s24 + $0x38] sm:$0xff]  }
 0x5fc   : > { %14941 = vmatmul.mubr.msk.bf16.vlgmr.msra.gmra.mrb[48].mxu0 %vm19733_vm6, %v17787_v8  ;;  %vm19739_vm6 = vmmov %vm19724_vm0  ;;  %v4537_v8 = vsel %vm17550_vm11, %v17725_v40, 0 }
 0x5fd   : > { %14949 = vmatpush3.bf16.msra.mxu0 %v15734_v10  ;;  %14944 = vmatprep.mubr.msk.bf16.mxu0 %vm19734_vm5, %v17790_v13  ;;  %vm19740_vm5 = vmmov %vm19724_vm0 }
 0x5fe   : > { %14958 = vmatprep.subr.bf16.mxu0 %v15735_v16 }
 0x604   : > { %14945 = vmatmul.mubr.msk.bf16.gmra.mrb[52].mxu0 %vm19724_vm0, %v17797_v26 }
 0x605   : > { %14950 = vmatprep.mubr.msk.bf16.mxu0 %vm19735_vm10, %v4316_v41  ;;  %vm19742_vm10 = vmmov %vm19724_vm0 }
 0x60c   : > { %14951 = vmatmul.mubr.msk.bf16.vlgmr.msra.gmra.mrb[48].mxu0 %vm19736_vm2, %v4320_v23  ;;  %vm19745_vm2 = vmmov %vm19724_vm0 }
 0x60d   : > { %14959 = vmatpush3.bf16.msra.mxu0 %v15735_v16  ;;  %14954 = vmatprep.mubr.msk.bf16.mxu0 %vm19737_vm15, %v4324_v37  ;;  %vm19746_vm15 = vmmov %vm19724_vm0  ;;  %v15739_v37 = vld [vmem:[%s19750_s18] sm:$0xff]  }
 0x60e   : > { %14968 = vmatprep.subr.bf16.mxu0 %v15736_v46  ;;  %14998 = vmatprep.subr.bf16.mxu1 %v15739_v37 }
 0x60f   : > { %14999 = vmatpush3.bf16.msra.mxu1 %v15739_v37 }
 0x614   : > { %14955 = vmatmul.mubr.msk.bf16.gmra.mrb[52].mxu0 %vm19738_vm9, %v4330_v24  ;;  %vm19743_vm9 = vmmov %vm19724_vm0  ;;  %v15741_v24 = vld [vmem:[%s19750_s18 + $0x10] sm:$0xff]  }
 0x615   : > { %14960 = vmatprep.mubr.msk.bf16.mxu0 %vm19739_vm6, %v4437_v33  ;;  %vm19747_vm6 = vmmov %vm19724_vm0  ;;  %v15740_v33 = vld [vmem:[%s19750_s18 + $0x8] sm:$0xff]  }
 0x616   : > { %15000 = vmatprep.subr.bf16.mxu1 %v15740_v33 }
 0x617   : > { %15001 = vmatpush3.bf16.msra.mxu1 %v15740_v33 }
 0x618   : > { %15002 = vmatprep.subr.bf16.mxu1 %v15741_v24 }
 0x61b   : > { %15003 = vmatpush3.bf16.msra.mxu1 %v15741_v24 }
 0x61c   : > { %14961 = vmatmul.mubr.msk.bf16.vlgmr.msra.gmra.mrb[48].mxu0 %vm19740_vm5, %v4439_v28  ;;  %vm19748_vm5 = vmmov %vm19724_vm0  ;;  %v15742_v28 = vld [vmem:[%s19750_s18 + $0x18] sm:$0xff]  }
 0x61d   : > { %14969 = vmatpush3.bf16.msra.mxu0 %v15736_v46  ;;  %14964 = vmatprep.mubr.msk.bf16.mxu0 %vm19741_vm4, %v4441_v62  ;;  %vm19744_vm4 = vmmov %vm19724_vm0  ;;  %v15743_v62 = vld [vmem:[%s19750_s18 + $0x20] sm:$0xff]  }
 0x61e   : > { %14978 = vmatprep.subr.bf16.mxu0 %v15737_v55  ;;  %15004 = vmatprep.subr.bf16.mxu1 %v15742_v28 }
 0x61f   : > { %15005 = vmatpush3.bf16.msra.mxu1 %v15742_v28 }
 0x620   : > { %15006 = vmatprep.subr.bf16.mxu1 %v15743_v62 }
 0x623   : > { %15007 = vmatpush3.bf16.msra.mxu1 %v15743_v62 }
 0x624   : > { %14965 = vmatmul.mubr.msk.bf16.gmra.mrb[52].mxu0 %vm19724_vm0, %v4443_v5  ;;  %vm19749_vm0 = vsmask.f32 7424  ;;  %15008 = vmatprep.subr.bf16.mxu1 %v15744_v0 }
 0x625   : > { %14970 = vmatprep.mubr.msk.bf16.mxu0 %vm19742_vm10, %v4535_v30  ;;  %v4637_v6 = vsel %vm19749_vm0, %v17830_v56, %v17623_v12  ;;  %vm19751_vm10 = vmmov %vm19745_vm2  ;;  %v15745_v56 = vld [vmem:[%s19750_s18 + $0x30] sm:$0xff]  }
 0x627   : > { %15009 = vmatpush3.bf16.msra.mxu1 %v15744_v0 }
 0x628   : > { %15010 = vmatprep.subr.bf16.mxu1 %v15745_v56 }
 0x62b   : > { %15011 = vmatpush3.bf16.msra.mxu1 %v15745_v56 }
 0x62c   : > { %14971 = vmatmul.mubr.msk.bf16.vlgmr.msra.gmra.mrb[48].mxu0 %vm19743_vm9, %v4536_v48  ;;  %vm19752_vm9 = vmmov %vm19745_vm2  ;;  %15012 = vmatprep.subr.bf16.mxu1 %v15746_v35 }
 0x62d   : > { %14979 = vmatpush3.bf16.msra.mxu0 %v15737_v55  ;;  %14974 = vmatprep.mubr.msk.bf16.mxu0 %vm19744_vm4, %v4537_v8  ;;  %vm19753_vm4 = vmmov %vm19745_vm2 }
 0x62e   : > { %14988 = vmatprep.subr.bf16.mxu0 %v15738_v44 }
 0x62f   : > { %15013 = vmatpush3.bf16.msra.mxu1 %v15746_v35 }
 0x630   : > { %15022 = vmatprep.subr.bf16.mxu1 %v15747_v50 }
 0x634   : > { %14975 = vmatmul.mubr.msk.bf16.gmra.mrb[52].mxu0 %vm19745_vm2, %v4538_v14 }
 0x635   : > { %14980 = vmatprep.mubr.msk.bf16.mxu0 %vm19746_vm15, %v17756_v9  ;;  %vm19754_vm15 = vcmask 1046528  }
 0x636   : > { %v4738_v43 = vsel %vm19754_vm15, %v4736_v1, %v17623_v12 }
 0x63c   : > { %14981 = vmatmul.mubr.msk.bf16.vlgmr.msra.gmra.mrb[48].mxu0 %vm19747_vm6, %v17768_v25  ;;  %vm19755_vm6 = vmmov %vm19745_vm2 }
 0x63d   : > { %14989 = vmatpush3.bf16.msra.mxu0 %v15738_v44  ;;  %14984 = vmatprep.mubr.msk.bf16.mxu0 %vm19748_vm5, %v17772_v61  ;;  %vm19758_vm5 = vcmask 523264  }
 0x63e   : > { %vm19759_vm0 = vmmov %vm19758_vm5 }
 0x63f   : > { %vm19764_vm15 = vmmov %vm19759_vm0 }
 0x644   : > { %14985 = vmatmul.mubr.msk.bf16.gmra.mrb[52].mxu0 %vm19751_vm10, %v4637_v6  ;;  %vm19760_vm10 = vmmov %vm19759_vm0 }
 0x645   : > { %14990 = vmatprep.mubr.msk.bf16.mxu0 %vm19752_vm9, %v4733_v22  ;;  %v13391_v22 = vld [vmem:[%s19757_s7] ss:$0 sm:$0xff]  ;;  %vm19761_vm9 = vmmov %vm19759_vm0  ;;  %s19842_s7 = sld [smem:[#allocation26_spill]] }
 0x64c   : > { %14991 = vmatmul.mubr.msk.bf16.vlgmr.msra.gmra.mrb[48].mxu0 %vm19753_vm4, %v4735_v27  ;;  %vm19762_vm4 = vmmov %vm19759_vm0 }
 0x64d   : > { %14994 = vmatprep.mubr.msk.bf16.mxu0 %vm19745_vm2, %v4737_v2  ;;  %vm19763_vm2 = vmmov %vm19759_vm0 }
 0x654   : > { %14995 = vmatmul.mubr.msk.bf16.gmra.mrb[52].mxu0 %vm19755_vm6, %v4738_v43  ;;  %vm19767_vm6 = vmmov %vm19759_vm0 }
 0x688   : > { %v14902_v40 = vpop.f32.mrb[40].mxu0 }
 0x689   : > { %v3801_v9 = vpop.f32.mrb[41].mxu0 }
 0x68a   : > { %v14903_v25 = vpop.f32.mrb[42].mxu0 }
 0x68b   : > { %v3804_v61 = vpop.f32.mrb[43].mxu0 }
 0x691   : > { %v17926_v13 = vpop.f32.mrb[44].mxu0 }
 0x692   : > { %v17928_v26 = vpop.f32.mrb[45].mxu0 }
 0x693   : > { %v17930_v41 = vpop.f32.mrb[46].mxu0 }
 0x694   : > { %v17932_v23 = vpop.f32.mrb[47].mxu0 }
 0x71f   : > { %v14992_v49 = vpop.f32.mrb[48].mxu0 }
 0x720   : > { %v4791_v5 = vpop.f32.mrb[49].mxu0 }
 0x721   : > { %4838 = vrot.lane.b32.xlu0 %v4791_v5, %s19491_s16  ;;  %v14993_v52 = vpop.f32.mrb[50].mxu0 }
 0x722   : > { %v4794_v59 = vpop.f32.mrb[51].mxu0 }
 0x723   : > { %4840 = vrot.lane.b32.xlu1 %v4794_v59, %s19491_s16 }
 0x725   : > { %4842 = vrot.lane.b32.xlu0 %v14992_v49, %s19491_s16 }
 0x727   : > { %4844 = vrot.lane.b32.xlu1 %v14993_v52, %s19491_s16  ;;  %v14996_v20 = vpop.f32.mrb[52].mxu0 }
 0x728   : > { %v4807_v31 = vpop.f32.mrb[53].mxu0 }
 0x729   : > { %4846 = vrot.lane.b32.xlu0 %v4807_v31, %s19491_s16  ;;  %v14997_v18 = vpop.f32.mrb[54].mxu0 }
 0x72a   : > { %v4810_v57 = vpop.f32.mrb[55].mxu0 }
 0x72b   : > { %4848 = vrot.lane.b32.xlu1 %v4810_v57, %s19491_s16  ;;  %v13392_v57 = vld [vmem:[%s19766_s11] ss:$0 sm:$0xff]  ;;  %s19843_s11 = sld [smem:[#allocation28_spill]] }
 0x72d   : > { %4850 = vrot.lane.b32.xlu0 %v14996_v20, %s19491_s16 }
 0x72f   : > { %4852 = vrot.lane.b32.xlu1 %v14997_v18, %s19491_s16  ;;  %v15748_v18 = vld [vmem:[%s19756_s22 + $0x8] sm:$0xff]  }
 0x793   : > { %v4839_v1 = vpop.permute.xlu0 %4838 }
 0x794   : > { %v4862_v32 = vsel %vm19758_vm5, %v3801_v9, %v4839_v1  ;;  %vm5061_vm5 = vcmask 261120  }
 0x795   : > { %v4877_v27 = vadd.f32 %v13391_v22, %v4862_v32  ;;  %v4841_v2 = vpop.permute.xlu1 %4840 }
 0x796   : > { %v4863_v21 = vsel %vm19759_vm0, %v3804_v61, %v4841_v2  ;;  %vm19768_vm0 = vsmask.f32 4352 }
 0x797   : > { %v4878_v10 = vadd.f32 %v13391_v22, %v4863_v21  ;;  %v4843_v16 = vpop.permute.xlu0 %4842  ;;  %v4885_v55 = vmax.f32 %v4877_v27, 0.0 }
 0x798   : > { %v4864_v46 = vsel %vm19760_vm10, %v14902_v40, %v4843_v16  ;;  %vm19769_vm10 = vcmp.ne.s16.totalorder %v17179_v29, 0 }
 0x799   : > { %v4886_v30 = vmax.f32 %v4878_v10, 0.0  ;;  %v4879_v44 = vadd.f32 %v13391_v22, %v4864_v46  ;;  %v4845_v48 = vpop.permute.xlu1 %4844 }
 0x79a   : > { %v4865_v8 = vsel %vm19761_vm9, %v14903_v25, %v4845_v48  ;;  %vm19770_vm9 = vsmask.f32 7424 }
 0x79b   : > { %v4880_v14 = vadd.f32 %v13391_v22, %v4865_v8  ;;  %v4847_v6 = vpop.permute.xlu0 %4846  ;;  %v4893_v43 = vpack.c.bf16 %v4886_v30, %v4885_v55  ;;  %v4887_v37 = vmax.f32 %v4879_v44, 0.0 }
 0x79c   : > { %v4866_v9 = vsel %vm19762_vm4, %v17928_v26, %v4847_v6  ;;  %vm19771_vm4 = vmmov %vm19768_vm0 }
 0x79d   : > { %v4888_v33 = vmax.f32 %v4880_v14, 0.0  ;;  %v4881_v24 = vadd.f32 %v13391_v22, %v4866_v9  ;;  %15014 = vmatprep.mubr.bf16.mxu1 %v4893_v43  ;;  %v4849_v61 = vpop.permute.xlu1 %4848  ;;  %v15750_v9 = vld [vmem:[%s19765_s23 + $0x18] sm:$0xff]  }
 0x79e   : > { %v4867_v40 = vsel %vm19763_vm2, %v17932_v23, %v4849_v61  ;;  %vm19772_vm2 = vmmov %vm19768_vm0 }
 0x79f   : > { %v4894_v28 = vpack.c.bf16 %v4888_v33, %v4887_v37  ;;  %v4882_v62 = vadd.f32 %v13391_v22, %v4867_v40  ;;  %v4851_v0 = vpop.permute.xlu0 %4850  ;;  %v4889_v56 = vmax.f32 %v4881_v24, 0.0 }
 0x7a0   : > { %v4868_v25 = vsel %vm19764_vm15, %v17926_v13, %v4851_v0  ;;  %v15749_v13 = vld [vmem:[%s19765_s23 + $0x10] sm:$0xff]   ;;  %vm19775_vm15 = vcmp.ne.s16.totalorder %v17386_v45, 0 }
 0x7a1   : > { %v4890_v49 = vmax.f32 %v4882_v62, 0.0  ;;  %v4883_v35 = vadd.f32 %v13391_v22, %v4868_v25  ;;  %15015 = vmatmul.mubr.bf16.vlgmr.msra.gmra.mrb[24].mxu1 %v4894_v28  ;;  %v4853_v26 = vpop.permute.xlu1 %4852 }
 0x7a2   : > { %v4869_v5 = vsel %vm19767_vm6, %v17930_v41, %v4853_v26  ;;  %15023 = vmatpush3.bf16.msra.mxu1 %v15747_v50  ;;  %vm19777_vm6 = vmmov %vm19770_vm9 }
 0x7a3   : > { %v4884_v52 = vadd.f32 %v13391_v22, %v4869_v5  ;;  %v4895_v23 = vpack.c.bf16 %v4890_v49, %v4889_v56  ;;  %v4891_v59 = vmax.f32 %v4883_v35, 0.0  ;;  %15024 = vmatprep.subr.bf16.mxu1 %v15748_v18 }
 0x7a5   : > { %v4892_v20 = vmax.f32 %v4884_v52, 0.0  ;;  %15018 = vmatprep.mubr.bf16.mxu1 %v4895_v23  ;;  %v17971_v52 = vld [vmem:[%s19765_s23] sm:$0xff]  }
 0x7a6   : > { %15025 = vmatpush3.bf16.msra.mxu1 %v15748_v18 }
 0x7a7   : > { %v4896_v31 = vpack.c.bf16 %v4892_v20, %v4891_v59  ;;  %15034 = vmatprep.subr.bf16.mxu1 %v15749_v13 }
 0x7a9   : > { %15019 = vmatmul.mubr.bf16.gmra.mrb[28].mxu1 %v4896_v31 }
 0x874   : > { %v15016_v1 = vpop.f32.mrb[24].mxu1 }
 0x875   : > { %v5011_v32 = vadd.f32 %v15016_v1, %v13392_v57  ;;  %v5002_v27 = vpop.f32.mrb[25].mxu1 }
 0x876   : > { %v5003_v2 = vadd.f32 %v13392_v57, %v5002_v27  ;;  %v15017_v21 = vpop.f32.mrb[26].mxu1 }
 0x877   : > { %v5014_v41 = vadd.f32 %v15017_v21, %v13392_v57  ;;  %v5005_v50 = vpop.f32.mrb[27].mxu1  ;;  %v5035_v10 = vmax.f32 %v5011_v32, 0.0 }
 0x878   : > { %v5006_v22 = vadd.f32 %v13392_v57, %v5005_v50  ;;  %v5033_v46 = vmax.f32 %v5003_v2, 0.0 }
 0x879   : > { %v5036_v16 = vmax.f32 %v5014_v41, 0.0 }
 0x87a   : > { %v5034_v55 = vmax.f32 %v5006_v22, 0.0 }
 0x87b   : > { %v5042_v30 = vpack.c.bf16 %v5036_v16, %v5035_v10 }
 0x87c   : > { %v5041_v44 = vpack.c.bf16 %v5034_v55, %v5033_v46  ;;  %v15020_v48 = vpop.f32.mrb[28].mxu1 }
 0x87d   : > { %v5146_v8 = vshrl.u32 %v5042_v30, 16  ;;  %v5149_v14 = vshll.u32 %v5042_v30, 16  ;;  %v5027_v6 = vadd.f32 %v15020_v48, %v13392_v57  ;;  %v5018_v43 = vpop.f32.mrb[29].mxu1 }
 0x87e   : > { %v5139_v37 = vshrl.u32 %v5041_v44, 16  ;;  %v5142_v33 = vshll.u32 %v5041_v44, 16  ;;  %v5019_v24 = vadd.f32 %v13392_v57, %v5018_v43  ;;  %v15021_v61 = vpop.f32.mrb[30].mxu1  ;;  %15026 = vmatprep.mubr.msk.bf16.mxu1 %vm5061_vm5, %v5041_v44 }
 0x87f   : > { %v5148_v40 = vrot.slane %v5146_v8, 3  ;;  %v5151_v28 = vrot.slane %v5149_v14, 4  ;;  %v5030_v62 = vadd.f32 %v15021_v61, %v13392_v57  ;;  %v5021_v0 = vpop.f32.mrb[31].mxu1  ;;  %15027 = vmatmul.mubr.msk.bf16.vlgmr.msra.gmra.mrb[32].mxu1 %vm5061_vm5, %v5042_v30  ;;  %v5039_v26 = vmax.f32 %v5027_v6, 0.0 }
 0x880   : > { %v5141_v25 = vrot.slane %v5139_v37, 3  ;;  %v5144_v56 = vrot.slane %v5142_v33, 4  ;;  %v5022_v49 = vadd.f32 %v13392_v57, %v5021_v0  ;;  %15035 = vmatpush3.bf16.msra.mxu1 %v15749_v13  ;;  %v5037_v59 = vmax.f32 %v5019_v24, 0.0 }
 0x881   : > { %v5152_v35 = vor.u32 %v5151_v28, %v5148_v40  ;;  %v5040_v5 = vmax.f32 %v5030_v62, 0.0  ;;  %15036 = vmatprep.subr.bf16.mxu1 %v15750_v9 }
 0x882   : > { %v5145_v23 = vor.u32 %v5144_v56, %v5141_v25  ;;  %v5038_v20 = vmax.f32 %v5022_v49, 0.0 }
 0x883   : > { %v5044_v31 = vpack.c.bf16 %v5040_v5, %v5039_v26 }
 0x884   : > { %v17974_v18 = vsel %vm19768_vm0, %v5145_v23, %v5152_v35  ;;  %v17978_v1 = vsel %vm17192_vm12, 0, %v5145_v23  ;;  %v5043_v32 = vpack.c.bf16 %v5038_v20, %v5037_v59  ;;  %15037 = vmatpush3.bf16.msra.mxu1 %v15750_v9 }
 0x885   : > { %v5162_v13 = vshrl.u32 %v5044_v31, 16  ;;  %v5165_v57 = vshll.u32 %v5044_v31, 16  ;;  %v5193_v27 = vshll.u32 %v17978_v1, 16  ;;  %15046 = vmatprep.subr.bf16.mxu1 %v17971_v52  ;;  %v5198_v41 = vshll.u32 %v17974_v18, 16 }
 0x886   : > { %v5154_v2 = vshrl.u32 %v5043_v32, 16  ;;  %v5157_v21 = vshll.u32 %v5043_v32, 16  ;;  %15030 = vmatprep.mubr.msk.bf16.mxu1 %vm5061_vm5, %v5043_v32  ;;  %v5191_v10 = vshrl.u32 %v17978_v1, 16  ;;  %v5404_v8 = vsel %vm17198_vm13, %v17978_v1, 0 }
 0x887   : > { %v5164_v50 = vrot.slane %v5162_v13, 3  ;;  %v5167_v22 = vrot.slane %v5165_v57, 4  ;;  %15031 = vmatmul.mubr.msk.bf16.gmra.mrb[36].mxu1 %vm5061_vm5, %v5044_v31  ;;  %v5195_v16 = vrot.slane %v5193_v27, 1  ;;  %v5200_v30 = vrot.slane %v5198_v41, 1  ;;  %v15752_v13 = vld [vmem:[%s19765_s23 + $0x8] sm:$0xff]  }
 0x888   : > { %v5156_v46 = vrot.slane %v5154_v2, 3  ;;  %v5159_v55 = vrot.slane %v5157_v21, 4  ;;  %v5405_v14 = vsel %vm19769_vm10, %v17974_v18, 0  ;;  %v5202_v43 = vshrl.u32 %v17974_v18, 16 }
 0x889   : > { %v5168_v44 = vor.u32 %v5167_v22, %v5164_v50  ;;  %v5196_v48 = vor.u32 %v5195_v16, %v5191_v10  ;;  %v5419_v9 = vrot.slane %v5404_v8, 1  ;;  %v5420_v37 = vrot.slane %v5405_v14, 1 }
 0x88a   : > { %v5160_v6 = vor.u32 %v5159_v55, %v5156_v46  ;;  %v5177_v61 = vsel %vm17438_vm1, %v17978_v1, 0  ;;  %v5525_v40 = vsel %vm17202_vm14, %v17978_v1, 0  ;;  %v5526_v49 = vsel %vm17207_vm7, %v17974_v18, 0 }
 0x88b   : > { %v17999_v33 = vsel %vm17192_vm12, %v5168_v44, 0  ;;  %v5201_v24 = vsel %vm19770_vm9, %v5196_v48, %v5200_v30  ;;  %vm19773_vm12 = vcmask 1046528   ;;  %vm19774_vm14 = vcmp.ne.s16.totalorder %v17378_v60, 0 }
 0x88c   : > { %v18009_v28 = vsel %vm19771_vm4, %v5152_v35, %v5160_v6  ;;  %v18012_v62 = vsel %vm19772_vm2, %v5160_v6, %v5168_v44  ;;  %15038 = vmatprep.mubr.msk.bf16.mxu1 %vm5061_vm5, %v5201_v24  ;;  %v5222_v36 = vshll.u32 %v17999_v33, 16  ;;  %v18017_v0 = vsel %vm19773_vm12, %v5419_v9, %v5420_v37  ;;  %vm19778_vm0 = vmmov %vm19773_vm12 }
 0x88d   : > { %v5206_v25 = vshll.u32 %v18009_v28, 16  ;;  %v5210_v56 = vshrl.u32 %v18009_v28, 16  ;;  %v5214_v39 = vshll.u32 %v18012_v62, 16  ;;  %v5204_v35 = vor.u32 %v5202_v43, %v5200_v30  ;;  %vm19781_vm4 = vmmov %vm19777_vm6 }
 0x88e   : > { %v5218_v26 = vshrl.u32 %v18012_v62, 16  ;;  %v18026_v5 = vrot.slane %v5222_v36, 1  ;;  %v5406_v23 = vsel %vm19774_vm14, %v18009_v28, 0  ;;  %v5407_v57 = vsel %vm19775_vm15, %v18012_v62, 0  ;;  %vm19782_vm2 = vmmov %vm19781_vm4 }
 0x88f   : > { %v5208_v59 = vrot.slane %v5206_v25, 1  ;;  %v5216_v20 = vrot.slane %v5214_v39, 1  ;;  %v5658_v31 = vrot.slane %v5210_v56, 4  ;;  %v5422_v32 = vrot.slane %v5406_v23, 1  ;;  %vm19784_vm14 = vmmov %vm19778_vm0 }
 0x890   : > { %vm19776_vm7 = vnez %v19605_v19  ;;  %v5540_v2 = vrot.slane %v5525_v40, 4  ;;  %v5541_v21 = vrot.slane %v5526_v49, 4  ;;  %v5424_v55 = vrot.slane %v5407_v57, 1  ;;  %vm19785_vm15 = vmmov %vm19778_vm0 }
 0x891   : > { %v5408_v42 = vsel %vm19776_vm7, %v17999_v33, 0  ;;  %v18039_v50 = vsel %vm19777_vm6, %v5204_v35, %v5208_v59  ;;  %v5212_v22 = vor.u32 %v5210_v56, %v5208_v59  ;;  %v5220_v16 = vor.u32 %v5218_v26, %v5216_v20 }
 0x892   : > { %v18042_v46 = vsel %vm19778_vm0, %v5420_v37, %v5422_v32  ;;  %15039 = vmatmul.mubr.msk.bf16.vlgmr.msra.gmra.mrb[40].mxu1 %vm5061_vm5, %v18039_v50  ;;  %v5426_v30 = vrot.slane %v5408_v42, 1  ;;  %vm19779_vm10 = vcmask 1043456   ;;  %vm19780_vm9 = vnez %v19607_v4  ;;  %v15753_v4 = vld [vmem:[%s19765_s23 + $0x20] sm:$0xff]  }
 0x893   : > { %v18047_v44 = vsel %vm19779_vm10, %v5540_v2, %v5541_v21  ;;  %v5527_v19 = vsel %vm19780_vm9, %v18009_v28, 0  ;;  %15047 = vmatpush3.bf16.msra.mxu1 %v17971_v52  ;;  %v18054_v48 = vsel %vm19781_vm4, %v5212_v22, %v5216_v20  ;;  %v18058_v8 = vsel %vm19782_vm2, %v5220_v16, %v18026_v5  ;;  %vm19787_vm6 = vmmov %vm19779_vm10 }
 0x894   : > { %v5543_v14 = vrot.slane %v5527_v19, 4  ;;  %vm19783_vm12 = vnez %v19609_v17  ;;  %15042 = vmatprep.mubr.msk.bf16.mxu1 %vm5061_vm5, %v18054_v48  ;;  %15048 = vmatprep.subr.bf16.mxu1 %v15752_v13  ;;  %v18067_v9 = vsel %vm19784_vm14, %v5422_v32, %v5424_v55  ;;  %v18070_v52 = vsel %vm19785_vm15, %v5424_v55, %v5426_v30  ;;  %vm19788_vm0 = vmmov %vm19787_vm6 }
 0x895   : > { %v5528_v6 = vsel %vm19783_vm12, %v18012_v62, 0  ;;  %vm19786_vm7 = vnez %v19603_v11  ;;  %v5651_v56 = vrot.slane %v5191_v10, 4  ;;  %v5652_v49 = vrot.slane %v5193_v27, 5  ;;  %vm19789_vm10 = vmmov %vm19788_vm0 }
 0x896   : > { %v5545_v37 = vrot.slane %v5528_v6, 4  ;;  %v5529_v24 = vsel %vm19786_vm7, %v17999_v33, 0  ;;  %v18076_v40 = vsel %vm19787_vm6, %v5541_v21, %v5543_v14  ;;  %v5654_v23 = vrot.slane %v5202_v43, 4 }
 0x897   : > { %v5547_v17 = vrot.slane %v5529_v24, 4  ;;  %v5655_v59 = vrot.slane %v5198_v41, 5  ;;  %v5659_v20 = vrot.slane %v5206_v25, 5  ;;  %15049 = vmatpush3.bf16.msra.mxu1 %v15752_v13  ;;  %v5653_v32 = vor.u32 %v5652_v49, %v5651_v56 }
 0x898   : > { %v18081_v35 = vsel %vm19788_vm0, %v5543_v14, %v5545_v37  ;;  %v5662_v57 = vrot.slane %v5218_v26, 4  ;;  %v5663_v42 = vrot.slane %v5214_v39, 5  ;;  %15058 = vmatprep.subr.bf16.mxu1 %v15753_v4  ;;  %v5666_v27 = vshrl.u32 %v17999_v33, 16 }
 0x899   : > { %v18086_v11 = vsel %vm19789_vm10, %v5545_v37, %v5547_v17  ;;  %v5656_v10 = vor.u32 %v5655_v59, %v5654_v23  ;;  %v5660_v2 = vor.u32 %v5659_v20, %v5658_v31  ;;  %v5669_v21 = vrot.slane %v5222_v36, 5  ;;  %v15754_v17 = vld [vmem:[%s19765_s23 + $0x28] sm:$0xff]  }
 0x89a   : > { %v5664_v22 = vor.u32 %v5663_v42, %v5662_v57  ;;  %vm19790_vm9 = vnez %v19578_v47  ;;  %vm19791_vm4 = vcmp.ne.s16.totalorder %v17186_v34, 0  ;;  %vm19792_vm2 = vcmp.ne.s16.totalorder %v17393_v15, 0  ;;  %15043 = vmatmul.mubr.msk.bf16.gmra.mrb[44].mxu1 %vm5061_vm5, %v18058_v8  ;;  %v15755_v57 = vld [vmem:[%s19765_s23 + $0x30] sm:$0xff]   ;;  %v15756_v42 = vld [vmem:[%s19765_s23 + $0x38] sm:$0xff]  }
 0x89b   : > { %v5769_v43 = vsel %vm19790_vm9, %v17978_v1, 0  ;;  %v5770_v41 = vsel %vm19791_vm4, %v17974_v18, 0  ;;  %v5771_v25 = vsel %vm19792_vm2, %v18009_v28, 0  ;;  %vm19793_vm12 = vsmask.f32 3328  ;;  %15050 = vmatprep.mubr.msk.bf16.mxu1 %vm5061_vm5, %v5177_v61 }
 0x89c   : > { %v5657_v39 = vsel %vm19793_vm12, %v5653_v32, %v5656_v10  ;;  %vm19794_vm14 = vmmov %vm19793_vm12  ;;  %v5668_v26 = vrot.slane %v5666_v27, 4  ;;  %v5784_v31 = vrot.slane %v5769_v43, 5  ;;  %v5785_v47 = vrot.slane %v5770_v41, 5 }
 0x89d   : > { %v18102_v36 = vsel %vm19794_vm14, %v5656_v10, %v5660_v2  ;;  %vm19795_vm15 = vmmov %vm19793_vm12  ;;  %v5787_v15 = vrot.slane %v5771_v25, 5  ;;  %vm19796_vm7 = vcmp.ne.s16.totalorder %v17396_v3, 0  ;;  %vm19797_vm6 = vnez %v19615_v54  ;;  %v15757_v10 = vld [vmem:[%s19765_s23 + $0x40] sm:$0xff]  }
 0x89e   : > { %v5665_v34 = vsel %vm19795_vm15, %v5660_v2, %v5664_v22  ;;  %v5772_v13 = vsel %vm19796_vm7, %v18012_v62, 0  ;;  %v5670_v16 = vor.u32 %v5669_v21, %v5668_v26  ;;  %v5773_v30 = vsel %vm19797_vm6, %v17999_v33, 0  ;;  %vm19800_vm9 = vmmov %vm19793_vm12 }
 0x89f   : > { %v5789_v55 = vrot.slane %v5772_v13, 5  ;;  %vm19798_vm0 = vcmask 1042432   ;;  %v5791_v61 = vrot.slane %v5773_v30, 5  ;;  %v18124_v3 = vor.u32 %v5666_v27, %v18026_v5 }
 0x8a0   : > { %v5786_v19 = vsel %vm19798_vm0, %v5784_v31, %v5785_v47  ;;  %vm19799_vm10 = vmmov %vm19798_vm0  ;;  %v5671_v14 = vsel %vm19800_vm9, %v5664_v22, %v5670_v16  ;;  %v6091_v54 = vsel %vm17198_vm13, %v17974_v18, 0  ;;  %vm19803_vm12 = vcmp.ne.s16.totalorder %v17179_v29, 0 }
 0x8a1   : > { %v5788_v1 = vsel %vm19799_vm10, %v5785_v47, %v5787_v15  ;;  %vm19801_vm4 = vmmov %vm19798_vm0  ;;  %v6092_v24 = vsel %vm19803_vm12, %v18009_v28, 0  ;;  %v6104_v56 = vrot.slane %v6091_v54, 1  ;;  %vm19804_vm14 = vcmp.ne.s16.totalorder %v17378_v60, 0 }
 0x8a2   : > { %v5790_v6 = vsel %vm19801_vm4, %v5787_v15, %v5789_v55  ;;  %vm19802_vm2 = vmmov %vm19798_vm0  ;;  %v6105_v49 = vrot.slane %v6092_v24, 1  ;;  %v6093_v23 = vsel %vm19804_vm14, %v18012_v62, 0  ;;  %vm19805_vm15 = vcmp.ne.s16.totalorder %v17386_v45, 0 }
 0x8a3   : > { %v18121_v37 = vsel %vm19802_vm2, %v5789_v55, %v5791_v61  ;;  %v18139_v5 = vsel %vm19805_vm15, %v17999_v33, 0  ;;  %v5178_v38 = vsel %vm17542_vm3, %v17974_v18, 0  ;;  %v6107_v59 = vrot.slane %v6093_v23, 1  ;;  %vm19822_vm15 = vmmov %vm19798_vm0 }
 0x8a4   : > { %v6109_v29 = vrot.slane %v18139_v5, 1  ;;  %15051 = vmatmul.mubr.msk.bf16.vlgmr.msra.gmra.mrb[40].mxu1 %vm5061_vm5, %v5178_v38  ;;  %v5179_v60 = vsel %vm17550_vm11, %v18009_v28, 0  ;;  %vm19806_vm13 = vcmask 1046528   ;;  %v5891_v2 = vsel %vm17542_vm3, %v18009_v28, 0 }
 0x8a5   : > { %v18150_v20 = vsel %vm19806_vm13, %v6104_v56, %v6105_v49  ;;  %15059 = vmatpush3.bf16.msra.mxu1 %v15753_v4  ;;  %15054 = vmatprep.mubr.msk.bf16.mxu1 %vm5061_vm5, %v5179_v60  ;;  %vm19807_vm7 = vmmov %vm19806_vm13  ;;  %v5180_v4 = vsel %vm17566_vm8, %v18012_v62, 0  ;;  %v5892_v27 = vsel %vm17550_vm11, %v18012_v62, 0  ;;  %v18245_v62 = vld [vmem:[%s19809_s1] sm:$0x3]  ;;  %vm19813_vm11 = vcmask 1040384   ;;  %s19844_s1 = smov %s19843_s11 }
 0x8a6   : > { %v18154_v45 = vsel %vm19807_vm7, %v6105_v49, %v6107_v59  ;;  %vm19808_vm6 = vmmov %vm19807_vm7  ;;  %15060 = vmatprep.subr.bf16.mxu1 %v15754_v17  ;;  %vm19815_vm10 = vcmask 1043456   ;;  %vm19816_vm9 = vcmask 1044480   ;;  %vm19817_vm4 = vcmask 1045504  }
 0x8a7   : > { %v18159_v32 = vsel %vm19808_vm6, %v6107_v59, %v6109_v29  ;;  %vm19811_vm3 = vmmov %vm19808_vm6 }
 0x8a8   : > { %v6111_v51 = vsel %vm19811_vm3, %v6109_v29, %v17623_v12  ;;  %vm19819_vm2 = vmmov %vm19811_vm3 }
 0x8a9   : > { %15061 = vmatpush3.bf16.msra.mxu1 %v15754_v17  ;;  %vm19820_vm12 = vmmov %vm19813_vm11 }
 0x8aa   : > { %15070 = vmatprep.subr.bf16.mxu1 %v15755_v57  ;;  %vm19823_vm13 = vmmov %vm19815_vm10 }
 0x8ab   : > { %vm19824_vm7 = vmmov %vm19816_vm9 }
 0x8ac   : > { %15055 = vmatmul.mubr.msk.bf16.gmra.mrb[44].mxu1 %vm5061_vm5, %v5180_v4  ;;  %vm19825_vm6 = vmmov %vm19817_vm4 }
 0x8ad   : > { %15062 = vmatprep.mubr.msk.bf16.mxu1 %vm5061_vm5, %v18017_v0  ;;  %v15758_v0 = vld [vmem:[%s19765_s23 + $0x48] sm:$0xff]   ;;  %vm19827_vm3 = vmmov %vm19813_vm11 }
 0x8b4   : > { %15063 = vmatmul.mubr.msk.bf16.vlgmr.msra.gmra.mrb[40].mxu1 %vm5061_vm5, %v18042_v46  ;;  %v15759_v46 = vld [vmem:[%s19765_s23 + $0x50] sm:$0xff]  }
 0x8b5   : > { %15071 = vmatpush3.bf16.msra.mxu1 %v15755_v57  ;;  %15066 = vmatprep.mubr.msk.bf16.mxu1 %vm5061_vm5, %v18067_v9  ;;  %v15761_v9 = vld [vmem:[%s19765_s23 + $0x60] sm:$0xff]  }
 0x8b6   : > { %15072 = vmatprep.subr.bf16.mxu1 %v15756_v42 }
 0x8b9   : > { %15073 = vmatpush3.bf16.msra.mxu1 %v15756_v42 }
 0x8ba   : > { %15082 = vmatprep.subr.bf16.mxu1 %v15757_v10 }
 0x8bc   : > { %15067 = vmatmul.mubr.msk.bf16.gmra.mrb[44].mxu1 %vm5061_vm5, %v18070_v52  ;;  %v15762_v52 = vld [vmem:[%s19765_s23 + $0x68] sm:$0xff]  }
 0x8bd   : > { %15074 = vmatprep.mubr.msk.bf16.mxu1 %vm5061_vm5, %v18047_v44  ;;  %v15760_v44 = vld [vmem:[%s19765_s23 + $0x58] sm:$0xff]  }
 0x8c4   : > { %15075 = vmatmul.mubr.msk.bf16.vlgmr.msra.gmra.mrb[40].mxu1 %vm5061_vm5, %v18076_v40  ;;  %v15763_v40 = vld [vmem:[%s19765_s23 + $0x70] sm:$0xff]  }
 0x8c5   : > { %15083 = vmatpush3.bf16.msra.mxu1 %v15757_v10  ;;  %15078 = vmatprep.mubr.msk.bf16.mxu1 %vm5061_vm5, %v18081_v35  ;;  %v5890_v35 = vsel %vm17438_vm1, %v17974_v18, 0  ;;  %v5893_v18 = vsel %vm17566_vm8, %v17999_v33, 0  ;;  %vm19810_vm1 = vsmask.f32 7424  ;;  %v19812_v33 = vld [vmem:[#allocation53_spill] sm:$0xff]  ;;  %vm19814_vm8 = vcmask 1041408  }
 0x8c6   : > { %15084 = vmatprep.subr.bf16.mxu1 %v15758_v0  ;;  %v6002_v58 = vsel %vm19810_vm1, %v18124_v3, %v17623_v12  ;;  %v18242_v28 = vsub.s32 0, %v19812_v33  ;;  %vm19821_vm14 = vmmov %vm19814_vm8 }
 0x8c7   : > { %vm19826_vm1 = vmmov %vm19819_vm2 }
 0x8c9   : > { %15085 = vmatpush3.bf16.msra.mxu1 %v15758_v0 }
 0x8ca   : > { %15094 = vmatprep.subr.bf16.mxu1 %v15759_v46 }
 0x8cc   : > { %15079 = vmatmul.mubr.msk.bf16.gmra.mrb[44].mxu1 %vm5061_vm5, %v18086_v11  ;;  %v15764_v11 = vld [vmem:[%s19765_s23 + $0x78] sm:$0xff]  }
 0x8cd   : > { %15086 = vmatprep.mubr.msk.bf16.mxu1 %vm5061_vm5, %v5657_v39 }
 0x8d4   : > { %15087 = vmatmul.mubr.msk.bf16.vlgmr.msra.gmra.mrb[40].mxu1 %vm5061_vm5, %v18102_v36 }
 0x8d5   : > { %15095 = vmatpush3.bf16.msra.mxu1 %v15759_v46  ;;  %15090 = vmatprep.mubr.msk.bf16.mxu1 %vm5061_vm5, %v5665_v34 }
 0x8d6   : > { %15096 = vmatprep.subr.bf16.mxu1 %v15760_v44 }
 0x8d9   : > { %15097 = vmatpush3.bf16.msra.mxu1 %v15760_v44 }
 0x8da   : > { %15106 = vmatprep.subr.bf16.mxu1 %v15761_v9 }
 0x8dc   : > { %15091 = vmatmul.mubr.msk.bf16.gmra.mrb[44].mxu1 %vm5061_vm5, %v5671_v14 }
 0x8dd   : > { %15098 = vmatprep.mubr.msk.bf16.mxu1 %vm5061_vm5, %v5786_v19 }
 0x8e4   : > { %15099 = vmatmul.mubr.msk.bf16.vlgmr.msra.gmra.mrb[40].mxu1 %vm5061_vm5, %v5788_v1 }
 0x8e5   : > { %15107 = vmatpush3.bf16.msra.mxu1 %v15761_v9  ;;  %15102 = vmatprep.mubr.msk.bf16.mxu1 %vm5061_vm5, %v5790_v6 }
 0x8e6   : > { %15108 = vmatprep.subr.bf16.mxu1 %v15762_v52 }
 0x8e9   : > { %15109 = vmatpush3.bf16.msra.mxu1 %v15762_v52 }
 0x8ea   : > { %15118 = vmatprep.subr.bf16.mxu1 %v15763_v40 }
 0x8ec   : > { %15103 = vmatmul.mubr.msk.bf16.gmra.mrb[44].mxu1 %vm5061_vm5, %v18121_v37 }
 0x8ed   : > { %15110 = vmatprep.mubr.msk.bf16.mxu1 %vm5061_vm5, %v5890_v35 }
 0x8f4   : > { %15111 = vmatmul.mubr.msk.bf16.vlgmr.msra.gmra.mrb[40].mxu1 %vm5061_vm5, %v5891_v2 }
 0x8f5   : > { %15119 = vmatpush3.bf16.msra.mxu1 %v15763_v40  ;;  %15114 = vmatprep.mubr.msk.bf16.mxu1 %vm5061_vm5, %v5892_v27 }
 0x8f6   : > { %15120 = vmatprep.subr.bf16.mxu1 %v15764_v11 }
 0x8f9   : > { %15121 = vmatpush3.bf16.msra.mxu1 %v15764_v11 }
 0x8fa   : > { %15130 = vmatprep.subr.bf16.mxu1 %v15765_v53 }
 0x8fc   : > { %15115 = vmatmul.mubr.msk.bf16.gmra.mrb[44].mxu1 %vm5061_vm5, %v5893_v18 }
 0x8fd   : > { %15122 = vmatprep.mubr.msk.bf16.mxu1 %vm5061_vm5, %v18039_v50  ;;  %v6214_v50 = vrot.slane %v18245_v62, %v18242_v28 }
 0x904   : > { %15123 = vmatmul.mubr.msk.bf16.vlgmr.msra.gmra.mrb[40].mxu1 %vm5061_vm5, %v18054_v48 }
 0x905   : > { %15131 = vmatpush3.bf16.msra.mxu1 %v15765_v53  ;;  %15126 = vmatprep.mubr.msk.bf16.mxu1 %vm5061_vm5, %v18058_v8 }
 0x906   : > { %15132 = vmatprep.subr.bf16.mxu1 %v15766_v63 }
 0x909   : > { %15133 = vmatpush3.bf16.msra.mxu1 %v15766_v63 }
 0x90c   : > { %15127 = vmatmul.mubr.msk.bf16.gmra.mrb[44].mxu1 %vm5061_vm5, %v6002_v58 }
 0x90d   : > { %15134 = vmatprep.mubr.msk.bf16.mxu1 %vm5061_vm5, %v18150_v20 }
 0x914   : > { %15135 = vmatmul.mubr.msk.bf16.vlgmr.msra.gmra.mrb[40].mxu1 %vm5061_vm5, %v18154_v45 }
 0x915   : > { %15138 = vmatprep.mubr.msk.bf16.mxu1 %vm5061_vm5, %v18159_v32 }
 0x91c   : > { %15139 = vmatmul.mubr.msk.bf16.gmra.mrb[44].mxu1 %vm5061_vm5, %v6111_v51 }
 0x91d   : > { %7594 = vmatprep.mubr.bf16.mxu1 %v19673_v7 }
 0x952   : > { %v15028_v48 = vpop.f32.mrb[32].mxu1 }
 0x953   : > { %v6225_v8 = vadd.f32 %v15028_v48, %v6214_v50  ;;  %v5108_v21 = vpop.f32.mrb[33].mxu1 }
 0x954   : > { %v6221_v22 = vadd.f32 %v6214_v50, %v5108_v21  ;;  %v15029_v43 = vpop.f32.mrb[34].mxu1 }
 0x955   : > { %v6227_v41 = vadd.f32 %v15029_v43, %v6214_v50  ;;  %v5111_v25 = vpop.f32.mrb[35].mxu1  ;;  %v6241_v39 = vmax.f32 %v6225_v8, 0.0  ;;  %v15767_v43 = vld [vmem:[%s19818_s2 + $0x40] sm:$0xff]  }
 0x956   : > { %v6223_v12 = vadd.f32 %v6214_v50, %v5111_v25  ;;  %v6237_v26 = vmax.f32 %v6221_v22, 0.0  ;;  %14478 = vmatprep.subr.bf16.mxu0 %v15767_v43  ;;  %v15768_v25 = vld [vmem:[%s19818_s2] sm:$0xff]  }
 0x957   : > { %v6243_v36 = vmax.f32 %v6227_v41, 0.0  ;;  %14479 = vmatpush3.bf16.msra.mxu0 %v15768_v25 }
 0x958   : > { %v6239_v31 = vmax.f32 %v6223_v12, 0.0  ;;  %v15769_v12 = vld [vmem:[%s19818_s2 + $0x48] sm:$0xff]  }
 0x959   : > { %v6263_v34 = vmax.f32 %v6241_v39, %v6243_v36  ;;  %v15770_v39 = vld [vmem:[%s19818_s2 + $0x8] sm:$0xff]   ;;  %14480 = vmatprep.subr.bf16.mxu0 %v15769_v12  ;;  %v15771_v36 = vld [vmem:[%s19818_s2 + $0x50] sm:$0xff]  }
 0x95a   : > { %v6253_v47 = vmax.f32 %v6237_v26, %v6239_v31  ;;  %v15032_v15 = vpop.f32.mrb[36].mxu1  ;;  %v15772_v26 = vld [vmem:[%s19818_s2 + $0x10] sm:$0xff]   ;;  %v15773_v31 = vld [vmem:[%s19818_s2 + $0x58] sm:$0xff]  }
 0x95b   : > { %v6267_v13 = vrot.slane %v6263_v34, 1  ;;  %v5124_v16 = vpop.f32.mrb[37].mxu1  ;;  %v6233_v30 = vadd.f32 %v15032_v15, %v6214_v50  ;;  %14481 = vmatpush3.bf16.msra.mxu0 %v15770_v39  ;;  %v15776_v15 = vld [vmem:[%s19818_s2 + $0x20] sm:$0xff]  }
 0x95c   : > { %v6257_v55 = vrot.slane %v6253_v47, 1  ;;  %v15033_v19 = vpop.f32.mrb[38].mxu1  ;;  %v6229_v1 = vadd.f32 %v6214_v50, %v5124_v16  ;;  %14482 = vmatprep.subr.bf16.mxu0 %v15771_v36  ;;  %v15778_v16 = vld [vmem:[%s19818_s2 + $0x28] sm:$0xff]  }
 0x95d   : > { %v6235_v61 = vadd.f32 %v15033_v19, %v6214_v50  ;;  %v5127_v14 = vpop.f32.mrb[39].mxu1  ;;  %v6271_v3 = vmax.f32 %v6263_v34, %v6267_v13  ;;  %v6249_v17 = vmax.f32 %v6233_v30, 0.0  ;;  %v15774_v34 = vld [vmem:[%s19818_s2 + $0x18] sm:$0xff]   ;;  %v15777_v13 = vld [vmem:[%s19818_s2 + $0x68] sm:$0xff]   ;;  %v15780_v30 = vld [vmem:[%s19818_s2 + $0x30] sm:$0xff]  }
 0x95e   : > { %v6261_v6 = vmax.f32 %v6253_v47, %v6257_v55  ;;  %v6231_v37 = vadd.f32 %v6214_v50, %v5127_v14  ;;  %v6245_v49 = vmax.f32 %v6229_v1, 0.0  ;;  %v15775_v47 = vld [vmem:[%s19818_s2 + $0x60] sm:$0xff]   ;;  %v15779_v55 = vld [vmem:[%s19818_s2 + $0x70] sm:$0xff]   ;;  %v15781_v19 = vld [vmem:[%s19818_s2 + $0x78] sm:$0xff]  }
 0x95f   : > { %v6251_v56 = vmax.f32 %v6235_v61, 0.0  ;;  %v6309_v29 = vrot.slane %v6271_v3, 4  ;;  %v6313_v45 = vrot.slane %v6271_v3, 5  ;;  %v6317_v4 = vrot.slane %v6271_v3, 6  ;;  %14483 = vmatpush3.bf16.msra.mxu0 %v15772_v26  ;;  %v15782_v1 = vld [vmem:[%s19818_s2 + $0x38] sm:$0xff]  }
 0x960   : > { %v6295_v54 = vrot.slane %v6261_v6, 1  ;;  %v6299_v24 = vrot.slane %v6261_v6, 2  ;;  %v6247_v23 = vmax.f32 %v6231_v37, 0.0  ;;  %v6303_v5 = vrot.slane %v6261_v6, 3  ;;  %14484 = vmatprep.subr.bf16.mxu0 %v15773_v31 }
 0x961   : > { %v6283_v59 = vmax.f32 %v6249_v17, %v6251_v56  ;;  %v6321_v46 = vrot.slane %v6271_v3, 7  ;;  %v18286_v61 = vsub.s32 1, %v19812_v33 }
 0x962   : > { %v6357_v38 = vsel %vm19813_vm11, %v6261_v6, %v6295_v54  ;;  %v6273_v20 = vmax.f32 %v6245_v49, %v6247_v23  ;;  %vm19828_vm11 = vmmov %vm19814_vm8 }
 0x963   : > { %v6359_v60 = vsel %vm19814_vm8, %v6357_v38, %v6299_v24  ;;  %v6287_v57 = vrot.slane %v6283_v59, 1  ;;  %14485 = vmatpush3.bf16.msra.mxu0 %v15774_v34  ;;  %v6218_v14 = vrot.slane %v18245_v62, %v18286_v61  ;;  %vm19829_vm8 = vmmov %vm19798_vm0 }
 0x964   : > { %v6361_v32 = vsel %vm19798_vm0, %v6359_v60, %v6303_v5  ;;  %v6277_v42 = vrot.slane %v6273_v20, 1  ;;  %14486 = vmatprep.subr.bf16.mxu0 %v15775_v47  ;;  %vm19830_vm0 = vmmov %vm19815_vm10 }
 0x965   : > { %v6363_v10 = vsel %vm19815_vm10, %v6361_v32, %v6309_v29  ;;  %v6291_v52 = vmax.f32 %v6283_v59, %v6287_v57  ;;  %vm19831_vm10 = vmmov %vm19824_vm7 }
 0x966   : > { %v6365_v0 = vsel %vm19816_vm9, %v6363_v10, %v6313_v45  ;;  %v6281_v44 = vmax.f32 %v6273_v20, %v6277_v42  ;;  %vm19832_vm9 = vmmov %vm19817_vm4 }
 0x967   : > { %v6367_v9 = vsel %vm19817_vm4, %v6365_v0, %v6317_v4  ;;  %v6341_v53 = vrot.slane %v6291_v52, 4  ;;  %v6345_v63 = vrot.slane %v6291_v52, 5  ;;  %v6349_v51 = vrot.slane %v6291_v52, 6  ;;  %14487 = vmatpush3.bf16.msra.mxu0 %v15776_v15  ;;  %vm19833_vm4 = vmmov %vm19826_vm1 }
 0x968   : > { %v6327_v40 = vrot.slane %v6281_v44, 1  ;;  %v6331_v35 = vrot.slane %v6281_v44, 2  ;;  %v18256_v11 = vsel %vm19819_vm2, %v6367_v9, %v6321_v46  ;;  %v6335_v2 = vrot.slane %v6281_v44, 3  ;;  %14488 = vmatprep.subr.bf16.mxu0 %v15777_v13  ;;  %vm19835_vm2 = vmmov %vm19827_vm3 }
 0x969   : > { %v6353_v48 = vrot.slane %v6291_v52, 7 }
 0x96a   : > { %v6371_v27 = vsel %vm19820_vm12, %v6281_v44, %v6327_v40  ;;  %vm19836_vm12 = vmmov %vm19828_vm11 }
 0x96b   : > { %v6373_v18 = vsel %vm19821_vm14, %v6371_v27, %v6331_v35  ;;  %14489 = vmatpush3.bf16.msra.mxu0 %v15778_v16  ;;  %vm19837_vm14 = vmmov %vm19829_vm8 }
 0x96c   : > { %v6375_v58 = vsel %vm19822_vm15, %v6373_v18, %v6335_v2  ;;  %14490 = vmatprep.subr.bf16.mxu0 %v15779_v55  ;;  %vm19838_vm15 = vmmov %vm19830_vm0 }
 0x96d   : > { %v6377_v50 = vsel %vm19823_vm13, %v6375_v58, %v6341_v53  ;;  %vm19839_vm13 = vmmov %vm19824_vm7 }
 0x96e   : > { %v6379_v8 = vsel %vm19824_vm7, %v6377_v50, %v6345_v63  ;;  %vm19840_vm7 = vmmov %vm19825_vm6 }
 0x96f   : > { %v6381_v21 = vsel %vm19825_vm6, %v6379_v8, %v6349_v51  ;;  %14491 = vmatpush3.bf16.msra.mxu0 %v15780_v30  ;;  %vm19841_vm6 = vmmov %vm19826_vm1 }
 0x970   : > { %v18265_v22 = vsel %vm19826_vm1, %v6381_v21, %v6353_v48  ;;  %14492 = vmatprep.subr.bf16.mxu0 %v15781_v19  ;;  %vm16595_vm1 = vmmov 0  }
 0x971   : > { %v6385_v41 = vpack.c.bf16 %v18265_v22, %v18256_v11 }
 0x973   : > { %14493 = vmatpush3.bf16.msra.mxu0 %v15782_v1 }
 0x9e7   : > { %v15136_v6 = vpop.f32.mrb[40].mxu1 }
 0x9e8   : > { %v6226_v37 = vadd.f32 %v15136_v6, %v6218_v14  ;;  %v6170_v3 = vpop.f32.mrb[41].mxu1 }
 0x9e9   : > { %v6222_v54 = vadd.f32 %v6218_v14, %v6170_v3  ;;  %v15137_v24 = vpop.f32.mrb[42].mxu1 }
 0x9ea   : > { %v6228_v17 = vadd.f32 %v15137_v24, %v6218_v14  ;;  %v6173_v56 = vpop.f32.mrb[43].mxu1  ;;  %v6242_v23 = vmax.f32 %v6226_v37, 0.0 }
 0x9eb   : > { %v6224_v49 = vadd.f32 %v6218_v14, %v6173_v56  ;;  %v6238_v38 = vmax.f32 %v6222_v54, 0.0 }
 0x9ec   : > { %v6244_v5 = vmax.f32 %v6228_v17, 0.0 }
 0x9ed   : > { %v6240_v59 = vmax.f32 %v6224_v49, 0.0 }
 0x9ee   : > { %v6264_v29 = vmax.f32 %v6242_v23, %v6244_v5  ;;  %v15783_v23 = vld [vmem:[%s19834_s26] sm:$0xff]   ;;  %v16594_v5 = vmov 0.0  }
 0x9ef   : > { %v6254_v60 = vmax.f32 %v6238_v38, %v6240_v59  ;;  %v15140_v20 = vpop.f32.mrb[44].mxu1  ;;  %15142 = vmatprep.subr.bf16.mxu0 %v16594_v5  ;;  %v15784_v38 = vld [vmem:[%s19834_s26 + $0x8] sm:$0xff]  }
 0x9f0   : > { %v6268_v45 = vrot.slane %v6264_v29, 1  ;;  %v6234_v32 = vadd.f32 %v15140_v20, %v6218_v14  ;;  %v6186_v57 = vpop.f32.mrb[45].mxu1  ;;  %v6642_v20 = vand.u32 3, %v19812_v33 }
 0x9f1   : > { %v6258_v4 = vrot.slane %v6254_v60, 1  ;;  %v6230_v62 = vadd.f32 %v6218_v14, %v6186_v57  ;;  %v15141_v42 = vpop.f32.mrb[46].mxu1  ;;  %v19845_v57 = vld [vmem:[#allocation54_spill] sm:$0xff] }
 0x9f2   : > { %v6236_v10 = vadd.f32 %v15141_v42, %v6218_v14  ;;  %v6189_v0 = vpop.f32.mrb[47].mxu1  ;;  %v6272_v9 = vmax.f32 %v6264_v29, %v6268_v45  ;;  %v6250_v52 = vmax.f32 %v6234_v32, 0.0  ;;  %v13493_v29 = vld [vmem:[%s19842_s7] ss:$0 sm:$0xff]  ;;  %s19871_s7 = sld [smem:[#allocation30_spill]] }
 0x9f3   : > { %v6262_v46 = vmax.f32 %v6254_v60, %v6258_v4  ;;  %v6232_v44 = vadd.f32 %v6218_v14, %v6189_v0  ;;  %v6246_v27 = vmax.f32 %v6230_v62, 0.0  ;;  %v6649_v4 = vand.u32 3, %v19845_v57  ;;  %v15793_v57 = vld [vmem:[%s19844_s1 + $0x40] sm:$0xff]  }
 0x9f4   : > { %v6252_v40 = vmax.f32 %v6236_v10, 0.0  ;;  %v6310_v50 = vrot.slane %v6272_v9, 4  ;;  %v6314_v21 = vrot.slane %v6272_v9, 5  ;;  %v6318_v36 = vrot.slane %v6272_v9, 6 }
 0x9f5   : > { %v6296_v35 = vrot.slane %v6262_v46, 1  ;;  %v6300_v2 = vrot.slane %v6262_v46, 2  ;;  %v6248_v53 = vmax.f32 %v6232_v44, 0.0  ;;  %v6304_v63 = vrot.slane %v6262_v46, 3  ;;  %v15785_v44 = vld [vmem:[%s19843_s11 + $0x10] sm:$0xff]   ;;  %s19874_s11 = sld [smem:[#allocation29_spill]] }
 0x9f6   : > { %v6284_v18 = vmax.f32 %v6250_v52, %v6252_v40  ;;  %v6322_v34 = vrot.slane %v6272_v9, 7 }
 0x9f7   : > { %v6358_v58 = vsel %vm19827_vm3, %v6262_v46, %v6296_v35  ;;  %v6274_v51 = vmax.f32 %v6246_v27, %v6248_v53  ;;  %vm18317_vm3 = vcmp.le.s32.totalorder %v6642_v20, 2  ;;  %v15786_v35 = vld [vmem:[%s19844_s1 + $0x18] sm:$0xff]  }
 0x9f8   : > { %v6360_v48 = vsel %vm19828_vm11, %v6358_v58, %v6300_v2  ;;  %v6288_v8 = vrot.slane %v6284_v18, 1  ;;  %vm18321_vm11 = vcmp.le.s32.totalorder %v6649_v4, 2  ;;  %s19872_s16 = smov %s19871_s7 }
 0x9f9   : > { %v6278_v43 = vrot.slane %v6274_v51, 1  ;;  %v6362_v25 = vsel %vm19829_vm8, %v6360_v48, %v6304_v63  ;;  %vm6808_vm8 = vmpackc.low %vm18317_vm3, %vm18317_vm3 }
 0x9fa   : > { %v6364_v12 = vsel %vm19830_vm0, %v6362_v25, %v6310_v50  ;;  %v6292_v31 = vmax.f32 %v6284_v18, %v6288_v8  ;;  %vm6809_vm0 = vmpackc.low %vm18321_vm11, %vm18321_vm11  ;;  %v6810_v53 = vsel %vm6808_vm8, 65537, %v19673_v7 }
 0x9fb   : > { %v6282_v39 = vmax.f32 %v6274_v51, %v6278_v43  ;;  %v6366_v26 = vsel %vm19831_vm10, %v6364_v12, %v6314_v21  ;;  %vm6634_vm10 = vsmask.f32 2304  ;;  %v6811_v18 = vsel %vm6809_vm0, 65537, %v19673_v7 }
 0x9fc   : > { %v6368_v13 = vsel %vm19832_vm9, %v6366_v26, %v6318_v36  ;;  %v6342_v19 = vrot.slane %v6292_v31, 4  ;;  %v6346_v14 = vrot.slane %v6292_v31, 5  ;;  %v6350_v37 = vrot.slane %v6292_v31, 6  ;;  %vm19850_vm9 = vmmov %vm19837_vm14  ;;  %v15787_v26 = vld [vmem:[%s19844_s1] sm:$0xff]  }
 0x9fd   : > { %v6328_v47 = vrot.slane %v6282_v39, 1  ;;  %v6332_v15 = vrot.slane %v6282_v39, 2  ;;  %v6370_v16 = vsel %vm19833_vm4, %v6368_v13, %v6322_v34  ;;  %v6336_v55 = vrot.slane %v6282_v39, 3  ;;  %vm18340_vm4 = vmand %vm19850_vm9, %vm6634_vm10  ;;  %v15788_v13 = vld [vmem:[%s19844_s1 + $0x8] sm:$0xff]  }
 0x9fe   : > { %v6354_v54 = vrot.slane %v6292_v31, 7  ;;  %v18344_v51 = vcombine.low %v6810_v53, %v6811_v18  ;;  %vm19858_vm11 = vmmov %vm19850_vm9  ;;  %vm19861_vm0 = vcmask 1046528   ;;  %vm19862_vm10 = vcmask 1045504  }
 0x9ff   : > { %v6372_v30 = vsel %vm19835_vm2, %v6282_v39, %v6328_v47  ;;  %vm6662_vm2 = vcmp.ge.s32.totalorder %v6642_v20, 1  ;;  %vm6965_vm9 = vsmask.f32 5376 }
 0xa00   : > { %v6374_v1 = vsel %vm19836_vm12, %v6372_v30, %v6332_v15  ;;  %vm6663_vm12 = vcmp.ge.s32.totalorder %v6649_v4, 1  ;;  %v7249_v12 = vrot.slane %v18344_v51, 3  ;;  %v7033_v46 = vrot.slane %v18344_v51, 5 }
 0xa01   : > { %v6376_v6 = vsel %vm19837_vm14, %v6374_v1, %v6336_v55  ;;  %vm6666_vm14 = vmpackc.low %vm6662_vm2, %vm6662_vm2 }
 0xa02   : > { %v6378_v3 = vsel %vm19838_vm15, %v6376_v6, %v6342_v19  ;;  %vm6667_vm15 = vmpackc.low %vm6663_vm12, %vm6663_vm12  ;;  %v18371_v34 = vsel %vm6666_vm14, 65537, %v19673_v7  ;;  %vm18452_vm2 = vcmp.ne.s16.totalorder %v7033_v46, 0 }
 0xa03   : > { %v6380_v24 = vsel %vm19839_vm13, %v6378_v3, %v6346_v14  ;;  %vm19853_vm13 = vsmask.f32 7424  ;;  %v18374_v47 = vsel %vm6667_vm15, 65537, %v19673_v7  ;;  %v13553_v18 = vcombine.low %v18371_v34, %v18371_v34 }
 0xa04   : > { %v6382_v17 = vsel %vm19840_vm7, %v6380_v24, %v6350_v37  ;;  %vm18376_vm7 = vcmp.ne.s16.totalorder %v7249_v12, 0  ;;  %v18388_v55 = vcombine.low %v18371_v34, %v18374_v47  ;;  %v15789_v37 = vld [vmem:[%s19844_s1 + $0x20] sm:$0xff]   ;;  %vm19869_vm15 = vcmask 1044480  }
 0xa05   : > { %v6384_v56 = vsel %vm19841_vm6, %v6382_v17, %v6354_v54  ;;  %vm18474_vm12 = vcmp.ne.s16.totalorder %v13553_v18, 0 }
 0xa06   : > { %v6386_v49 = vpack.c.bf16 %v6384_v56, %v6370_v16  ;;  %v6815_v16 = vrot.slane %v18344_v51, 7  ;;  %vm6673_vm6 = vcmp.ne.s16.totalorder %v18388_v55, 0  ;;  %v6887_v56 = vrot.slane %v18388_v55, 6  ;;  %v15796_v51 = vld [vmem:[%s19844_s1 + $0x58] sm:$0xff]  }
 0xa08   : > { %6554 = vmatprep.mubr.bf16.mxu0 %v6386_v49  ;;  %vm18397_vm3 = vcmp.ne.s16.totalorder %v6815_v16, 0  ;;  %v15790_v49 = vld [vmem:[%s19844_s1 + $0x28] sm:$0xff]   ;;  %vm18421_vm8 = vcmp.ne.s16.totalorder %v6887_v56, 0  ;;  %v15803_v56 = vld [vmem:[%s19871_s7 + $0x40] sm:$0xff]   ;;  %s19875_s7 = sld [smem:[#allocation32_spill]] }
 0xa09   : > { %6555 = vmatmul.mubr.bf16.vlgmr.msra.gmra.mrb[56].mxu0 %v6385_v41 }
 0xa0a   : > { %15146 = vmatprep.mubr.msk.bf16.mxu0 %vm16595_vm1, %v16594_v5  ;;  %15143 = vmatpush3.bf16.msra.mxu0 %v15783_v23 }
 0xa0b   : > { %15144 = vmatprep.subr.bf16.mxu0 %v16594_v5 }
 0xa0e   : > { %15145 = vmatpush3.bf16.msra.mxu0 %v15784_v38 }
 0xa0f   : > { %15150 = vmatprep.subr.bf16.mxu0 %v16594_v5 }
 0xadc   : > { %v14494_v59 = vpop.f32.mrb[56].mxu0 }
 0xadd   : > { %v14495_v11 = vpop.f32.mrb[57].mxu0 }
 0xade   : > { %v14496_v22 = vadd.f32 %v14495_v11, %v14494_v59  ;;  %v14497_v41 = vpop.f32.mrb[58].mxu0 }
 0xadf   : > { %v14498_v60 = vpop.f32.mrb[59].mxu0 }
 0xae0   : > { %v6557_v45 = vadd.f32 %v14496_v22, %v13493_v29  ;;  %v14499_v32 = vadd.f32 %v14498_v60, %v14497_v41  ;;  %v15792_v60 = vld [vmem:[%s19844_s1 + $0x38] sm:$0xff]  }
 0xae2   : > { %v6560_v62 = vadd.f32 %v14499_v32, %v13493_v29  ;;  %v6563_v10 = vmax.f32 %v6557_v45, 0.0  ;;  %v15791_v29 = vld [vmem:[%s19844_s1 + $0x30] sm:$0xff]  }
 0xae4   : > { %v6564_v0 = vmax.f32 %v6560_v62, 0.0 }
 0xae6   : > { %v6565_v9 = vpack.c.bf16 %v6564_v0, %v6563_v10 }
 0xae8   : > { %v6626_v52 = vshrl.u32 %v6565_v9, 16  ;;  %v6629_v40 = vshll.u32 %v6565_v9, 16  ;;  %15147 = vmatmul.mubr.msk.bf16.vlgmr.msra.gmra.mrb[60].mxu0 %vm5061_vm5, %v6565_v9 }
 0xae9   : > { %15151 = vmatpush3.bf16.msra.mxu0 %v15785_v44  ;;  %15154 = vmatprep.mubr.msk.bf16.mxu0 %vm16595_vm1, %v16594_v5  ;;  %v15794_v44 = vld [vmem:[%s19844_s1 + $0x48] sm:$0xff]  }
 0xaea   : > { %v6628_v2 = vrot.slane %v6626_v52, 5  ;;  %v6631_v27 = vrot.slane %v6629_v40, 6  ;;  %15152 = vmatprep.subr.bf16.mxu0 %v16594_v5 }
 0xaec   : > { %v6632_v58 = vor.u32 %v6631_v27, %v6628_v2 }
 0xaed   : > { %15153 = vmatpush3.bf16.msra.mxu0 %v15786_v35  ;;  %v15795_v35 = vld [vmem:[%s19844_s1 + $0x50] sm:$0xff]  }
 0xaee   : > { %v18348_v50 = vsel %vm18340_vm4, 0, %v6632_v58  ;;  %v18352_v48 = vsel %vm18340_vm4, %v6632_v58, 0  ;;  %15158 = vmatprep.subr.bf16.mxu0 %v16594_v5  ;;  %v13554_v58 = vcombine.low %v18374_v47, %v18374_v47 }
 0xaef   : > { %v18356_v8 = vshll.u32 %v18348_v50, 16  ;;  %v18359_v21 = vshll.u32 %v18352_v48, 16  ;;  %v18362_v43 = vshrl.u32 %v18348_v50, 16  ;;  %v7251_v30 = vsel %vm18376_vm7, %v18348_v50, 0 }
 0xaf0   : > { %v7252_v19 = vsel %vm18376_vm7, %v18352_v48, 0  ;;  %v7260_v1 = vrot.slane %v7251_v30, 5  ;;  %v6674_v54 = vsel %vm6673_vm6, %v18348_v50, 0  ;;  %v6817_v24 = vsel %vm18397_vm3, %v18348_v50, 0 }
 0xaf1   : > { %v6689_v25 = vrot.slane %v18356_v8, 1  ;;  %v6694_v36 = vrot.slane %v18359_v21, 1  ;;  %v7261_v14 = vrot.slane %v7252_v19, 5  ;;  %v6818_v17 = vsel %vm18397_vm3, %v18352_v48, 0  ;;  %v15799_v19 = vld [vmem:[%s19844_s1 + $0x70] sm:$0xff]  }
 0xaf2   : > { %v6826_v23 = vrot.slane %v6817_v24, 1  ;;  %v6827_v38 = vrot.slane %v6818_v17, 1  ;;  %v6889_v22 = vsel %vm18421_vm8, %v18348_v50, 0  ;;  %v6890_v41 = vsel %vm18421_vm8, %v18352_v48, 0  ;;  %v15802_v17 = vld [vmem:[%s19844_s1 + $0x88] sm:$0xff]  }
 0xaf3   : > { %v6690_v39 = vor.u32 %v6689_v25, %v18362_v43  ;;  %v18404_v3 = vsel %vm19858_vm11, %v7260_v1, %v7261_v14  ;;  %v6899_v20 = vrot.slane %v6889_v22, 2  ;;  %v6900_v45 = vrot.slane %v6890_v41, 2  ;;  %v15810_v22 = vld [vmem:[%s19872_s16 + $0x18] sm:$0xff]   ;;  %v15811_v41 = vld [vmem:[%s19872_s16 + $0x60] sm:$0xff]  }
 0xaf4   : > { %v6828_v11 = vsel %vm19861_vm0, %v6826_v23, %v6827_v38  ;;  %v6969_v32 = vshrl.u32 %v18352_v48, 16  ;;  %v6966_v4 = vrot.slane %v18362_v43, 2  ;;  %v6967_v42 = vrot.slane %v18356_v8, 3  ;;  %v15805_v23 = vld [vmem:[%s19872_s16 + $0x48] sm:$0xff]  }
 0xaf5   : > { %v6695_v31 = vsel %vm19853_vm13, %v6690_v39, %v6694_v36  ;;  %v6901_v62 = vsel %vm19862_vm10, %v6899_v20, %v6900_v45  ;;  %v6972_v0 = vrot.slane %v18359_v21, 3  ;;  %v7035_v27 = vsel %vm18452_vm2, %v18348_v50, 0  ;;  %v15806_v38 = vld [vmem:[%s19872_s16 + $0x8] sm:$0xff]  }
 0xaf6   : > { %15155 = vmatmul.mubr.msk.bf16.vlgmr.msra.gmra.mrb[64].mxu0 %vm5061_vm5, %v6695_v31  ;;  %v6971_v10 = vrot.slane %v6969_v32, 2  ;;  %v6968_v9 = vor.u32 %v6967_v42, %v6966_v4  ;;  %v7036_v53 = vsel %vm18452_vm2, %v18352_v48, 0  ;;  %v7044_v25 = vrot.slane %v7035_v27, 3  ;;  %v15813_v20 = vld [vmem:[%s19872_s16 + $0x68] sm:$0xff]   ;;  %v15817_v4 = vld [vmem:[%s19872_s16 + $0x78] sm:$0xff]  }
 0xaf7   : > { %15159 = vmatpush3.bf16.msra.mxu0 %v15787_v26  ;;  %15162 = vmatprep.mubr.msk.bf16.mxu0 %vm16595_vm1, %v16594_v5  ;;  %v7045_v12 = vrot.slane %v7036_v53, 3  ;;  %vm18478_vm14 = vcmp.ne.s16.totalorder %v13554_v58, 0  ;;  %v15797_v26 = vld [vmem:[%s19844_s1 + $0x60] sm:$0xff]   ;;  %v7109_v34 = vsel %vm18474_vm12, %v18348_v50, 0  ;;  %v7184_v50 = vrot.slane %v18362_v43, 4  ;;  %v15814_v45 = vld [vmem:[%s19872_s16 + $0x28] sm:$0xff]  }
 0xaf8   : > { %15160 = vmatprep.subr.bf16.mxu0 %v16594_v5  ;;  %v6973_v52 = vor.u32 %v6972_v0, %v6971_v10  ;;  %v7110_v47 = vsel %vm18478_vm14, %v18352_v48, 0  ;;  %v7118_v16 = vrot.slane %v7109_v34, 4  ;;  %vm19870_vm13 = vcmask 1043456   ;;  %v7321_v42 = vld [vmem:[%s19874_s11] sm:$0x3]  ;;  %s19877_s11 = sld [smem:[#allocation33_spill]] }
 0xaf9   : > { %v7046_v31 = vsel %vm19869_vm15, %v7044_v25, %v7045_v12  ;;  %v7119_v30 = vrot.slane %v7110_v47, 4  ;;  %v7185_v48 = vrot.slane %v18356_v8, 5  ;;  %v7187_v14 = vrot.slane %v6969_v32, 4  ;;  %v15801_v8 = vld [vmem:[%s19844_s1 + $0x80] sm:$0xff]   ;;  %v15815_v32 = vld [vmem:[%s19872_s16 + $0x70] sm:$0xff]   ;;  %vm19881_vm10 = vmmov %vm19870_vm13 }
 0xafa   : > { %v6974_v2 = vsel %vm6965_vm9, %v6968_v9, %v6973_v52  ;;  %vm19873_vm11 = vsmask.f32 3328  ;;  %v7326_v10 = vrot.slane %v7321_v42, %v18242_v28  ;;  %vm19880_vm0 = vsmask.f32 7424 }
 0xafb   : > { %15161 = vmatpush3.bf16.msra.mxu0 %v15788_v13  ;;  %v15798_v13 = vld [vmem:[%s19844_s1 + $0x68] sm:$0xff]   ;;  %v7120_v1 = vsel %vm19870_vm13, %v7118_v16, %v7119_v30  ;;  %v7186_v43 = vor.u32 %v7185_v48, %v7184_v50  ;;  %vm19882_vm15 = vmmov %vm19873_vm11  ;;  %vm19883_vm13 = vcmask 1042432  }
 0xafc   : > { %15166 = vmatprep.subr.bf16.mxu0 %v16594_v5 }
 0xafe   : > { %15163 = vmatmul.mubr.msk.bf16.vlgmr.msra.gmra.mrb[68].mxu0 %vm5061_vm5, %v6674_v54  ;;  %v15800_v54 = vld [vmem:[%s19844_s1 + $0x78] sm:$0xff]   ;;  %s19876_s1 = smov %s19875_s7  ;;  %s19878_s2 = smov %s19877_s11 }
 0xaff   : > { %15167 = vmatpush3.bf16.msra.mxu0 %v15789_v37  ;;  %15170 = vmatprep.mubr.msk.bf16.mxu0 %vm16595_vm1, %v16594_v5  ;;  %v7188_v37 = vrot.slane %v18359_v21, 5 }
 0xb00   : > { %15168 = vmatprep.subr.bf16.mxu0 %v16594_v5 }
 0xb01   : > { %v7189_v24 = vor.u32 %v7188_v37, %v7187_v14 }
 0xb03   : > { %15169 = vmatpush3.bf16.msra.mxu0 %v15790_v49  ;;  %v7190_v21 = vsel %vm19873_vm11, %v7186_v43, %v7189_v24  ;;  %v15804_v49 = vld [vmem:[%s19872_s16] sm:$0xff]   ;;  %vm19884_vm11 = vcmask 1046528  }
 0xb04   : > { %15174 = vmatprep.subr.bf16.mxu0 %v16594_v5 }
 0xb06   : > { %15171 = vmatmul.mubr.msk.bf16.vlgmr.msra.gmra.mrb[72].mxu0 %vm5061_vm5, %v6828_v11  ;;  %v15808_v11 = vld [vmem:[%s19872_s16 + $0x10] sm:$0xff]  }
 0xb07   : > { %15175 = vmatpush3.bf16.msra.mxu0 %v15791_v29  ;;  %15178 = vmatprep.mubr.msk.bf16.mxu0 %vm16595_vm1, %v16594_v5  ;;  %v15807_v29 = vld [vmem:[%s19872_s16 + $0x50] sm:$0xff]  }
 0xb08   : > { %15176 = vmatprep.subr.bf16.mxu0 %v16594_v5 }
 0xb0b   : > { %15177 = vmatpush3.bf16.msra.mxu0 %v15792_v60  ;;  %v15812_v60 = vld [vmem:[%s19872_s16 + $0x20] sm:$0xff]  }
 0xb0c   : > { %15182 = vmatprep.subr.bf16.mxu0 %v16594_v5 }
 0xb0e   : > { %15179 = vmatmul.mubr.msk.bf16.vlgmr.msra.gmra.mrb[76].mxu0 %vm5061_vm5, %v6901_v62  ;;  %v15818_v62 = vld [vmem:[%s19872_s16 + $0x38] sm:$0xff]  }
 0xb0f   : > { %15183 = vmatpush3.bf16.msra.mxu0 %v15793_v57  ;;  %15186 = vmatprep.mubr.msk.bf16.mxu0 %vm16595_vm1, %v16594_v5  ;;  %v15816_v57 = vld [vmem:[%s19872_s16 + $0x30] sm:$0xff]  }
 0xb10   : > { %15184 = vmatprep.subr.bf16.mxu0 %v16594_v5 }
 0xb13   : > { %15185 = vmatpush3.bf16.msra.mxu0 %v15794_v44 }
 0xb14   : > { %15190 = vmatprep.subr.bf16.mxu0 %v16594_v5 }
 0xb16   : > { %15187 = vmatmul.mubr.msk.bf16.vlgmr.msra.gmra.mrb[80].mxu0 %vm5061_vm5, %v6974_v2 }
 0xb17   : > { %15191 = vmatpush3.bf16.msra.mxu0 %v15795_v35  ;;  %15194 = vmatprep.mubr.msk.bf16.mxu0 %vm16595_vm1, %v16594_v5 }
 0xb18   : > { %15192 = vmatprep.subr.bf16.mxu0 %v16594_v5 }
 0xb1b   : > { %15193 = vmatpush3.bf16.msra.mxu0 %v15796_v51 }
 0xb1c   : > { %15198 = vmatprep.subr.bf16.mxu0 %v16594_v5 }
 0xb1e   : > { %15195 = vmatmul.mubr.msk.bf16.vlgmr.msra.gmra.mrb[84].mxu0 %vm5061_vm5, %v7046_v31 }
 0xb1f   : > { %15199 = vmatpush3.bf16.msra.mxu0 %v15797_v26  ;;  %15202 = vmatprep.mubr.msk.bf16.mxu0 %vm16595_vm1, %v16594_v5 }
 0xb20   : > { %15200 = vmatprep.subr.bf16.mxu0 %v16594_v5 }
 0xb23   : > { %15201 = vmatpush3.bf16.msra.mxu0 %v15798_v13 }
 0xb24   : > { %15206 = vmatprep.subr.bf16.mxu0 %v16594_v5 }
 0xb26   : > { %15203 = vmatmul.mubr.msk.bf16.vlgmr.msra.gmra.mrb[88].mxu0 %vm5061_vm5, %v7120_v1 }
 0xb27   : > { %15207 = vmatpush3.bf16.msra.mxu0 %v15799_v19  ;;  %15210 = vmatprep.mubr.msk.bf16.mxu0 %vm16595_vm1, %v16594_v5 }
 0xb28   : > { %15208 = vmatprep.subr.bf16.mxu0 %v16594_v5 }
 0xb2b   : > { %15209 = vmatpush3.bf16.msra.mxu0 %v15800_v54 }
 0xb2c   : > { %15214 = vmatprep.subr.bf16.mxu0 %v16594_v5 }
 0xb2e   : > { %15211 = vmatmul.mubr.msk.bf16.vlgmr.msra.gmra.mrb[92].mxu0 %vm5061_vm5, %v7190_v21 }
 0xb2f   : > { %15215 = vmatpush3.bf16.msra.mxu0 %v15801_v8  ;;  %15218 = vmatprep.mubr.msk.bf16.mxu0 %vm16595_vm1, %v16594_v5 }
 0xb30   : > { %15216 = vmatprep.subr.bf16.mxu0 %v16594_v5 }
 0xb33   : > { %15217 = vmatpush3.bf16.msra.mxu0 %v15802_v17 }
 0xb34   : > { %14530 = vmatprep.subr.bf16.mxu0 %v15803_v56 }
 0xb36   : > { %15219 = vmatmul.mubr.msk.bf16.vlgmr.msra.gmra.mrb[96].mxu0 %vm5061_vm5, %v18404_v3  ;;  %v15809_v3 = vld [vmem:[%s19872_s16 + $0x58] sm:$0xff]   ;;  %vm7558_vm5 = vcmask 392192  }
 0xb37   : > { %14531 = vmatpush3.bf16.msra.mxu0 %v15804_v49 }
 0xb38   : > { %14532 = vmatprep.subr.bf16.mxu0 %v15805_v23 }
 0xb3b   : > { %14533 = vmatpush3.bf16.msra.mxu0 %v15806_v38 }
 0xb3c   : > { %14534 = vmatprep.subr.bf16.mxu0 %v15807_v29 }
 0xb3f   : > { %14535 = vmatpush3.bf16.msra.mxu0 %v15808_v11 }
 0xb40   : > { %14536 = vmatprep.subr.bf16.mxu0 %v15809_v3 }
 0xb43   : > { %14537 = vmatpush3.bf16.msra.mxu0 %v15810_v22 }
 0xb44   : > { %14538 = vmatprep.subr.bf16.mxu0 %v15811_v41 }
 0xb47   : > { %14539 = vmatpush3.bf16.msra.mxu0 %v15812_v60 }
 0xb48   : > { %14540 = vmatprep.subr.bf16.mxu0 %v15813_v20 }
 0xb4b   : > { %14541 = vmatpush3.bf16.msra.mxu0 %v15814_v45 }
 0xb4c   : > { %14542 = vmatprep.subr.bf16.mxu0 %v15815_v32 }
 0xb4f   : > { %14543 = vmatpush3.bf16.msra.mxu0 %v15816_v57 }
 0xb50   : > { %14544 = vmatprep.subr.bf16.mxu0 %v15817_v4 }
 0xb53   : > { %14545 = vmatpush3.bf16.msra.mxu0 %v15818_v62 }
 0xbbb   : > { %v6619_v0 = vpop.f32.mrb[60].mxu0 }
 0xbbc   : > { %v7333_v46 = vadd.f32 %v7326_v10, %v6619_v0  ;;  %v15148_v44 = vpop.f32.mrb[61].mxu0 }
 0xbbd   : > { %v6622_v9 = vpop.f32.mrb[62].mxu0 }
 0xbbe   : > { %v7335_v52 = vadd.f32 %v7326_v10, %v6622_v9  ;;  %v15149_v35 = vpop.f32.mrb[63].mxu0  ;;  %v7337_v2 = vmax.f32 %v7333_v46, 0.0 }
 0xbbf   : > { %v7330_v35 = vrot.slane %v7321_v42, %v18286_v61  ;;  %v15819_v42 = vld [vmem:[%s19875_s7] ss:$8 sps:$4 sm:$0xff]   ;;  %s19888_s7 = sld [smem:[#allocation34_spill]] }
 0xbc0   : > { %v7339_v27 = vmax.f32 %v7335_v52, 0.0 }
 0xbc2   : > { %v7341_v53 = vpack.c.bf16 %v7339_v27, %v7337_v2 }
 0xbc9   : > { %v6745_v18 = vpop.f32.mrb[64].mxu0 }
 0xbca   : > { %v15156_v58 = vpop.f32.mrb[65].mxu0 }
 0xbcb   : > { %v6748_v51 = vpop.f32.mrb[66].mxu0 }
 0xbcc   : > { %v15157_v25 = vpop.f32.mrb[67].mxu0 }
 0xbd1   : > { %v6801_v12 = vpop.f32.mrb[68].mxu0 }
 0xbd2   : > { %v6802_v26 = vadd.f32 %v6801_v12, %v6745_v18  ;;  %v15164_v31 = vpop.f32.mrb[69].mxu0 }
 0xbd3   : > { %v6804_v34 = vpop.f32.mrb[70].mxu0 }
 0xbd4   : > { %v6805_v47 = vadd.f32 %v6804_v34, %v6748_v51  ;;  %v15165_v13 = vpop.f32.mrb[71].mxu0 }
 0xbd5   : > { %v15821_v13 = vld [vmem:[%s19876_s1 + $0x4] ss:$8 sps:$4 sm:$0xff]  }
 0xbd6   : > { %7562 = vmatprep.subr.bf16.mxu1 %v15821_v13 }
 0xbd7   : > { %7563 = vmatpush1.bf16.msra.mxu1 %v15819_v42 }
 0xbd9   : > { %v6878_v16 = vpop.f32.mrb[72].mxu0 }
 0xbda   : > { %v6885_v30 = vadd.f32 %v6878_v16, %v6802_v26  ;;  %v15172_v19 = vpop.f32.mrb[73].mxu0  ;;  %v15822_v16 = vld [vmem:[%s19876_s1 + $0x10] ss:$8 sps:$4 sm:$0xff]  }
 0xbdb   : > { %v6881_v50 = vpop.f32.mrb[74].mxu0  ;;  %v15827_v19 = vld [vmem:[%s19876_s1 + $0x24] ss:$8 sps:$4 sm:$0xff]  }
 0xbdc   : > { %v6886_v1 = vadd.f32 %v6881_v50, %v6805_v47  ;;  %v15173_v48 = vpop.f32.mrb[75].mxu0  ;;  %v15828_v50 = vld [vmem:[%s19877_s11 + $0x30] ss:$8 sps:$4 sm:$0xff]   ;;  %s19889_s11 = smov 64  }
 0xbdd   : > { %v15833_v48 = vld [vmem:[%s19878_s2 + $0x44] ss:$8 sps:$4 sm:$0xff]  }
 0xbe1   : > { %v6951_v14 = vpop.f32.mrb[76].mxu0 }
 0xbe2   : > { %v6958_v37 = vadd.f32 %v6951_v14, %v6885_v30  ;;  %v15180_v54 = vpop.f32.mrb[77].mxu0  ;;  %v15824_v30 = vld [vmem:[%s19876_s1 + $0x14] ss:$8 sps:$4 sm:$0xff]   ;;  %v15831_v14 = vld [vmem:[%s19878_s2 + $0x40] ss:$8 sps:$4 sm:$0xff]  }
 0xbe3   : > { %v6954_v43 = vpop.f32.mrb[78].mxu0  ;;  %7564 = vmatprep.subr.bf16.mxu1 %v15824_v30  ;;  %v15834_v54 = vld [vmem:[%s19878_s2 + $0x50] ss:$8 sps:$4 sm:$0xff]  }
 0xbe4   : > { %v6959_v24 = vadd.f32 %v6954_v43, %v6886_v1  ;;  %v15181_v8 = vpop.f32.mrb[79].mxu0  ;;  %v15830_v1 = vld [vmem:[%s19878_s2 + $0x34] ss:$8 sps:$4 sm:$0xff]   ;;  %7565 = vmatpush1.bf16.msra.mxu1 %v15822_v16  ;;  %v15839_v43 = vld [vmem:[%s19878_s2 + $0x4] ss:$8 sps:$4 sm:$0xff]  }
 0xbe5   : > { %7566 = vmatprep.subr.bf16.mxu1 %v15827_v19  ;;  %7674 = vmatprep.subr.bf16.mxu0 %v15830_v1  ;;  %v13576_v8 = vld [vmem:[%s19879_s3] ss:$0 sm:$0xff]  ;;  %s19887_s3 = sld [smem:[#allocation35_spill]] }
 0xbe9   : > { %v7024_v21 = vpop.f32.mrb[80].mxu0 }
 0xbea   : > { %v7031_v17 = vadd.f32 %v7024_v21, %v6958_v37  ;;  %v15188_v56 = vpop.f32.mrb[81].mxu0  ;;  %v15836_v37 = vld [vmem:[%s19878_s2 + $0x54] ss:$8 sps:$4 sm:$0xff]  }
 0xbeb   : > { %v7027_v49 = vpop.f32.mrb[82].mxu0 }
 0xbec   : > { %v7032_v23 = vadd.f32 %v7027_v49, %v6959_v24  ;;  %v15189_v38 = vpop.f32.mrb[83].mxu0 }
 0xbf1   : > { %v7096_v29 = vpop.f32.mrb[84].mxu0 }
 0xbf2   : > { %v7103_v11 = vadd.f32 %v7096_v29, %v7031_v17  ;;  %v15196_v3 = vpop.f32.mrb[85].mxu0 }
 0xbf3   : > { %v7099_v22 = vpop.f32.mrb[86].mxu0 }
 0xbf4   : > { %v7104_v41 = vadd.f32 %v7099_v22, %v7032_v23  ;;  %v15197_v60 = vpop.f32.mrb[87].mxu0 }
 0xbf9   : > { %v7170_v20 = vpop.f32.mrb[88].mxu0 }
 0xbfa   : > { %v7177_v45 = vadd.f32 %v7170_v20, %v7103_v11  ;;  %v15204_v32 = vpop.f32.mrb[89].mxu0 }
 0xbfb   : > { %v7173_v57 = vpop.f32.mrb[90].mxu0 }
 0xbfc   : > { %v7178_v4 = vadd.f32 %v7173_v57, %v7104_v41  ;;  %v15205_v62 = vpop.f32.mrb[91].mxu0 }
 0xc01   : > { %v7240_v10 = vpop.f32.mrb[92].mxu0 }
 0xc02   : > { %v7247_v0 = vadd.f32 %v7240_v10, %v7177_v45  ;;  %v15212_v46 = vpop.f32.mrb[93].mxu0 }
 0xc03   : > { %v7243_v44 = vpop.f32.mrb[94].mxu0 }
 0xc04   : > { %v7248_v9 = vadd.f32 %v7243_v44, %v7178_v4  ;;  %v15213_v52 = vpop.f32.mrb[95].mxu0  ;;  %v15837_v44 = vld [vmem:[%s19878_s2] ss:$8 sps:$4 sm:$0xff]  }
 0xc09   : > { %v7312_v2 = vpop.f32.mrb[96].mxu0 }
 0xc0a   : > { %v7319_v27 = vadd.f32 %v7312_v2, %v7247_v0  ;;  %v15220_v18 = vpop.f32.mrb[97].mxu0 }
 0xc0b   : > { %v7315_v58 = vpop.f32.mrb[98].mxu0 }
 0xc0c   : > { %v7334_v51 = vadd.f32 %v7330_v35, %v7319_v27  ;;  %v7320_v25 = vadd.f32 %v7315_v58, %v7248_v9  ;;  %v15221_v12 = vpop.f32.mrb[99].mxu0 }
 0xc0d   : > { %v15840_v12 = vld [vmem:[%s19878_s2 + $0x10] ss:$8 sps:$4 sm:$0xff]  }
 0xc0e   : > { %v7336_v26 = vadd.f32 %v7330_v35, %v7320_v25  ;;  %v7338_v31 = vmax.f32 %v7334_v51, 0.0  ;;  %v15842_v35 = vld [vmem:[%s19878_s2 + $0x14] ss:$8 sps:$4 sm:$0xff]  }
 0xc10   : > { %v7340_v34 = vmax.f32 %v7336_v26, 0.0 }
 0xc12   : > { %v7342_v47 = vpack.c.bf16 %v7340_v34, %v7338_v31  ;;  %v15845_v34 = vld [vmem:[%s19878_s2 + $0x24] ss:$8 sps:$4 sm:$0xff]  }
 0xc14   : > { %7510 = vmatprep.mubr.bf16.mxu0 %v7342_v47 }
 0xc15   : > { %7511 = vmatmul.mubr.bf16.vlgmr.msra.gmra.mrb[100].mxu0 %v7341_v53  ;;  %v15825_v53 = vld [vmem:[%s19876_s1 + $0x20] ss:$8 sps:$4 sm:$0xff]  }
 0xc16   : > { %7706 = vmatprep.mubr.bf16.mxu0 %v19673_v7  ;;  %7675 = vmatpush1.bf16.msra.mxu0 %v15828_v50 }
 0xc17   : > { %7676 = vmatprep.subr.bf16.mxu0 %v15833_v48  ;;  %7567 = vmatpush1.bf16.msra.mxu1 %v15825_v53  ;;  %v15843_v53 = vld [vmem:[%s19878_s2 + $0x20] ss:$8 sps:$4 sm:$0xff]  }
 0xc1a   : > { %7677 = vmatpush1.bf16.msra.mxu0 %v15831_v14  ;;  %v15848_v14 = vld [vmem:[%s19878_s2 + $0x64] ss:$8 sps:$4 sm:$0xff]  }
 0xc1b   : > { %7678 = vmatprep.subr.bf16.mxu0 %v15836_v37 }
 0xc1e   : > { %7679 = vmatpush1.bf16.msra.mxu0 %v15834_v54 }
 0xc1f   : > { %7750 = vmatprep.subr.bf16.mxu0 %v15839_v43  ;;  %v15846_v43 = vld [vmem:[%s19878_s2 + $0x60] ss:$8 sps:$4 sm:$0xff]  }
 0xce8   : > { %v14546_v24 = vpop.f32.mrb[100].mxu0 }
 0xce9   : > { %v14547_v21 = vpop.f32.mrb[101].mxu0 }
 0xcea   : > { %v14548_v17 = vadd.f32 %v14547_v21, %v14546_v24  ;;  %v14549_v56 = vpop.f32.mrb[102].mxu0  ;;  %v15851_v24 = vld [vmem:[%s19878_s2 + $0x74] ss:$8 sps:$4 sm:$0xff]   ;;  %v15849_v21 = vld [vmem:[%s19878_s2 + $0x70] ss:$8 sps:$4 sm:$0xff]  }
 0xceb   : > { %v14550_v49 = vpop.f32.mrb[103].mxu0 }
 0xcec   : > { %v7513_v23 = vadd.f32 %v14548_v17, %v13576_v8  ;;  %v14551_v38 = vadd.f32 %v14550_v49, %v14549_v56  ;;  %v15854_v17 = vld [vmem:[%s19878_s2 + $0x84] ss:$8 sps:$4 sm:$0xff]  }
 0xcee   : > { %v7516_v29 = vadd.f32 %v14551_v38, %v13576_v8  ;;  %v7519_v11 = vmax.f32 %v7513_v23, 0.0  ;;  %v15852_v23 = vld [vmem:[%s19878_s2 + $0x80] ss:$8 sps:$4 sm:$0xff]   ;;  %v15857_v38 = vld [vmem:[%s19878_s2 + $0x94] ss:$8 sps:$4 sm:$0xff]  }
 0xcf0   : > { %v7520_v3 = vmax.f32 %v7516_v29, 0.0 }
 0xcf2   : > { %v7521_v22 = vpack.c.bf16 %v7520_v3, %v7519_v11  ;;  %v15855_v3 = vld [vmem:[%s19878_s2 + $0x90] ss:$8 sps:$4 sm:$0xff]  }
 0xcf4   : > { %v7605_v41 = vshrl.u32 %v7521_v22, 16  ;;  %v7608_v60 = vshll.u32 %v7521_v22, 16  ;;  %13599 = vmatmul.mubr.msk.bf16.vlgmr.msra.gmra.mrb[48].mxu1 %vm7558_vm5, %v7521_v22  ;;  %v15860_v22 = vld [vmem:[%s19878_s2 + $0xa4] ss:$8 sps:$4 sm:$0xff]  }
 0xcf6   : > { %v7607_v20 = vrot.slane %v7605_v41, 5  ;;  %v7610_v45 = vrot.slane %v7608_v60, 6  ;;  %v15858_v60 = vld [vmem:[%s19878_s2 + $0xa0] ss:$8 sps:$4 sm:$0xff]  }
 0xcf8   : > { %v7611_v32 = vor.u32 %v7610_v45, %v7607_v20  ;;  %v15863_v20 = vld [vmem:[%s19878_s2 + $0xb4] ss:$8 sps:$4 sm:$0xff]  }
 0xcfa   : > { %v18554_v57 = vsel %vm18340_vm4, 0, %v7611_v32  ;;  %v18558_v4 = vsel %vm18340_vm4, %v7611_v32, 0 }
 0xcfb   : > { %v18561_v62 = vshll.u32 %v18554_v57, 16  ;;  %v18564_v10 = vshll.u32 %v18558_v4, 16  ;;  %v18567_v0 = vshrl.u32 %v18554_v57, 16  ;;  %v7991_v2 = vshrl.u32 %v18558_v4, 16 }
 0xcfc   : > { %v8171_v18 = vsel %vm18474_vm12, %v18554_v57, 0  ;;  %v8172_v58 = vsel %vm18478_vm14, %v18558_v4, 0  ;;  %v8359_v16 = vsel %vm18376_vm7, %v18554_v57, 0  ;;  %v8360_v19 = vsel %vm18376_vm7, %v18558_v4, 0 }
 0xcfd   : > { %v7634_v46 = vrot.slane %v18561_v62, 1  ;;  %v7639_v52 = vrot.slane %v18564_v10, 1  ;;  %v8272_v51 = vrot.slane %v18567_v0, 4  ;;  %v8273_v25 = vrot.slane %v18561_v62, 5 }
 0xcfe   : > { %v8182_v26 = vrot.slane %v8171_v18, 4  ;;  %v8183_v31 = vrot.slane %v8172_v58, 4  ;;  %v8275_v42 = vrot.slane %v7991_v2, 4  ;;  %v8276_v13 = vrot.slane %v18564_v10, 5  ;;  %v15867_v58 = vld [vmem:[%s19878_s2 + $0xd0] ss:$8 sps:$4 sm:$0xff]  }
 0xcff   : > { %v7635_v9 = vor.u32 %v7634_v46, %v18567_v0  ;;  %v8274_v47 = vor.u32 %v8273_v25, %v8272_v51  ;;  %v8370_v50 = vrot.slane %v8359_v16, 5  ;;  %v8371_v48 = vrot.slane %v8360_v19, 5  ;;  %v15861_v46 = vld [vmem:[%s19878_s2 + $0xb0] ss:$8 sps:$4 sm:$0xff]   ;;  %v15872_v51 = vld [vmem:[%s19878_s2 + $0xe4] ss:$8 sps:$4 sm:$0xff]  }
 0xd00   : > { %v18595_v30 = vsel %vm19881_vm10, %v8182_v26, %v8183_v31  ;;  %v8277_v1 = vor.u32 %v8276_v13, %v8275_v42  ;;  %v7615_v8 = vsel %vm6673_vm6, %v18554_v57, 0  ;;  %v7793_v56 = vsel %vm18397_vm3, %v18554_v57, 0  ;;  %v15873_v16 = vld [vmem:[%s19878_s2 + $0xf0] ss:$8 sps:$4 sm:$0xff]  }
 0xd01   : > { %v7640_v27 = vsel %vm19880_vm0, %v7635_v9, %v7639_v52  ;;  %v18606_v54 = vsel %vm19883_vm13, %v8370_v50, %v8371_v48  ;;  %v7794_v49 = vsel %vm18397_vm3, %v18558_v4, 0  ;;  %v7804_v29 = vrot.slane %v7793_v56, 1  ;;  %v15884_v48 = vld [vmem:[%s19878_s2 + $0x124] ss:$8 sps:$4 sm:$0xff]   ;;  %v15891_v56 = vld [vmem:[%s19878_s2 + $0x150] ss:$8 sps:$4 sm:$0xff]  }
 0xd02   : > { %13612 = vmatmul.mubr.msk.bf16.vlgmr.msra.gmra.mrb[104].mxu0 %vm7558_vm5, %v7640_v27  ;;  %v18603_v37 = vsel %vm19882_vm15, %v8274_v47, %v8277_v1  ;;  %v7805_v11 = vrot.slane %v7794_v49, 1  ;;  %v7887_v45 = vsel %vm18421_vm8, %v18554_v57, 0  ;;  %v7888_v32 = vsel %vm18421_vm8, %v18558_v4, 0  ;;  %v15869_v27 = vld [vmem:[%s19878_s2 + $0xd4] ss:$8 sps:$4 sm:$0xff]  }
 0xd03   : > { %7751 = vmatpush1.bf16.msra.mxu0 %v15837_v44  ;;  %7782 = vmatprep.mubr.bf16.mxu0 %v19673_v7  ;;  %v15866_v44 = vld [vmem:[%s19878_s2 + $0xc4] ss:$8 sps:$4 sm:$0xff]   ;;  %v7898_v9 = vrot.slane %v7887_v45, 2  ;;  %v7899_v52 = vrot.slane %v7888_v32, 2  ;;  %vm19885_vm0 = vcmask 1045504   ;;  %v7988_v25 = vrot.slane %v18567_v0, 2 }
 0xd04   : > { %7752 = vmatprep.subr.bf16.mxu0 %v15842_v35  ;;  %v7806_v41 = vsel %vm19884_vm11, %v7804_v29, %v7805_v11  ;;  %v15864_v35 = vld [vmem:[%s19878_s2 + $0xc0] ss:$8 sps:$4 sm:$0xff]   ;;  %v7993_v26 = vrot.slane %v7991_v2, 2  ;;  %v7994_v31 = vrot.slane %v18564_v10, 3  ;;  %v15875_v47 = vld [vmem:[%s19878_s2 + $0xf4] ss:$8 sps:$4 sm:$0xff]  }
 0xd05   : > { %v7900_v18 = vsel %vm19885_vm0, %v7898_v9, %v7899_v52  ;;  %v15878_v0 = vld [vmem:[%s19878_s2 + $0x104] ss:$8 sps:$4 sm:$0xff]   ;;  %v15876_v10 = vld [vmem:[%s19878_s2 + $0x100] ss:$8 sps:$4 sm:$0xff]   ;;  %v15881_v2 = vld [vmem:[%s19878_s2 + $0x114] ss:$8 sps:$4 sm:$0xff]  }
 0xd06   : > { %v7995_v13 = vor.u32 %v7994_v31, %v7993_v26  ;;  %v8077_v19 = vsel %vm18452_vm2, %v18554_v57, 0  ;;  %v8078_v50 = vsel %vm18452_vm2, %v18558_v4, 0  ;;  %v15879_v1 = vld [vmem:[%s19878_s2 + $0x110] ss:$8 sps:$4 sm:$0xff]   ;;  %vm19886_vm10 = vcmask 1044480   ;;  %v15911_v45 = vld [vmem:[%s19887_s3 + $0x48] sm:$0xff]  }
 0xd07   : > { %7753 = vmatpush1.bf16.msra.mxu0 %v15840_v12  ;;  %v7989_v12 = vrot.slane %v18561_v62, 3  ;;  %v15885_v4 = vld [vmem:[%s19878_s2 + $0x130] ss:$8 sps:$4 sm:$0xff]   ;;  %v15896_v49 = vld [vmem:[%s19878_s2 + $0x164] ss:$8 sps:$4 sm:$0xff]   ;;  %vm19890_vm15 = vcmask 523264  }
 0xd08   : > { %7754 = vmatprep.subr.bf16.mxu0 %v15845_v34  ;;  %v15870_v34 = vld [vmem:[%s19878_s2 + $0xe0] ss:$8 sps:$4 sm:$0xff]   ;;  %v15897_v29 = vld [vmem:[%s19878_s2 + $0x170] ss:$8 sps:$4 sm:$0xff]   ;;  %v15902_v11 = vld [vmem:[%s19878_s2 + $0x184] ss:$8 sps:$4 sm:$0xff]  }
 0xd09   : > { %v7990_v42 = vor.u32 %v7989_v12, %v7988_v25  ;;  %v15912_v32 = vld [vmem:[%s19887_s3 + $0x8] sm:$0xff]   ;;  %v15914_v9 = vld [vmem:[%s19887_s3 + $0x10] sm:$0xff]   ;;  %v15918_v31 = vld [vmem:[%s19887_s3 + $0x20] sm:$0xff]  }
 0xd0a   : > { %vm19891_vm13 = vmmov %vm19890_vm15 }
 0xd0b   : > { %7755 = vmatpush1.bf16.msra.mxu0 %v15843_v53  ;;  %v7996_v62 = vsel %vm6965_vm9, %v7990_v42, %v7995_v13  ;;  %v8088_v53 = vrot.slane %v8077_v19, 3  ;;  %v15919_v42 = vld [vmem:[%s19887_s3 + $0x68] sm:$0xff]   ;;  %vm19892_vm11 = vmmov %vm19891_vm13 }
 0xd0c   : > { %7840 = vmatprep.subr.bf16.mxu0 %v15848_v14  ;;  %v8089_v14 = vrot.slane %v8078_v50, 3  ;;  %vm19893_vm0 = vmmov %vm19892_vm11 }
 0xd0e   : > { %13619 = vmatmul.mubr.msk.bf16.vlgmr.msra.gmra.mrb[104].mxu0 %vm7558_vm5, %v7615_v8  ;;  %v8090_v57 = vsel %vm19886_vm10, %v8088_v53, %v8089_v14  ;;  %v15890_v8 = vld [vmem:[%s19878_s2 + $0x144] ss:$8 sps:$4 sm:$0xff]   ;;  %vm19897_vm10 = vsmask.f32 7424 }
 0xd0f   : > { %7841 = vmatpush1.bf16.msra.mxu0 %v15846_v43  ;;  %7872 = vmatprep.mubr.bf16.mxu0 %v19673_v7  ;;  %v15882_v43 = vld [vmem:[%s19878_s2 + $0x120] ss:$8 sps:$4 sm:$0xff]  }
 0xd10   : > { %7842 = vmatprep.subr.bf16.mxu0 %v15851_v24  ;;  %v15887_v24 = vld [vmem:[%s19878_s2 + $0x134] ss:$8 sps:$4 sm:$0xff]  }
 0xd13   : > { %7843 = vmatpush1.bf16.msra.mxu0 %v15849_v21  ;;  %v15888_v21 = vld [vmem:[%s19878_s2 + $0x140] ss:$8 sps:$4 sm:$0xff]  }
 0xd14   : > { %7844 = vmatprep.subr.bf16.mxu0 %v15854_v17  ;;  %v15893_v17 = vld [vmem:[%s19878_s2 + $0x154] ss:$8 sps:$4 sm:$0xff]  }
 0xd17   : > { %7845 = vmatpush1.bf16.msra.mxu0 %v15852_v23  ;;  %v15894_v23 = vld [vmem:[%s19878_s2 + $0x160] ss:$8 sps:$4 sm:$0xff]  }
 0xd18   : > { %7934 = vmatprep.subr.bf16.mxu0 %v15857_v38  ;;  %v15899_v38 = vld [vmem:[%s19878_s2 + $0x174] ss:$8 sps:$4 sm:$0xff]  }
 0xd1a   : > { %13632 = vmatmul.mubr.msk.bf16.vlgmr.msra.gmra.mrb[104].mxu0 %vm7558_vm5, %v7806_v41  ;;  %v15908_v41 = vld [vmem:[%s19878_s2 + $0x1a4] ss:$8 sps:$4 sm:$0xff]  }
 0xd1b   : > { %7935 = vmatpush1.bf16.msra.mxu0 %v15855_v3  ;;  %7966 = vmatprep.mubr.bf16.mxu0 %v19673_v7  ;;  %v15900_v3 = vld [vmem:[%s19878_s2 + $0x180] ss:$8 sps:$4 sm:$0xff]  }
 0xd1c   : > { %7936 = vmatprep.subr.bf16.mxu0 %v15860_v22  ;;  %v15903_v22 = vld [vmem:[%s19878_s2 + $0x190] ss:$8 sps:$4 sm:$0xff]  }
 0xd1f   : > { %7937 = vmatpush1.bf16.msra.mxu0 %v15858_v60  ;;  %v15906_v60 = vld [vmem:[%s19878_s2 + $0x1a0] ss:$8 sps:$4 sm:$0xff]  }
 0xd20   : > { %7938 = vmatprep.subr.bf16.mxu0 %v15863_v20  ;;  %v15909_v20 = vld [vmem:[%s19887_s3 + $0x40] sm:$0xff]  }
 0xd21   : > { %14552 = vmatprep.subr.bf16.mxu1 %v15909_v20 }
 0xd23   : > { %7939 = vmatpush1.bf16.msra.mxu0 %v15861_v46  ;;  %v15913_v46 = vld [vmem:[%s19887_s3 + $0x50] sm:$0xff]  }
 0xd24   : > { %8030 = vmatprep.subr.bf16.mxu0 %v15866_v44  ;;  %v18703_v44 = vld [vmem:[%s19888_s7] sm:$0x7]  ;;  %s19894_s7 = sld [smem:[#allocation37_spill]] }
 0xd25   : > { %v8478_v52 = vrot.slane %v18703_v44, %v18242_v28  ;;  %v8482_v53 = vrot.slane %v18703_v44, %v18286_v61 }
 0xd26   : > { %13645 = vmatmul.mubr.msk.bf16.vlgmr.msra.gmra.mrb[104].mxu0 %vm7558_vm5, %v7900_v18 }
 0xd27   : > { %8031 = vmatpush1.bf16.msra.mxu0 %v15864_v35  ;;  %8062 = vmatprep.mubr.bf16.mxu0 %v19673_v7 }
 0xd28   : > { %8032 = vmatprep.subr.bf16.mxu0 %v15869_v27  ;;  %v15916_v27 = vld [vmem:[%s19887_s3 + $0x18] sm:$0xff]  }
 0xd2a   : > { %s19895_s1 = smov %s19894_s7 }
 0xd2b   : > { %8033 = vmatpush1.bf16.msra.mxu0 %v15867_v58 }
 0xd2c   : > { %8034 = vmatprep.subr.bf16.mxu0 %v15872_v51  ;;  %v15917_v51 = vld [vmem:[%s19887_s3 + $0x60] sm:$0xff]  }
 0xd2f   : > { %8035 = vmatpush1.bf16.msra.mxu0 %v15870_v34 }
 0xd30   : > { %8124 = vmatprep.subr.bf16.mxu0 %v15875_v47 }
 0xd32   : > { %13658 = vmatmul.mubr.msk.bf16.vlgmr.msra.gmra.mrb[104].mxu0 %vm7558_vm5, %v7996_v62  ;;  %v15922_v62 = vld [vmem:[%s19887_s3 + $0x30] sm:$0xff]  }
 0xd33   : > { %8125 = vmatpush1.bf16.msra.mxu0 %v15873_v16  ;;  %8156 = vmatprep.mubr.bf16.mxu0 %v19673_v7  ;;  %v15920_v16 = vld [vmem:[%s19887_s3 + $0x28] sm:$0xff]  }
 0xd34   : > { %8126 = vmatprep.subr.bf16.mxu0 %v15878_v0  ;;  %v15921_v0 = vld [vmem:[%s19887_s3 + $0x70] sm:$0xff]  }
 0xd37   : > { %8127 = vmatpush1.bf16.msra.mxu0 %v15876_v10  ;;  %v15923_v10 = vld [vmem:[%s19887_s3 + $0x78] sm:$0xff]  }
 0xd38   : > { %8128 = vmatprep.subr.bf16.mxu0 %v15881_v2  ;;  %v15924_v2 = vld [vmem:[%s19887_s3 + $0x38] sm:$0xff]  }
 0xd3b   : > { %8129 = vmatpush1.bf16.msra.mxu0 %v15879_v1 }
 0xd3c   : > { %8218 = vmatprep.subr.bf16.mxu0 %v15884_v48 }
 0xd3e   : > { %13671 = vmatmul.mubr.msk.bf16.vlgmr.msra.gmra.mrb[104].mxu0 %vm7558_vm5, %v8090_v57 }
 0xd3f   : > { %8219 = vmatpush1.bf16.msra.mxu0 %v15882_v43  ;;  %8250 = vmatprep.mubr.bf16.mxu0 %v19673_v7 }
 0xd40   : > { %8220 = vmatprep.subr.bf16.mxu0 %v15887_v24 }
 0xd43   : > { %8221 = vmatpush1.bf16.msra.mxu0 %v15885_v4 }
 0xd44   : > { %8222 = vmatprep.subr.bf16.mxu0 %v15890_v8 }
 0xd47   : > { %8223 = vmatpush1.bf16.msra.mxu0 %v15888_v21 }
 0xd48   : > { %8312 = vmatprep.subr.bf16.mxu0 %v15893_v17 }
 0xd4a   : > { %13684 = vmatmul.mubr.msk.bf16.vlgmr.msra.gmra.mrb[104].mxu0 %vm7558_vm5, %v18595_v30  ;;  %v15905_v30 = vld [vmem:[%s19878_s2 + $0x194] ss:$8 sps:$4 sm:$0xff]   ;;  %s19896_s2 = sld [smem:[#allocation38_spill]] }
 0xd4b   : > { %8313 = vmatpush1.bf16.msra.mxu0 %v15891_v56  ;;  %8344 = vmatprep.mubr.bf16.mxu0 %v19673_v7 }
 0xd4c   : > { %8314 = vmatprep.subr.bf16.mxu0 %v15896_v49  ;;  %v15925_v49 = vld [vmem:[%s19887_s3 + $0x80] sm:$0xff]  }
 0xd4f   : > { %8315 = vmatpush1.bf16.msra.mxu0 %v15894_v23  ;;  %v15926_v23 = vld [vmem:[%s19887_s3 + $0x88] sm:$0xff]  }
 0xd50   : > { %8316 = vmatprep.subr.bf16.mxu0 %v15899_v38  ;;  %v15927_v38 = vld [vmem:[%s19887_s3 + $0x90] sm:$0xff]  }
 0xd53   : > { %8317 = vmatpush1.bf16.msra.mxu0 %v15897_v29  ;;  %v15928_v29 = vld [vmem:[%s19887_s3 + $0x98] sm:$0xff]  }
 0xd54   : > { %8406 = vmatprep.subr.bf16.mxu0 %v15902_v11  ;;  %v15929_v11 = vld [vmem:[%s19887_s3 + $0xa0] sm:$0xff]  }
 0xd56   : > { %13697 = vmatmul.mubr.msk.bf16.vlgmr.msra.gmra.mrb[104].mxu0 %vm7558_vm5, %v18603_v37  ;;  %v15910_v37 = vld [vmem:[%s19887_s3] sm:$0xff]  }
 0xd57   : > { %8407 = vmatpush1.bf16.msra.mxu0 %v15900_v3  ;;  %8438 = vmatprep.mubr.bf16.mxu0 %v19673_v7  ;;  %v18739_v3 = vsub.s32 2, %v19812_v33 }
 0xd58   : > { %8408 = vmatprep.subr.bf16.mxu0 %v15905_v30  ;;  %14553 = vmatpush3.bf16.msra.mxu1 %v15910_v37 }
 0xd59   : > { %14554 = vmatprep.subr.bf16.mxu1 %v15911_v45  ;;  %v8486_v20 = vrot.slane %v18703_v44, %v18739_v3  ;;  %v15931_v45 = vld [vmem:[%s19887_s3 + $0xb0] sm:$0xff]  }
 0xd5b   : > { %8409 = vmatpush1.bf16.msra.mxu0 %v15903_v22  ;;  %v15930_v22 = vld [vmem:[%s19887_s3 + $0xa8] sm:$0xff]  }
 0xd5c   : > { %8410 = vmatprep.subr.bf16.mxu0 %v15908_v41  ;;  %14555 = vmatpush3.bf16.msra.mxu1 %v15912_v32 }
 0xd5d   : > { %14556 = vmatprep.subr.bf16.mxu1 %v15913_v46 }
 0xd5f   : > { %8411 = vmatpush1.bf16.msra.mxu0 %v15906_v60 }
 0xd60   : > { %14557 = vmatpush3.bf16.msra.mxu1 %v15914_v9  ;;  %v15932_v9 = vld [vmem:[%s19887_s3 + $0xb8] sm:$0xff]  }
 0xd62   : > { %13710 = vmatmul.mubr.msk.bf16.vlgmr.msra.gmra.mrb[104].mxu0 %vm7558_vm5, %v18606_v54  ;;  %v15915_v54 = vld [vmem:[%s19887_s3 + $0x58] sm:$0xff]   ;;  %s19906_s3 = sld [smem:[#allocation39_spill]] }
 0xd63   : > { %14558 = vmatprep.subr.bf16.mxu1 %v15915_v54 }
 0xd64   : > { %14559 = vmatpush3.bf16.msra.mxu1 %v15916_v27  ;;  %v15935_v27 = vld [vmem:[%s19895_s1 + $0x4] ss:$8 sps:$4 sm:$0xff]  }
 0xd65   : > { %14560 = vmatprep.subr.bf16.mxu1 %v15917_v51  ;;  %v15939_v51 = vld [vmem:[%s19895_s1 + $0x20] ss:$8 sps:$4 sm:$0xff]  }
 0xd68   : > { %14561 = vmatpush3.bf16.msra.mxu1 %v15918_v31 }
 0xd69   : > { %14562 = vmatprep.subr.bf16.mxu1 %v15919_v42 }
 0xd6c   : > { %14563 = vmatpush3.bf16.msra.mxu1 %v15920_v16  ;;  %v13711_v16 = vld [vmem:[#allocation2] ss:$0 sm:$0xff] }
 0xd6d   : > { %14564 = vmatprep.subr.bf16.mxu1 %v15921_v0 }
 0xd70   : > { %14565 = vmatpush3.bf16.msra.mxu1 %v15922_v62 }
 0xd71   : > { %14566 = vmatprep.subr.bf16.mxu1 %v15923_v10 }
 0xd74   : > { %14567 = vmatpush3.bf16.msra.mxu1 %v15924_v2 }
 0xd75   : > { %15222 = vmatprep.subr.bf16.mxu1 %v16594_v5 }
 0xdc7   : > { %v7596_v35 = vpop.f32.mrb[48].mxu1 }
 0xdc8   : > { %v8490_v18 = vadd.f32 %v8478_v52, %v7596_v35  ;;  %v7598_v58 = vpop.f32.mrb[49].mxu1  ;;  %v15933_v35 = vld [vmem:[%s19894_s7] ss:$8 sps:$4 sm:$0xff]   ;;  %s19904_s7 = sld [smem:[#allocation40_spill]] }
 0xdc9   : > { %v7600_v25 = vpop.f32.mrb[50].mxu1 }
 0xdca   : > { %v8493_v12 = vadd.f32 %v8478_v52, %v7600_v25  ;;  %v7602_v26 = vpop.f32.mrb[51].mxu1  ;;  %v8496_v34 = vmax.f32 %v8490_v18, 0.0  ;;  %v15936_v18 = vld [vmem:[%s19895_s1 + $0x10] ss:$8 sps:$4 sm:$0xff]   ;;  %v15941_v25 = vld [vmem:[%s19895_s1 + $0x24] ss:$8 sps:$4 sm:$0xff]  }
 0xdcc   : > { %v8499_v47 = vmax.f32 %v8493_v12, 0.0  ;;  %v15944_v12 = vld [vmem:[%s19896_s2 + $0x34] ss:$8 sps:$4 sm:$0xff]  }
 0xdce   : > { %v8502_v13 = vpack.c.bf16 %v8499_v47, %v8496_v34 }
 0xe35   : > { %v8440_v19 = vpop.f32.mrb[104].mxu0 }
 0xe36   : > { %8457 = vrot.lane.b32.xlu0 %v8440_v19, %s19889_s11  ;;  %v8442_v50 = vpop.f32.mrb[105].mxu0 }
 0xe37   : > { %v8444_v1 = vpop.f32.mrb[106].mxu0 }
 0xe38   : > { %8461 = vrot.lane.b32.xlu1 %v8444_v1, %s19889_s11  ;;  %v8446_v48 = vpop.f32.mrb[107].mxu0 }
 0xe3a   : > { %8459 = vrot.lane.b32.xlu0 %v8442_v50, %s19889_s11 }
 0xe3c   : > { %8463 = vrot.lane.b32.xlu1 %v8446_v48, %s19889_s11 }
 0xea8   : > { %v8458_v14 = vpop.permute.xlu0 %8457 }
 0xea9   : > { %v8471_v43 = vsel %vm19890_vm15, %v7598_v58, %v8458_v14  ;;  %v15938_v58 = vld [vmem:[%s19895_s1 + $0x14] ss:$8 sps:$4 sm:$0xff]   ;;  %vm19898_vm15 = vcmask 1043456   ;;  %s19905_s1 = smov %s19904_s7 }
 0xeaa   : > { %v8491_v24 = vadd.f32 %v8482_v53, %v8471_v43  ;;  %v8462_v57 = vpop.permute.xlu1 %8461  ;;  %v15942_v43 = vld [vmem:[%s19896_s2 + $0x30] ss:$8 sps:$4 sm:$0xff]  }
 0xeab   : > { %v8472_v4 = vsel %vm19891_vm13, %v7602_v26, %v8462_v57  ;;  %vm19899_vm13 = vsmask.f32 3328 }
 0xeac   : > { %v8494_v8 = vadd.f32 %v8482_v53, %v8472_v4  ;;  %v8497_v21 = vmax.f32 %v8491_v24, 0.0  ;;  %v8460_v41 = vpop.permute.xlu0 %8459 }
 0xead   : > { %v8465_v37 = vsel %vm19893_vm0, %v8458_v14, %v8460_v41  ;;  %vm19901_vm0 = vcmask 1046528  }
 0xeae   : > { %v8500_v17 = vmax.f32 %v8494_v8, 0.0  ;;  %v8464_v30 = vpop.permute.xlu1 %8463  ;;  %v8492_v46 = vadd.f32 %v8486_v20, %v8465_v37  ;;  %v15951_v37 = vld [vmem:[%s19896_s2] ss:$8 sps:$4 sm:$0xff]  }
 0xeaf   : > { %v8466_v60 = vsel %vm19892_vm11, %v8462_v57, %v8464_v30  ;;  %v15947_v57 = vld [vmem:[%s19896_s2 + $0x44] ss:$8 sps:$4 sm:$0xff]   ;;  %vm19900_vm11 = vcmask 1042432  }
 0xeb0   : > { %v8503_v56 = vpack.c.bf16 %v8500_v17, %v8497_v21  ;;  %v8495_v32 = vadd.f32 %v8486_v20, %v8466_v60  ;;  %v8498_v44 = vmax.f32 %v8492_v46, 0.0  ;;  %v15945_v21 = vld [vmem:[%s19896_s2 + $0x40] ss:$8 sps:$4 sm:$0xff]   ;;  %v15953_v30 = vld [vmem:[%s19896_s2 + $0x4] ss:$8 sps:$4 sm:$0xff]  }
 0xeb1   : > { %v15956_v46 = vld [vmem:[%s19896_s2 + $0x14] ss:$8 sps:$4 sm:$0xff]  }
 0xeb2   : > { %8736 = vmatprep.mubr.bf16.mxu1 %v8503_v56  ;;  %v8501_v52 = vmax.f32 %v8495_v32, 0.0 }
 0xeb3   : > { %8737 = vmatmul.mubr.bf16.vlgmr.msra.gmra.mrb[52].mxu1 %v8502_v13 }
 0xeb4   : > { %15223 = vmatpush3.bf16.msra.mxu1 %v15925_v49  ;;  %15238 = vmatprep.mubr.msk.bf16.mxu1 %vm16595_vm1, %v16594_v5  ;;  %v8504_v54 = vpack.c.bf16 %v8501_v52, %v8498_v44  ;;  %v15950_v49 = vld [vmem:[%s19896_s2 + $0x54] ss:$8 sps:$4 sm:$0xff]  }
 0xeb5   : > { %15224 = vmatprep.subr.bf16.mxu1 %v16594_v5 }
 0xeb8   : > { %15225 = vmatpush3.bf16.msra.mxu1 %v15926_v23 }
 0xeb9   : > { %15226 = vmatprep.subr.bf16.mxu1 %v16594_v5 }
 0xebc   : > { %15227 = vmatpush3.bf16.msra.mxu1 %v15927_v38  ;;  %v15948_v38 = vld [vmem:[%s19896_s2 + $0x50] ss:$8 sps:$4 sm:$0xff]  }
 0xebd   : > { %15228 = vmatprep.subr.bf16.mxu1 %v16594_v5 }
 0xec0   : > { %15229 = vmatpush3.bf16.msra.mxu1 %v15928_v29 }
 0xec1   : > { %15230 = vmatprep.subr.bf16.mxu1 %v16594_v5 }
 0xec4   : > { %15231 = vmatpush3.bf16.msra.mxu1 %v15929_v11 }
 0xec5   : > { %15232 = vmatprep.subr.bf16.mxu1 %v16594_v5 }
 0xec8   : > { %15233 = vmatpush3.bf16.msra.mxu1 %v15930_v22 }
 0xec9   : > { %15234 = vmatprep.subr.bf16.mxu1 %v16594_v5 }
 0xecc   : > { %15235 = vmatpush3.bf16.msra.mxu1 %v15931_v45 }
 0xecd   : > { %15236 = vmatprep.subr.bf16.mxu1 %v16594_v5 }
 0xed0   : > { %15237 = vmatpush3.bf16.msra.mxu1 %v15932_v9 }
 0xed1   : > { %8828 = vmatprep.subr.bf16.mxu1 %v15935_v27 }
 0xed3   : > { %15239 = vmatmul.mubr.bf16.vlgmr.msra.gmra.mrb[56].mxu1 %v8504_v54 }
 0xed4   : > { %8860 = vmatprep.mubr.bf16.mxu1 %v19673_v7  ;;  %8829 = vmatpush1.bf16.msra.mxu1 %v15933_v35 }
 0xed5   : > { %8830 = vmatprep.subr.bf16.mxu1 %v15938_v58 }
 0xed8   : > { %8831 = vmatpush1.bf16.msra.mxu1 %v15936_v18  ;;  %v15954_v18 = vld [vmem:[%s19896_s2 + $0x10] ss:$8 sps:$4 sm:$0xff]  }
 0xed9   : > { %8832 = vmatprep.subr.bf16.mxu1 %v15941_v25  ;;  %v15959_v25 = vld [vmem:[%s19896_s2 + $0x24] ss:$8 sps:$4 sm:$0xff]  }
 0xedc   : > { %8833 = vmatpush1.bf16.msra.mxu1 %v15939_v51 }
 0xedd   : > { %8940 = vmatprep.subr.bf16.mxu1 %v15944_v12 }
 0xf86   : > { %v14568_v26 = vpop.f32.mrb[52].mxu1 }
 0xf87   : > { %v14569_v31 = vpop.f32.mrb[53].mxu1 }
 0xf88   : > { %v14570_v34 = vadd.f32 %v14569_v31, %v14568_v26  ;;  %v14571_v47 = vpop.f32.mrb[54].mxu1 }
 0xf89   : > { %v14572_v42 = vpop.f32.mrb[55].mxu1 }
 0xf8a   : > { %v14573_v13 = vadd.f32 %v14572_v42, %v14571_v47  ;;  %v8739_v0 = vadd.f32 %v14570_v34, %v13711_v16 }
 0xf8c   : > { %v8742_v19 = vadd.f32 %v14573_v13, %v13711_v16 }
 0xfa6   : > { %v8779_v62 = vpop.f32.mrb[56].mxu1 }
 0xfa7   : > { %v8780_v10 = vadd.f32 %v8779_v62, %v8739_v0  ;;  %v15240_v2 = vpop.f32.mrb[57].mxu1  ;;  %v15957_v62 = vld [vmem:[%s19896_s2 + $0x20] ss:$8 sps:$4 sm:$0xff]  }
 0xfa8   : > { %v8782_v50 = vpop.f32.mrb[58].mxu1 }
 0xfa9   : > { %v8783_v1 = vadd.f32 %v8782_v50, %v8742_v19  ;;  %v15241_v48 = vpop.f32.mrb[59].mxu1  ;;  %v8786_v53 = vmax.f32 %v8780_v10, 0.0  ;;  %v15962_v10 = vld [vmem:[%s19896_s2 + $0x64] ss:$8 sps:$4 sm:$0xff]   ;;  %v15960_v50 = vld [vmem:[%s19896_s2 + $0x60] ss:$8 sps:$4 sm:$0xff]  }
 0xfab   : > { %v8787_v14 = vmax.f32 %v8783_v1, 0.0  ;;  %v15965_v1 = vld [vmem:[%s19896_s2 + $0x74] ss:$8 sps:$4 sm:$0xff]  }
 0xfad   : > { %v8788_v24 = vpack.c.bf16 %v8787_v14, %v8786_v53  ;;  %v15963_v53 = vld [vmem:[%s19896_s2 + $0x70] ss:$8 sps:$4 sm:$0xff]   ;;  %v15968_v14 = vld [vmem:[%s19896_s2 + $0x84] ss:$8 sps:$4 sm:$0xff]  }
 0xfaf   : > { %v8871_v4 = vshrl.u32 %v8788_v24, 16  ;;  %v8874_v8 = vshll.u32 %v8788_v24, 16  ;;  %13742 = vmatmul.mubr.msk.bf16.vlgmr.msra.gmra.mrb[60].mxu1 %vm7558_vm5, %v8788_v24 }
 0xfb0   : > { %8941 = vmatpush1.bf16.msra.mxu1 %v15942_v43  ;;  %8972 = vmatprep.mubr.bf16.mxu1 %v19673_v7 }
 0xfb1   : > { %v8873_v17 = vrot.slane %v8871_v4, 5  ;;  %v8876_v56 = vrot.slane %v8874_v8, 6  ;;  %8942 = vmatprep.subr.bf16.mxu1 %v15947_v57  ;;  %v15966_v57 = vld [vmem:[%s19896_s2 + $0x80] ss:$8 sps:$4 sm:$0xff]   ;;  %v15971_v4 = vld [vmem:[%s19896_s2 + $0x94] ss:$8 sps:$4 sm:$0xff]  }
 0xfb3   : > { %v8877_v23 = vor.u32 %v8876_v56, %v8873_v17  ;;  %v15969_v17 = vld [vmem:[%s19896_s2 + $0x90] ss:$8 sps:$4 sm:$0xff]   ;;  %v15974_v56 = vld [vmem:[%s19896_s2 + $0xa4] ss:$8 sps:$4 sm:$0xff]  }
 0xfb4   : > { %8943 = vmatpush1.bf16.msra.mxu1 %v15945_v21 }
 0xfb5   : > { %v18768_v29 = vsel %vm18340_vm4, 0, %v8877_v23  ;;  %v18772_v11 = vsel %vm18340_vm4, %v8877_v23, 0  ;;  %8944 = vmatprep.subr.bf16.mxu1 %v15950_v49  ;;  %v15972_v23 = vld [vmem:[%s19896_s2 + $0xa0] ss:$8 sps:$4 sm:$0xff]  }
 0xfb6   : > { %v18776_v22 = vshll.u32 %v18768_v29, 16  ;;  %v18779_v41 = vshll.u32 %v18772_v11, 16  ;;  %v18782_v60 = vshrl.u32 %v18768_v29, 16  ;;  %v9257_v9 = vshrl.u32 %v18772_v11, 16 }
 0xfb7   : > { %v9437_v44 = vsel %vm18474_vm12, %v18768_v29, 0  ;;  %v9438_v54 = vsel %vm18478_vm14, %v18772_v11, 0  ;;  %v9625_v34 = vsel %vm18376_vm7, %v18768_v29, 0  ;;  %v9626_v42 = vsel %vm18376_vm7, %v18772_v11, 0 }
 0xfb8   : > { %8945 = vmatpush1.bf16.msra.mxu1 %v15948_v38  ;;  %v8900_v20 = vrot.slane %v18776_v22, 1  ;;  %v8905_v32 = vrot.slane %v18779_v41, 1  ;;  %v9538_v35 = vrot.slane %v18782_v60, 4  ;;  %v9539_v27 = vrot.slane %v18776_v22, 5  ;;  %v15977_v38 = vld [vmem:[%s19896_s2 + $0xb4] ss:$8 sps:$4 sm:$0xff]  }
 0xfb9   : > { %9016 = vmatprep.subr.bf16.mxu1 %v15953_v30  ;;  %v9448_v58 = vrot.slane %v9437_v44, 4  ;;  %v9449_v51 = vrot.slane %v9438_v54, 4  ;;  %v9541_v26 = vrot.slane %v9257_v9, 4  ;;  %v9542_v31 = vrot.slane %v18779_v41, 5  ;;  %v15983_v44 = vld [vmem:[%s19896_s2 + $0xd4] ss:$8 sps:$4 sm:$0xff]  }
 0xfba   : > { %v8901_v45 = vor.u32 %v8900_v20, %v18782_v60  ;;  %v9540_v12 = vor.u32 %v9539_v27, %v9538_v35  ;;  %v9636_v13 = vrot.slane %v9625_v34, 5  ;;  %v9637_v0 = vrot.slane %v9626_v42, 5  ;;  %v15981_v35 = vld [vmem:[%s19896_s2 + $0xd0] ss:$8 sps:$4 sm:$0xff]   ;;  %v15986_v27 = vld [vmem:[%s19896_s2 + $0xe4] ss:$8 sps:$4 sm:$0xff]  }
 0xfbb   : > { %v18810_v47 = vsel %vm19898_vm15, %v9448_v58, %v9449_v51  ;;  %v9543_v16 = vor.u32 %v9542_v31, %v9541_v26  ;;  %v8881_v48 = vsel %vm6673_vm6, %v18768_v29, 0  ;;  %v9059_v43 = vsel %vm18397_vm3, %v18768_v29, 0  ;;  %v15989_v26 = vld [vmem:[%s19896_s2 + $0xf4] ss:$8 sps:$4 sm:$0xff]   ;;  %v15987_v42 = vld [vmem:[%s19896_s2 + $0xf0] ss:$8 sps:$4 sm:$0xff]  }
 0xfbc   : > { %v8906_v52 = vsel %vm19897_vm10, %v8901_v45, %v8905_v32  ;;  %v18821_v19 = vsel %vm19900_vm11, %v9636_v13, %v9637_v0  ;;  %v9060_v24 = vsel %vm18397_vm3, %v18772_v11, 0  ;;  %v9070_v8 = vrot.slane %v9059_v43, 1  ;;  %v15980_v45 = vld [vmem:[%s19896_s2 + $0xc4] ss:$8 sps:$4 sm:$0xff]   ;;  %v15993_v0 = vld [vmem:[%s19896_s2 + $0x110] ss:$8 sps:$4 sm:$0xff]  }
 0xfbd   : > { %13755 = vmatmul.mubr.msk.bf16.vlgmr.msra.gmra.mrb[64].mxu1 %vm7558_vm5, %v8906_v52  ;;  %v18818_v2 = vsel %vm19899_vm13, %v9540_v12, %v9543_v16  ;;  %v9071_v21 = vrot.slane %v9060_v24, 1  ;;  %v9153_v30 = vsel %vm18421_vm8, %v18768_v29, 0  ;;  %v9154_v20 = vsel %vm18421_vm8, %v18772_v11, 0  ;;  %v15978_v52 = vld [vmem:[%s19896_s2 + $0xc0] ss:$8 sps:$4 sm:$0xff]  }
 0xfbe   : > { %9017 = vmatpush1.bf16.msra.mxu1 %v15951_v37  ;;  %9048 = vmatprep.mubr.bf16.mxu1 %v19673_v7  ;;  %v15975_v37 = vld [vmem:[%s19896_s2 + $0xb0] ss:$8 sps:$4 sm:$0xff]   ;;  %v9164_v32 = vrot.slane %v9153_v30, 2  ;;  %vm19902_vm10 = vcmask 1045504   ;;  %v9255_v58 = vrot.slane %v18776_v22, 3  ;;  %v9259_v51 = vrot.slane %v9257_v9, 2 }
 0xfbf   : > { %9018 = vmatprep.subr.bf16.mxu1 %v15956_v46  ;;  %v9072_v49 = vsel %vm19901_vm0, %v9070_v8, %v9071_v21  ;;  %v9165_v46 = vrot.slane %v9154_v20, 2  ;;  %v15984_v12 = vld [vmem:[%s19896_s2 + $0xe0] ss:$8 sps:$4 sm:$0xff]   ;;  %v15995_v9 = vld [vmem:[%s19896_s2 + $0x114] ss:$8 sps:$4 sm:$0xff]   ;;  %v9343_v13 = vsel %vm18452_vm2, %v18768_v29, 0 }
 0xfc0   : > { %v9344_v16 = vsel %vm18452_vm2, %v18772_v11, 0  ;;  %vm19903_vm15 = vcmask 1044480   ;;  %v15999_v11 = vld [vmem:[%s19896_s2 + $0x130] ss:$8 sps:$4 sm:$0xff]   ;;  %v16007_v43 = vld [vmem:[%s19896_s2 + $0x154] ss:$8 sps:$4 sm:$0xff]  }
 0xfc1   : > { %v9166_v54 = vsel %vm19902_vm10, %v9164_v32, %v9165_v46  ;;  %v16005_v24 = vld [vmem:[%s19896_s2 + $0x150] ss:$8 sps:$4 sm:$0xff]   ;;  %v16013_v8 = vld [vmem:[%s19896_s2 + $0x174] ss:$8 sps:$4 sm:$0xff]   ;;  %v16024_v30 = vld [vmem:[%s19905_s1] sm:$0xff]  }
 0xfc2   : > { %9019 = vmatpush1.bf16.msra.mxu1 %v15954_v18  ;;  %v9254_v18 = vrot.slane %v18782_v60, 2  ;;  %v15992_v60 = vld [vmem:[%s19896_s2 + $0x104] ss:$8 sps:$4 sm:$0xff]   ;;  %v16011_v21 = vld [vmem:[%s19896_s2 + $0x170] ss:$8 sps:$4 sm:$0xff]  }
 0xfc3   : > { %9020 = vmatprep.subr.bf16.mxu1 %v15959_v25  ;;  %v9260_v25 = vrot.slane %v18779_v41, 3  ;;  %v15990_v41 = vld [vmem:[%s19896_s2 + $0x100] ss:$8 sps:$4 sm:$0xff]   ;;  %v16028_v46 = vld [vmem:[%s19905_s1 + $0x10] sm:$0xff]  }
 0xfc4   : > { %v9256_v31 = vor.u32 %v9255_v58, %v9254_v18  ;;  %v16025_v20 = vld [vmem:[%s19905_s1 + $0x48] sm:$0xff]   ;;  %v18919_v32 = vld [vmem:[%s19906_s3] sm:$0x7]  ;;  %s19911_s3 = sld [smem:[#allocation41_spill]] }
 0xfc5   : > { %v9261_v34 = vor.u32 %v9260_v25, %v9259_v51  ;;  %v16031_v18 = vld [vmem:[%s19905_s1 + $0x60] sm:$0xff]  }
 0xfc6   : > { %9021 = vmatpush1.bf16.msra.mxu1 %v15957_v62  ;;  %v15998_v62 = vld [vmem:[%s19896_s2 + $0x124] ss:$8 sps:$4 sm:$0xff]  }
 0xfc7   : > { %9106 = vmatprep.subr.bf16.mxu1 %v15962_v10  ;;  %v9262_v22 = vsel %vm6965_vm9, %v9256_v31, %v9261_v34  ;;  %v9354_v10 = vrot.slane %v9343_v13, 3  ;;  %v16033_v34 = vld [vmem:[%s19905_s1 + $0x68] sm:$0xff]   ;;  %v16038_v13 = vld [vmem:[%s19905_s1 + $0x38] sm:$0xff]  }
 0xfc9   : > { %13762 = vmatmul.mubr.msk.bf16.vlgmr.msra.gmra.mrb[64].mxu1 %vm7558_vm5, %v8881_v48  ;;  %v16001_v48 = vld [vmem:[%s19896_s2 + $0x134] ss:$8 sps:$4 sm:$0xff]  }
 0xfca   : > { %9107 = vmatpush1.bf16.msra.mxu1 %v15960_v50  ;;  %9138 = vmatprep.mubr.bf16.mxu1 %v19673_v7  ;;  %v9355_v50 = vrot.slane %v9344_v16, 3 }
 0xfcb   : > { %9108 = vmatprep.subr.bf16.mxu1 %v15965_v1  ;;  %v15996_v1 = vld [vmem:[%s19896_s2 + $0x120] ss:$8 sps:$4 sm:$0xff]  }
 0xfcc   : > { %v9356_v29 = vsel %vm19903_vm15, %v9354_v10, %v9355_v50  ;;  %v9748_v50 = vrot.slane %v18919_v32, %v18286_v61 }
 0xfce   : > { %9109 = vmatpush1.bf16.msra.mxu1 %v15963_v53  ;;  %v16004_v53 = vld [vmem:[%s19896_s2 + $0x144] ss:$8 sps:$4 sm:$0xff]  }
 0xfcf   : > { %9110 = vmatprep.subr.bf16.mxu1 %v15968_v14  ;;  %v16002_v14 = vld [vmem:[%s19896_s2 + $0x140] ss:$8 sps:$4 sm:$0xff]  }
 0xfd2   : > { %9111 = vmatpush1.bf16.msra.mxu1 %v15966_v57  ;;  %v16010_v57 = vld [vmem:[%s19896_s2 + $0x164] ss:$8 sps:$4 sm:$0xff]  }
 0xfd3   : > { %9200 = vmatprep.subr.bf16.mxu1 %v15971_v4  ;;  %v16008_v4 = vld [vmem:[%s19896_s2 + $0x160] ss:$8 sps:$4 sm:$0xff]  }
 0xfd5   : > { %13775 = vmatmul.mubr.msk.bf16.vlgmr.msra.gmra.mrb[64].mxu1 %vm7558_vm5, %v9072_v49  ;;  %v16017_v49 = vld [vmem:[%s19896_s2 + $0x190] ss:$8 sps:$4 sm:$0xff]  }
 0xfd6   : > { %9201 = vmatpush1.bf16.msra.mxu1 %v15969_v17  ;;  %9232 = vmatprep.mubr.bf16.mxu1 %v19673_v7  ;;  %v16016_v17 = vld [vmem:[%s19896_s2 + $0x184] ss:$8 sps:$4 sm:$0xff]  }
 0xfd7   : > { %9202 = vmatprep.subr.bf16.mxu1 %v15974_v56  ;;  %v16014_v56 = vld [vmem:[%s19896_s2 + $0x180] ss:$8 sps:$4 sm:$0xff]  }
 0xfda   : > { %9203 = vmatpush1.bf16.msra.mxu1 %v15972_v23  ;;  %v16022_v23 = vld [vmem:[%s19896_s2 + $0x1a4] ss:$8 sps:$4 sm:$0xff]  }
 0xfdb   : > { %9204 = vmatprep.subr.bf16.mxu1 %v15977_v38  ;;  %v16020_v38 = vld [vmem:[%s19896_s2 + $0x1a0] ss:$8 sps:$4 sm:$0xff]  }
 0xfde   : > { %9205 = vmatpush1.bf16.msra.mxu1 %v15975_v37  ;;  %v16026_v37 = vld [vmem:[%s19905_s1 + $0x8] sm:$0xff]  }
 0xfdf   : > { %9296 = vmatprep.subr.bf16.mxu1 %v15980_v45  ;;  %v16027_v45 = vld [vmem:[%s19905_s1 + $0x50] sm:$0xff]  }
 0xfe1   : > { %13788 = vmatmul.mubr.msk.bf16.vlgmr.msra.gmra.mrb[64].mxu1 %vm7558_vm5, %v9166_v54  ;;  %v16030_v54 = vld [vmem:[%s19905_s1 + $0x18] sm:$0xff]  }
 0xfe2   : > { %9297 = vmatpush1.bf16.msra.mxu1 %v15978_v52  ;;  %9328 = vmatprep.mubr.bf16.mxu1 %v19673_v7  ;;  %v16029_v52 = vld [vmem:[%s19905_s1 + $0x58] sm:$0xff]  }
 0xfe3   : > { %9298 = vmatprep.subr.bf16.mxu1 %v15983_v44 }
 0xfe6   : > { %9299 = vmatpush1.bf16.msra.mxu1 %v15981_v35 }
 0xfe7   : > { %9300 = vmatprep.subr.bf16.mxu1 %v15986_v27 }
 0xfea   : > { %9301 = vmatpush1.bf16.msra.mxu1 %v15984_v12  ;;  %v16032_v12 = vld [vmem:[%s19905_s1 + $0x20] sm:$0xff]  }
 0xfeb   : > { %9390 = vmatprep.subr.bf16.mxu1 %v15989_v26 }
 0xfed   : > { %13801 = vmatmul.mubr.msk.bf16.vlgmr.msra.gmra.mrb[64].mxu1 %vm7558_vm5, %v9262_v22  ;;  %v16035_v22 = vld [vmem:[%s19905_s1 + $0x70] sm:$0xff]  }
 0xfee   : > { %9391 = vmatpush1.bf16.msra.mxu1 %v15987_v42  ;;  %9422 = vmatprep.mubr.bf16.mxu1 %v19673_v7 }
 0xfef   : > { %9392 = vmatprep.subr.bf16.mxu1 %v15992_v60  ;;  %v16034_v60 = vld [vmem:[%s19905_s1 + $0x28] sm:$0xff]  }
 0xff2   : > { %9393 = vmatpush1.bf16.msra.mxu1 %v15990_v41  ;;  %v16036_v41 = vld [vmem:[%s19905_s1 + $0x30] sm:$0xff]  }
 0xff3   : > { %9394 = vmatprep.subr.bf16.mxu1 %v15995_v9  ;;  %v16037_v9 = vld [vmem:[%s19905_s1 + $0x78] sm:$0xff]  }
 0xff6   : > { %9395 = vmatpush1.bf16.msra.mxu1 %v15993_v0 }
 0xff7   : > { %9484 = vmatprep.subr.bf16.mxu1 %v15998_v62 }
 0xff9   : > { %13814 = vmatmul.mubr.msk.bf16.vlgmr.msra.gmra.mrb[64].mxu1 %vm7558_vm5, %v9356_v29 }
 0xffa   : > { %9485 = vmatpush1.bf16.msra.mxu1 %v15996_v1  ;;  %9516 = vmatprep.mubr.bf16.mxu1 %v19673_v7 }
 0xffb   : > { %9486 = vmatprep.subr.bf16.mxu1 %v16001_v48 }
 0xffe   : > { %9487 = vmatpush1.bf16.msra.mxu1 %v15999_v11 }
 0xfff   : > { %9488 = vmatprep.subr.bf16.mxu1 %v16004_v53 }
0x1002   : > { %9489 = vmatpush1.bf16.msra.mxu1 %v16002_v14 }
0x1003   : > { %9578 = vmatprep.subr.bf16.mxu1 %v16007_v43 }
0x1005   : > { %13827 = vmatmul.mubr.msk.bf16.vlgmr.msra.gmra.mrb[64].mxu1 %vm7558_vm5, %v18810_v47  ;;  %v16019_v47 = vld [vmem:[%s19896_s2 + $0x194] ss:$8 sps:$4 sm:$0xff]  }
0x1006   : > { %9579 = vmatpush1.bf16.msra.mxu1 %v16005_v24  ;;  %9610 = vmatprep.mubr.bf16.mxu1 %v19673_v7 }
0x1007   : > { %9580 = vmatprep.subr.bf16.mxu1 %v16010_v57 }
0x100a   : > { %9581 = vmatpush1.bf16.msra.mxu1 %v16008_v4  ;;  %v16039_v4 = vld [vmem:[%s19905_s1 + $0x80] sm:$0xff]  }
0x100b   : > { %9582 = vmatprep.subr.bf16.mxu1 %v16013_v8  ;;  %v16040_v8 = vld [vmem:[%s19905_s1 + $0x88] sm:$0xff]  }
0x100e   : > { %9583 = vmatpush1.bf16.msra.mxu1 %v16011_v21  ;;  %v16041_v21 = vld [vmem:[%s19905_s1 + $0x90] sm:$0xff]  }
0x100f   : > { %9672 = vmatprep.subr.bf16.mxu1 %v16016_v17  ;;  %v16042_v17 = vld [vmem:[%s19905_s1 + $0x98] sm:$0xff]  }
0x1011   : > { %13840 = vmatmul.mubr.msk.bf16.vlgmr.msra.gmra.mrb[64].mxu1 %vm7558_vm5, %v18818_v2  ;;  %v16023_v2 = vld [vmem:[%s19904_s7 + $0x40] sm:$0xff]   ;;  %s19915_s7 = sld [smem:[#allocation44_spill]] }
0x1012   : > { %9673 = vmatpush1.bf16.msra.mxu1 %v16014_v56  ;;  %9704 = vmatprep.mubr.bf16.mxu1 %v19673_v7  ;;  %v16043_v56 = vld [vmem:[%s19905_s1 + $0xa0] sm:$0xff]  }
0x1013   : > { %9674 = vmatprep.subr.bf16.mxu1 %v16019_v47  ;;  %14583 = vmatprep.subr.bf16.mxu0 %v16023_v2  ;;  %v9752_v2 = vrot.slane %v18919_v32, %v18739_v3 }
0x1014   : > { %14584 = vmatpush3.bf16.msra.mxu0 %v16024_v30 }
0x1015   : > { %14585 = vmatprep.subr.bf16.mxu0 %v16025_v20  ;;  %v16045_v20 = vld [vmem:[%s19905_s1 + $0xb0] sm:$0xff]  }
0x1016   : > { %9675 = vmatpush1.bf16.msra.mxu1 %v16017_v49  ;;  %v16044_v49 = vld [vmem:[%s19905_s1 + $0xa8] sm:$0xff]  }
0x1017   : > { %9676 = vmatprep.subr.bf16.mxu1 %v16022_v23 }
0x1018   : > { %14586 = vmatpush3.bf16.msra.mxu0 %v16026_v37 }
0x1019   : > { %14587 = vmatprep.subr.bf16.mxu0 %v16027_v45 }
0x101a   : > { %9677 = vmatpush1.bf16.msra.mxu1 %v16020_v38 }
0x101c   : > { %14588 = vmatpush3.bf16.msra.mxu0 %v16028_v46  ;;  %v16046_v46 = vld [vmem:[%s19905_s1 + $0xb8] sm:$0xff]   ;;  %s19916_s1 = smov %s19915_s7 }
0x101d   : > { %13853 = vmatmul.mubr.msk.bf16.vlgmr.msra.gmra.mrb[64].mxu1 %vm7558_vm5, %v18821_v19  ;;  %v9744_v19 = vrot.slane %v18919_v32, %v18242_v28  ;;  %14589 = vmatprep.subr.bf16.mxu0 %v16029_v52  ;;  %vm19907_vm5 = vcmask 523264  }
0x101e   : > { %10264 = vmatprep.mubr.bf16.mxu1 %v19673_v7  ;;  %vm19908_vm13 = vmmov %vm19907_vm5 }
0x1020   : > { %14590 = vmatpush3.bf16.msra.mxu0 %v16030_v54  ;;  %v16049_v54 = vld [vmem:[%s19911_s3 + $0x4] ss:$8 sps:$4 sm:$0xff]  }
0x1021   : > { %14591 = vmatprep.subr.bf16.mxu0 %v16031_v18  ;;  %v16055_v18 = vld [vmem:[%s19911_s3 + $0x24] ss:$8 sps:$4 sm:$0xff]  }
0x1024   : > { %14592 = vmatpush3.bf16.msra.mxu0 %v16032_v12 }
0x1025   : > { %14593 = vmatprep.subr.bf16.mxu0 %v16033_v34 }
0x1028   : > { %14594 = vmatpush3.bf16.msra.mxu0 %v16034_v60 }
0x1029   : > { %14595 = vmatprep.subr.bf16.mxu0 %v16035_v22 }
0x102c   : > { %14596 = vmatpush3.bf16.msra.mxu0 %v16036_v41 }
0x102d   : > { %14597 = vmatprep.subr.bf16.mxu0 %v16037_v9 }
0x1030   : > { %14598 = vmatpush3.bf16.msra.mxu0 %v16038_v13 }
0x1031   : > { %15242 = vmatprep.subr.bf16.mxu0 %v16594_v5 }
0x1082   : > { %v8862_v44 = vpop.f32.mrb[60].mxu1 }
0x1083   : > { %v9756_v35 = vadd.f32 %v9744_v19, %v8862_v44  ;;  %v8864_v27 = vpop.f32.mrb[61].mxu1  ;;  %v16047_v44 = vld [vmem:[%s19911_s3] ss:$8 sps:$4 sm:$0xff]  }
0x1084   : > { %v8866_v58 = vpop.f32.mrb[62].mxu1 }
0x1085   : > { %v9759_v51 = vadd.f32 %v9744_v19, %v8866_v58  ;;  %v8868_v25 = vpop.f32.mrb[63].mxu1  ;;  %v9762_v26 = vmax.f32 %v9756_v35, 0.0  ;;  %v16052_v35 = vld [vmem:[%s19911_s3 + $0x14] ss:$8 sps:$4 sm:$0xff]   ;;  %v16056_v58 = vld [vmem:[%s19911_s3 + $0x30] ss:$8 sps:$4 sm:$0xff]  }
0x1087   : > { %v9765_v31 = vmax.f32 %v9759_v51, 0.0  ;;  %v16058_v51 = vld [vmem:[%s19911_s3 + $0x34] ss:$8 sps:$4 sm:$0xff]  }
0x1089   : > { %v9768_v42 = vpack.c.bf16 %v9765_v31, %v9762_v26 }
0x10f0   : > { %v9706_v16 = vpop.f32.mrb[64].mxu1 }
0x10f1   : > { %9723 = vrot.lane.b32.xlu0 %v9706_v16, %s19889_s11  ;;  %v9708_v0 = vpop.f32.mrb[65].mxu1 }
0x10f2   : > { %v9710_v62 = vpop.f32.mrb[66].mxu1 }
0x10f3   : > { %9727 = vrot.lane.b32.xlu1 %v9710_v62, %s19889_s11  ;;  %v9712_v10 = vpop.f32.mrb[67].mxu1 }
0x10f5   : > { %9725 = vrot.lane.b32.xlu0 %v9708_v0, %s19889_s11 }
0x10f7   : > { %9729 = vrot.lane.b32.xlu1 %v9712_v10, %s19889_s11  ;;  %s19912_s11 = sld [smem:[#allocation42_spill]] }
0x10fd   : > { %s19913_s2 = smov %s19912_s11 }
0x10fe   : > { %v16061_v12 = vld [vmem:[%s19913_s2 + $0x44] ss:$8 sps:$4 sm:$0xff]   ;;  %v16064_v26 = vld [vmem:[%s19913_s2 + $0x54] ss:$8 sps:$4 sm:$0xff]   ;;  %v16062_v31 = vld [vmem:[%s19913_s2 + $0x50] ss:$8 sps:$4 sm:$0xff]  }
0x10ff   : > { %10232 = vmatprep.subr.bf16.mxu1 %v16061_v12  ;;  %v16067_v34 = vld [vmem:[%s19913_s2 + $0x64] ss:$8 sps:$4 sm:$0xff]   ;;  %v16070_v60 = vld [vmem:[%s19913_s2 + $0x74] ss:$8 sps:$4 sm:$0xff]   ;;  %v16068_v22 = vld [vmem:[%s19913_s2 + $0x70] ss:$8 sps:$4 sm:$0xff]  }
0x1100   : > { %v16073_v41 = vld [vmem:[%s19913_s2 + $0x4] ss:$8 sps:$4 sm:$0xff]   ;;  %v16076_v63 = vld [vmem:[%s19913_s2 + $0x14] ss:$8 sps:$4 sm:$0xff]   ;;  %v16098_v6 = vld [vmem:[%s19913_s2 + $0xd0] ss:$8 sps:$4 sm:$0xff]  }
0x1101   : > { %v16079_v36 = vld [vmem:[%s19913_s2 + $0x24] ss:$8 sps:$4 sm:$0xff]   ;;  %v16110_v59 = vld [vmem:[%s19913_s2 + $0x110] ss:$8 sps:$4 sm:$0xff]  }
0x1163   : > { %v9724_v1 = vpop.permute.xlu0 %9723 }
0x1164   : > { %v9737_v48 = vsel %vm19907_vm5, %v8864_v27, %v9724_v1  ;;  %v16050_v27 = vld [vmem:[%s19911_s3 + $0x10] ss:$8 sps:$4 sm:$0xff]  }
0x1165   : > { %v9757_v29 = vadd.f32 %v9748_v50, %v9737_v48  ;;  %v9728_v11 = vpop.permute.xlu1 %9727 }
0x1166   : > { %v9738_v53 = vsel %vm19908_vm13, %v8868_v25, %v9728_v11  ;;  %v16059_v25 = vld [vmem:[%s19912_s11 + $0x40] ss:$8 sps:$4 sm:$0xff]   ;;  %s19932_s11 = sld [smem:[#allocation43_spill]] }
0x1167   : > { %v9760_v14 = vadd.f32 %v9748_v50, %v9738_v53  ;;  %v9763_v43 = vmax.f32 %v9757_v29, 0.0  ;;  %v9726_v23 = vpop.permute.xlu0 %9725  ;;  %10233 = vmatpush1.bf16.msra.mxu1 %v16059_v25  ;;  %v13854_v50 = vld [vmem:[#allocation5] ss:$0 sm:$0xff] }
0x1168   : > { %10234 = vmatprep.subr.bf16.mxu1 %v16064_v26 }
0x1169   : > { %v9766_v24 = vmax.f32 %v9760_v14, 0.0  ;;  %v9730_v47 = vpop.permute.xlu1 %9729 }
0x116b   : > { %v9769_v57 = vpack.c.bf16 %v9766_v24, %v9763_v43  ;;  %10235 = vmatpush1.bf16.msra.mxu1 %v16062_v31 }
0x116c   : > { %10236 = vmatprep.subr.bf16.mxu1 %v16067_v34  ;;  %v16167_v34 = vld [vmem:[%s19915_s7 + $0x40] sm:$0xff]   ;;  %s19938_s7 = sld [smem:[#allocation45_spill]] }
0x116d   : > { %10002 = vmatprep.mubr.bf16.mxu0 %v9769_v57 }
0x116e   : > { %10003 = vmatmul.mubr.bf16.vlgmr.msra.gmra.mrb[108].mxu0 %v9768_v42  ;;  %v16065_v42 = vld [vmem:[%s19913_s2 + $0x60] ss:$8 sps:$4 sm:$0xff]  }
0x116f   : > { %15243 = vmatpush3.bf16.msra.mxu0 %v16039_v4  ;;  %15258 = vmatprep.mubr.msk.bf16.mxu0 %vm16595_vm1, %v16594_v5  ;;  %vm19909_vm1 = vmmov %vm19907_vm5 }
0x1170   : > { %15244 = vmatprep.subr.bf16.mxu0 %v16594_v5  ;;  %v9732_v38 = vsel %vm19909_vm1, %v9728_v11, %v9730_v47  ;;  %vm19910_vm11 = vmmov %vm19909_vm1  ;;  %10237 = vmatpush1.bf16.msra.mxu1 %v16065_v42  ;;  %v16168_v42 = vld [vmem:[%s19916_s1] sm:$0xff]  }
0x1171   : > { %v9731_v30 = vsel %vm19910_vm11, %v9724_v1, %v9726_v23  ;;  %v9761_v37 = vadd.f32 %v9752_v2, %v9732_v38  ;;  %10238 = vmatprep.subr.bf16.mxu1 %v16070_v60  ;;  %vm19914_vm0 = vmmov %vm19909_vm1  ;;  %v16074_v60 = vld [vmem:[%s19913_s2 + $0x10] ss:$8 sps:$4 sm:$0xff]  }
0x1172   : > { %v9758_v45 = vadd.f32 %v9752_v2, %v9731_v30  ;;  %vm19918_vm10 = vmmov %vm19914_vm0 }
0x1173   : > { %15245 = vmatpush3.bf16.msra.mxu0 %v16040_v8  ;;  %v9767_v19 = vmax.f32 %v9761_v37, 0.0  ;;  %vm19927_vm5 = vmmov %vm19914_vm0 }
0x1174   : > { %15246 = vmatprep.subr.bf16.mxu0 %v16594_v5  ;;  %v9764_v32 = vmax.f32 %v9758_v45, 0.0  ;;  %10239 = vmatpush1.bf16.msra.mxu1 %v16068_v22  ;;  %vm19929_vm13 = vmmov %vm19914_vm0 }
0x1175   : > { %10318 = vmatprep.subr.bf16.mxu1 %v16073_v41  ;;  %vm19930_vm1 = vmmov %vm19914_vm0 }
0x1176   : > { %v9770_v52 = vpack.c.bf16 %v9767_v19, %v9764_v32  ;;  %v16071_v19 = vld [vmem:[%s19913_s2] ss:$8 sps:$4 sm:$0xff]   ;;  %vm19931_vm11 = vmmov %vm19914_vm0 }
0x1177   : > { %15247 = vmatpush3.bf16.msra.mxu0 %v16041_v21 }
0x1178   : > { %15248 = vmatprep.subr.bf16.mxu0 %v16594_v5 }
0x117b   : > { %15249 = vmatpush3.bf16.msra.mxu0 %v16042_v17 }
0x117c   : > { %15250 = vmatprep.subr.bf16.mxu0 %v16594_v5 }
0x117f   : > { %15251 = vmatpush3.bf16.msra.mxu0 %v16043_v56 }
0x1180   : > { %15252 = vmatprep.subr.bf16.mxu0 %v16594_v5 }
0x1183   : > { %15253 = vmatpush3.bf16.msra.mxu0 %v16044_v49 }
0x1184   : > { %15254 = vmatprep.subr.bf16.mxu0 %v16594_v5 }
0x1187   : > { %15255 = vmatpush3.bf16.msra.mxu0 %v16045_v20 }
0x1188   : > { %15256 = vmatprep.subr.bf16.mxu0 %v16594_v5  ;;  %v16053_v5 = vld [vmem:[%s19911_s3 + $0x20] ss:$8 sps:$4 sm:$0xff]  }
0x118b   : > { %15257 = vmatpush3.bf16.msra.mxu0 %v16046_v46 }
0x118c   : > { %10106 = vmatprep.subr.bf16.mxu0 %v16049_v54 }
0x118e   : > { %15259 = vmatmul.mubr.bf16.vlgmr.msra.gmra.mrb[112].mxu0 %v9770_v52 }
0x118f   : > { %10138 = vmatprep.mubr.bf16.mxu0 %v19673_v7  ;;  %10107 = vmatpush1.bf16.msra.mxu0 %v16047_v44 }
0x1190   : > { %10108 = vmatprep.subr.bf16.mxu0 %v16052_v35 }
0x1193   : > { %10109 = vmatpush1.bf16.msra.mxu0 %v16050_v27 }
0x1194   : > { %10110 = vmatprep.subr.bf16.mxu0 %v16055_v18 }
0x1197   : > { %10111 = vmatpush1.bf16.msra.mxu0 %v16053_v5 }
0x1198   : > { %10112 = vmatprep.subr.bf16.mxu0 %v16058_v51 }
0x119b   : > { %10113 = vmatpush1.bf16.msra.mxu0 %v16056_v58 }
0x119c   : > { %14614 = vmatprep.subr.bf16.mxu0 %v16167_v34  ;;  %v16118_v34 = vld [vmem:[%s19913_s2 + $0x134] ss:$8 sps:$4 sm:$0xff]  }
0x1241   : > { %v14599_v9 = vpop.f32.mrb[108].mxu0 }
0x1242   : > { %v14600_v13 = vpop.f32.mrb[109].mxu0 }
0x1243   : > { %v14601_v16 = vadd.f32 %v14600_v13, %v14599_v9  ;;  %v14602_v0 = vpop.f32.mrb[110].mxu0  ;;  %v16169_v13 = vld [vmem:[%s19916_s1 + $0x48] sm:$0xff]  }
0x1244   : > { %v14603_v62 = vpop.f32.mrb[111].mxu0 }
0x1245   : > { %v14604_v10 = vadd.f32 %v14603_v62, %v14602_v0  ;;  %v10005_v1 = vadd.f32 %v14601_v16, %v13854_v50 }
0x1247   : > { %v10008_v53 = vadd.f32 %v14604_v10, %v13854_v50 }
0x1261   : > { %v10045_v48 = vpop.f32.mrb[112].mxu0 }
0x1262   : > { %v10046_v29 = vadd.f32 %v10045_v48, %v10005_v1  ;;  %v15260_v11 = vpop.f32.mrb[113].mxu0 }
0x1263   : > { %v10048_v14 = vpop.f32.mrb[114].mxu0  ;;  %v16170_v11 = vld [vmem:[%s19916_s1 + $0x8] sm:$0xff]  }
0x1264   : > { %v10049_v43 = vadd.f32 %v10048_v14, %v10008_v53  ;;  %v15261_v24 = vpop.f32.mrb[115].mxu0  ;;  %v10052_v57 = vmax.f32 %v10046_v29, 0.0 }
0x1265   : > { %v16077_v24 = vld [vmem:[%s19913_s2 + $0x20] ss:$8 sps:$4 sm:$0xff]  }
0x1266   : > { %v10053_v4 = vmax.f32 %v10049_v43, 0.0  ;;  %v16171_v43 = vld [vmem:[%s19916_s1 + $0x50] sm:$0xff]  }
0x1268   : > { %v10054_v8 = vpack.c.bf16 %v10053_v4, %v10052_v57  ;;  %v16082_v57 = vld [vmem:[%s19913_s2 + $0x34] ss:$8 sps:$4 sm:$0xff]  }
0x126a   : > { %v10149_v21 = vshrl.u32 %v10054_v8, 16  ;;  %v10152_v17 = vshll.u32 %v10054_v8, 16  ;;  %13887 = vmatmul.mubr.msk.bf16.vlgmr.msra.gmra.mrb[116].mxu0 %vm19914_vm0, %v10054_v8  ;;  %v16080_v8 = vld [vmem:[%s19913_s2 + $0x30] ss:$8 sps:$4 sm:$0xff]  }
0x126b   : > { %14615 = vmatpush3.bf16.msra.mxu0 %v16168_v42  ;;  %v16116_v42 = vld [vmem:[%s19913_s2 + $0x130] ss:$8 sps:$4 sm:$0xff]  }
0x126c   : > { %v10151_v56 = vrot.slane %v10149_v21, 5  ;;  %v10154_v47 = vrot.slane %v10152_v17, 6  ;;  %14616 = vmatprep.subr.bf16.mxu0 %v16169_v13  ;;  %v16085_v21 = vld [vmem:[%s19913_s2 + $0x84] ss:$8 sps:$4 sm:$0xff]   ;;  %v16083_v17 = vld [vmem:[%s19913_s2 + $0x80] ss:$8 sps:$4 sm:$0xff]  }
0x126d   : > { %v16127_v13 = vld [vmem:[%s19913_s2 + $0x164] ss:$8 sps:$4 sm:$0xff]  }
0x126e   : > { %v10155_v49 = vor.u32 %v10154_v47, %v10151_v56  ;;  %v16088_v56 = vld [vmem:[%s19913_s2 + $0x94] ss:$8 sps:$4 sm:$0xff]  }
0x126f   : > { %14617 = vmatpush3.bf16.msra.mxu0 %v16170_v11  ;;  %v16172_v11 = vld [vmem:[%s19916_s1 + $0x10] sm:$0xff]  }
0x1270   : > { %v18985_v23 = vsel %vm18340_vm4, 0, %v10155_v49  ;;  %v18989_v38 = vsel %vm18340_vm4, %v10155_v49, 0  ;;  %vm19917_vm4 = vsmask.f32 7424  ;;  %14618 = vmatprep.subr.bf16.mxu0 %v16171_v43  ;;  %v16086_v49 = vld [vmem:[%s19913_s2 + $0x90] ss:$8 sps:$4 sm:$0xff]  }
0x1271   : > { %v10178_v2 = vshrl.u32 %v18985_v23, 16  ;;  %v10180_v30 = vshll.u32 %v18985_v23, 16  ;;  %v10185_v20 = vshll.u32 %v18989_v38, 16  ;;  %v10585_v44 = vshrl.u32 %v18989_v38, 16  ;;  %v16142_v43 = vld [vmem:[%s19913_s2 + $0x1b4] ss:$8 sps:$4 sm:$0xff]  }
0x1272   : > { %v10681_v27 = vsel %vm18452_vm2, %v18985_v23, 0  ;;  %v10682_v5 = vsel %vm18452_vm2, %v18989_v38, 0  ;;  %v10787_v12 = vsel %vm18474_vm12, %v18985_v23, 0  ;;  %v10788_v26 = vsel %vm18478_vm14, %v18989_v38, 0  ;;  %vm19919_vm2 = vmmov %vm19903_vm15 }
0x1273   : > { %v10182_v37 = vrot.slane %v10180_v30, 1  ;;  %v10582_v45 = vrot.slane %v10178_v2, 2  ;;  %v10583_v46 = vrot.slane %v10180_v30, 3  ;;  %v10187_v52 = vrot.slane %v10185_v20, 1  ;;  %vm19923_vm14 = vmmov %vm19914_vm0  ;;  %14619 = vmatpush3.bf16.msra.mxu0 %v16172_v11 }
0x1274   : > { %v10588_v54 = vrot.slane %v10185_v20, 3  ;;  %v10587_v58 = vrot.slane %v10585_v44, 2  ;;  %v10694_v51 = vrot.slane %v10681_v27, 3  ;;  %v10695_v25 = vrot.slane %v10682_v5, 3  ;;  %vm19925_vm15 = vmmov %vm19914_vm0  ;;  %v16106_v27 = vld [vmem:[%s19913_s2 + $0xf4] ss:$8 sps:$4 sm:$0xff]  }
0x1275   : > { %v10183_v32 = vor.u32 %v10182_v37, %v10178_v2  ;;  %v10584_v35 = vor.u32 %v10583_v46, %v10582_v45  ;;  %v10902_v31 = vrot.slane %v10178_v2, 4  ;;  %v10903_v40 = vrot.slane %v10180_v30, 5  ;;  %v16091_v2 = vld [vmem:[%s19913_s2 + $0xa4] ss:$8 sps:$4 sm:$0xff]   ;;  %v16089_v30 = vld [vmem:[%s19913_s2 + $0xa0] ss:$8 sps:$4 sm:$0xff]  }
0x1276   : > { %v10589_v22 = vor.u32 %v10588_v54, %v10587_v58  ;;  %v19016_v41 = vsel %vm19919_vm2, %v10694_v51, %v10695_v25  ;;  %v10800_v39 = vrot.slane %v10787_v12, 4  ;;  %v10801_v9 = vrot.slane %v10788_v26, 4  ;;  %v16092_v45 = vld [vmem:[%s19913_s2 + $0xb0] ss:$8 sps:$4 sm:$0xff]   ;;  %v16097_v46 = vld [vmem:[%s19913_s2 + $0xc4] ss:$8 sps:$4 sm:$0xff]  }
0x1277   : > { %v10188_v18 = vsel %vm19917_vm4, %v10183_v32, %v10187_v52  ;;  %v10904_v16 = vor.u32 %v10903_v40, %v10902_v31  ;;  %v10905_v0 = vrot.slane %v10585_v44, 4  ;;  %v10906_v62 = vrot.slane %v10185_v20, 5  ;;  %v16094_v20 = vld [vmem:[%s19913_s2 + $0xb4] ss:$8 sps:$4 sm:$0xff]   ;;  %v16095_v52 = vld [vmem:[%s19913_s2 + $0xc0] ss:$8 sps:$4 sm:$0xff]  }
0x1278   : > { %13904 = vmatmul.mubr.msk.bf16.vlgmr.msra.gmra.mrb[68].mxu1 %vm19918_vm10, %v10188_v18  ;;  %v10999_v10 = vsel %vm18376_vm7, %v18985_v23, 0  ;;  %v19024_v50 = vsel %vm6965_vm9, %v10584_v35, %v10589_v22  ;;  %vm19920_vm12 = vcmask 1043456   ;;  %v11000_v48 = vsel %vm18376_vm7, %v18989_v38, 0  ;;  %v16100_v44 = vld [vmem:[%s19913_s2 + $0xd4] ss:$8 sps:$4 sm:$0xff]  }
0x1279   : > { %10319 = vmatpush1.bf16.msra.mxu1 %v16071_v19  ;;  %10350 = vmatprep.mubr.bf16.mxu1 %v19673_v7  ;;  %v19027_v1 = vsel %vm19920_vm12, %v10800_v39, %v10801_v9  ;;  %v11012_v29 = vrot.slane %v10999_v10, 5  ;;  %v10907_v53 = vor.u32 %v10906_v62, %v10905_v0  ;;  %v11013_v14 = vrot.slane %v11000_v48, 5  ;;  %v16101_v35 = vld [vmem:[%s19913_s2 + $0xe0] ss:$8 sps:$4 sm:$0xff]   ;;  %v16104_v58 = vld [vmem:[%s19913_s2 + $0xf0] ss:$8 sps:$4 sm:$0xff]  }
0x127a   : > { %10320 = vmatprep.subr.bf16.mxu1 %v16076_v63  ;;  %vm19921_vm9 = vsmask.f32 3328  ;;  %vm19922_vm7 = vcmask 1042432   ;;  %v10159_v47 = vsel %vm6673_vm6, %v18985_v23, 0  ;;  %v10361_v55 = vsel %vm18397_vm3, %v18985_v23, 0 }
0x127b   : > { %v19037_v4 = vsel %vm19921_vm9, %v10904_v16, %v10907_v53  ;;  %v19040_v15 = vsel %vm19922_vm7, %v11012_v29, %v11013_v14  ;;  %v10362_v37 = vsel %vm18397_vm3, %v18989_v38, 0  ;;  %v10374_v19 = vrot.slane %v10361_v55, 1  ;;  %v16103_v63 = vld [vmem:[%s19913_s2 + $0xe4] ss:$8 sps:$4 sm:$0xff]   ;;  %v16107_v26 = vld [vmem:[%s19913_s2 + $0x100] ss:$8 sps:$4 sm:$0xff]   ;;  %vm19937_vm9 = vmmov %vm19922_vm7 }
0x127c   : > { %v10375_v32 = vrot.slane %v10362_v37, 1  ;;  %vm19924_vm6 = vcmask 1046528   ;;  %v10467_v5 = vsel %vm18421_vm8, %v18985_v23, 0  ;;  %v10468_v18 = vsel %vm18421_vm8, %v18989_v38, 0  ;;  %v16109_v51 = vld [vmem:[%s19913_s2 + $0x104] ss:$8 sps:$4 sm:$0xff]   ;;  %vm19928_vm8 = vmmov %vm19914_vm0 }
0x127d   : > { %10321 = vmatpush1.bf16.msra.mxu1 %v16074_v60  ;;  %v10480_v25 = vrot.slane %v10467_v5, 2  ;;  %v10481_v12 = vrot.slane %v10468_v18, 2  ;;  %v16112_v31 = vld [vmem:[%s19913_s2 + $0x114] ss:$8 sps:$4 sm:$0xff]   ;;  %vm19926_vm3 = vcmask 1045504   ;;  %vm19933_vm4 = vcmask 1040384  }
0x127e   : > { %10322 = vmatprep.subr.bf16.mxu1 %v16079_v36  ;;  %v10376_v54 = vsel %vm19924_vm6, %v10374_v19, %v10375_v32  ;;  %v16115_v38 = vld [vmem:[%s19913_s2 + $0x124] ss:$8 sps:$4 sm:$0xff]   ;;  %v16113_v40 = vld [vmem:[%s19913_s2 + $0x120] ss:$8 sps:$4 sm:$0xff]   ;;  %v16124_v39 = vld [vmem:[%s19913_s2 + $0x154] ss:$8 sps:$4 sm:$0xff]  }
0x127f   : > { %v10482_v23 = vsel %vm19926_vm3, %v10480_v25, %v10481_v12  ;;  %v16121_v60 = vld [vmem:[%s19913_s2 + $0x144] ss:$8 sps:$4 sm:$0xff]   ;;  %v16119_v22 = vld [vmem:[%s19913_s2 + $0x140] ss:$8 sps:$4 sm:$0xff]   ;;  %v16122_v9 = vld [vmem:[%s19913_s2 + $0x150] ss:$8 sps:$4 sm:$0xff]  }
0x1280   : > { %v16125_v36 = vld [vmem:[%s19913_s2 + $0x160] ss:$8 sps:$4 sm:$0xff]   ;;  %v16130_v16 = vld [vmem:[%s19913_s2 + $0x174] ss:$8 sps:$4 sm:$0xff]   ;;  %v16128_v0 = vld [vmem:[%s19913_s2 + $0x170] ss:$8 sps:$4 sm:$0xff]  }
0x1281   : > { %10323 = vmatpush1.bf16.msra.mxu1 %v16077_v24  ;;  %v16133_v62 = vld [vmem:[%s19913_s2 + $0x184] ss:$8 sps:$4 sm:$0xff]   ;;  %v16131_v10 = vld [vmem:[%s19913_s2 + $0x180] ss:$8 sps:$4 sm:$0xff]   ;;  %v16134_v48 = vld [vmem:[%s19913_s2 + $0x190] ss:$8 sps:$4 sm:$0xff]  }
0x1282   : > { %10324 = vmatprep.subr.bf16.mxu1 %v16082_v57  ;;  %v16139_v29 = vld [vmem:[%s19913_s2 + $0x1a4] ss:$8 sps:$4 sm:$0xff]   ;;  %v16137_v53 = vld [vmem:[%s19913_s2 + $0x1a0] ss:$8 sps:$4 sm:$0xff]   ;;  %v16173_v14 = vld [vmem:[%s19916_s1 + $0x58] sm:$0xff]   ;;  %vm19935_vm2 = vcmask 1041408  }
0x1283   : > { %14620 = vmatprep.subr.bf16.mxu0 %v16173_v14  ;;  %v16175_v24 = vld [vmem:[%s19916_s1 + $0x60] sm:$0xff]   ;;  %v16140_v57 = vld [vmem:[%s19913_s2 + $0x1b0] ss:$8 sps:$4 sm:$0xff]   ;;  %vm19934_vm10 = vmmov %vm19933_vm4 }
0x1284   : > { %v16180_v55 = vld [vmem:[%s19916_s1 + $0x30] sm:$0xff]   ;;  %v16181_v37 = vld [vmem:[%s19916_s1 + $0x78] sm:$0xff]   ;;  %v16183_v19 = vld [vmem:[%s19916_s1 + $0xc0] sm:$0xff]  }
0x1285   : > { %10325 = vmatpush1.bf16.msra.mxu1 %v16080_v8  ;;  %v16145_v8 = vld [vmem:[%s19913_s2 + $0x1c4] ss:$8 sps:$4 sm:$0xff]   ;;  %v16152_v32 = vld [vmem:[%s19913_s2 + $0x1f0] ss:$8 sps:$4 sm:$0xff]   ;;  %vm19936_vm12 = vmmov %vm19935_vm2 }
0x1286   : > { %10420 = vmatprep.subr.bf16.mxu1 %v16085_v21  ;;  %v16176_v21 = vld [vmem:[%s19916_s1 + $0x20] sm:$0xff]   ;;  %v16164_v5 = vld [vmem:[%s19913_s2 + $0x230] ss:$8 sps:$4 sm:$0xff]   ;;  %vm19941_vm6 = vmmov %vm19933_vm4 }
0x1287   : > { %vm19943_vm3 = vmmov %vm19935_vm2 }
0x1288   : > { %13913 = vmatmul.mubr.msk.bf16.vlgmr.msra.gmra.mrb[68].mxu1 %vm19923_vm14, %v10159_v47  ;;  %v16148_v47 = vld [vmem:[%s19913_s2 + $0x1d4] ss:$8 sps:$4 sm:$0xff]   ;;  %vm19940_vm14 = vmmov %vm19933_vm4 }
0x1289   : > { %10421 = vmatpush1.bf16.msra.mxu1 %v16083_v17  ;;  %10452 = vmatprep.mubr.bf16.mxu1 %v19673_v7  ;;  %v16177_v17 = vld [vmem:[%s19916_s1 + $0x68] sm:$0xff]  }
0x128a   : > { %10422 = vmatprep.subr.bf16.mxu1 %v16088_v56  ;;  %v16143_v56 = vld [vmem:[%s19913_s2 + $0x1c0] ss:$8 sps:$4 sm:$0xff]  }
0x128d   : > { %10423 = vmatpush1.bf16.msra.mxu1 %v16086_v49  ;;  %v16178_v49 = vld [vmem:[%s19916_s1 + $0x28] sm:$0xff]  }
0x128e   : > { %10424 = vmatprep.subr.bf16.mxu1 %v16091_v2  ;;  %v16179_v2 = vld [vmem:[%s19916_s1 + $0x70] sm:$0xff]  }
0x1291   : > { %10425 = vmatpush1.bf16.msra.mxu1 %v16089_v30  ;;  %v16146_v30 = vld [vmem:[%s19913_s2 + $0x1d0] ss:$8 sps:$4 sm:$0xff]  }
0x1292   : > { %10426 = vmatprep.subr.bf16.mxu1 %v16094_v20  ;;  %v16151_v20 = vld [vmem:[%s19913_s2 + $0x1e4] ss:$8 sps:$4 sm:$0xff]  }
0x1295   : > { %10427 = vmatpush1.bf16.msra.mxu1 %v16092_v45  ;;  %v16149_v45 = vld [vmem:[%s19913_s2 + $0x1e0] ss:$8 sps:$4 sm:$0xff]  }
0x1296   : > { %10526 = vmatprep.subr.bf16.mxu1 %v16097_v46  ;;  %v16154_v46 = vld [vmem:[%s19913_s2 + $0x1f4] ss:$8 sps:$4 sm:$0xff]  }
0x1298   : > { %13930 = vmatmul.mubr.msk.bf16.vlgmr.msra.gmra.mrb[68].mxu1 %vm19925_vm15, %v10376_v54  ;;  %v16160_v54 = vld [vmem:[%s19913_s2 + $0x214] ss:$8 sps:$4 sm:$0xff]   ;;  %vm19942_vm15 = vmmov %vm19935_vm2 }
0x1299   : > { %10527 = vmatpush1.bf16.msra.mxu1 %v16095_v52  ;;  %10558 = vmatprep.mubr.bf16.mxu1 %v19673_v7  ;;  %v16157_v52 = vld [vmem:[%s19913_s2 + $0x204] ss:$8 sps:$4 sm:$0xff]  }
0x129a   : > { %10528 = vmatprep.subr.bf16.mxu1 %v16100_v44  ;;  %v16155_v44 = vld [vmem:[%s19913_s2 + $0x200] ss:$8 sps:$4 sm:$0xff]  }
0x129d   : > { %10529 = vmatpush1.bf16.msra.mxu1 %v16098_v6  ;;  %v16158_v6 = vld [vmem:[%s19913_s2 + $0x210] ss:$8 sps:$4 sm:$0xff]  }
0x129e   : > { %10530 = vmatprep.subr.bf16.mxu1 %v16103_v63  ;;  %v16163_v63 = vld [vmem:[%s19913_s2 + $0x224] ss:$8 sps:$4 sm:$0xff]  }
0x12a1   : > { %10531 = vmatpush1.bf16.msra.mxu1 %v16101_v35  ;;  %v16161_v35 = vld [vmem:[%s19913_s2 + $0x220] ss:$8 sps:$4 sm:$0xff]  }
0x12a2   : > { %10532 = vmatprep.subr.bf16.mxu1 %v16106_v27  ;;  %v16166_v27 = vld [vmem:[%s19913_s2 + $0x234] ss:$8 sps:$4 sm:$0xff]  }
0x12a5   : > { %10533 = vmatpush1.bf16.msra.mxu1 %v16104_v58 }
0x12a6   : > { %10634 = vmatprep.subr.bf16.mxu1 %v16109_v51 }
0x12a8   : > { %13947 = vmatmul.mubr.msk.bf16.vlgmr.msra.gmra.mrb[68].mxu1 %vm19927_vm5, %v10482_v23  ;;  %vm19944_vm5 = vmmov %vm19922_vm7 }
0x12a9   : > { %10635 = vmatpush1.bf16.msra.mxu1 %v16107_v26  ;;  %10666 = vmatprep.mubr.bf16.mxu1 %v19673_v7 }
0x12aa   : > { %10636 = vmatprep.subr.bf16.mxu1 %v16112_v31 }
0x12ad   : > { %10637 = vmatpush1.bf16.msra.mxu1 %v16110_v59 }
0x12ae   : > { %10638 = vmatprep.subr.bf16.mxu1 %v16115_v38 }
0x12b1   : > { %10639 = vmatpush1.bf16.msra.mxu1 %v16113_v40 }
0x12b2   : > { %10640 = vmatprep.subr.bf16.mxu1 %v16118_v34 }
0x12b5   : > { %10641 = vmatpush1.bf16.msra.mxu1 %v16116_v42 }
0x12b6   : > { %10740 = vmatprep.subr.bf16.mxu1 %v16121_v60 }
0x12b8   : > { %13964 = vmatmul.mubr.msk.bf16.vlgmr.msra.gmra.mrb[68].mxu1 %vm19928_vm8, %v19024_v50  ;;  %v16136_v50 = vld [vmem:[%s19913_s2 + $0x194] ss:$8 sps:$4 sm:$0xff]   ;;  %s19939_s2 = smov %s19938_s7  ;;  %vm19945_vm8 = vmmov %vm19944_vm5 }
0x12b9   : > { %10741 = vmatpush1.bf16.msra.mxu1 %v16119_v22  ;;  %10772 = vmatprep.mubr.bf16.mxu1 %v19673_v7 }
0x12ba   : > { %10742 = vmatprep.subr.bf16.mxu1 %v16124_v39 }
0x12bd   : > { %10743 = vmatpush1.bf16.msra.mxu1 %v16122_v9 }
0x12be   : > { %10744 = vmatprep.subr.bf16.mxu1 %v16127_v13 }
0x12c1   : > { %10745 = vmatpush1.bf16.msra.mxu1 %v16125_v36 }
0x12c2   : > { %10746 = vmatprep.subr.bf16.mxu1 %v16130_v16 }
0x12c5   : > { %10747 = vmatpush1.bf16.msra.mxu1 %v16128_v0 }
0x12c6   : > { %10846 = vmatprep.subr.bf16.mxu1 %v16133_v62 }
0x12c8   : > { %13981 = vmatmul.mubr.msk.bf16.vlgmr.msra.gmra.mrb[68].mxu1 %vm19929_vm13, %v19016_v41  ;;  %v16174_v41 = vld [vmem:[%s19916_s1 + $0x18] sm:$0xff]   ;;  %vm11701_vm13 = vsmask.f32 1280 }
0x12c9   : > { %10847 = vmatpush1.bf16.msra.mxu1 %v16131_v10  ;;  %10878 = vmatprep.mubr.bf16.mxu1 %v19673_v7 }
0x12ca   : > { %10848 = vmatprep.subr.bf16.mxu1 %v16136_v50  ;;  %14621 = vmatpush3.bf16.msra.mxu0 %v16174_v41 }
0x12cb   : > { %14622 = vmatprep.subr.bf16.mxu0 %v16175_v24 }
0x12cd   : > { %10849 = vmatpush1.bf16.msra.mxu1 %v16134_v48 }
0x12ce   : > { %10850 = vmatprep.subr.bf16.mxu1 %v16139_v29  ;;  %14623 = vmatpush3.bf16.msra.mxu0 %v16176_v21 }
0x12cf   : > { %14624 = vmatprep.subr.bf16.mxu0 %v16177_v17 }
0x12d1   : > { %10851 = vmatpush1.bf16.msra.mxu1 %v16137_v53 }
0x12d2   : > { %10852 = vmatprep.subr.bf16.mxu1 %v16142_v43  ;;  %14625 = vmatpush3.bf16.msra.mxu0 %v16178_v49 }
0x12d3   : > { %14626 = vmatprep.subr.bf16.mxu0 %v16179_v2 }
0x12d5   : > { %10853 = vmatpush1.bf16.msra.mxu1 %v16140_v57 }
0x12d6   : > { %10952 = vmatprep.subr.bf16.mxu1 %v16145_v8  ;;  %14627 = vmatpush3.bf16.msra.mxu0 %v16180_v55  ;;  %v16184_v55 = vld [vmem:[%s19916_s1 + $0x80] sm:$0xff]  }
0x12d7   : > { %14628 = vmatprep.subr.bf16.mxu0 %v16181_v37 }
0x12d8   : > { %13998 = vmatmul.mubr.msk.bf16.vlgmr.msra.gmra.mrb[68].mxu1 %vm19930_vm1, %v19027_v1  ;;  %v16182_v1 = vld [vmem:[%s19916_s1 + $0x38] sm:$0xff]   ;;  %vm19948_vm1 = vmmov %vm19914_vm0 }
0x12d9   : > { %10953 = vmatpush1.bf16.msra.mxu1 %v16143_v56  ;;  %10984 = vmatprep.mubr.bf16.mxu1 %v19673_v7 }
0x12da   : > { %10954 = vmatprep.subr.bf16.mxu1 %v16148_v47  ;;  %14629 = vmatpush3.bf16.msra.mxu0 %v16182_v1  ;;  %v16187_v1 = vld [vmem:[%s19916_s1 + $0xd0] sm:$0xff]  }
0x12db   : > { %14636 = vmatprep.subr.bf16.mxu0 %v16183_v19  ;;  %v16188_v19 = vld [vmem:[%s19916_s1 + $0x90] sm:$0xff]  }
0x12dd   : > { %10955 = vmatpush1.bf16.msra.mxu1 %v16146_v30 }
0x12de   : > { %10956 = vmatprep.subr.bf16.mxu1 %v16151_v20 }
0x12e1   : > { %10957 = vmatpush1.bf16.msra.mxu1 %v16149_v45  ;;  %v16185_v45 = vld [vmem:[%s19916_s1 + $0xc8] sm:$0xff]  }
0x12e2   : > { %10958 = vmatprep.subr.bf16.mxu1 %v16154_v46  ;;  %v16186_v46 = vld [vmem:[%s19916_s1 + $0x88] sm:$0xff]  }
0x12e5   : > { %10959 = vmatpush1.bf16.msra.mxu1 %v16152_v32  ;;  %v16189_v32 = vld [vmem:[%s19916_s1 + $0xd8] sm:$0xff]  }
0x12e6   : > { %11058 = vmatprep.subr.bf16.mxu1 %v16157_v52  ;;  %v16190_v52 = vld [vmem:[%s19916_s1 + $0x98] sm:$0xff]  }
0x12e8   : > { %14015 = vmatmul.mubr.msk.bf16.vlgmr.msra.gmra.mrb[68].mxu1 %vm19931_vm11, %v19037_v4  ;;  %v19150_v4 = vld [vmem:[%s19932_s11] sm:$0xf]  ;;  %s19946_s11 = sld [smem:[#allocation46_spill]]  ;;  %vm19949_vm11 = vmmov %vm19935_vm2 }
0x12e9   : > { %11059 = vmatpush1.bf16.msra.mxu1 %v16155_v44  ;;  %11090 = vmatprep.mubr.bf16.mxu1 %v19673_v7  ;;  %v11110_v18 = vrot.slane %v19150_v4, %v18242_v28  ;;  %v11114_v58 = vrot.slane %v19150_v4, %v18286_v61  ;;  %v16191_v44 = vld [vmem:[%s19916_s1 + $0xe0] sm:$0xff]  }
0x12ea   : > { %11060 = vmatprep.subr.bf16.mxu1 %v16160_v54  ;;  %v16192_v54 = vld [vmem:[%s19916_s1 + $0xa0] sm:$0xff]  }
0x12ed   : > { %11061 = vmatpush1.bf16.msra.mxu1 %v16158_v6  ;;  %v16193_v6 = vld [vmem:[%s19916_s1 + $0xe8] sm:$0xff]  }
0x12ee   : > { %11062 = vmatprep.subr.bf16.mxu1 %v16163_v63  ;;  %v16194_v63 = vld [vmem:[%s19916_s1 + $0xa8] sm:$0xff]  }
0x12f1   : > { %11063 = vmatpush1.bf16.msra.mxu1 %v16161_v35  ;;  %v16195_v35 = vld [vmem:[%s19916_s1 + $0xf0] sm:$0xff]  }
0x12f2   : > { %11064 = vmatprep.subr.bf16.mxu1 %v16166_v27  ;;  %v16196_v27 = vld [vmem:[%s19916_s1 + $0xb0] sm:$0xff]  }
0x12f5   : > { %11065 = vmatpush1.bf16.msra.mxu1 %v16164_v5  ;;  %v16197_v5 = vld [vmem:[%s19916_s1 + $0xf8] sm:$0xff]  }
0x12f8   : > { %14032 = vmatmul.mubr.msk.bf16.vlgmr.msra.gmra.mrb[68].mxu1 %vm19914_vm0, %v19040_v15  ;;  %vm11702_vm0 = vmand %vm19949_vm11, %vm11701_vm13 }
0x12f9   : > { %12208 = vmatprep.mubr.bf16.mxu1 %v19673_v7 }
0x133d   : > { %v10140_v51 = vpop.f32.mrb[116].mxu0 }
0x133e   : > { %v11127_v25 = vadd.f32 %v11110_v18, %v10140_v51  ;;  %v10142_v12 = vpop.f32.mrb[117].mxu0  ;;  %v11121_v51 = vsub.s32 3, %v19812_v33 }
0x133f   : > { %v11128_v26 = vadd.f32 %v11114_v58, %v10142_v12  ;;  %v10144_v31 = vpop.f32.mrb[118].mxu0 }
0x1340   : > { %v11135_v23 = vmax.f32 %v11127_v25, 0.0  ;;  %v11131_v59 = vadd.f32 %v11110_v18, %v10144_v31  ;;  %v10146_v38 = vpop.f32.mrb[119].mxu0  ;;  %v16198_v18 = vld [vmem:[%s19916_s1 + $0xb8] sm:$0xff]   ;;  %v11118_v25 = vrot.slane %v19150_v4, %v18739_v3  ;;  %v11122_v12 = vrot.slane %v19150_v4, %v11121_v51  ;;  %s19947_s1 = smov %s19946_s11 }
0x1341   : > { %v11136_v40 = vmax.f32 %v11128_v26, 0.0  ;;  %v11132_v15 = vadd.f32 %v11114_v58, %v10146_v38  ;;  %v16201_v58 = vld [vmem:[%s19938_s7 + $0x4] ss:$8 sps:$4 sm:$0xff]   ;;  %s1392_s7 = sand.u32 1, %s16533_s10  }
0x1342   : > { %v11147_v34 = vrot.slane %v11135_v23, 4  ;;  %v11139_v42 = vmax.f32 %v11131_v59, 0.0  ;;  %s13035_s4 = scalar_lea.sflag [#allocation4], %s1392_s7 }
0x1343   : > { %v11148_v60 = vrot.slane %v11136_v40, 4  ;;  %v11140_v22 = vmax.f32 %v11132_v15, 0.0 }
0x1344   : > { %v11155_v39 = vmax.f32 %v11135_v23, %v11147_v34  ;;  %v11179_v9 = vrot.slane %v11139_v42, 4 }
0x1345   : > { %v11156_v13 = vmax.f32 %v11136_v40, %v11148_v60  ;;  %v11180_v36 = vrot.slane %v11140_v22, 4 }
0x1346   : > { %v11163_v16 = vrot.slane %v11155_v39, 1  ;;  %v11187_v0 = vmax.f32 %v11139_v42, %v11179_v9 }
0x1347   : > { %v11164_v62 = vrot.slane %v11156_v13, 1  ;;  %v11188_v10 = vmax.f32 %v11140_v22, %v11180_v36 }
0x1348   : > { %v11171_v50 = vmax.f32 %v11155_v39, %v11163_v16  ;;  %v11195_v48 = vrot.slane %v11187_v0, 1 }
0x1349   : > { %v11172_v29 = vmax.f32 %v11156_v13, %v11164_v62  ;;  %v11196_v11 = vrot.slane %v11188_v10, 1 }
0x134a   : > { %v11211_v53 = vrot.slane %v11171_v50, 1  ;;  %v11203_v14 = vmax.f32 %v11187_v0, %v11195_v48 }
0x134b   : > { %v11212_v43 = vrot.slane %v11172_v29, 1  ;;  %v11204_v41 = vmax.f32 %v11188_v10, %v11196_v11 }
0x134c   : > { %v11239_v24 = vsel %vm19933_vm4, %v11171_v50, %v11211_v53  ;;  %v11223_v57 = vrot.slane %v11203_v14, 6  ;;  %v11231_v8 = vrot.slane %v11203_v14, 7  ;;  %vm19950_vm4 = vsmask.f32 3328 }
0x134d   : > { %v11224_v21 = vrot.slane %v11204_v41, 6  ;;  %v11232_v17 = vrot.slane %v11204_v41, 7  ;;  %v11240_v56 = vsel %vm19934_vm10, %v11172_v29, %v11212_v43  ;;  %vm19951_vm10 = vcmask 1043456  }
0x134e   : > { %v11243_v47 = vsel %vm19935_vm2, %v11239_v24, %v11223_v57  ;;  %vm11704_vm2 = vmand %vm19951_vm10, %vm19950_vm4 }
0x134f   : > { %v11244_v49 = vsel %vm19936_vm12, %v11240_v56, %v11224_v21  ;;  %v11247_v2 = vsel %vm19937_vm9, %v11243_v47, %v11231_v8 }
0x1350   : > { %v11248_v30 = vsel %vm19922_vm7, %v11244_v49, %v11232_v17  ;;  %v11251_v37 = vpack.c.bf16 %v11247_v2, %v11247_v2  ;;  %vm19954_vm7 = vmmov %vm19948_vm1 }
0x1351   : > { %v11252_v20 = vpack.c.bf16 %v11248_v30, %v11248_v30 }
0x1353   : > { %11550 = vmatprep.mubr.bf16.mxu0 %v11252_v20 }
0x1354   : > { %11551 = vmatmul.mubr.bf16.vlgmr.msra.gmra.mrb[120].mxu0 %v11251_v37 }
0x1355   : > { %14637 = vmatpush3.bf16.msra.mxu0 %v16184_v55 }
0x1356   : > { %14638 = vmatprep.subr.bf16.mxu0 %v16185_v45  ;;  %v16199_v45 = vld [vmem:[%s19939_s2] ss:$8 sps:$4 sm:$0xff]  }
0x1359   : > { %14639 = vmatpush3.bf16.msra.mxu0 %v16186_v46 }
0x135a   : > { %14640 = vmatprep.subr.bf16.mxu0 %v16187_v1  ;;  %v16204_v1 = vld [vmem:[%s19939_s2 + $0x14] ss:$8 sps:$4 sm:$0xff]  }
0x135d   : > { %14641 = vmatpush3.bf16.msra.mxu0 %v16188_v19  ;;  %v16202_v19 = vld [vmem:[%s19939_s2 + $0x10] ss:$8 sps:$4 sm:$0xff]  }
0x135e   : > { %14642 = vmatprep.subr.bf16.mxu0 %v16189_v32 }
0x1361   : > { %14643 = vmatpush3.bf16.msra.mxu0 %v16190_v52 }
0x1362   : > { %14644 = vmatprep.subr.bf16.mxu0 %v16191_v44 }
0x1365   : > { %14645 = vmatpush3.bf16.msra.mxu0 %v16192_v54 }
0x1366   : > { %14646 = vmatprep.subr.bf16.mxu0 %v16193_v6 }
0x1369   : > { %14647 = vmatpush3.bf16.msra.mxu0 %v16194_v63  ;;  %v16205_v63 = vld [vmem:[%s19939_s2 + $0x20] ss:$8 sps:$4 sm:$0xff]  }
0x136a   : > { %14648 = vmatprep.subr.bf16.mxu0 %v16195_v35  ;;  %v16207_v35 = vld [vmem:[%s19939_s2 + $0x24] ss:$8 sps:$4 sm:$0xff]  }
0x136d   : > { %14649 = vmatpush3.bf16.msra.mxu0 %v16196_v27  ;;  %v16210_v27 = vld [vmem:[%s19939_s2 + $0x34] ss:$8 sps:$4 sm:$0xff]  }
0x136e   : > { %14650 = vmatprep.subr.bf16.mxu0 %v16197_v5  ;;  %v16211_v5 = vld [vmem:[%s19946_s11 + $0x100] ss:$8 sps:$4 sm:$0xff]   ;;  %s14254_s11 = sshll.u32 %s16853_s0, 4 }
0x136f   : > { %s19393_s3 = scalar_lea.hbm %s16830_s20, %s14254_s11 }
0x1371   : > { %14651 = vmatpush3.bf16.msra.mxu0 %v16198_v18  ;;  %v16213_v18 = vld [vmem:[%s19947_s1 + $0x104] ss:$8 sps:$4 sm:$0xff]  }
0x1372   : > { %11651 = vmatprep.subr.bf16.mxu0 %v16201_v58  ;;  %v16208_v58 = vld [vmem:[%s19939_s2 + $0x30] ss:$8 sps:$4 sm:$0xff]   ;;  %12176 = vmatprep.subr.bf16.mxu1 %v16213_v18  ;;  %v16247_v18 = vld [vmem:[%s19947_s1 + $0x1a0] ss:$8 sps:$4 sm:$0xff]  }
0x1373   : > { %12177 = vmatpush1.bf16.msra.mxu1 %v16211_v5 }
0x13cb   : > { %v11092_v26 = vpop.f32.mrb[68].mxu1 }
0x13cc   : > { %v11129_v31 = vadd.f32 %v11118_v25, %v11092_v26  ;;  %v11094_v23 = vpop.f32.mrb[69].mxu1  ;;  %v16217_v26 = vld [vmem:[%s19947_s1 + $0x110] ss:$8 sps:$4 sm:$0xff]  }
0x13cd   : > { %v11130_v59 = vadd.f32 %v11122_v12, %v11094_v23  ;;  %v11096_v38 = vpop.f32.mrb[70].mxu1  ;;  %v16223_v23 = vld [vmem:[%s19947_s1 + $0x120] ss:$8 sps:$4 sm:$0xff]  }
0x13ce   : > { %v11137_v40 = vmax.f32 %v11129_v31, 0.0  ;;  %v11133_v15 = vadd.f32 %v11118_v25, %v11096_v38  ;;  %v11098_v34 = vpop.f32.mrb[71].mxu1  ;;  %v16219_v25 = vld [vmem:[%s19947_s1 + $0x114] ss:$8 sps:$4 sm:$0xff]   ;;  %v16225_v31 = vld [vmem:[%s19947_s1 + $0x124] ss:$8 sps:$4 sm:$0xff]  }
0x13cf   : > { %v11138_v42 = vmax.f32 %v11130_v59, 0.0  ;;  %v11134_v60 = vadd.f32 %v11122_v12, %v11098_v34  ;;  %v16216_v12 = vld [vmem:[%s19947_s1 + $0x44] ss:$8 sps:$4 sm:$0xff]   ;;  %12178 = vmatprep.subr.bf16.mxu1 %v16219_v25  ;;  %v16231_v59 = vld [vmem:[%s19947_s1 + $0x134] ss:$8 sps:$4 sm:$0xff]  }
0x13d0   : > { %v11149_v22 = vrot.slane %v11137_v40, 4  ;;  %v11141_v39 = vmax.f32 %v11133_v15, 0.0  ;;  %12179 = vmatpush1.bf16.msra.mxu1 %v16217_v26  ;;  %v16229_v38 = vld [vmem:[%s19947_s1 + $0x130] ss:$8 sps:$4 sm:$0xff]   ;;  %v14033_v15 = vld [vmem:[#allocation7] ss:$0 sm:$0xff] }
0x13d1   : > { %v11150_v9 = vrot.slane %v11138_v42, 4  ;;  %v11142_v13 = vmax.f32 %v11134_v60, 0.0  ;;  %12180 = vmatprep.subr.bf16.mxu1 %v16225_v31  ;;  %v16250_v25 = vld [vmem:[%s19947_s1 + $0x20] ss:$8 sps:$4 sm:$0xff]   ;;  %v16258_v26 = vld [vmem:[%s19947_s1 + $0x34] ss:$8 sps:$4 sm:$0xff]  }
0x13d2   : > { %v11157_v36 = vmax.f32 %v11137_v40, %v11149_v22  ;;  %v11181_v16 = vrot.slane %v11141_v39, 4  ;;  %v16237_v40 = vld [vmem:[%s19947_s1 + $0x184] ss:$8 sps:$4 sm:$0xff]   ;;  %v16253_v31 = vld [vmem:[%s19947_s1 + $0x1b0] ss:$8 sps:$4 sm:$0xff]  }
0x13d3   : > { %v11158_v0 = vmax.f32 %v11138_v42, %v11150_v9  ;;  %v11182_v62 = vrot.slane %v11142_v13, 4 }
0x13d4   : > { %v11165_v10 = vrot.slane %v11157_v36, 1  ;;  %v11189_v4 = vmax.f32 %v11141_v39, %v11181_v16  ;;  %12181 = vmatpush1.bf16.msra.mxu1 %v16223_v23  ;;  %v16214_v16 = vld [vmem:[%s19947_s1 + $0x40] ss:$8 sps:$4 sm:$0xff]   ;;  %v16261_v23 = vld [vmem:[%s19947_s1 + $0x204] ss:$8 sps:$4 sm:$0xff]  }
0x13d5   : > { %v11166_v50 = vrot.slane %v11158_v0, 1  ;;  %v11190_v48 = vmax.f32 %v11142_v13, %v11182_v62  ;;  %12182 = vmatprep.subr.bf16.mxu1 %v16231_v59  ;;  %v16222_v62 = vld [vmem:[%s19947_s1 + $0x54] ss:$8 sps:$4 sm:$0xff]   ;;  %v16256_v59 = vld [vmem:[%s19947_s1 + $0x30] ss:$8 sps:$4 sm:$0xff]  }
0x13d6   : > { %v11173_v29 = vmax.f32 %v11157_v36, %v11165_v10  ;;  %v11197_v11 = vrot.slane %v11189_v4, 1 }
0x13d7   : > { %v11174_v53 = vmax.f32 %v11158_v0, %v11166_v50  ;;  %v11198_v14 = vrot.slane %v11190_v48, 1  ;;  %v16220_v50 = vld [vmem:[%s19947_s1 + $0x50] ss:$8 sps:$4 sm:$0xff]  }
0x13d8   : > { %v11213_v43 = vrot.slane %v11173_v29, 1  ;;  %v11205_v41 = vmax.f32 %v11189_v4, %v11197_v11  ;;  %12183 = vmatpush1.bf16.msra.mxu1 %v16229_v38 }
0x13d9   : > { %v11214_v24 = vrot.slane %v11174_v53, 1  ;;  %v11206_v57 = vmax.f32 %v11190_v48, %v11198_v14  ;;  %12376 = vmatprep.subr.bf16.mxu1 %v16237_v40  ;;  %v11710_v48 = vand.u32 1, %v19812_v33  ;;  %v16264_v40 = vld [vmem:[%s19947_s1 + $0x84] ss:$8 sps:$4 sm:$0xff]  }
0x13da   : > { %v11241_v8 = vsel %vm19940_vm14, %v11173_v29, %v11213_v43  ;;  %v11225_v21 = vrot.slane %v11205_v41, 6  ;;  %v11233_v17 = vrot.slane %v11205_v41, 7  ;;  %v16226_v43 = vld [vmem:[%s19947_s1 + $0x60] ss:$8 sps:$4 sm:$0xff]   ;;  %vm19955_vm14 = vmmov %vm19948_vm1  ;;  %v16285_v41 = vld [vmem:[%s19947_s1 + $0xc4] ss:$8 sps:$4 sm:$0xff]  }
0x13db   : > { %v11226_v56 = vrot.slane %v11206_v57, 6  ;;  %v11234_v47 = vrot.slane %v11206_v57, 7  ;;  %v11242_v49 = vsel %vm19941_vm6, %v11174_v53, %v11214_v24  ;;  %v16228_v53 = vld [vmem:[%s19947_s1 + $0x64] ss:$8 sps:$4 sm:$0xff]   ;;  %vm19219_vm12 = vcmp.ge.s32.totalorder %v11710_v48, 1 }
0x13dc   : > { %v11245_v2 = vsel %vm19942_vm15, %v11241_v8, %v11225_v21  ;;  %v16234_v57 = vld [vmem:[%s19947_s1 + $0x74] ss:$8 sps:$4 sm:$0xff]   ;;  %vm11720_vm9 = vmpackc.low %vm19219_vm12, %vm19219_vm12  ;;  %vm19259_vm6 = vcmp.le.s32.totalorder %v11710_v48, 0 }
0x13dd   : > { %v11246_v30 = vsel %vm19943_vm3, %v11242_v49, %v11226_v56  ;;  %v11249_v20 = vsel %vm19944_vm5, %v11245_v2, %v11233_v17  ;;  %v16232_v56 = vld [vmem:[%s19947_s1 + $0x70] ss:$8 sps:$4 sm:$0xff]   ;;  %vm11914_vm3 = vmpackc.low %vm19259_vm6, %vm19259_vm6 }
0x13de   : > { %v11250_v55 = vsel %vm19945_vm8, %v11246_v30, %v11234_v47  ;;  %v11253_v46 = vpack.c.bf16 %v11249_v20, %v11249_v20  ;;  %v16240_v30 = vld [vmem:[%s19947_s1 + $0x4] ss:$8 sps:$4 sm:$0xff]   ;;  %v16235_v20 = vld [vmem:[%s19947_s1 + $0x180] ss:$8 sps:$4 sm:$0xff]   ;;  %vm19958_vm5 = vmmov %vm19948_vm1 }
0x13df   : > { %v11254_v37 = vpack.c.bf16 %v11250_v55, %v11250_v55  ;;  %v12018_v55 = vsel %vm11720_vm9, 65537, %v19673_v7  ;;  %vm19959_vm8 = vmmov %vm19948_vm1 }
0x13e0   : > { %vm19960_vm11 = vmmov %vm19958_vm5 }
0x13e1   : > { %11590 = vmatprep.mubr.bf16.mxu0 %v11254_v37 }
0x13e2   : > { %11591 = vmatmul.mubr.bf16.vlgmr.msra.gmra.mrb[124].mxu0 %v11253_v46 }
0x13e3   : > { %11652 = vmatpush1.bf16.msra.mxu0 %v16199_v45  ;;  %11683 = vmatprep.mubr.bf16.mxu0 %v19673_v7 }
0x13e4   : > { %11653 = vmatprep.subr.bf16.mxu0 %v16204_v1  ;;  %v16243_v1 = vld [vmem:[%s19947_s1 + $0x194] ss:$8 sps:$4 sm:$0xff]  }
0x13e7   : > { %11654 = vmatpush1.bf16.msra.mxu0 %v16202_v19 }
0x13e8   : > { %11655 = vmatprep.subr.bf16.mxu0 %v16207_v35  ;;  %v16244_v35 = vld [vmem:[%s19947_s1 + $0x10] ss:$8 sps:$4 sm:$0xff]  }
0x13eb   : > { %11656 = vmatpush1.bf16.msra.mxu0 %v16205_v63  ;;  %v16249_v63 = vld [vmem:[%s19947_s1 + $0x1a4] ss:$8 sps:$4 sm:$0xff]  }
0x13ec   : > { %11657 = vmatprep.subr.bf16.mxu0 %v16210_v27  ;;  %v16252_v27 = vld [vmem:[%s19947_s1 + $0x24] ss:$8 sps:$4 sm:$0xff]  }
0x13ef   : > { %11658 = vmatpush1.bf16.msra.mxu0 %v16208_v58  ;;  %v16255_v58 = vld [vmem:[%s19947_s1 + $0x1b4] ss:$8 sps:$4 sm:$0xff]  }
0x13f0   : > { %11789 = vmatprep.subr.bf16.mxu0 %v16216_v12  ;;  %v16310_v12 = vld [vmem:[%s19947_s1 + $0x1d0] ss:$8 sps:$4 sm:$0xff]  }
0x1427   : > { %v14630_v32 = vpop.f32.mrb[120].mxu0 }
0x1428   : > { %v14631_v52 = vpop.f32.mrb[121].mxu0 }
0x1429   : > { %v14632_v44 = vadd.f32 %v14631_v52, %v14630_v32  ;;  %v14633_v54 = vpop.f32.mrb[122].mxu0  ;;  %v16238_v32 = vld [vmem:[%s19947_s1] ss:$8 sps:$4 sm:$0xff]   ;;  %v16246_v52 = vld [vmem:[%s19947_s1 + $0x14] ss:$8 sps:$4 sm:$0xff]  }
0x142a   : > { %v14634_v6 = vpop.f32.mrb[123].mxu0 }
0x142b   : > { %v11553_v60 = vadd.f32 %v14632_v44, %v14033_v15  ;;  %v19244_v44 = vcombine.low %v12018_v55, %v12018_v55  ;;  %v16241_v6 = vld [vmem:[%s19947_s1 + $0x190] ss:$8 sps:$4 sm:$0xff]   ;;  %v16259_v15 = vld [vmem:[%s19947_s1 + $0x200] ss:$8 sps:$4 sm:$0xff]  }
0x142c   : > { %v16292_v55 = vld [vmem:[%s19947_s1 + $0xf0] ss:$8 sps:$4 sm:$0xff]  }
0x142d   : > { %v12319_v5 = vrot.slane %v19244_v44, 6 }
0x142f   : > { %vm12320_vm15 = vcmp.ne.s16.totalorder %v12319_v5, 0 }
0x14b5   : > { %v14652_v34 = vpop.f32.mrb[124].mxu0 }
0x14b6   : > { %v14653_v42 = vpop.f32.mrb[125].mxu0 }
0x14b7   : > { %v14654_v22 = vadd.f32 %v14653_v42, %v14652_v34  ;;  %v14655_v39 = vpop.f32.mrb[126].mxu0  ;;  %v11915_v34 = vsel %vm11914_vm3, 65537, %v19673_v7  ;;  %vm19970_vm3 = vcmask 1040384  }
0x14b8   : > { %v14656_v9 = vpop.f32.mrb[127].mxu0  ;;  %v16270_v39 = vld [vmem:[%s19947_s1 + $0x94] ss:$8 sps:$4 sm:$0xff]  }
0x14b9   : > { %v11593_v13 = vadd.f32 %v14654_v22, %v11553_v60  ;;  %v16267_v60 = vld [vmem:[%s19947_s1 + $0x214] ss:$8 sps:$4 sm:$0xff]   ;;  %v16262_v22 = vld [vmem:[%s19947_s1 + $0x80] ss:$8 sps:$4 sm:$0xff]   ;;  %v19278_v9 = vcombine.low %v11915_v34, %v11915_v34 }
0x14ba   : > { %v16324_v34 = vld [vmem:[%s16820_s14 + $0x10] sm:$0xff]  }
0x14bb   : > { %v11598_v36 = vmax.f32 %v11593_v13, 0.0  ;;  %v11918_v48 = vrot.slane %v19278_v9, 7 }
0x14bd   : > { %v11599_v0 = vpack.c.bf16 %v11598_v36, %v11598_v36  ;;  %v16265_v36 = vld [vmem:[%s19947_s1 + $0x210] ss:$8 sps:$4 sm:$0xff]  }
0x14bf   : > { %v11692_v10 = vshrl.u32 %v11599_v0, 16  ;;  %v11695_v4 = vshll.u32 %v11599_v0, 16  ;;  %14074 = vmatmul.mubr.msk.bf16.vlgmr.msra.gmra.mrb[128].mxu0 %vm19948_vm1, %v11599_v0  ;;  %v16268_v0 = vld [vmem:[%s19947_s1 + $0x90] ss:$8 sps:$4 sm:$0xff]   ;;  %vm11919_vm1 = vcmp.ne.s16.totalorder %v11918_v48, 0 }
0x14c0   : > { %11790 = vmatpush1.bf16.msra.mxu0 %v16214_v16  ;;  %11821 = vmatprep.mubr.bf16.mxu0 %v19673_v7  ;;  %v16273_v16 = vld [vmem:[%s19947_s1 + $0x224] ss:$8 sps:$4 sm:$0xff]   ;;  %v16339_v48 = vld [vmem:[%s16820_s14 + $0xd0] sm:$0xff]  }
0x14c1   : > { %v11694_v29 = vrot.slane %v11692_v10, 6  ;;  %v11697_v11 = vrot.slane %v11695_v4, 7  ;;  %11791 = vmatprep.subr.bf16.mxu0 %v16222_v62  ;;  %v16276_v62 = vld [vmem:[%s19947_s1 + $0xa4] ss:$8 sps:$4 sm:$0xff]   ;;  %v12517_v10 = vrot.slane %v19278_v9, 5 }
0x14c2   : > { %v16271_v4 = vld [vmem:[%s19947_s1 + $0x220] ss:$8 sps:$4 sm:$0xff]  }
0x14c3   : > { %v11698_v14 = vor.u32 %v11697_v11, %v11694_v29  ;;  %v16274_v29 = vld [vmem:[%s19947_s1 + $0xa0] ss:$8 sps:$4 sm:$0xff]   ;;  %v16282_v11 = vld [vmem:[%s19947_s1 + $0xb4] ss:$8 sps:$4 sm:$0xff]   ;;  %vm12518_vm13 = vcmp.ne.s16.totalorder %v12517_v10, 0 }
0x14c4   : > { %11792 = vmatpush1.bf16.msra.mxu0 %v16220_v50  ;;  %v16279_v50 = vld [vmem:[%s19947_s1 + $0x234] ss:$8 sps:$4 sm:$0xff]   ;;  %v16336_v10 = vld [vmem:[%s16820_s14 + $0x80] sm:$0xff]  }
0x14c5   : > { %v11703_v24 = vsel %vm11702_vm0, 0, %v11698_v14  ;;  %11793 = vmatprep.subr.bf16.mxu0 %v16228_v53  ;;  %v16277_v53 = vld [vmem:[%s19947_s1 + $0x230] ss:$8 sps:$4 sm:$0xff]   ;;  %vm19961_vm0 = vmmov %vm19958_vm5 }
0x14c6   : > { %v19224_v8 = vsel %vm11704_vm2, %v11703_v24, 0  ;;  %v16280_v14 = vld [vmem:[%s19947_s1 + $0xb0] ss:$8 sps:$4 sm:$0xff]   ;;  %vm19962_vm10 = vmmov %vm19961_vm0 }
0x14c7   : > { %v11740_v21 = vshrl.u32 %v19224_v8, 16  ;;  %v11742_v17 = vshll.u32 %v19224_v8, 16  ;;  %v12321_v38 = vsel %vm12320_vm15, %v19224_v8, 0  ;;  %v11721_v13 = vsel %vm11720_vm9, %v19224_v8, 0  ;;  %vm19963_vm12 = vmmov %vm19961_vm0 }
0x14c8   : > { %11794 = vmatpush1.bf16.msra.mxu0 %v16226_v43  ;;  %v12332_v42 = vrot.slane %v12321_v38, 2  ;;  %v12519_v43 = vsel %vm12518_vm13, %v19224_v8, 0  ;;  %v11920_v24 = vsel %vm11919_vm1, %v19224_v8, 0  ;;  %v16320_v38 = vld [vmem:[%s16820_s14] sm:$0xff]   ;;  %vm19964_vm9 = vmmov %vm19961_vm0 }
0x14c9   : > { %11795 = vmatprep.subr.bf16.mxu0 %v16234_v57  ;;  %v12130_v47 = vrot.slane %v11740_v21, 1  ;;  %v12131_v49 = vrot.slane %v11742_v17, 2  ;;  %v11744_v2 = vrot.slane %v11742_v17, 1  ;;  %v12428_v37 = vrot.slane %v11740_v21, 2 }
0x14ca   : > { %v12429_v19 = vrot.slane %v11742_v17, 3  ;;  %v12530_v57 = vrot.slane %v12519_v43, 3  ;;  %v11931_v17 = vrot.slane %v11920_v24, 1  ;;  %v19366_v43 = vld [vmem:[%s19965_s6] sm:$0xf]  ;;  %v16345_v24 = vld [vmem:[%s16820_s14 + $0xe8] sm:$0xff]  }
0x14cb   : > { %v12132_v45 = vor.u32 %v12131_v49, %v12130_v47  ;;  %v11745_v46 = vor.u32 %v11744_v2, %v11740_v21  ;;  %v16283_v21 = vld [vmem:[%s19947_s1 + $0xc0] ss:$8 sps:$4 sm:$0xff]   ;;  %v16286_v47 = vld [vmem:[%s19947_s1 + $0xd0] ss:$8 sps:$4 sm:$0xff]   ;;  %v16291_v49 = vld [vmem:[%s19947_s1 + $0xe4] ss:$8 sps:$4 sm:$0xff]  }
0x14cc   : > { %11796 = vmatpush1.bf16.msra.mxu0 %v16232_v56  ;;  %v19246_v54 = vor.u32 %v12429_v19, %v12428_v37  ;;  %v16288_v56 = vld [vmem:[%s19947_s1 + $0xd4] ss:$8 sps:$4 sm:$0xff]   ;;  %v12021_v2 = vrot.slane %v19244_v44, 7  ;;  %v16297_v37 = vld [vmem:[%s19947_s1 + $0x144] ss:$8 sps:$4 sm:$0xff]   ;;  %v12219_v44 = vrot.slane %v19278_v9, 6 }
0x14cd   : > { %14153 = vmatmul.mubr.msk.bf16.vlgmr.msra.gmra.mrb[72].mxu1 %vm19954_vm7, %v12132_v45  ;;  %11873 = vmatprep.subr.bf16.mxu0 %v16240_v30  ;;  %v16289_v30 = vld [vmem:[%s19947_s1 + $0xe0] ss:$8 sps:$4 sm:$0xff]   ;;  %v16300_v19 = vld [vmem:[%s19947_s1 + $0x154] ss:$8 sps:$4 sm:$0xff]   ;;  %vm19966_vm7 = vcmask 1043456   ;;  %s16596_s6 = smov [#allocation10]  }
0x14ce   : > { %12377 = vmatpush1.bf16.msra.mxu1 %v16235_v20  ;;  %12408 = vmatprep.mubr.bf16.mxu1 %v19673_v7  ;;  %v16294_v20 = vld [vmem:[%s19947_s1 + $0xf4] ss:$8 sps:$4 sm:$0xff]   ;;  %vm12022_vm4 = vcmp.ne.s16.totalorder %v12021_v2, 0  ;;  %vm12220_vm2 = vcmp.ne.s16.totalorder %v12219_v44, 0  ;;  %v16330_v9 = vld [vmem:[%s16820_s14 + $0x28] sm:$0xff]   ;;  %vm19968_vm6 = vmmov %vm19966_vm7  ;;  %s16471_s0 = sshll.u32 %s16596_s6, 4  ;;  %s16472_s0 = int_to_ptr.vmem [resolvable:$false] %s16471_s0 }
0x14cf   : > { %14091 = vmatmul.mubr.msk.bf16.vlgmr.msra.gmra.mrb[132].mxu0 %vm19955_vm14, %v11745_v46  ;;  %12378 = vmatprep.subr.bf16.mxu1 %v16243_v1  ;;  %v12023_v45 = vsel %vm12022_vm4, %v19224_v8, 0  ;;  %v16295_v46 = vld [vmem:[%s19947_s1 + $0x140] ss:$8 sps:$4 sm:$0xff]   ;;  %v12221_v5 = vsel %vm12220_vm2, %v19224_v8, 0  ;;  %vm19967_vm14 = vmmov %vm19966_vm7  ;;  %s16473_s8 = scalar_lea.vmem %s16472_s0, 32 }
0x14d0   : > { %11874 = vmatpush1.bf16.msra.mxu0 %v16238_v32  ;;  %11905 = vmatprep.mubr.bf16.mxu0 %v19673_v7  ;;  %v12034_v1 = vrot.slane %v12023_v45, 1  ;;  %v16298_v32 = vld [vmem:[%s19947_s1 + $0x150] ss:$8 sps:$4 sm:$0xff]   ;;  %v16313_v8 = vld [vmem:[%s19947_s1 + $0x1e0] ss:$8 sps:$4 sm:$0xff]   ;;  %vm19969_vm15 = vmmov %vm19968_vm6 }
0x14d1   : > { %11875 = vmatprep.subr.bf16.mxu0 %v16246_v52  ;;  %v16303_v52 = vld [vmem:[%s19947_s1 + $0x164] ss:$8 sps:$4 sm:$0xff]   ;;  %v16348_v45 = vld [vmem:[%s16820_s14 + $0xb0] sm:$0xff]  }
0x14d2   : > { %12379 = vmatpush1.bf16.msra.mxu1 %v16241_v6  ;;  %v16301_v6 = vld [vmem:[%s19947_s1 + $0x160] ss:$8 sps:$4 sm:$0xff]  }
0x14d3   : > { %12380 = vmatprep.subr.bf16.mxu1 %v16249_v63  ;;  %v16306_v63 = vld [vmem:[%s19947_s1 + $0x174] ss:$8 sps:$4 sm:$0xff]  }
0x14d4   : > { %11876 = vmatpush1.bf16.msra.mxu0 %v16244_v35  ;;  %v16304_v35 = vld [vmem:[%s19947_s1 + $0x170] ss:$8 sps:$4 sm:$0xff]  }
0x14d5   : > { %11877 = vmatprep.subr.bf16.mxu0 %v16252_v27  ;;  %v16309_v27 = vld [vmem:[%s19947_s1 + $0x1c4] ss:$8 sps:$4 sm:$0xff]  }
0x14d6   : > { %12381 = vmatpush1.bf16.msra.mxu1 %v16247_v18  ;;  %v16307_v18 = vld [vmem:[%s19947_s1 + $0x1c0] ss:$8 sps:$4 sm:$0xff]  }
0x14d7   : > { %12382 = vmatprep.subr.bf16.mxu1 %v16255_v58  ;;  %v12232_v58 = vrot.slane %v12221_v5, 2 }
0x14d8   : > { %11878 = vmatpush1.bf16.msra.mxu0 %v16250_v25  ;;  %v16312_v25 = vld [vmem:[%s19947_s1 + $0x1d4] ss:$8 sps:$4 sm:$0xff]  }
0x14d9   : > { %11879 = vmatprep.subr.bf16.mxu0 %v16258_v26  ;;  %v16315_v26 = vld [vmem:[%s19947_s1 + $0x1e4] ss:$8 sps:$4 sm:$0xff]  }
0x14da   : > { %12383 = vmatpush1.bf16.msra.mxu1 %v16253_v31  ;;  %v16318_v31 = vld [vmem:[%s19947_s1 + $0x1f4] ss:$8 sps:$4 sm:$0xff]  }
0x14db   : > { %12574 = vmatprep.subr.bf16.mxu1 %v16261_v23  ;;  %v16316_v23 = vld [vmem:[%s19947_s1 + $0x1f0] ss:$8 sps:$4 sm:$0xff]   ;;  %s1393_s1 = scalar_lea.vmem [#allocation10], %s1392_s7 }
0x14dc   : > { %11880 = vmatpush1.bf16.msra.mxu0 %v16256_v59  ;;  %v16319_v59 = vld [vmem:[%s16820_s14 + $0x40] sm:$0xff]   ;;  %s13047_s2 = sshll.u32 %s1393_s1, 4  ;;  %s19395_s2 = int_to_ptr.vmem [resolvable:$true] %s13047_s2 }
0x14dd   : > { %14187 = vmatmul.mubr.msk.bf16.vlgmr.msra.gmra.mrb[76].mxu1 %vm19958_vm5, %v12332_v42  ;;  %11975 = vmatprep.subr.bf16.mxu0 %v16264_v40  ;;  %v16322_v40 = vld [vmem:[%s16820_s14 + $0x8] sm:$0xff]   ;;  %v16325_v42 = vld [vmem:[%s16820_s14 + $0x58] sm:$0xff]   ;;  %vm19971_vm5 = vmmov %vm19970_vm3  ;;  %s16467_s5 = scalar_lea.vmem %s19395_s2, 16  ;;  %p16474_p8 = scmp.lt.s32.totalorder %s19395_s2, %s16472_s0 }
0x14de   : > { %12575 = vmatpush1.bf16.msra.mxu1 %v16259_v15  ;;  %12606 = vmatprep.mubr.bf16.mxu1 %v19673_v7  ;;  %v16323_v15 = vld [vmem:[%s16820_s14 + $0x50] sm:$0xff]   ;;  %p16468_p6 = scmp.ne.s32.totalorder %s19395_s2, %s16467_s5  ;;  %p16475_p11 = scmp.lt.s32.totalorder %s16473_s8, %s16467_s5 }
0x14df   : > { %14100 = vmatmul.mubr.msk.bf16.vlgmr.msra.gmra.mrb[136].mxu0 %vm19959_vm8, %v11721_v13  ;;  %12576 = vmatprep.subr.bf16.mxu1 %v16267_v60  ;;  %v16326_v60 = vld [vmem:[%s16820_s14 + $0x18] sm:$0xff]   ;;  %v16331_v13 = vld [vmem:[%s16820_s14 + $0x70] sm:$0xff]  }
0x14e0   : > { %11976 = vmatpush1.bf16.msra.mxu0 %v16262_v22  ;;  %12007 = vmatprep.mubr.bf16.mxu0 %v19673_v7  ;;  %v16327_v22 = vld [vmem:[%s16820_s14 + $0x60] sm:$0xff]   ;;  %p16469_p10 = pnand %p16468_p6, %p19972_p9  ;;  %p16476_p13 = por %p16475_p11, %p16474_p8 }
0x14e1   : > { %11977 = vmatprep.subr.bf16.mxu0 %v16270_v39  ;;  %v16329_v39 = vld [vmem:[%s16820_s14 + $0x68] sm:$0xff]  }
0x14e2   : > { %12577 = vmatpush1.bf16.msra.mxu1 %v16265_v36  ;;  %v16332_v36 = vld [vmem:[%s16820_s14 + $0x30] sm:$0xff]   ;;  %p16470_p7 = pneg %p16469_p10 }
0x14e3   : > { %12578 = vmatprep.subr.bf16.mxu1 %v16273_v16  ;;  %v16333_v16 = vld [vmem:[%s16820_s14 + $0x78] sm:$0xff]  }
0x14e4   : > { %11978 = vmatpush1.bf16.msra.mxu0 %v16268_v0  ;;  %v16334_v0 = vld [vmem:[%s16820_s14 + $0x38] sm:$0xff]   ;;  %p16477_p1 = pnand %p16476_p13, %p16470_p7 }
0x14e5   : > { %11979 = vmatprep.subr.bf16.mxu0 %v16276_v62  ;;  %v16335_v62 = vld [vmem:[%s16820_s14 + $0xc0] sm:$0xff]  }
0x14e6   : > { %12579 = vmatpush1.bf16.msra.mxu1 %v16271_v4  ;;  %v16337_v4 = vld [vmem:[%s16820_s14 + $0xc8] sm:$0xff]  }
0x14e7   : > { %12580 = vmatprep.subr.bf16.mxu1 %v16279_v50  ;;  %v16338_v50 = vld [vmem:[%s16820_s14 + $0x88] sm:$0xff]  }
0x14e8   : > { %11980 = vmatpush1.bf16.msra.mxu0 %v16274_v29  ;;  %v16340_v29 = vld [vmem:[%s16820_s14 + $0x90] sm:$0xff]  }
0x14e9   : > { %11981 = vmatprep.subr.bf16.mxu0 %v16282_v11  ;;  %v16341_v11 = vld [vmem:[%s16820_s14 + $0xd8] sm:$0xff]  }
0x14ea   : > { %12581 = vmatpush1.bf16.msra.mxu1 %v16277_v53  ;;  %v16342_v53 = vld [vmem:[%s16820_s14 + $0x98] sm:$0xff]  }
0x14eb   : > { %14680 = vmatprep.subr.bf16.mxu1 %v16335_v62 }
0x14ec   : > { %11982 = vmatpush1.bf16.msra.mxu0 %v16280_v14  ;;  %v16343_v14 = vld [vmem:[%s16820_s14 + $0xe0] sm:$0xff]  }
0x14ed   : > { %14221 = vmatmul.mubr.msk.bf16.vlgmr.msra.gmra.mrb[80].mxu1 %vm19960_vm11, %v12530_v57  ;;  %12078 = vmatprep.subr.bf16.mxu0 %v16285_v41  ;;  %v16344_v41 = vld [vmem:[%s16820_s14 + $0xa0] sm:$0xff]   ;;  %v12622_v57 = vrot.slane %v19366_v43, %v18242_v28  ;;  %v16349_v28 = vld [vmem:[%s16820_s14 + $0xf8] sm:$0xff]  }
0x14ee   : > { %14681 = vmatpush3.bf16.msra.mxu1 %v16336_v10 }
0x14ef   : > { %14118 = vmatmul.mubr.msk.bf16.vlgmr.msra.gmra.mrb[140].mxu0 %vm19961_vm0, %v11931_v17  ;;  %14682 = vmatprep.subr.bf16.mxu1 %v16337_v4  ;;  %v16346_v17 = vld [vmem:[%s16820_s14 + $0xa8] sm:$0xff]  }
0x14f0   : > { %12079 = vmatpush1.bf16.msra.mxu0 %v16283_v21  ;;  %12110 = vmatprep.mubr.bf16.mxu0 %v19673_v7  ;;  %v12626_v21 = vrot.slane %v19366_v43, %v18286_v61 }
0x14f1   : > { %12080 = vmatprep.subr.bf16.mxu0 %v16288_v56 }
0x14f2   : > { %14683 = vmatpush3.bf16.msra.mxu1 %v16338_v50 }
0x14f3   : > { %14684 = vmatprep.subr.bf16.mxu1 %v16339_v48 }
0x14f4   : > { %12081 = vmatpush1.bf16.msra.mxu0 %v16286_v47  ;;  %v16347_v47 = vld [vmem:[%s16820_s14 + $0xf0] sm:$0xff]  }
0x14f5   : > { %12082 = vmatprep.subr.bf16.mxu0 %v16291_v49 }
0x14f6   : > { %14685 = vmatpush3.bf16.msra.mxu1 %v16340_v29 }
0x14f7   : > { %14686 = vmatprep.subr.bf16.mxu1 %v16341_v11 }
0x14f8   : > { %12083 = vmatpush1.bf16.msra.mxu0 %v16289_v30 }
0x14f9   : > { %12084 = vmatprep.subr.bf16.mxu0 %v16294_v20 }
0x14fa   : > { %14687 = vmatpush3.bf16.msra.mxu1 %v16342_v53 }
0x14fb   : > { %14688 = vmatprep.subr.bf16.mxu1 %v16343_v14 }
0x14fc   : > { %12085 = vmatpush1.bf16.msra.mxu0 %v16292_v55 }
0x14fd   : > { %12276 = vmatprep.subr.bf16.mxu0 %v16297_v37 }
0x14fe   : > { %14689 = vmatpush3.bf16.msra.mxu1 %v16344_v41 }
0x14ff   : > { %14136 = vmatmul.mubr.msk.bf16.vlgmr.msra.gmra.mrb[144].mxu0 %vm19962_vm10, %v12034_v1  ;;  %14690 = vmatprep.subr.bf16.mxu1 %v16345_v24 }
0x1500   : > { %12277 = vmatpush1.bf16.msra.mxu0 %v16295_v46  ;;  %12308 = vmatprep.mubr.bf16.mxu0 %v19673_v7 }
0x1501   : > { %12278 = vmatprep.subr.bf16.mxu0 %v16300_v19 }
0x1502   : > { %14691 = vmatpush3.bf16.msra.mxu1 %v16346_v17 }
0x1503   : > { %14692 = vmatprep.subr.bf16.mxu1 %v16347_v47 }
0x1504   : > { %12279 = vmatpush1.bf16.msra.mxu0 %v16298_v32 }
0x1505   : > { %12280 = vmatprep.subr.bf16.mxu0 %v16303_v52  ;;  %v16350_v52 = vld [vmem:[%s16820_s14 + $0xb8] sm:$0xff]  }
0x1506   : > { %14693 = vmatpush3.bf16.msra.mxu1 %v16348_v45 }
0x1507   : > { %14694 = vmatprep.subr.bf16.mxu1 %v16349_v28 }
0x1508   : > { %12281 = vmatpush1.bf16.msra.mxu0 %v16301_v6 }
0x1509   : > { %12282 = vmatprep.subr.bf16.mxu0 %v16306_v63 }
0x150a   : > { %14695 = vmatpush3.bf16.msra.mxu1 %v16350_v52 }
0x150c   : > { %12283 = vmatpush1.bf16.msra.mxu0 %v16304_v35 }
0x150d   : > { %12474 = vmatprep.subr.bf16.mxu0 %v16309_v27 }
0x150f   : > { %14170 = vmatmul.mubr.msk.bf16.vlgmr.msra.gmra.mrb[148].mxu0 %vm19963_vm12, %v12232_v58 }
0x1510   : > { %12475 = vmatpush1.bf16.msra.mxu0 %v16307_v18  ;;  %12506 = vmatprep.mubr.bf16.mxu0 %v19673_v7  ;;  %v16321_v7 = vld [vmem:[%s16820_s14 + $0x48] sm:$0xff]  }
0x1511   : > { %12476 = vmatprep.subr.bf16.mxu0 %v16312_v25 }
0x1514   : > { %12477 = vmatpush1.bf16.msra.mxu0 %v16310_v12 }
0x1515   : > { %12478 = vmatprep.subr.bf16.mxu0 %v16315_v26 }
0x1518   : > { %12479 = vmatpush1.bf16.msra.mxu0 %v16313_v8 }
0x1519   : > { %12480 = vmatprep.subr.bf16.mxu0 %v16318_v31 }
0x151c   : > { %12481 = vmatpush1.bf16.msra.mxu0 %v16316_v23 }
0x151d   : > { %14658 = vmatprep.subr.bf16.mxu0 %v16319_v59 }
0x151f   : > { %14204 = vmatmul.mubr.msk.bf16.vlgmr.msra.gmra.mrb[152].mxu0 %vm19964_vm9, %v19246_v54  ;;  %v16328_v54 = vld [vmem:[%s16820_s14 + $0x20] sm:$0xff]  }
0x1520   : > { %14659 = vmatpush3.bf16.msra.mxu0 %v16320_v38 }
0x1521   : > { %14660 = vmatprep.subr.bf16.mxu0 %v16321_v7 }
0x1524   : > { %14661 = vmatpush3.bf16.msra.mxu0 %v16322_v40 }
0x1525   : > { %14662 = vmatprep.subr.bf16.mxu0 %v16323_v15 }
0x1528   : > { %14663 = vmatpush3.bf16.msra.mxu0 %v16324_v34 }
0x1529   : > { %14664 = vmatprep.subr.bf16.mxu0 %v16325_v42 }
0x152c   : > { %14665 = vmatpush3.bf16.msra.mxu0 %v16326_v60 }
0x152d   : > { %14666 = vmatprep.subr.bf16.mxu0 %v16327_v22 }
0x1530   : > { %14667 = vmatpush3.bf16.msra.mxu0 %v16328_v54 }
0x1531   : > { %14668 = vmatprep.subr.bf16.mxu0 %v16329_v39 }
0x1534   : > { %14669 = vmatpush3.bf16.msra.mxu0 %v16330_v9 }
0x1535   : > { %14670 = vmatprep.subr.bf16.mxu0 %v16331_v13 }
0x1538   : > { %14671 = vmatpush3.bf16.msra.mxu0 %v16332_v36 }
0x1539   : > { %14672 = vmatprep.subr.bf16.mxu0 %v16333_v16 }
0x153c   : > { %14673 = vmatpush3.bf16.msra.mxu0 %v16334_v0 }
0x1592   : > { %v11685_v56 = vpop.f32.mrb[128].mxu0 }
0x1593   : > { %v12639_v49 = vadd.f32 %v12622_v57, %v11685_v56  ;;  %v11687_v2 = vpop.f32.mrb[129].mxu0 }
0x1594   : > { %v12640_v30 = vadd.f32 %v12626_v21, %v11687_v2  ;;  %v11689_v20 = vpop.f32.mrb[130].mxu0 }
0x1595   : > { %v12643_v55 = vmax.f32 %v12639_v49, 0.0  ;;  %v11690_v37 = vpop.f32.mrb[131].mxu0 }
0x1596   : > { %v12644_v46 = vmax.f32 %v12640_v30, 0.0 }
0x1597   : > { %v12647_v61 = vsel %vm19966_vm7, %v12643_v55, 0.0 }
0x1598   : > { %v12648_v1 = vrot.slane %v12647_v61, 4  ;;  %v12654_v19 = vsel %vm19967_vm14, %v12644_v46, 0.0 }
0x1599   : > { %v12655_v32 = vrot.slane %v12654_v19, 4 }
0x159a   : > { %v12649_v44 = vadd.f32 %v12648_v1, %v12647_v61 }
0x159b   : > { %v12656_v6 = vadd.f32 %v12655_v32, %v12654_v19 }
0x159c   : > { %v12650_v63 = vrot.slane %v12649_v44, 2 }
0x159d   : > { %v12657_v35 = vrot.slane %v12656_v6, 2 }
0x159e   : > { %v12651_v27 = vadd.f32 %v12650_v63, %v12649_v44  ;;  %v12630_v44 = vrot.slane %v19366_v43, %v18739_v3 }
0x159f   : > { %v12658_v5 = vadd.f32 %v12657_v35, %v12656_v6  ;;  %v12634_v35 = vrot.slane %v19366_v43, %v11121_v51 }
0x15a0   : > { %v12652_v18 = vrot.slane %v12651_v27, 1  ;;  %v12210_v58 = vpop.f32.mrb[72].mxu1 }
0x15a1   : > { %v12212_v25 = vpop.f32.mrb[73].mxu1  ;;  %v12659_v12 = vrot.slane %v12658_v5, 1 }
0x15a2   : > { %v12653_v26 = vadd.f32 %v12652_v18, %v12651_v27  ;;  %v11823_v8 = vpop.f32.mrb[132].mxu0  ;;  %v12214_v31 = vpop.f32.mrb[74].mxu1 }
0x15a3   : > { %v11825_v23 = vpop.f32.mrb[133].mxu0  ;;  %v12215_v59 = vpop.f32.mrb[75].mxu1  ;;  %v12660_v38 = vadd.f32 %v12659_v12, %v12658_v5 }
0x15a4   : > { %v11827_v7 = vpop.f32.mrb[134].mxu0  ;;  %v12675_v40 = vmul.f32 0.25, %v12653_v26 }
0x15a5   : > { %v11828_v15 = vpop.f32.mrb[135].mxu0  ;;  %v12676_v34 = vmul.f32 0.25, %v12660_v38 }
0x15a6   : > { %v12679_v60 = vpack.c.bf16 %v12675_v40, %v12675_v40 }
0x15a7   : > { %v12680_v42 = vpack.c.bf16 %v12676_v34, %v12676_v34 }
0x15a9   : > { %12972 = vmatprep.mubr.bf16.mxu0 %v12680_v42 }
0x15aa   : > { %12973 = vmatmul.mubr.bf16.vlgmr.msra.gmra.mrb[156].mxu0 %v12679_v60 }
0x15b0   : > { %v12410_v22 = vpop.f32.mrb[76].mxu1 }
0x15b1   : > { %v12412_v54 = vpop.f32.mrb[77].mxu1 }
0x15b2   : > { %v11907_v39 = vpop.f32.mrb[136].mxu0  ;;  %v12414_v9 = vpop.f32.mrb[78].mxu1 }
0x15b3   : > { %v11908_v13 = vadd.f32 %v11907_v39, %v11823_v8  ;;  %v11909_v36 = vpop.f32.mrb[137].mxu0  ;;  %v12415_v16 = vpop.f32.mrb[79].mxu1 }
0x15b4   : > { %v11910_v0 = vadd.f32 %v11909_v36, %v11825_v23  ;;  %v11911_v62 = vpop.f32.mrb[138].mxu0 }
0x15b5   : > { %v11912_v10 = vpop.f32.mrb[139].mxu0 }
0x15b6   : > { %v12747_v10 = vld [vmem:[#allocation8] sm:$0x1] }
0x15c0   : > { %v12608_v4 = vpop.f32.mrb[80].mxu1 }
0x15c1   : > { %v12610_v50 = vpop.f32.mrb[81].mxu1 }
0x15c2   : > { %v12009_v48 = vpop.f32.mrb[140].mxu0  ;;  %v12612_v29 = vpop.f32.mrb[82].mxu1 }
0x15c3   : > { %v12016_v11 = vadd.f32 %v12009_v48, %v11908_v13  ;;  %v12011_v53 = vpop.f32.mrb[141].mxu0  ;;  %v12613_v14 = vpop.f32.mrb[83].mxu1 }
0x15c4   : > { %v12017_v41 = vadd.f32 %v12011_v53, %v11910_v0  ;;  %v12013_v24 = vpop.f32.mrb[142].mxu0 }
0x15c5   : > { %v12014_v57 = vpop.f32.mrb[143].mxu0 }
0x15d2   : > { %v12112_v21 = vpop.f32.mrb[144].mxu0 }
0x15d3   : > { %v12119_v17 = vadd.f32 %v12112_v21, %v12016_v11  ;;  %v12114_v56 = vpop.f32.mrb[145].mxu0 }
0x15d4   : > { %v12120_v47 = vadd.f32 %v12114_v56, %v12017_v41  ;;  %v12116_v49 = vpop.f32.mrb[146].mxu0 }
0x15d5   : > { %v12117_v2 = vpop.f32.mrb[147].mxu0  ;;  %v12217_v30 = vadd.f32 %v12210_v58, %v12119_v17 }
0x15d6   : > { %v12218_v20 = vadd.f32 %v12212_v25, %v12120_v47 }
0x15e2   : > { %v12310_v55 = vpop.f32.mrb[148].mxu0 }
0x15e3   : > { %v12317_v37 = vadd.f32 %v12310_v55, %v12217_v30  ;;  %v12312_v45 = vpop.f32.mrb[149].mxu0 }
0x15e4   : > { %v12318_v46 = vadd.f32 %v12312_v45, %v12218_v20  ;;  %v12314_v28 = vpop.f32.mrb[150].mxu0 }
0x15e5   : > { %v12315_v61 = vpop.f32.mrb[151].mxu0  ;;  %v12417_v1 = vadd.f32 %v12410_v22, %v12317_v37 }
0x15e6   : > { %v12418_v19 = vadd.f32 %v12412_v54, %v12318_v46 }
0x15f2   : > { %v12508_v32 = vpop.f32.mrb[152].mxu0 }
0x15f3   : > { %v12515_v52 = vadd.f32 %v12508_v32, %v12417_v1  ;;  %v12510_v6 = vpop.f32.mrb[153].mxu0 }
0x15f4   : > { %v12516_v63 = vadd.f32 %v12510_v6, %v12418_v19  ;;  %v12512_v27 = vpop.f32.mrb[154].mxu0 }
0x15f5   : > { %v12615_v5 = vadd.f32 %v12608_v4, %v12515_v52  ;;  %v12513_v18 = vpop.f32.mrb[155].mxu0 }
0x15f6   : > { %v12616_v58 = vadd.f32 %v12610_v50, %v12516_v63 }
0x15f7   : > { %v12641_v25 = vadd.f32 %v12630_v44, %v12615_v5 }
0x15f8   : > { %v12642_v12 = vadd.f32 %v12634_v35, %v12616_v58 }
0x15f9   : > { %v12645_v26 = vmax.f32 %v12641_v25, 0.0 }
0x15fa   : > { %v12646_v8 = vmax.f32 %v12642_v12, 0.0 }
0x15fb   : > { %v12661_v31 = vsel %vm19968_vm6, %v12645_v26, 0.0 }
0x15fc   : > { %v12662_v23 = vrot.slane %v12661_v31, 4  ;;  %v12668_v59 = vsel %vm19969_vm15, %v12646_v8, 0.0 }
0x15fd   : > { %v12669_v3 = vrot.slane %v12668_v59, 4 }
0x15fe   : > { %v12663_v38 = vadd.f32 %v12662_v23, %v12661_v31 }
0x15ff   : > { %v12670_v7 = vadd.f32 %v12669_v3, %v12668_v59 }
0x1600   : > { %v12664_v40 = vrot.slane %v12663_v38, 2 }
0x1601   : > { %v12671_v33 = vrot.slane %v12670_v7, 2 }
0x1602   : > { %v12665_v15 = vadd.f32 %v12664_v40, %v12663_v38 }
0x1603   : > { %v12672_v51 = vadd.f32 %v12671_v33, %v12670_v7 }
0x1604   : > { %v12666_v43 = vrot.slane %v12665_v15, 1 }
0x1605   : > { %v12673_v34 = vrot.slane %v12672_v51, 1 }
0x1606   : > { %v12667_v42 = vadd.f32 %v12666_v43, %v12665_v15 }
0x1607   : > { %v12674_v60 = vadd.f32 %v12673_v34, %v12672_v51 }
0x1608   : > { %v12677_v22 = vmul.f32 0.25, %v12667_v42 }
0x1609   : > { %v12678_v54 = vmul.f32 0.25, %v12674_v60 }
0x160a   : > { %v12681_v9 = vpack.c.bf16 %v12677_v22, %v12677_v22 }
0x160b   : > { %v12682_v39 = vpack.c.bf16 %v12678_v54, %v12678_v54 }
0x160d   : > { %13012 = vmatprep.mubr.bf16.mxu1 %v12682_v39 }
0x160e   : > { %13013 = vmatmul.mubr.bf16.vlgmr.msra.gmra.mrb[84].mxu1 %v12681_v9 }
0x167d   : > { %v14674_v13 = vpop.f32.mrb[156].mxu0 }
0x167e   : > { %v14675_v36 = vpop.f32.mrb[157].mxu0 }
0x167f   : > { %v14676_v16 = vadd.f32 %v14675_v36, %v14674_v13  ;;  %v14677_v0 = vpop.f32.mrb[158].mxu0 }
0x1680   : > { %v14678_v62 = vpop.f32.mrb[159].mxu0 }
0x1681   : > { %v12975_v48 = vadd.f32 %v14676_v16, %v12747_v10 }
0x16e1   : > { %v14696_v4 = vpop.f32.mrb[84].mxu1 }
0x16e2   : > { %v14697_v50 = vpop.f32.mrb[85].mxu1 }
0x16e3   : > { %v14698_v29 = vadd.f32 %v14697_v50, %v14696_v4  ;;  %v14699_v11 = vpop.f32.mrb[86].mxu1 }
0x16e4   : > { %v14700_v53 = vpop.f32.mrb[87].mxu1 }
0x16e5   : > { %v13015_v14 = vadd.f32 %v14698_v29, %v12975_v48 }
0x16e7   : > { %v13020_v41 = vsel %vm19970_vm3, %v13015_v14, -inf }
0x16e8   : > { %13021 = vmax.xlane.f32.xlu0 %v13020_v41 }
0x1775   : > { %v13022_v24 = vpop.xlane.xlu0 %13021 }
0x1776   : > { %v13023_v57 = vsub.f32 %v13015_v14, %v13022_v24 }
0x1778   : > { %v13024_v21 = vmul.f32 1.442695, %v13023_v57 }
0x177a   : > { %16351 = vpow2.f32 %v13024_v21 }
0x1784   : > { %v16352_v17 = vpop.eup %16351 }
0x1785   : > { %v13026_v56 = vsel %vm19971_vm5, %v16352_v17, 0.0 }
0x1786   : > { %13027 = vadd.xlane.f32.xlu1 %v13026_v56 }
0x1813   : > { %v13028_v47 = vpop.xlane.xlu1 %13027 }
0x1814   : > { %16353 = vlog2.f32 %v13028_v47 }
0x181e   : > { %v16354_v49 = vpop.eup %16353 }
0x181f   : > { %v13030_v2 = vmul.f32 0.6931472, %v16354_v49 }
0x1821   : > { %v13031_v30 = vadd.f32 %v13030_v2, %v13022_v24 }
0x1823   : > { %v13032_v20 = vsub.f32 %v13015_v14, %v13031_v30 }
0x1825   : > { %13033 = vst [vmem:[%s1393_s1] sm:$0x1] %v13032_v20 }
0x1826   : > { %16480 = shalt.err (!%p16477_p1)
}
0x1827   : > { %s16481_s1 = scalar_lea.hbm %s19393_s3, 16  ;;  %s16485_s6 = scalar_lea.hbm %s16830_s20, 32 }
0x1828   : > { %p16482_p2 = scmp.ne.s32.totalorder %s19393_s3, %s16481_s1  ;;  %p16486_p4 = scmp.lt.u32.totalorder %s19393_s3, %s16830_s20 }
0x1829   : > { %p16487_p12 = scmp.lt.u32.totalorder %s16485_s6, %s16481_s1  ;;  %p16489_p6 = scmp.lt.u32.totalorder %s16481_s1, %s19393_s3 }
0x182a   : > { %p16483_p0 = pnand %p16482_p2, %p19972_p9 }
0x182b   : > { %p16488_p5 = por %p16487_p12, %p16486_p4 }
0x182c   : > { %p16484_p3 = pneg %p16483_p0 }
0x182d   : > { %p16490_p10 = por %p16489_p6, %p16488_p5 }
0x182f   : > { %p16491_p7 = pnand %p16490_p10, %p16484_p3 }
0x1831   : > { %16494 = shalt.err (!%p16491_p7)
}
0x1832   : > { %15566 = dma.vmem_to_hbm [thread:$0]  (%p19972_p9), %s19395_s2, 16, %s19393_s3, %s13035_s4  }
0x1833 PF: > { %s19973_s5 = sld [smem:[#allocation48_spill]]  ;;  %s19974_s8 = sld [smem:[#allocation52_spill]] }
0x1834   : > { %p15593_p8 = scmp.ge.s32.totalorder %s16541_s15, 2 }
0x1839   : > { %s13059_s7 = sand.u32 1, %s19973_s5   ;;  %p19975_p11 = scmp.ne.s32.totalorder %s19974_s8, 0 }
0x183a   : > { %s13060_s11 = scalar_lea.sflag [#allocation4], %s13059_s7 }
0x183b   : > { %p15582_p13 = pnand %p15593_p8, %p19975_p11 }
0x183d   : > { %16524 = dma.done.wait (!%p15582_p13), %s13060_s11, 16  }
0x183e   : > { %16526 = vsyncadd (!%p15582_p13), %s13060_s11, 4294967280  ;;  %s19976_s15 = sld [smem:[#allocation50_spill]]  ;;  %s19977_s0 = sld [smem:[#allocation49_spill]] }
0x183f   : > { %s19978_s11 = sld [smem:[#allocation51_spill]]  ;;  %s19979_s7 = smov %s16533_s10 }
0x1844   : > { %p104_p1 = scmp.ge.s32.totalorder %s19976_s15, 4   ;;  %s19980_s10 = smov %s19977_s0 }
0x1846   :  { %106 = sbr.rel (!%p104_p1) target bundleno = 92 (0x5c), region = 361 }
0x184d   :  { %13064 = vsyncpa [#allocation3], 1 }
0x184e   :  { %13066 = vsyncpa [#allocation3 + $0x1], 1 }
0x184f   :  { %13067 = vsyncpa [#allocation6], 1 }
0x1850   :  { %13068 = vsyncpa [#allocation9], 1 }
0x1851   :  { %13069 = vsyncpa [#allocation4], 1 }
0x1852   :  { %13071 = vsyncpa [#allocation4 + $0x1], 1 }

</bundles_post_ra>
